<compile_context>
chip_gen: v7x
topology: tpu7x:2x2x1
jax: 0.10.0
libtpu: 0.0.40
codegen_flags: <defaults>
</compile_context>

<pallas_src>
import functools

import jax
import jax.numpy as jnp
from jax.experimental import pallas as pl
from jax.experimental.pallas import tpu as pltpu

_BN_EPS = 1e-5


# ----------------------------------------------------------------------------
# Generation-dependent budgets (review: don't force the v7x limits onto v5e/v6e)
# ----------------------------------------------------------------------------
def _tpu_budget():
    vmem_cap = 64 * 1024 * 1024
    try:
        info = pltpu.get_tpu_info()
        vmem_cap = int(getattr(info, "vmem_capacity_bytes", vmem_cap))
    except Exception:
        pass
    if vmem_cap >= 100 * 1024 * 1024:          # v5e / v6e: 128 MiB physical VMEM
        return 96 * 1024 * 1024, 1024
    return 32 * 1024 * 1024, 512               # v7x-class: 64 MiB physical VMEM


_VMEM_LIMIT, _TP_MAX = _tpu_budget()


# ----------------------------------------------------------------------------
# Small helpers
# ----------------------------------------------------------------------------
def _round_up(x, m):
    return (x + m - 1) // m * m


def _row_tiling(p):
    """Row tile (multiple of 8) and padded row count (multiple of the tile)."""
    tp = min(_TP_MAX, _round_up(p, 8))
    return tp, _round_up(p, tp)


def _pad_rows(x, p_pad):
    p = x.shape[0]
    if p == p_pad:
        return x
    return jnp.pad(x, ((0, p_pad - p), (0, 0)))


def _elu(y):
    # exp(min(y, 0)) keeps the discarded branch of jnp.where finite for large positive y.
    return jnp.where(y > 0, y, jnp.exp(jnp.minimum(y, 0.0)) - 1.0)


def _fused_fits(p_pad, tp, k, g, c):
    """Can the pre-BN activations stay VMEM-resident for the fused two-phase kernel?"""
    y_resident = g * p_pad * c * 4                 # f32 scratch, whole slab
    x_stream = 2 * tp * k * 2                      # double-buffered bf16 input tile
    w_resident = 2 * g * k * c * 2                 # (double-buffered) bf16 weights
    o_stream = 2 * g * tp * c * 2                  # double-buffered bf16 output tile
    misc = 8 * c * 4
    return (y_resident + x_stream + w_resident + o_stream + misc) <= _VMEM_LIMIT // 2


# ----------------------------------------------------------------------------
# Fused conv/convT + BatchNorm(train) + ELU kernel (two-phase grid)
# ----------------------------------------------------------------------------
def _fused_conv_bn_elu_kernel(p_valid, tp, groups, count, needs_mask,
                              x_ref, w_ref, gamma_ref, beta_ref, o_ref,
                              y_sc, sum_sc, sq_sc, scale_sc, shift_sc):
    """grid = (2, n_tiles).  Phase 0: y = x @ w[t] (bf16 MXU, f32 acc) stored to VMEM
    scratch + per-channel sum/sumsq accumulation.  Phase boundary: scale/shift from the
    moments.  Phase 1: o = ELU(y * scale + shift) streamed to HBM (bf16)."""
    ph = pl.program_id(0)
    i = pl.program_id(1)
    inv_count = 1.0 / count

    @pl.when(ph == 0)
    def _matmul_and_stats():
        @pl.when(i == 0)
        def _init():
            sum_sc[...] = jnp.zeros_like(sum_sc)
            sq_sc[...] = jnp.zeros_like(sq_sc)

        x = x_ref[...]
        if x.dtype != jnp.bfloat16:
            x = x.astype(jnp.bfloat16)
        row0 = pl.multiple_of(i * tp, tp)
        if needs_mask:  # static: only emitted when rows were padded
            rows = jax.lax.broadcasted_iota(jnp.int32, (tp, 1), 0) + i * tp
            valid = rows < p_valid
        for t in range(groups):
            y = jnp.dot(x, w_ref[t], preferred_element_type=jnp.float32)
            y_sc[t, pl.ds(row0, tp), :] = y
            if needs_mask:
                y = jnp.where(valid, y, 0.0)
            sum_sc[...] += jnp.sum(y, axis=0, keepdims=True)
            sq_sc[...] += jnp.sum(y * y, axis=0, keepdims=True)

    @pl.when((ph == 1) & (i == 0))
    def _fold_moments():
        mean = sum_sc[...] * inv_count
        var = jnp.maximum(sq_sc[...] * inv_count - mean * mean, 0.0)  # biased variance
        scale = gamma_ref[...] * jax.lax.rsqrt(var + _BN_EPS)
        scale_sc[...] = scale
        shift_sc[...] = beta_ref[...] - mean * scale

    @pl.when(ph == 1)
    def _apply_bn_elu():
        row0 = pl.multiple_of(i * tp, tp)
        scale = scale_sc[...]
        shift = shift_sc[...]
        for t in range(groups):
            y = y_sc[t, pl.ds(row0, tp), :]
            o_ref[t] = _elu(y * scale + shift).astype(o_ref.dtype)


def _conv_bn_elu_fused(x2d, w_gkc, gamma, beta, count, tp, p_pad,
                       out_dtype=jnp.bfloat16):
    """x2d: (P, K) bf16; w_gkc: (G, K, C) bf16; gamma/beta: (C,) f32 -> (G, P, C)."""
    p, k = x2d.shape
    g, _, c = w_gkc.shape
    xp = _pad_rows(x2d, p_pad)
    kernel = functools.partial(_fused_conv_bn_elu_kernel,
                               p, tp, g, float(count), p_pad != p)
    out = pl.pallas_call(
        kernel,
        out_shape=jax.ShapeDtypeStruct((g, p_pad, c), out_dtype),
        grid=(2, p_pad // tp),
        in_specs=[
            # Phase 1 pins x to block 0 so the cols slab is only streamed once (phase 0).
            pl.BlockSpec((tp, k), lambda ph, i: (i * (1 - ph), 0)),
            pl.BlockSpec((g, k, c), lambda ph, i: (0, 0, 0)),
            pl.BlockSpec((1, c), lambda ph, i: (0, 0)),
            pl.BlockSpec((1, c), lambda ph, i: (0, 0)),
        ],
        # Output blocks are only produced in phase 1; during phase 0 the map pins block 0
        # so nothing gets written back to HBM until the BN-apply phase.
        out_specs=pl.BlockSpec((g, tp, c), lambda ph, i: (0, i * ph, 0)),
        scratch_shapes=[
            pltpu.VMEM((g, p_pad, c), jnp.float32),   # VMEM-resident pre-BN activations
            pltpu.VMEM((1, c), jnp.float32),          # per-channel sum
            pltpu.VMEM((1, c), jnp.float32),          # per-channel sum of squares
            pltpu.VMEM((1, c), jnp.float32),          # BN scale
            pltpu.VMEM((1, c), jnp.float32),          # BN shift
        ],
        compiler_params=pltpu.CompilerParams(
            dimension_semantics=("arbitrary", "arbitrary"),
            vmem_limit_bytes=_VMEM_LIMIT),
    )(xp, w_gkc,
      gamma.reshape(1, c).astype(jnp.float32),
      beta.reshape(1, c).astype(jnp.float32))
    return out[:, :p, :]


# ----------------------------------------------------------------------------
# Fallback (large-footprint) path: two pallas_calls with a bf16 intermediate
# ----------------------------------------------------------------------------
def _matmul_stats_kernel(p_valid, tp, needs_mask, x_ref, w_ref, y_ref, sum_ref, sq_ref):
    i = pl.program_id(0)
    x = x_ref[...]
    if x.dtype != jnp.bfloat16:
        x = x.astype(jnp.bfloat16)
    y = jnp.dot(x, w_ref[...], preferred_element_type=jnp.float32)
    y_ref[...] = y.astype(y_ref.dtype)       # bf16 store: halves the HBM round trip

    @pl.when(i == 0)
    def _():
        sum_ref[...] = jnp.zeros_like(sum_ref)
        sq_ref[...] = jnp.zeros_like(sq_ref)

    if needs_mask:
        rows = jax.lax.broadcasted_iota(jnp.int32, (tp, 1), 0) + i * tp
        y = jnp.where(rows < p_valid, y, 0.0)
    sum_ref[...] += jnp.sum(y, axis=0, keepdims=True)
    sq_ref[...] += jnp.sum(y * y, axis=0, keepdims=True)


def _scale_shift_elu_kernel(x_ref, scale_ref, shift_ref, o_ref):
    t = x_ref[...].astype(jnp.float32) * scale_ref[...] + shift_ref[...]
    o_ref[...] = _elu(t).astype(o_ref.dtype)


def _matmul_stats(xp, w, tp, p_valid, p_pad):
    _, k = xp.shape
    c = w.shape[1]
    kernel = functools.partial(_matmul_stats_kernel, p_valid, tp, p_pad != p_valid)
    return pl.pallas_call(
        kernel,
        out_shape=(jax.ShapeDtypeStruct((p_pad, c), jnp.bfloat16),
                   jax.ShapeDtypeStruct((1, c), jnp.float32),
                   jax.ShapeDtypeStruct((1, c), jnp.float32)),
        grid=(p_pad // tp,),
        in_specs=[pl.BlockSpec((tp, k), lambda i: (i, 0)),
                  pl.BlockSpec((k, c), lambda i: (0, 0))],
        out_specs=(pl.BlockSpec((tp, c), lambda i: (i, 0)),
                   pl.BlockSpec((1, c), lambda i: (0, 0)),
                   pl.BlockSpec((1, c), lambda i: (0, 0))),
        compiler_params=pltpu.CompilerParams(
            dimension_semantics=("arbitrary",),
            vmem_limit_bytes=_VMEM_LIMIT),
    )(xp, w)


def _bn_elu_apply(y_pad, scale, shift, tp, out_dtype=jnp.bfloat16):
    p_pad, c = y_pad.shape
    return pl.pallas_call(
        _scale_shift_elu_kernel,
        out_shape=jax.ShapeDtypeStruct((p_pad, c), out_dtype),
        grid=(p_pad // tp,),
        in_specs=[pl.BlockSpec((tp, c), lambda i: (i, 0)),
                  pl.BlockSpec((1, c), lambda i: (0, 0)),
                  pl.BlockSpec((1, c), lambda i: (0, 0))],
        out_specs=pl.BlockSpec((tp, c), lambda i: (i, 0)),
        compiler_params=pltpu.CompilerParams(
            dimension_semantics=("parallel",),
            vmem_limit_bytes=_VMEM_LIMIT),
    )(y_pad, scale, shift)


def _bn_scale_shift(s, sq, gamma, beta, count, groups):
    cout = gamma.shape[0]
    s_c = s.reshape(groups, cout).sum(0)
    sq_c = sq.reshape(groups, cout).sum(0)
    mean = s_c / count
    var = jnp.maximum(sq_c / count - mean * mean, 0.0)
    scale = gamma * jax.lax.rsqrt(var + _BN_EPS)
    shift = beta - mean * scale
    return (jnp.tile(scale, groups).reshape(1, groups * cout),
            jnp.tile(shift, groups).reshape(1, groups * cout))


def _conv_bn_core_fallback(x2d, w_gkc, gamma, beta, count, tp, p_pad):
    p = x2d.shape[0]
    g, k, c = w_gkc.shape
    w2d = jnp.transpose(w_gkc, (1, 0, 2)).reshape(k, g * c)   # tap-major columns
    y_pad, s, sq = _matmul_stats(_pad_rows(x2d, p_pad), w2d, tp, p, p_pad)
    scale, shift = _bn_scale_shift(s, sq, gamma, beta, float(count), g)
    out = _bn_elu_apply(y_pad, scale, shift, tp)[:p]           # (P, G*C)
    return jnp.transpose(out.reshape(p, g, c), (1, 0, 2))      # (G, P, C)


def _conv_bn_core(x2d, w_gkc, gamma, beta, count):
    """Dispatch: fused single-call kernel when the pre-BN slab fits VMEM, else 2-call."""
    p, k = x2d.shape
    g, _, c = w_gkc.shape
    tp, p_pad = _row_tiling(p)
    if _fused_fits(p_pad, tp, k, g, c):
        return _conv_bn_elu_fused(x2d, w_gkc, gamma, beta, count, tp, p_pad)
    return _conv_bn_core_fallback(x2d, w_gkc, gamma, beta, count, tp, p_pad)


# ----------------------------------------------------------------------------
# Plain matmul + bias kernel (classifier conv, large-batch FC)
# ----------------------------------------------------------------------------
def _matmul_bias_kernel(apply_elu, x_ref, w_ref, b_ref, o_ref):
    x = x_ref[...]
    if x.dtype != jnp.bfloat16:
        x = x.astype(jnp.bfloat16)
    y = jnp.dot(x, w_ref[...], preferred_element_type=jnp.float32) + b_ref[...]
    if apply_elu:
        y = _elu(y)
    o_ref[...] = y.astype(o_ref.dtype)


def _matmul_bias(x, w, b, apply_elu=False, out_dtype=jnp.float32):
    p, k = x.shape
    c = w.shape[1]
    tp, p_pad = _row_tiling(p)
    xp = _pad_rows(x, p_pad)
    out = pl.pallas_call(
        functools.partial(_matmul_bias_kernel, apply_elu),
        out_shape=jax.ShapeDtypeStruct((p_pad, c), out_dtype),
        grid=(p_pad // tp,),
        in_specs=[pl.BlockSpec((tp, k), lambda i: (i, 0)),
                  pl.BlockSpec((k, c), lambda i: (0, 0)),
                  pl.BlockSpec((1, c), lambda i: (0, 0))],
        out_specs=pl.BlockSpec((tp, c), lambda i: (i, 0)),
        compiler_params=pltpu.CompilerParams(
            dimension_semantics=("parallel",),
            vmem_limit_bytes=_VMEM_LIMIT),
    )(xp, w, b)
    return out[:p]


def _dense(x2d, prm, apply_elu, out_dtype):
    # Review: at tiny batch the Pallas launch overhead dominates -> plain XLA dot.
    if x2d.shape[0] < 128:
        y = jnp.dot(x2d.astype(jnp.bfloat16), prm["w"],
                    preferred_element_type=jnp.float32) + prm["b"]
        if apply_elu:
            y = _elu(y)
        return y.astype(out_dtype)
    return _matmul_bias(x2d, prm["w"], prm["b"], apply_elu=apply_elu, out_dtype=out_dtype)


# ----------------------------------------------------------------------------
# Layer wrappers (XLA glue: patch extraction, tap de-interleave, reshapes)
# ----------------------------------------------------------------------------
def _im2col_3x3(x_nhwc, stride):
    """3x3 SAME-padded patch extraction -> (N*Ho*Wo, 9*C), tap-major / channel-minor."""
    n, h, w, c = x_nhwc.shape
    xp = jnp.pad(x_nhwc, ((0, 0), (1, 1), (1, 1), (0, 0)))
    ho = (h + 2 - 3) // stride + 1
    wo = (w + 2 - 3) // stride + 1
    pats = []
    for ky in range(3):
        for kx in range(3):
            pats.append(xp[:, ky:ky + stride * (ho - 1) + 1:stride,
                           kx:kx + stride * (wo - 1) + 1:stride, :])
    p = jnp.stack(pats, axis=3)                          # (N, Ho, Wo, 9, C)
    return p.reshape(n * ho * wo, 9 * c), (n, ho, wo)


def conv3x3_bn_elu(x_nhwc, prm, stride):
    cols, (n, ho, wo) = _im2col_3x3(x_nhwc, stride)
    cout = prm["gamma"].shape[0]
    p = cols.shape[0]
    out = _conv_bn_core(cols, prm["w"], prm["gamma"], prm["beta"], count=p)  # (1, P, C)
    return out[0].reshape(n, ho, wo, cout)


def conv_transpose2x2_bn_elu(x_nhwc, prm):
    """convT(k=2, s=2) + BN + ELU; taps live on the leading G=4 axis of the kernel out."""
    n, h, w, cin = x_nhwc.shape
    cout = prm["gamma"].shape[0]
    p = n * h * w
    xr = x_nhwc.reshape(p, cin)
    # BN stats are per output channel over N*2H*2W = 4*P samples (pooled across taps).
    out = _conv_bn_core(xr, prm["w"], prm["gamma"], prm["beta"], count=4 * p)  # (4, P, C)
    # tap t = ky*2 + kx -> output offset (ky, kx); kernel_size == stride so no overlap.
    out = out.reshape(2, 2, n, h, w, cout).transpose(2, 3, 0, 4, 1, 5)
    return out.reshape(n, 2 * h, 2 * w, cout)


def conv3x3_plain(x_nhwc, prm):
    cols, (n, ho, wo) = _im2col_3x3(x_nhwc, 1)
    cout = prm["b"].shape[1]
    out = _matmul_bias(cols, prm["w"], prm["b"], apply_elu=False, out_dtype=jnp.float32)
    return out.reshape(n, ho, wo, cout)


# ----------------------------------------------------------------------------
# Parameter construction (deterministic fan-in init, pre-laid-out bf16 weights)
# ----------------------------------------------------------------------------
def _conv_bn_p(key, cin, cout, k=3):
    # Conv bias omitted: a per-channel constant cancels exactly under training-mode BN.
    s = 1.0 / (cin * k * k) ** 0.5
    w = jax.random.uniform(key, (cout, cin, k, k), jnp.float32, -s, s)
    # (ky, kx, cin) flattened x cout, with a leading G=1 tap axis -> (1, k*k*Cin, Cout).
    w = jnp.transpose(w, (2, 3, 1, 0)).reshape(1, k * k * cin, cout).astype(jnp.bfloat16)
    return dict(w=w,
                gamma=jnp.ones((cout,), jnp.float32),
                beta=jnp.zeros((cout,), jnp.float32))


def _convt_bn_p(key, cin, cout):
    # ConvT bias omitted for the same reason.
    s = 1.0 / (cin * 4) ** 0.5
    w = jax.random.uniform(key, (cin, cout, 2, 2), jnp.float32, -s, s)
    # (tap=ky*2+kx, Cin, Cout) so the kernel indexes taps on the leading (row) axis.
    w = jnp.transpose(w, (2, 3, 0, 1)).reshape(4, cin, cout).astype(jnp.bfloat16)
    return dict(w=w,
                gamma=jnp.ones((cout,), jnp.float32),
                beta=jnp.zeros((cout,), jnp.float32))


def _conv_plain_p(key, cin, cout, k=3):
    k1, k2 = jax.random.split(key)
    s = 1.0 / (cin * k * k) ** 0.5
    w = jax.random.uniform(k1, (cout, cin, k, k), jnp.float32, -s, s)
    b = jax.random.uniform(k2, (cout,), jnp.float32, -s, s)
    return dict(w=jnp.transpose(w, (2, 3, 1, 0)).reshape(k * k * cin, cout).astype(jnp.bfloat16),
                b=b.reshape(1, cout))


def _linear_p(key, fin, fout):
    k1, k2 = jax.random.split(key)
    s = 1.0 / fin ** 0.5
    w = jax.random.uniform(k1, (fout, fin), jnp.float32, -s, s)
    b = jax.random.uniform(k2, (fout,), jnp.float32, -s, s)
    return dict(w=w.T.astype(jnp.bfloat16), b=b.reshape(1, fout))


def init_autoencoder(key, image_size, channels, blocks, init_channels, latent_dim,
                     input_latent_dim=0):
    ki = iter(jax.random.split(key, 64))
    params = {}
    enc_blocks = []
    cin = channels
    for b in range(blocks):
        cout = init_channels * 2 ** b
        enc_blocks.append(dict(strided=_conv_bn_p(next(ki), cin, cout),
                               conv=_conv_bn_p(next(ki), cout, cout)))
        cin = cout
    params["enc_blocks"] = enc_blocks
    bneck_c = init_channels // 2
    params["enc_bottleneck"] = _conv_bn_p(next(ki), cin, bneck_c)
    h0 = image_size[0] // 2 ** (blocks + 1)
    w0 = image_size[1] // 2 ** (blocks + 1)
    feature_shape = (bneck_c, h0, w0)
    feat = bneck_c * h0 * w0
    params["enc_fc"] = _linear_p(next(ki), feat, latent_dim)
    params["dec_fc"] = _linear_p(next(ki), latent_dim + input_latent_dim, feat)
    dec_blocks = []
    cin = bneck_c
    for b in range(blocks - 1, -1, -1):
        cout = init_channels * 2 ** b
        dec_blocks.append(dict(convt=_convt_bn_p(next(ki), cin, cout),
                               conv=_conv_bn_p(next(ki), cout, cout)))
        cin = cout
    params["dec_final_convt"] = _convt_bn_p(next(ki), cin, init_channels)
    params["dec_blocks"] = dec_blocks
    params["classifier"] = _conv_plain_p(next(ki), init_channels, channels)
    return params, feature_shape


# ----------------------------------------------------------------------------
# Forward pass (matches Autoencoder.forward: returns {'x_hat': ..., 'z': ...})
# ----------------------------------------------------------------------------
def autoencoder_forward(params, x_nchw, subencodings=None, *, feature_shape):
    x = jnp.transpose(x_nchw, (0, 2, 3, 1)).astype(jnp.bfloat16)    # NCHW -> NHWC
    # ----- encoder -----
    h = x
    for blk in params["enc_blocks"]:
        h = conv3x3_bn_elu(h, blk["strided"], stride=2)
        h = conv3x3_bn_elu(h, blk["conv"], stride=1)
    h = conv3x3_bn_elu(h, params["enc_bottleneck"], stride=2)
    # flatten in PyTorch NCHW order (torch.flatten(features, 1))
    feats = jnp.transpose(h, (0, 3, 1, 2)).reshape(h.shape[0], -1)
    z = _dense(feats, params["enc_fc"], apply_elu=False, out_dtype=jnp.float32)
    # ----- decoder -----
    z_in = z if subencodings is None else jnp.concatenate([*subencodings, z], axis=1)
    f = _dense(z_in, params["dec_fc"], apply_elu=True, out_dtype=jnp.bfloat16)
    c0, h0, w0 = feature_shape
    h = f.reshape(-1, c0, h0, w0).transpose(0, 2, 3, 1)             # NCHW view -> NHWC
    for blk in params["dec_blocks"]:
        h = conv_transpose2x2_bn_elu(h, blk["convt"])
        h = conv3x3_bn_elu(h, blk["conv"], stride=1)
    h = conv_transpose2x2_bn_elu(h, params["dec_final_convt"])
    x_hat = conv3x3_plain(h, params["classifier"])
    x_hat = jnp.transpose(x_hat, (0, 3, 1, 2))                       # NHWC -> NCHW
    return {"x_hat": x_hat, "z": z}


if __name__ == "__main__":
    key = jax.random.PRNGKey(0)
    kp, kx = jax.random.split(key)
    image_size = (16, 16)
    channels, blocks, init_channels, latent_dim = 4, 2, 8, 16
    batch = 2

    params, feature_shape = init_autoencoder(kp, image_size, channels, blocks,
                                             init_channels, latent_dim)
    x = jax.random.normal(kx, (batch, channels, *image_size), jnp.float32)

    forward = jax.jit(functools.partial(autoencoder_forward, feature_shape=feature_shape))
    out = forward(params, x)
    out = jax.block_until_ready(out)

    assert out["x_hat"].shape == (batch, channels, *image_size), out["x_hat"].shape
    assert out["z"].shape == (batch, latent_dim), out["z"].shape
    assert bool(jnp.all(jnp.isfinite(out["x_hat"]))) and bool(jnp.all(jnp.isfinite(out["z"])))
    print("KERNEL_OK")
</pallas_src>

<mosaic_0001>
module attributes {stable_mosaic.version = 11 : i64} {
  func.func @_fused_conv_bn_elu_kernel(%arg0: i32, %arg1: i32, %arg2: memref<128x36xbf16, #tpu.memory_space<vmem>>, %arg3: memref<1x36x8xbf16, #tpu.memory_space<vmem>>, %arg4: memref<1x8xf32, #tpu.memory_space<vmem>>, %arg5: memref<1x8xf32, #tpu.memory_space<vmem>>, %arg6: memref<1x128x8xbf16, #tpu.memory_space<vmem>>, %arg7: memref<1x128x8xf32, #tpu.memory_space<vmem>>, %arg8: memref<1x8xf32, #tpu.memory_space<vmem>>, %arg9: memref<1x8xf32, #tpu.memory_space<vmem>>, %arg10: memref<1x8xf32, #tpu.memory_space<vmem>>, %arg11: memref<1x8xf32, #tpu.memory_space<vmem>>) attributes {dimension_semantics = [#tpu.dimension_semantics<arbitrary>, #tpu.dimension_semantics<arbitrary>], iteration_bounds = array<i64: 2, 1>, scalar_prefetch = 0 : i64, scratch_operands = 5 : i64, tpu.core_type = #tpu.core_type<tc>, window_params = [{transform_indices = @transform_0, window_bounds = array<i64: 128, 36>}, {pipeline_mode = #tpu.pipeline_mode<synchronous>, transform_indices = @transform_1, window_bounds = array<i64: 1, 36, 8>}, {pipeline_mode = #tpu.pipeline_mode<synchronous>, transform_indices = @transform_2, window_bounds = array<i64: 1, 8>}, {pipeline_mode = #tpu.pipeline_mode<synchronous>, transform_indices = @transform_3, window_bounds = array<i64: 1, 8>}, {transform_indices = @transform_4, window_bounds = array<i64: 1, 128, 8>}]} {
    %c0_i32 = arith.constant 0 : i32
    %0 = arith.cmpi eq, %arg0, %c0_i32 : i32
    %1 = arith.extui %0 : i1 to i32
    %c0_i32_0 = arith.constant 0 : i32
    %2 = arith.cmpi ne, %1, %c0_i32_0 : i32
    scf.if %2 {
      %c0_i32_5 = arith.constant 0 : i32
      %11 = arith.cmpi eq, %arg1, %c0_i32_5 : i32
      %12 = arith.extui %11 : i1 to i32
      %c0_i32_6 = arith.constant 0 : i32
      %13 = arith.cmpi ne, %12, %c0_i32_6 : i32
      scf.if %13 {
        %cst_23 = arith.constant 0.000000e+00 : f32
        %35 = vector.broadcast %cst_23 : f32 to vector<1x8xf32>
        %c0_24 = arith.constant 0 : index
        %c0_25 = arith.constant 0 : index
        %36 = vector.load %arg8[%c0_24, %c0_25] : memref<1x8xf32, #tpu.memory_space<vmem>>, vector<1x8xf32>
        tpu.vector_store %arg8[%c0_24, %c0_25], %35 {strides = array<i32>} : memref<1x8xf32, #tpu.memory_space<vmem>>, vector<1x8xf32>,
        %cst_26 = arith.constant 0.000000e+00 : f32
        %37 = vector.broadcast %cst_26 : f32 to vector<1x8xf32>
        %c0_27 = arith.constant 0 : index
        %c0_28 = arith.constant 0 : index
        %38 = vector.load %arg9[%c0_27, %c0_28] : memref<1x8xf32, #tpu.memory_space<vmem>>, vector<1x8xf32>
        tpu.vector_store %arg9[%c0_27, %c0_28], %37 {strides = array<i32>} : memref<1x8xf32, #tpu.memory_space<vmem>>, vector<1x8xf32>,
      } else {
      }
      %c0 = arith.constant 0 : index
      %c0_7 = arith.constant 0 : index
      %14 = vector.load %arg2[%c0, %c0_7] : memref<128x36xbf16, #tpu.memory_space<vmem>>, vector<128x36xbf16>
      %c128_i32 = arith.constant 128 : i32
      %15 = arith.muli %arg1, %c128_i32 : i32
      %16 = tpu.assume_multiple %15, 128 : i32
      %c0_8 = arith.constant 0 : index
      %c0_9 = arith.constant 0 : index
      %c0_10 = arith.constant 0 : index
      %17 = vector.load %arg3[%c0_8, %c0_9, %c0_10] : memref<1x36x8xbf16, #tpu.memory_space<vmem>>, vector<1x36x8xbf16>
      %18 = vector.shape_cast %17 : vector<1x36x8xbf16> to vector<36x8xbf16>
      %cst = arith.constant dense<0.000000e+00> : vector<128x8xf32>
      %19 = tpu.matmul %14, %18, %cst {dimension_numbers = #tpu.dot_dimension_numbers<[1], [0], [0], [1], [0, 0, 1, 1], [], []>} : vector<128x36xbf16>, vector<36x8xbf16>, vector<128x8xf32> -> vector<128x8xf32>
      %c0_11 = arith.constant 0 : index
      %20 = arith.index_cast %16 : i32 to index
      %c0_12 = arith.constant 0 : index
      %21 = vector.load %arg7[%c0_11, %20, %c0_12] : memref<1x128x8xf32, #tpu.memory_space<vmem>>, vector<1x128x8xf32>
      %22 = vector.shape_cast %21 : vector<1x128x8xf32> to vector<128x8xf32>
      %23 = vector.shape_cast %19 : vector<128x8xf32> to vector<1x128x8xf32>
      tpu.vector_store %arg7[%c0_11, %20, %c0_12], %23 {strides = array<i32>} : memref<1x128x8xf32, #tpu.memory_space<vmem>>, vector<1x128x8xf32>,
      %c0_13 = arith.constant 0 : index
      %c0_14 = arith.constant 0 : index
      %24 = vector.load %arg8[%c0_13, %c0_14] : memref<1x8xf32, #tpu.memory_space<vmem>>, vector<1x8xf32>
      %cst_15 = arith.constant dense<0.000000e+00> : vector<8xf32>
      %25 = vector.multi_reduction <add>, %19, %cst_15 [0] : vector<128x8xf32> to vector<8xf32>
      %26 = vector.shape_cast %25 : vector<8xf32> to vector<1x8xf32>
      %27 = arith.addf %24, %26 : vector<1x8xf32>
      %c0_16 = arith.constant 0 : index
      %c0_17 = arith.constant 0 : index
      %28 = vector.load %arg8[%c0_16, %c0_17] : memref<1x8xf32, #tpu.memory_space<vmem>>, vector<1x8xf32>
      tpu.vector_store %arg8[%c0_16, %c0_17], %27 {strides = array<i32>} : memref<1x8xf32, #tpu.memory_space<vmem>>, vector<1x8xf32>,
      %c0_18 = arith.constant 0 : index
      %c0_19 = arith.constant 0 : index
      %29 = vector.load %arg9[%c0_18, %c0_19] : memref<1x8xf32, #tpu.memory_space<vmem>>, vector<1x8xf32>
      %30 = arith.mulf %19, %19 : vector<128x8xf32>
      %cst_20 = arith.constant dense<0.000000e+00> : vector<8xf32>
      %31 = vector.multi_reduction <add>, %30, %cst_20 [0] : vector<128x8xf32> to vector<8xf32>
      %32 = vector.shape_cast %31 : vector<8xf32> to vector<1x8xf32>
      %33 = arith.addf %29, %32 : vector<1x8xf32>
      %c0_21 = arith.constant 0 : index
      %c0_22 = arith.constant 0 : index
      %34 = vector.load %arg9[%c0_21, %c0_22] : memref<1x8xf32, #tpu.memory_space<vmem>>, vector<1x8xf32>
      tpu.vector_store %arg9[%c0_21, %c0_22], %33 {strides = array<i32>} : memref<1x8xf32, #tpu.memory_space<vmem>>, vector<1x8xf32>,
    } else {
    }
    %c1_i32 = arith.constant 1 : i32
    %3 = arith.cmpi eq, %arg0, %c1_i32 : i32
    %c0_i32_1 = arith.constant 0 : i32
    %4 = arith.cmpi eq, %arg1, %c0_i32_1 : i32
    %5 = arith.andi %3, %4 : i1
    %6 = arith.extui %5 : i1 to i32
    %c0_i32_2 = arith.constant 0 : i32
    %7 = arith.cmpi ne, %6, %c0_i32_2 : i32
    scf.if %7 {
      %c0 = arith.constant 0 : index
      %c0_5 = arith.constant 0 : index
      %11 = vector.load %arg8[%c0, %c0_5] : memref<1x8xf32, #tpu.memory_space<vmem>>, vector<1x8xf32>
      %cst = arith.constant 7.812500e-03 : f32
      %12 = vector.broadcast %cst : f32 to vector<1x8xf32>
      %13 = arith.mulf %11, %12 : vector<1x8xf32>
      %c0_6 = arith.constant 0 : index
      %c0_7 = arith.constant 0 : index
      %14 = vector.load %arg9[%c0_6, %c0_7] : memref<1x8xf32, #tpu.memory_space<vmem>>, vector<1x8xf32>
      %cst_8 = arith.constant 7.812500e-03 : f32
      %15 = vector.broadcast %cst_8 : f32 to vector<1x8xf32>
      %16 = arith.mulf %14, %15 : vector<1x8xf32>
      %17 = arith.mulf %13, %13 : vector<1x8xf32>
      %18 = arith.subf %16, %17 : vector<1x8xf32>
      %cst_9 = arith.constant 0.000000e+00 : f32
      %19 = vector.broadcast %cst_9 : f32 to vector<1x8xf32>
      %20 = arith.maximumf %18, %19 : vector<1x8xf32>
      %c0_10 = arith.constant 0 : index
      %c0_11 = arith.constant 0 : index
      %21 = vector.load %arg4[%c0_10, %c0_11] : memref<1x8xf32, #tpu.memory_space<vmem>>, vector<1x8xf32>
      %cst_12 = arith.constant 9.99999974E-6 : f32
      %22 = vector.broadcast %cst_12 : f32 to vector<1x8xf32>
      %23 = arith.addf %20, %22 : vector<1x8xf32>
      %24 = math.rsqrt %23 : vector<1x8xf32>
      %25 = arith.mulf %21, %24 : vector<1x8xf32>
      %c0_13 = arith.constant 0 : index
      %c0_14 = arith.constant 0 : index
      %26 = vector.load %arg10[%c0_13, %c0_14] : memref<1x8xf32, #tpu.memory_space<vmem>>, vector<1x8xf32>
      tpu.vector_store %arg10[%c0_13, %c0_14], %25 {strides = array<i32>} : memref<1x8xf32, #tpu.memory_space<vmem>>, vector<1x8xf32>,
      %c0_15 = arith.constant 0 : index
      %c0_16 = arith.constant 0 : index
      %27 = vector.load %arg5[%c0_15, %c0_16] : memref<1x8xf32, #tpu.memory_space<vmem>>, vector<1x8xf32>
      %28 = arith.mulf %13, %25 : vector<1x8xf32>
      %29 = arith.subf %27, %28 : vector<1x8xf32>
      %c0_17 = arith.constant 0 : index
      %c0_18 = arith.constant 0 : index
      %30 = vector.load %arg11[%c0_17, %c0_18] : memref<1x8xf32, #tpu.memory_space<vmem>>, vector<1x8xf32>
      tpu.vector_store %arg11[%c0_17, %c0_18], %29 {strides = array<i32>} : memref<1x8xf32, #tpu.memory_space<vmem>>, vector<1x8xf32>,
    } else {
    }
    %c1_i32_3 = arith.constant 1 : i32
    %8 = arith.cmpi eq, %arg0, %c1_i32_3 : i32
    %9 = arith.extui %8 : i1 to i32
    %c0_i32_4 = arith.constant 0 : i32
    %10 = arith.cmpi ne, %9, %c0_i32_4 : i32
    scf.if %10 {
      %c128_i32 = arith.constant 128 : i32
      %11 = arith.muli %arg1, %c128_i32 : i32
      %12 = tpu.assume_multiple %11, 128 : i32
      %c0 = arith.constant 0 : index
      %c0_5 = arith.constant 0 : index
      %13 = vector.load %arg10[%c0, %c0_5] : memref<1x8xf32, #tpu.memory_space<vmem>>, vector<1x8xf32>
      %c0_6 = arith.constant 0 : index
      %c0_7 = arith.constant 0 : index
      %14 = vector.load %arg11[%c0_6, %c0_7] : memref<1x8xf32, #tpu.memory_space<vmem>>, vector<1x8xf32>
      %c0_8 = arith.constant 0 : index
      %15 = arith.index_cast %12 : i32 to index
      %c0_9 = arith.constant 0 : index
      %16 = vector.load %arg7[%c0_8, %15, %c0_9] : memref<1x128x8xf32, #tpu.memory_space<vmem>>, vector<1x128x8xf32>
      %17 = vector.shape_cast %16 : vector<1x128x8xf32> to vector<128x8xf32>
      %18 = vector.broadcast %13 : vector<1x8xf32> to vector<128x8xf32>
      %19 = arith.mulf %17, %18 : vector<128x8xf32>
      %20 = vector.broadcast %14 : vector<1x8xf32> to vector<128x8xf32>
      %21 = arith.addf %19, %20 : vector<128x8xf32>
      %cst = arith.constant 0.000000e+00 : f32
      %22 = vector.broadcast %cst : f32 to vector<128x8xf32>
      %23 = arith.cmpf ogt, %21, %22 : vector<128x8xf32>
      %cst_10 = arith.constant 0.000000e+00 : f32
      %24 = vector.broadcast %cst_10 : f32 to vector<128x8xf32>
      %25 = arith.minimumf %21, %24 : vector<128x8xf32>
      %26 = math.exp %25 : vector<128x8xf32>
      %cst_11 = arith.constant 1.000000e+00 : f32
      %27 = vector.broadcast %cst_11 : f32 to vector<128x8xf32>
      %28 = arith.subf %26, %27 : vector<128x8xf32>
      %29 = arith.select %23, %21, %28 : vector<128x8xi1>, vector<128x8xf32>
      %30 = arith.truncf %29 : vector<128x8xf32> to vector<128x8xbf16>
      %c0_12 = arith.constant 0 : index
      %c0_13 = arith.constant 0 : index
      %c0_14 = arith.constant 0 : index
      %31 = vector.load %arg6[%c0_12, %c0_13, %c0_14] : memref<1x128x8xbf16, #tpu.memory_space<vmem>>, vector<1x128x8xbf16>
      %32 = vector.shape_cast %31 : vector<1x128x8xbf16> to vector<128x8xbf16>
      %33 = vector.shape_cast %30 : vector<128x8xbf16> to vector<1x128x8xbf16>
      tpu.vector_store %arg6[%c0_12, %c0_13, %c0_14], %33 {strides = array<i32>} : memref<1x128x8xbf16, #tpu.memory_space<vmem>>, vector<1x128x8xbf16>,
    } else {
    }
    return
  }
  func.func @transform_0(%arg0: i32, %arg1: i32) -> (i32, i32) {
    %c1_i32 = arith.constant 1 : i32
    %0 = arith.subi %c1_i32, %arg0 : i32
    %1 = arith.muli %arg1, %0 : i32
    %c0_i32 = arith.constant 0 : i32
    %c0_i32_0 = arith.constant 0 : i32
    return %1, %c0_i32 : i32, i32
  }
  func.func @transform_1(%arg0: i32, %arg1: i32) -> (i32, i32, i32) {
    %c0_i32 = arith.constant 0 : i32
    %c0_i32_0 = arith.constant 0 : i32
    %c0_i32_1 = arith.constant 0 : i32
    %c0_i32_2 = arith.constant 0 : i32
    return %c0_i32, %c0_i32_0, %c0_i32_1 : i32, i32, i32
  }
  func.func @transform_2(%arg0: i32, %arg1: i32) -> (i32, i32) {
    %c0_i32 = arith.constant 0 : i32
    %c0_i32_0 = arith.constant 0 : i32
    %c0_i32_1 = arith.constant 0 : i32
    return %c0_i32, %c0_i32_0 : i32, i32
  }
  func.func @transform_3(%arg0: i32, %arg1: i32) -> (i32, i32) {
    %c0_i32 = arith.constant 0 : i32
    %c0_i32_0 = arith.constant 0 : i32
    %c0_i32_1 = arith.constant 0 : i32
    return %c0_i32, %c0_i32_0 : i32, i32
  }
  func.func @transform_4(%arg0: i32, %arg1: i32) -> (i32, i32, i32) {
    %0 = arith.muli %arg1, %arg0 : i32
    %c0_i32 = arith.constant 0 : i32
    %c0_i32_0 = arith.constant 0 : i32
    %c0_i32_1 = arith.constant 0 : i32
    return %c0_i32, %0, %c0_i32_0 : i32, i32, i32
  }
}

module attributes {stable_mosaic.version = 11 : i64} {
  func.func @_fused_conv_bn_elu_kernel(%arg0: i32, %arg1: i32, %arg2: memref<128x72xbf16, #tpu.memory_space<vmem>>, %arg3: memref<1x72x8xbf16, #tpu.memory_space<vmem>>, %arg4: memref<1x8xf32, #tpu.memory_space<vmem>>, %arg5: memref<1x8xf32, #tpu.memory_space<vmem>>, %arg6: memref<1x128x8xbf16, #tpu.memory_space<vmem>>, %arg7: memref<1x128x8xf32, #tpu.memory_space<vmem>>, %arg8: memref<1x8xf32, #tpu.memory_space<vmem>>, %arg9: memref<1x8xf32, #tpu.memory_space<vmem>>, %arg10: memref<1x8xf32, #tpu.memory_space<vmem>>, %arg11: memref<1x8xf32, #tpu.memory_space<vmem>>) attributes {dimension_semantics = [#tpu.dimension_semantics<arbitrary>, #tpu.dimension_semantics<arbitrary>], iteration_bounds = array<i64: 2, 1>, scalar_prefetch = 0 : i64, scratch_operands = 5 : i64, tpu.core_type = #tpu.core_type<tc>, window_params = [{transform_indices = @transform_0, window_bounds = array<i64: 128, 72>}, {pipeline_mode = #tpu.pipeline_mode<synchronous>, transform_indices = @transform_1, window_bounds = array<i64: 1, 72, 8>}, {pipeline_mode = #tpu.pipeline_mode<synchronous>, transform_indices = @transform_2, window_bounds = array<i64: 1, 8>}, {pipeline_mode = #tpu.pipeline_mode<synchronous>, transform_indices = @transform_3, window_bounds = array<i64: 1, 8>}, {transform_indices = @transform_4, window_bounds = array<i64: 1, 128, 8>}]} {
    %c0_i32 = arith.constant 0 : i32
    %0 = arith.cmpi eq, %arg0, %c0_i32 : i32
    %1 = arith.extui %0 : i1 to i32
    %c0_i32_0 = arith.constant 0 : i32
    %2 = arith.cmpi ne, %1, %c0_i32_0 : i32
    scf.if %2 {
      %c0_i32_5 = arith.constant 0 : i32
      %11 = arith.cmpi eq, %arg1, %c0_i32_5 : i32
      %12 = arith.extui %11 : i1 to i32
      %c0_i32_6 = arith.constant 0 : i32
      %13 = arith.cmpi ne, %12, %c0_i32_6 : i32
      scf.if %13 {
        %cst_23 = arith.constant 0.000000e+00 : f32
        %35 = vector.broadcast %cst_23 : f32 to vector<1x8xf32>
        %c0_24 = arith.constant 0 : index
        %c0_25 = arith.constant 0 : index
        %36 = vector.load %arg8[%c0_24, %c0_25] : memref<1x8xf32, #tpu.memory_space<vmem>>, vector<1x8xf32>
        tpu.vector_store %arg8[%c0_24, %c0_25], %35 {strides = array<i32>} : memref<1x8xf32, #tpu.memory_space<vmem>>, vector<1x8xf32>,
        %cst_26 = arith.constant 0.000000e+00 : f32
        %37 = vector.broadcast %cst_26 : f32 to vector<1x8xf32>
        %c0_27 = arith.constant 0 : index
        %c0_28 = arith.constant 0 : index
        %38 = vector.load %arg9[%c0_27, %c0_28] : memref<1x8xf32, #tpu.memory_space<vmem>>, vector<1x8xf32>
        tpu.vector_store %arg9[%c0_27, %c0_28], %37 {strides = array<i32>} : memref<1x8xf32, #tpu.memory_space<vmem>>, vector<1x8xf32>,
      } else {
      }
      %c0 = arith.constant 0 : index
      %c0_7 = arith.constant 0 : index
      %14 = vector.load %arg2[%c0, %c0_7] : memref<128x72xbf16, #tpu.memory_space<vmem>>, vector<128x72xbf16>
      %c128_i32 = arith.constant 128 : i32
      %15 = arith.muli %arg1, %c128_i32 : i32
      %16 = tpu.assume_multiple %15, 128 : i32
      %c0_8 = arith.constant 0 : index
      %c0_9 = arith.constant 0 : index
      %c0_10 = arith.constant 0 : index
      %17 = vector.load %arg3[%c0_8, %c0_9, %c0_10] : memref<1x72x8xbf16, #tpu.memory_space<vmem>>, vector<1x72x8xbf16>
      %18 = vector.shape_cast %17 : vector<1x72x8xbf16> to vector<72x8xbf16>
      %cst = arith.constant dense<0.000000e+00> : vector<128x8xf32>
      %19 = tpu.matmul %14, %18, %cst {dimension_numbers = #tpu.dot_dimension_numbers<[1], [0], [0], [1], [0, 0, 1, 1], [], []>} : vector<128x72xbf16>, vector<72x8xbf16>, vector<128x8xf32> -> vector<128x8xf32>
      %c0_11 = arith.constant 0 : index
      %20 = arith.index_cast %16 : i32 to index
      %c0_12 = arith.constant 0 : index
      %21 = vector.load %arg7[%c0_11, %20, %c0_12] : memref<1x128x8xf32, #tpu.memory_space<vmem>>, vector<1x128x8xf32>
      %22 = vector.shape_cast %21 : vector<1x128x8xf32> to vector<128x8xf32>
      %23 = vector.shape_cast %19 : vector<128x8xf32> to vector<1x128x8xf32>
      tpu.vector_store %arg7[%c0_11, %20, %c0_12], %23 {strides = array<i32>} : memref<1x128x8xf32, #tpu.memory_space<vmem>>, vector<1x128x8xf32>,
      %c0_13 = arith.constant 0 : index
      %c0_14 = arith.constant 0 : index
      %24 = vector.load %arg8[%c0_13, %c0_14] : memref<1x8xf32, #tpu.memory_space<vmem>>, vector<1x8xf32>
      %cst_15 = arith.constant dense<0.000000e+00> : vector<8xf32>
      %25 = vector.multi_reduction <add>, %19, %cst_15 [0] : vector<128x8xf32> to vector<8xf32>
      %26 = vector.shape_cast %25 : vector<8xf32> to vector<1x8xf32>
      %27 = arith.addf %24, %26 : vector<1x8xf32>
      %c0_16 = arith.constant 0 : index
      %c0_17 = arith.constant 0 : index
      %28 = vector.load %arg8[%c0_16, %c0_17] : memref<1x8xf32, #tpu.memory_space<vmem>>, vector<1x8xf32>
      tpu.vector_store %arg8[%c0_16, %c0_17], %27 {strides = array<i32>} : memref<1x8xf32, #tpu.memory_space<vmem>>, vector<1x8xf32>,
      %c0_18 = arith.constant 0 : index
      %c0_19 = arith.constant 0 : index
      %29 = vector.load %arg9[%c0_18, %c0_19] : memref<1x8xf32, #tpu.memory_space<vmem>>, vector<1x8xf32>
      %30 = arith.mulf %19, %19 : vector<128x8xf32>
      %cst_20 = arith.constant dense<0.000000e+00> : vector<8xf32>
      %31 = vector.multi_reduction <add>, %30, %cst_20 [0] : vector<128x8xf32> to vector<8xf32>
      %32 = vector.shape_cast %31 : vector<8xf32> to vector<1x8xf32>
      %33 = arith.addf %29, %32 : vector<1x8xf32>
      %c0_21 = arith.constant 0 : index
      %c0_22 = arith.constant 0 : index
      %34 = vector.load %arg9[%c0_21, %c0_22] : memref<1x8xf32, #tpu.memory_space<vmem>>, vector<1x8xf32>
      tpu.vector_store %arg9[%c0_21, %c0_22], %33 {strides = array<i32>} : memref<1x8xf32, #tpu.memory_space<vmem>>, vector<1x8xf32>,
    } else {
    }
    %c1_i32 = arith.constant 1 : i32
    %3 = arith.cmpi eq, %arg0, %c1_i32 : i32
    %c0_i32_1 = arith.constant 0 : i32
    %4 = arith.cmpi eq, %arg1, %c0_i32_1 : i32
    %5 = arith.andi %3, %4 : i1
    %6 = arith.extui %5 : i1 to i32
    %c0_i32_2 = arith.constant 0 : i32
    %7 = arith.cmpi ne, %6, %c0_i32_2 : i32
    scf.if %7 {
      %c0 = arith.constant 0 : index
      %c0_5 = arith.constant 0 : index
      %11 = vector.load %arg8[%c0, %c0_5] : memref<1x8xf32, #tpu.memory_space<vmem>>, vector<1x8xf32>
      %cst = arith.constant 7.812500e-03 : f32
      %12 = vector.broadcast %cst : f32 to vector<1x8xf32>
      %13 = arith.mulf %11, %12 : vector<1x8xf32>
      %c0_6 = arith.constant 0 : index
      %c0_7 = arith.constant 0 : index
      %14 = vector.load %arg9[%c0_6, %c0_7] : memref<1x8xf32, #tpu.memory_space<vmem>>, vector<1x8xf32>
      %cst_8 = arith.constant 7.812500e-03 : f32
      %15 = vector.broadcast %cst_8 : f32 to vector<1x8xf32>
      %16 = arith.mulf %14, %15 : vector<1x8xf32>
      %17 = arith.mulf %13, %13 : vector<1x8xf32>
      %18 = arith.subf %16, %17 : vector<1x8xf32>
      %cst_9 = arith.constant 0.000000e+00 : f32
      %19 = vector.broadcast %cst_9 : f32 to vector<1x8xf32>
      %20 = arith.maximumf %18, %19 : vector<1x8xf32>
      %c0_10 = arith.constant 0 : index
      %c0_11 = arith.constant 0 : index
      %21 = vector.load %arg4[%c0_10, %c0_11] : memref<1x8xf32, #tpu.memory_space<vmem>>, vector<1x8xf32>
      %cst_12 = arith.constant 9.99999974E-6 : f32
      %22 = vector.broadcast %cst_12 : f32 to vector<1x8xf32>
      %23 = arith.addf %20, %22 : vector<1x8xf32>
      %24 = math.rsqrt %23 : vector<1x8xf32>
      %25 = arith.mulf %21, %24 : vector<1x8xf32>
      %c0_13 = arith.constant 0 : index
      %c0_14 = arith.constant 0 : index
      %26 = vector.load %arg10[%c0_13, %c0_14] : memref<1x8xf32, #tpu.memory_space<vmem>>, vector<1x8xf32>
      tpu.vector_store %arg10[%c0_13, %c0_14], %25 {strides = array<i32>} : memref<1x8xf32, #tpu.memory_space<vmem>>, vector<1x8xf32>,
      %c0_15 = arith.constant 0 : index
      %c0_16 = arith.constant 0 : index
      %27 = vector.load %arg5[%c0_15, %c0_16] : memref<1x8xf32, #tpu.memory_space<vmem>>, vector<1x8xf32>
      %28 = arith.mulf %13, %25 : vector<1x8xf32>
      %29 = arith.subf %27, %28 : vector<1x8xf32>
      %c0_17 = arith.constant 0 : index
      %c0_18 = arith.constant 0 : index
      %30 = vector.load %arg11[%c0_17, %c0_18] : memref<1x8xf32, #tpu.memory_space<vmem>>, vector<1x8xf32>
      tpu.vector_store %arg11[%c0_17, %c0_18], %29 {strides = array<i32>} : memref<1x8xf32, #tpu.memory_space<vmem>>, vector<1x8xf32>,
    } else {
    }
    %c1_i32_3 = arith.constant 1 : i32
    %8 = arith.cmpi eq, %arg0, %c1_i32_3 : i32
    %9 = arith.extui %8 : i1 to i32
    %c0_i32_4 = arith.constant 0 : i32
    %10 = arith.cmpi ne, %9, %c0_i32_4 : i32
    scf.if %10 {
      %c128_i32 = arith.constant 128 : i32
      %11 = arith.muli %arg1, %c128_i32 : i32
      %12 = tpu.assume_multiple %11, 128 : i32
      %c0 = arith.constant 0 : index
      %c0_5 = arith.constant 0 : index
      %13 = vector.load %arg10[%c0, %c0_5] : memref<1x8xf32, #tpu.memory_space<vmem>>, vector<1x8xf32>
      %c0_6 = arith.constant 0 : index
      %c0_7 = arith.constant 0 : index
      %14 = vector.load %arg11[%c0_6, %c0_7] : memref<1x8xf32, #tpu.memory_space<vmem>>, vector<1x8xf32>
      %c0_8 = arith.constant 0 : index
      %15 = arith.index_cast %12 : i32 to index
      %c0_9 = arith.constant 0 : index
      %16 = vector.load %arg7[%c0_8, %15, %c0_9] : memref<1x128x8xf32, #tpu.memory_space<vmem>>, vector<1x128x8xf32>
      %17 = vector.shape_cast %16 : vector<1x128x8xf32> to vector<128x8xf32>
      %18 = vector.broadcast %13 : vector<1x8xf32> to vector<128x8xf32>
      %19 = arith.mulf %17, %18 : vector<128x8xf32>
      %20 = vector.broadcast %14 : vector<1x8xf32> to vector<128x8xf32>
      %21 = arith.addf %19, %20 : vector<128x8xf32>
      %cst = arith.constant 0.000000e+00 : f32
      %22 = vector.broadcast %cst : f32 to vector<128x8xf32>
      %23 = arith.cmpf ogt, %21, %22 : vector<128x8xf32>
      %cst_10 = arith.constant 0.000000e+00 : f32
      %24 = vector.broadcast %cst_10 : f32 to vector<128x8xf32>
      %25 = arith.minimumf %21, %24 : vector<128x8xf32>
      %26 = math.exp %25 : vector<128x8xf32>
      %cst_11 = arith.constant 1.000000e+00 : f32
      %27 = vector.broadcast %cst_11 : f32 to vector<128x8xf32>
      %28 = arith.subf %26, %27 : vector<128x8xf32>
      %29 = arith.select %23, %21, %28 : vector<128x8xi1>, vector<128x8xf32>
      %30 = arith.truncf %29 : vector<128x8xf32> to vector<128x8xbf16>
      %c0_12 = arith.constant 0 : index
      %c0_13 = arith.constant 0 : index
      %c0_14 = arith.constant 0 : index
      %31 = vector.load %arg6[%c0_12, %c0_13, %c0_14] : memref<1x128x8xbf16, #tpu.memory_space<vmem>>, vector<1x128x8xbf16>
      %32 = vector.shape_cast %31 : vector<1x128x8xbf16> to vector<128x8xbf16>
      %33 = vector.shape_cast %30 : vector<128x8xbf16> to vector<1x128x8xbf16>
      tpu.vector_store %arg6[%c0_12, %c0_13, %c0_14], %33 {strides = array<i32>} : memref<1x128x8xbf16, #tpu.memory_space<vmem>>, vector<1x128x8xbf16>,
    } else {
    }
    return
  }
  func.func @transform_0(%arg0: i32, %arg1: i32) -> (i32, i32) {
    %c1_i32 = arith.constant 1 : i32
    %0 = arith.subi %c1_i32, %arg0 : i32
    %1 = arith.muli %arg1, %0 : i32
    %c0_i32 = arith.constant 0 : i32
    %c0_i32_0 = arith.constant 0 : i32
    return %1, %c0_i32 : i32, i32
  }
  func.func @transform_1(%arg0: i32, %arg1: i32) -> (i32, i32, i32) {
    %c0_i32 = arith.constant 0 : i32
    %c0_i32_0 = arith.constant 0 : i32
    %c0_i32_1 = arith.constant 0 : i32
    %c0_i32_2 = arith.constant 0 : i32
    return %c0_i32, %c0_i32_0, %c0_i32_1 : i32, i32, i32
  }
  func.func @transform_2(%arg0: i32, %arg1: i32) -> (i32, i32) {
    %c0_i32 = arith.constant 0 : i32
    %c0_i32_0 = arith.constant 0 : i32
    %c0_i32_1 = arith.constant 0 : i32
    return %c0_i32, %c0_i32_0 : i32, i32
  }
  func.func @transform_3(%arg0: i32, %arg1: i32) -> (i32, i32) {
    %c0_i32 = arith.constant 0 : i32
    %c0_i32_0 = arith.constant 0 : i32
    %c0_i32_1 = arith.constant 0 : i32
    return %c0_i32, %c0_i32_0 : i32, i32
  }
  func.func @transform_4(%arg0: i32, %arg1: i32) -> (i32, i32, i32) {
    %0 = arith.muli %arg1, %arg0 : i32
    %c0_i32 = arith.constant 0 : i32
    %c0_i32_0 = arith.constant 0 : i32
    %c0_i32_1 = arith.constant 0 : i32
    return %c0_i32, %0, %c0_i32_0 : i32, i32, i32
  }
}

module attributes {stable_mosaic.version = 11 : i64} {
  func.func @_fused_conv_bn_elu_kernel(%arg0: i32, %arg1: i32, %arg2: memref<32x72xbf16, #tpu.memory_space<vmem>>, %arg3: memref<1x72x16xbf16, #tpu.memory_space<vmem>>, %arg4: memref<1x16xf32, #tpu.memory_space<vmem>>, %arg5: memref<1x16xf32, #tpu.memory_space<vmem>>, %arg6: memref<1x32x16xbf16, #tpu.memory_space<vmem>>, %arg7: memref<1x32x16xf32, #tpu.memory_space<vmem>>, %arg8: memref<1x16xf32, #tpu.memory_space<vmem>>, %arg9: memref<1x16xf32, #tpu.memory_space<vmem>>, %arg10: memref<1x16xf32, #tpu.memory_space<vmem>>, %arg11: memref<1x16xf32, #tpu.memory_space<vmem>>) attributes {dimension_semantics = [#tpu.dimension_semantics<arbitrary>, #tpu.dimension_semantics<arbitrary>], iteration_bounds = array<i64: 2, 1>, scalar_prefetch = 0 : i64, scratch_operands = 5 : i64, tpu.core_type = #tpu.core_type<tc>, window_params = [{transform_indices = @transform_0, window_bounds = array<i64: 32, 72>}, {pipeline_mode = #tpu.pipeline_mode<synchronous>, transform_indices = @transform_1, window_bounds = array<i64: 1, 72, 16>}, {pipeline_mode = #tpu.pipeline_mode<synchronous>, transform_indices = @transform_2, window_bounds = array<i64: 1, 16>}, {pipeline_mode = #tpu.pipeline_mode<synchronous>, transform_indices = @transform_3, window_bounds = array<i64: 1, 16>}, {transform_indices = @transform_4, window_bounds = array<i64: 1, 32, 16>}]} {
    %c0_i32 = arith.constant 0 : i32
    %0 = arith.cmpi eq, %arg0, %c0_i32 : i32
    %1 = arith.extui %0 : i1 to i32
    %c0_i32_0 = arith.constant 0 : i32
    %2 = arith.cmpi ne, %1, %c0_i32_0 : i32
    scf.if %2 {
      %c0_i32_5 = arith.constant 0 : i32
      %11 = arith.cmpi eq, %arg1, %c0_i32_5 : i32
      %12 = arith.extui %11 : i1 to i32
      %c0_i32_6 = arith.constant 0 : i32
      %13 = arith.cmpi ne, %12, %c0_i32_6 : i32
      scf.if %13 {
        %cst_23 = arith.constant 0.000000e+00 : f32
        %35 = vector.broadcast %cst_23 : f32 to vector<1x16xf32>
        %c0_24 = arith.constant 0 : index
        %c0_25 = arith.constant 0 : index
        %36 = vector.load %arg8[%c0_24, %c0_25] : memref<1x16xf32, #tpu.memory_space<vmem>>, vector<1x16xf32>
        tpu.vector_store %arg8[%c0_24, %c0_25], %35 {strides = array<i32>} : memref<1x16xf32, #tpu.memory_space<vmem>>, vector<1x16xf32>,
        %cst_26 = arith.constant 0.000000e+00 : f32
        %37 = vector.broadcast %cst_26 : f32 to vector<1x16xf32>
        %c0_27 = arith.constant 0 : index
        %c0_28 = arith.constant 0 : index
        %38 = vector.load %arg9[%c0_27, %c0_28] : memref<1x16xf32, #tpu.memory_space<vmem>>, vector<1x16xf32>
        tpu.vector_store %arg9[%c0_27, %c0_28], %37 {strides = array<i32>} : memref<1x16xf32, #tpu.memory_space<vmem>>, vector<1x16xf32>,
      } else {
      }
      %c0 = arith.constant 0 : index
      %c0_7 = arith.constant 0 : index
      %14 = vector.load %arg2[%c0, %c0_7] : memref<32x72xbf16, #tpu.memory_space<vmem>>, vector<32x72xbf16>
      %c32_i32 = arith.constant 32 : i32
      %15 = arith.muli %arg1, %c32_i32 : i32
      %16 = tpu.assume_multiple %15, 32 : i32
      %c0_8 = arith.constant 0 : index
      %c0_9 = arith.constant 0 : index
      %c0_10 = arith.constant 0 : index
      %17 = vector.load %arg3[%c0_8, %c0_9, %c0_10] : memref<1x72x16xbf16, #tpu.memory_space<vmem>>, vector<1x72x16xbf16>
      %18 = vector.shape_cast %17 : vector<1x72x16xbf16> to vector<72x16xbf16>
      %cst = arith.constant dense<0.000000e+00> : vector<32x16xf32>
      %19 = tpu.matmul %14, %18, %cst {dimension_numbers = #tpu.dot_dimension_numbers<[1], [0], [0], [1], [0, 0, 1, 1], [], []>} : vector<32x72xbf16>, vector<72x16xbf16>, vector<32x16xf32> -> vector<32x16xf32>
      %c0_11 = arith.constant 0 : index
      %20 = arith.index_cast %16 : i32 to index
      %c0_12 = arith.constant 0 : index
      %21 = vector.load %arg7[%c0_11, %20, %c0_12] : memref<1x32x16xf32, #tpu.memory_space<vmem>>, vector<1x32x16xf32>
      %22 = vector.shape_cast %21 : vector<1x32x16xf32> to vector<32x16xf32>
      %23 = vector.shape_cast %19 : vector<32x16xf32> to vector<1x32x16xf32>
      tpu.vector_store %arg7[%c0_11, %20, %c0_12], %23 {strides = array<i32>} : memref<1x32x16xf32, #tpu.memory_space<vmem>>, vector<1x32x16xf32>,
      %c0_13 = arith.constant 0 : index
      %c0_14 = arith.constant 0 : index
      %24 = vector.load %arg8[%c0_13, %c0_14] : memref<1x16xf32, #tpu.memory_space<vmem>>, vector<1x16xf32>
      %cst_15 = arith.constant dense<0.000000e+00> : vector<16xf32>
      %25 = vector.multi_reduction <add>, %19, %cst_15 [0] : vector<32x16xf32> to vector<16xf32>
      %26 = vector.shape_cast %25 : vector<16xf32> to vector<1x16xf32>
      %27 = arith.addf %24, %26 : vector<1x16xf32>
      %c0_16 = arith.constant 0 : index
      %c0_17 = arith.constant 0 : index
      %28 = vector.load %arg8[%c0_16, %c0_17] : memref<1x16xf32, #tpu.memory_space<vmem>>, vector<1x16xf32>
      tpu.vector_store %arg8[%c0_16, %c0_17], %27 {strides = array<i32>} : memref<1x16xf32, #tpu.memory_space<vmem>>, vector<1x16xf32>,
      %c0_18 = arith.constant 0 : index
      %c0_19 = arith.constant 0 : index
      %29 = vector.load %arg9[%c0_18, %c0_19] : memref<1x16xf32, #tpu.memory_space<vmem>>, vector<1x16xf32>
      %30 = arith.mulf %19, %19 : vector<32x16xf32>
      %cst_20 = arith.constant dense<0.000000e+00> : vector<16xf32>
      %31 = vector.multi_reduction <add>, %30, %cst_20 [0] : vector<32x16xf32> to vector<16xf32>
      %32 = vector.shape_cast %31 : vector<16xf32> to vector<1x16xf32>
      %33 = arith.addf %29, %32 : vector<1x16xf32>
      %c0_21 = arith.constant 0 : index
      %c0_22 = arith.constant 0 : index
      %34 = vector.load %arg9[%c0_21, %c0_22] : memref<1x16xf32, #tpu.memory_space<vmem>>, vector<1x16xf32>
      tpu.vector_store %arg9[%c0_21, %c0_22], %33 {strides = array<i32>} : memref<1x16xf32, #tpu.memory_space<vmem>>, vector<1x16xf32>,
    } else {
    }
    %c1_i32 = arith.constant 1 : i32
    %3 = arith.cmpi eq, %arg0, %c1_i32 : i32
    %c0_i32_1 = arith.constant 0 : i32
    %4 = arith.cmpi eq, %arg1, %c0_i32_1 : i32
    %5 = arith.andi %3, %4 : i1
    %6 = arith.extui %5 : i1 to i32
    %c0_i32_2 = arith.constant 0 : i32
    %7 = arith.cmpi ne, %6, %c0_i32_2 : i32
    scf.if %7 {
      %c0 = arith.constant 0 : index
      %c0_5 = arith.constant 0 : index
      %11 = vector.load %arg8[%c0, %c0_5] : memref<1x16xf32, #tpu.memory_space<vmem>>, vector<1x16xf32>
      %cst = arith.constant 3.125000e-02 : f32
      %12 = vector.broadcast %cst : f32 to vector<1x16xf32>
      %13 = arith.mulf %11, %12 : vector<1x16xf32>
      %c0_6 = arith.constant 0 : index
      %c0_7 = arith.constant 0 : index
      %14 = vector.load %arg9[%c0_6, %c0_7] : memref<1x16xf32, #tpu.memory_space<vmem>>, vector<1x16xf32>
      %cst_8 = arith.constant 3.125000e-02 : f32
      %15 = vector.broadcast %cst_8 : f32 to vector<1x16xf32>
      %16 = arith.mulf %14, %15 : vector<1x16xf32>
      %17 = arith.mulf %13, %13 : vector<1x16xf32>
      %18 = arith.subf %16, %17 : vector<1x16xf32>
      %cst_9 = arith.constant 0.000000e+00 : f32
      %19 = vector.broadcast %cst_9 : f32 to vector<1x16xf32>
      %20 = arith.maximumf %18, %19 : vector<1x16xf32>
      %c0_10 = arith.constant 0 : index
      %c0_11 = arith.constant 0 : index
      %21 = vector.load %arg4[%c0_10, %c0_11] : memref<1x16xf32, #tpu.memory_space<vmem>>, vector<1x16xf32>
      %cst_12 = arith.constant 9.99999974E-6 : f32
      %22 = vector.broadcast %cst_12 : f32 to vector<1x16xf32>
      %23 = arith.addf %20, %22 : vector<1x16xf32>
      %24 = math.rsqrt %23 : vector<1x16xf32>
      %25 = arith.mulf %21, %24 : vector<1x16xf32>
      %c0_13 = arith.constant 0 : index
      %c0_14 = arith.constant 0 : index
      %26 = vector.load %arg10[%c0_13, %c0_14] : memref<1x16xf32, #tpu.memory_space<vmem>>, vector<1x16xf32>
      tpu.vector_store %arg10[%c0_13, %c0_14], %25 {strides = array<i32>} : memref<1x16xf32, #tpu.memory_space<vmem>>, vector<1x16xf32>,
      %c0_15 = arith.constant 0 : index
      %c0_16 = arith.constant 0 : index
      %27 = vector.load %arg5[%c0_15, %c0_16] : memref<1x16xf32, #tpu.memory_space<vmem>>, vector<1x16xf32>
      %28 = arith.mulf %13, %25 : vector<1x16xf32>
      %29 = arith.subf %27, %28 : vector<1x16xf32>
      %c0_17 = arith.constant 0 : index
      %c0_18 = arith.constant 0 : index
      %30 = vector.load %arg11[%c0_17, %c0_18] : memref<1x16xf32, #tpu.memory_space<vmem>>, vector<1x16xf32>
      tpu.vector_store %arg11[%c0_17, %c0_18], %29 {strides = array<i32>} : memref<1x16xf32, #tpu.memory_space<vmem>>, vector<1x16xf32>,
    } else {
    }
    %c1_i32_3 = arith.constant 1 : i32
    %8 = arith.cmpi eq, %arg0, %c1_i32_3 : i32
    %9 = arith.extui %8 : i1 to i32
    %c0_i32_4 = arith.constant 0 : i32
    %10 = arith.cmpi ne, %9, %c0_i32_4 : i32
    scf.if %10 {
      %c32_i32 = arith.constant 32 : i32
      %11 = arith.muli %arg1, %c32_i32 : i32
      %12 = tpu.assume_multiple %11, 32 : i32
      %c0 = arith.constant 0 : index
      %c0_5 = arith.constant 0 : index
      %13 = vector.load %arg10[%c0, %c0_5] : memref<1x16xf32, #tpu.memory_space<vmem>>, vector<1x16xf32>
      %c0_6 = arith.constant 0 : index
      %c0_7 = arith.constant 0 : index
      %14 = vector.load %arg11[%c0_6, %c0_7] : memref<1x16xf32, #tpu.memory_space<vmem>>, vector<1x16xf32>
      %c0_8 = arith.constant 0 : index
      %15 = arith.index_cast %12 : i32 to index
      %c0_9 = arith.constant 0 : index
      %16 = vector.load %arg7[%c0_8, %15, %c0_9] : memref<1x32x16xf32, #tpu.memory_space<vmem>>, vector<1x32x16xf32>
      %17 = vector.shape_cast %16 : vector<1x32x16xf32> to vector<32x16xf32>
      %18 = vector.broadcast %13 : vector<1x16xf32> to vector<32x16xf32>
      %19 = arith.mulf %17, %18 : vector<32x16xf32>
      %20 = vector.broadcast %14 : vector<1x16xf32> to vector<32x16xf32>
      %21 = arith.addf %19, %20 : vector<32x16xf32>
      %cst = arith.constant 0.000000e+00 : f32
      %22 = vector.broadcast %cst : f32 to vector<32x16xf32>
      %23 = arith.cmpf ogt, %21, %22 : vector<32x16xf32>
      %cst_10 = arith.constant 0.000000e+00 : f32
      %24 = vector.broadcast %cst_10 : f32 to vector<32x16xf32>
      %25 = arith.minimumf %21, %24 : vector<32x16xf32>
      %26 = math.exp %25 : vector<32x16xf32>
      %cst_11 = arith.constant 1.000000e+00 : f32
      %27 = vector.broadcast %cst_11 : f32 to vector<32x16xf32>
      %28 = arith.subf %26, %27 : vector<32x16xf32>
      %29 = arith.select %23, %21, %28 : vector<32x16xi1>, vector<32x16xf32>
      %30 = arith.truncf %29 : vector<32x16xf32> to vector<32x16xbf16>
      %c0_12 = arith.constant 0 : index
      %c0_13 = arith.constant 0 : index
      %c0_14 = arith.constant 0 : index
      %31 = vector.load %arg6[%c0_12, %c0_13, %c0_14] : memref<1x32x16xbf16, #tpu.memory_space<vmem>>, vector<1x32x16xbf16>
      %32 = vector.shape_cast %31 : vector<1x32x16xbf16> to vector<32x16xbf16>
      %33 = vector.shape_cast %30 : vector<32x16xbf16> to vector<1x32x16xbf16>
      tpu.vector_store %arg6[%c0_12, %c0_13, %c0_14], %33 {strides = array<i32>} : memref<1x32x16xbf16, #tpu.memory_space<vmem>>, vector<1x32x16xbf16>,
    } else {
    }
    return
  }
  func.func @transform_0(%arg0: i32, %arg1: i32) -> (i32, i32) {
    %c1_i32 = arith.constant 1 : i32
    %0 = arith.subi %c1_i32, %arg0 : i32
    %1 = arith.muli %arg1, %0 : i32
    %c0_i32 = arith.constant 0 : i32
    %c0_i32_0 = arith.constant 0 : i32
    return %1, %c0_i32 : i32, i32
  }
  func.func @transform_1(%arg0: i32, %arg1: i32) -> (i32, i32, i32) {
    %c0_i32 = arith.constant 0 : i32
    %c0_i32_0 = arith.constant 0 : i32
    %c0_i32_1 = arith.constant 0 : i32
    %c0_i32_2 = arith.constant 0 : i32
    return %c0_i32, %c0_i32_0, %c0_i32_1 : i32, i32, i32
  }
  func.func @transform_2(%arg0: i32, %arg1: i32) -> (i32, i32) {
    %c0_i32 = arith.constant 0 : i32
    %c0_i32_0 = arith.constant 0 : i32
    %c0_i32_1 = arith.constant 0 : i32
    return %c0_i32, %c0_i32_0 : i32, i32
  }
  func.func @transform_3(%arg0: i32, %arg1: i32) -> (i32, i32) {
    %c0_i32 = arith.constant 0 : i32
    %c0_i32_0 = arith.constant 0 : i32
    %c0_i32_1 = arith.constant 0 : i32
    return %c0_i32, %c0_i32_0 : i32, i32
  }
  func.func @transform_4(%arg0: i32, %arg1: i32) -> (i32, i32, i32) {
    %0 = arith.muli %arg1, %arg0 : i32
    %c0_i32 = arith.constant 0 : i32
    %c0_i32_0 = arith.constant 0 : i32
    %c0_i32_1 = arith.constant 0 : i32
    return %c0_i32, %0, %c0_i32_0 : i32, i32, i32
  }
}

module attributes {stable_mosaic.version = 11 : i64} {
  func.func @_fused_conv_bn_elu_kernel(%arg0: i32, %arg1: i32, %arg2: memref<32x144xbf16, #tpu.memory_space<vmem>>, %arg3: memref<1x144x16xbf16, #tpu.memory_space<vmem>>, %arg4: memref<1x16xf32, #tpu.memory_space<vmem>>, %arg5: memref<1x16xf32, #tpu.memory_space<vmem>>, %arg6: memref<1x32x16xbf16, #tpu.memory_space<vmem>>, %arg7: memref<1x32x16xf32, #tpu.memory_space<vmem>>, %arg8: memref<1x16xf32, #tpu.memory_space<vmem>>, %arg9: memref<1x16xf32, #tpu.memory_space<vmem>>, %arg10: memref<1x16xf32, #tpu.memory_space<vmem>>, %arg11: memref<1x16xf32, #tpu.memory_space<vmem>>) attributes {dimension_semantics = [#tpu.dimension_semantics<arbitrary>, #tpu.dimension_semantics<arbitrary>], iteration_bounds = array<i64: 2, 1>, scalar_prefetch = 0 : i64, scratch_operands = 5 : i64, tpu.core_type = #tpu.core_type<tc>, window_params = [{transform_indices = @transform_0, window_bounds = array<i64: 32, 144>}, {pipeline_mode = #tpu.pipeline_mode<synchronous>, transform_indices = @transform_1, window_bounds = array<i64: 1, 144, 16>}, {pipeline_mode = #tpu.pipeline_mode<synchronous>, transform_indices = @transform_2, window_bounds = array<i64: 1, 16>}, {pipeline_mode = #tpu.pipeline_mode<synchronous>, transform_indices = @transform_3, window_bounds = array<i64: 1, 16>}, {transform_indices = @transform_4, window_bounds = array<i64: 1, 32, 16>}]} {
    %c0_i32 = arith.constant 0 : i32
    %0 = arith.cmpi eq, %arg0, %c0_i32 : i32
    %1 = arith.extui %0 : i1 to i32
    %c0_i32_0 = arith.constant 0 : i32
    %2 = arith.cmpi ne, %1, %c0_i32_0 : i32
    scf.if %2 {
      %c0_i32_5 = arith.constant 0 : i32
      %11 = arith.cmpi eq, %arg1, %c0_i32_5 : i32
      %12 = arith.extui %11 : i1 to i32
      %c0_i32_6 = arith.constant 0 : i32
      %13 = arith.cmpi ne, %12, %c0_i32_6 : i32
      scf.if %13 {
        %cst_23 = arith.constant 0.000000e+00 : f32
        %35 = vector.broadcast %cst_23 : f32 to vector<1x16xf32>
        %c0_24 = arith.constant 0 : index
        %c0_25 = arith.constant 0 : index
        %36 = vector.load %arg8[%c0_24, %c0_25] : memref<1x16xf32, #tpu.memory_space<vmem>>, vector<1x16xf32>
        tpu.vector_store %arg8[%c0_24, %c0_25], %35 {strides = array<i32>} : memref<1x16xf32, #tpu.memory_space<vmem>>, vector<1x16xf32>,
        %cst_26 = arith.constant 0.000000e+00 : f32
        %37 = vector.broadcast %cst_26 : f32 to vector<1x16xf32>
        %c0_27 = arith.constant 0 : index
        %c0_28 = arith.constant 0 : index
        %38 = vector.load %arg9[%c0_27, %c0_28] : memref<1x16xf32, #tpu.memory_space<vmem>>, vector<1x16xf32>
        tpu.vector_store %arg9[%c0_27, %c0_28], %37 {strides = array<i32>} : memref<1x16xf32, #tpu.memory_space<vmem>>, vector<1x16xf32>,
      } else {
      }
      %c0 = arith.constant 0 : index
      %c0_7 = arith.constant 0 : index
      %14 = vector.load %arg2[%c0, %c0_7] : memref<32x144xbf16, #tpu.memory_space<vmem>>, vector<32x144xbf16>
      %c32_i32 = arith.constant 32 : i32
      %15 = arith.muli %arg1, %c32_i32 : i32
      %16 = tpu.assume_multiple %15, 32 : i32
      %c0_8 = arith.constant 0 : index
      %c0_9 = arith.constant 0 : index
      %c0_10 = arith.constant 0 : index
      %17 = vector.load %arg3[%c0_8, %c0_9, %c0_10] : memref<1x144x16xbf16, #tpu.memory_space<vmem>>, vector<1x144x16xbf16>
      %18 = vector.shape_cast %17 : vector<1x144x16xbf16> to vector<144x16xbf16>
      %cst = arith.constant dense<0.000000e+00> : vector<32x16xf32>
      %19 = tpu.matmul %14, %18, %cst {dimension_numbers = #tpu.dot_dimension_numbers<[1], [0], [0], [1], [0, 0, 1, 1], [], []>} : vector<32x144xbf16>, vector<144x16xbf16>, vector<32x16xf32> -> vector<32x16xf32>
      %c0_11 = arith.constant 0 : index
      %20 = arith.index_cast %16 : i32 to index
      %c0_12 = arith.constant 0 : index
      %21 = vector.load %arg7[%c0_11, %20, %c0_12] : memref<1x32x16xf32, #tpu.memory_space<vmem>>, vector<1x32x16xf32>
      %22 = vector.shape_cast %21 : vector<1x32x16xf32> to vector<32x16xf32>
      %23 = vector.shape_cast %19 : vector<32x16xf32> to vector<1x32x16xf32>
      tpu.vector_store %arg7[%c0_11, %20, %c0_12], %23 {strides = array<i32>} : memref<1x32x16xf32, #tpu.memory_space<vmem>>, vector<1x32x16xf32>,
      %c0_13 = arith.constant 0 : index
      %c0_14 = arith.constant 0 : index
      %24 = vector.load %arg8[%c0_13, %c0_14] : memref<1x16xf32, #tpu.memory_space<vmem>>, vector<1x16xf32>
      %cst_15 = arith.constant dense<0.000000e+00> : vector<16xf32>
      %25 = vector.multi_reduction <add>, %19, %cst_15 [0] : vector<32x16xf32> to vector<16xf32>
      %26 = vector.shape_cast %25 : vector<16xf32> to vector<1x16xf32>
      %27 = arith.addf %24, %26 : vector<1x16xf32>
      %c0_16 = arith.constant 0 : index
      %c0_17 = arith.constant 0 : index
      %28 = vector.load %arg8[%c0_16, %c0_17] : memref<1x16xf32, #tpu.memory_space<vmem>>, vector<1x16xf32>
      tpu.vector_store %arg8[%c0_16, %c0_17], %27 {strides = array<i32>} : memref<1x16xf32, #tpu.memory_space<vmem>>, vector<1x16xf32>,
      %c0_18 = arith.constant 0 : index
      %c0_19 = arith.constant 0 : index
      %29 = vector.load %arg9[%c0_18, %c0_19] : memref<1x16xf32, #tpu.memory_space<vmem>>, vector<1x16xf32>
      %30 = arith.mulf %19, %19 : vector<32x16xf32>
      %cst_20 = arith.constant dense<0.000000e+00> : vector<16xf32>
      %31 = vector.multi_reduction <add>, %30, %cst_20 [0] : vector<32x16xf32> to vector<16xf32>
      %32 = vector.shape_cast %31 : vector<16xf32> to vector<1x16xf32>
      %33 = arith.addf %29, %32 : vector<1x16xf32>
      %c0_21 = arith.constant 0 : index
      %c0_22 = arith.constant 0 : index
      %34 = vector.load %arg9[%c0_21, %c0_22] : memref<1x16xf32, #tpu.memory_space<vmem>>, vector<1x16xf32>
      tpu.vector_store %arg9[%c0_21, %c0_22], %33 {strides = array<i32>} : memref<1x16xf32, #tpu.memory_space<vmem>>, vector<1x16xf32>,
    } else {
    }
    %c1_i32 = arith.constant 1 : i32
    %3 = arith.cmpi eq, %arg0, %c1_i32 : i32
    %c0_i32_1 = arith.constant 0 : i32
    %4 = arith.cmpi eq, %arg1, %c0_i32_1 : i32
    %5 = arith.andi %3, %4 : i1
    %6 = arith.extui %5 : i1 to i32
    %c0_i32_2 = arith.constant 0 : i32
    %7 = arith.cmpi ne, %6, %c0_i32_2 : i32
    scf.if %7 {
      %c0 = arith.constant 0 : index
      %c0_5 = arith.constant 0 : index
      %11 = vector.load %arg8[%c0, %c0_5] : memref<1x16xf32, #tpu.memory_space<vmem>>, vector<1x16xf32>
      %cst = arith.constant 3.125000e-02 : f32
      %12 = vector.broadcast %cst : f32 to vector<1x16xf32>
      %13 = arith.mulf %11, %12 : vector<1x16xf32>
      %c0_6 = arith.constant 0 : index
      %c0_7 = arith.constant 0 : index
      %14 = vector.load %arg9[%c0_6, %c0_7] : memref<1x16xf32, #tpu.memory_space<vmem>>, vector<1x16xf32>
      %cst_8 = arith.constant 3.125000e-02 : f32
      %15 = vector.broadcast %cst_8 : f32 to vector<1x16xf32>
      %16 = arith.mulf %14, %15 : vector<1x16xf32>
      %17 = arith.mulf %13, %13 : vector<1x16xf32>
      %18 = arith.subf %16, %17 : vector<1x16xf32>
      %cst_9 = arith.constant 0.000000e+00 : f32
      %19 = vector.broadcast %cst_9 : f32 to vector<1x16xf32>
      %20 = arith.maximumf %18, %19 : vector<1x16xf32>
      %c0_10 = arith.constant 0 : index
      %c0_11 = arith.constant 0 : index
      %21 = vector.load %arg4[%c0_10, %c0_11] : memref<1x16xf32, #tpu.memory_space<vmem>>, vector<1x16xf32>
      %cst_12 = arith.constant 9.99999974E-6 : f32
      %22 = vector.broadcast %cst_12 : f32 to vector<1x16xf32>
      %23 = arith.addf %20, %22 : vector<1x16xf32>
      %24 = math.rsqrt %23 : vector<1x16xf32>
      %25 = arith.mulf %21, %24 : vector<1x16xf32>
      %c0_13 = arith.constant 0 : index
      %c0_14 = arith.constant 0 : index
      %26 = vector.load %arg10[%c0_13, %c0_14] : memref<1x16xf32, #tpu.memory_space<vmem>>, vector<1x16xf32>
      tpu.vector_store %arg10[%c0_13, %c0_14], %25 {strides = array<i32>} : memref<1x16xf32, #tpu.memory_space<vmem>>, vector<1x16xf32>,
      %c0_15 = arith.constant 0 : index
      %c0_16 = arith.constant 0 : index
      %27 = vector.load %arg5[%c0_15, %c0_16] : memref<1x16xf32, #tpu.memory_space<vmem>>, vector<1x16xf32>
      %28 = arith.mulf %13, %25 : vector<1x16xf32>
      %29 = arith.subf %27, %28 : vector<1x16xf32>
      %c0_17 = arith.constant 0 : index
      %c0_18 = arith.constant 0 : index
      %30 = vector.load %arg11[%c0_17, %c0_18] : memref<1x16xf32, #tpu.memory_space<vmem>>, vector<1x16xf32>
      tpu.vector_store %arg11[%c0_17, %c0_18], %29 {strides = array<i32>} : memref<1x16xf32, #tpu.memory_space<vmem>>, vector<1x16xf32>,
    } else {
    }
    %c1_i32_3 = arith.constant 1 : i32
    %8 = arith.cmpi eq, %arg0, %c1_i32_3 : i32
    %9 = arith.extui %8 : i1 to i32
    %c0_i32_4 = arith.constant 0 : i32
    %10 = arith.cmpi ne, %9, %c0_i32_4 : i32
    scf.if %10 {
      %c32_i32 = arith.constant 32 : i32
      %11 = arith.muli %arg1, %c32_i32 : i32
      %12 = tpu.assume_multiple %11, 32 : i32
      %c0 = arith.constant 0 : index
      %c0_5 = arith.constant 0 : index
      %13 = vector.load %arg10[%c0, %c0_5] : memref<1x16xf32, #tpu.memory_space<vmem>>, vector<1x16xf32>
      %c0_6 = arith.constant 0 : index
      %c0_7 = arith.constant 0 : index
      %14 = vector.load %arg11[%c0_6, %c0_7] : memref<1x16xf32, #tpu.memory_space<vmem>>, vector<1x16xf32>
      %c0_8 = arith.constant 0 : index
      %15 = arith.index_cast %12 : i32 to index
      %c0_9 = arith.constant 0 : index
      %16 = vector.load %arg7[%c0_8, %15, %c0_9] : memref<1x32x16xf32, #tpu.memory_space<vmem>>, vector<1x32x16xf32>
      %17 = vector.shape_cast %16 : vector<1x32x16xf32> to vector<32x16xf32>
      %18 = vector.broadcast %13 : vector<1x16xf32> to vector<32x16xf32>
      %19 = arith.mulf %17, %18 : vector<32x16xf32>
      %20 = vector.broadcast %14 : vector<1x16xf32> to vector<32x16xf32>
      %21 = arith.addf %19, %20 : vector<32x16xf32>
      %cst = arith.constant 0.000000e+00 : f32
      %22 = vector.broadcast %cst : f32 to vector<32x16xf32>
      %23 = arith.cmpf ogt, %21, %22 : vector<32x16xf32>
      %cst_10 = arith.constant 0.000000e+00 : f32
      %24 = vector.broadcast %cst_10 : f32 to vector<32x16xf32>
      %25 = arith.minimumf %21, %24 : vector<32x16xf32>
      %26 = math.exp %25 : vector<32x16xf32>
      %cst_11 = arith.constant 1.000000e+00 : f32
      %27 = vector.broadcast %cst_11 : f32 to vector<32x16xf32>
      %28 = arith.subf %26, %27 : vector<32x16xf32>
      %29 = arith.select %23, %21, %28 : vector<32x16xi1>, vector<32x16xf32>
      %30 = arith.truncf %29 : vector<32x16xf32> to vector<32x16xbf16>
      %c0_12 = arith.constant 0 : index
      %c0_13 = arith.constant 0 : index
      %c0_14 = arith.constant 0 : index
      %31 = vector.load %arg6[%c0_12, %c0_13, %c0_14] : memref<1x32x16xbf16, #tpu.memory_space<vmem>>, vector<1x32x16xbf16>
      %32 = vector.shape_cast %31 : vector<1x32x16xbf16> to vector<32x16xbf16>
      %33 = vector.shape_cast %30 : vector<32x16xbf16> to vector<1x32x16xbf16>
      tpu.vector_store %arg6[%c0_12, %c0_13, %c0_14], %33 {strides = array<i32>} : memref<1x32x16xbf16, #tpu.memory_space<vmem>>, vector<1x32x16xbf16>,
    } else {
    }
    return
  }
  func.func @transform_0(%arg0: i32, %arg1: i32) -> (i32, i32) {
    %c1_i32 = arith.constant 1 : i32
    %0 = arith.subi %c1_i32, %arg0 : i32
    %1 = arith.muli %arg1, %0 : i32
    %c0_i32 = arith.constant 0 : i32
    %c0_i32_0 = arith.constant 0 : i32
    return %1, %c0_i32 : i32, i32
  }
  func.func @transform_1(%arg0: i32, %arg1: i32) -> (i32, i32, i32) {
    %c0_i32 = arith.constant 0 : i32
    %c0_i32_0 = arith.constant 0 : i32
    %c0_i32_1 = arith.constant 0 : i32
    %c0_i32_2 = arith.constant 0 : i32
    return %c0_i32, %c0_i32_0, %c0_i32_1 : i32, i32, i32
  }
  func.func @transform_2(%arg0: i32, %arg1: i32) -> (i32, i32) {
    %c0_i32 = arith.constant 0 : i32
    %c0_i32_0 = arith.constant 0 : i32
    %c0_i32_1 = arith.constant 0 : i32
    return %c0_i32, %c0_i32_0 : i32, i32
  }
  func.func @transform_3(%arg0: i32, %arg1: i32) -> (i32, i32) {
    %c0_i32 = arith.constant 0 : i32
    %c0_i32_0 = arith.constant 0 : i32
    %c0_i32_1 = arith.constant 0 : i32
    return %c0_i32, %c0_i32_0 : i32, i32
  }
  func.func @transform_4(%arg0: i32, %arg1: i32) -> (i32, i32, i32) {
    %0 = arith.muli %arg1, %arg0 : i32
    %c0_i32 = arith.constant 0 : i32
    %c0_i32_0 = arith.constant 0 : i32
    %c0_i32_1 = arith.constant 0 : i32
    return %c0_i32, %0, %c0_i32_0 : i32, i32, i32
  }
}

module attributes {stable_mosaic.version = 11 : i64} {
  func.func @_fused_conv_bn_elu_kernel(%arg0: i32, %arg1: i32, %arg2: memref<8x144xbf16, #tpu.memory_space<vmem>>, %arg3: memref<1x144x4xbf16, #tpu.memory_space<vmem>>, %arg4: memref<1x4xf32, #tpu.memory_space<vmem>>, %arg5: memref<1x4xf32, #tpu.memory_space<vmem>>, %arg6: memref<1x8x4xbf16, #tpu.memory_space<vmem>>, %arg7: memref<1x8x4xf32, #tpu.memory_space<vmem>>, %arg8: memref<1x4xf32, #tpu.memory_space<vmem>>, %arg9: memref<1x4xf32, #tpu.memory_space<vmem>>, %arg10: memref<1x4xf32, #tpu.memory_space<vmem>>, %arg11: memref<1x4xf32, #tpu.memory_space<vmem>>) attributes {dimension_semantics = [#tpu.dimension_semantics<arbitrary>, #tpu.dimension_semantics<arbitrary>], iteration_bounds = array<i64: 2, 1>, scalar_prefetch = 0 : i64, scratch_operands = 5 : i64, tpu.core_type = #tpu.core_type<tc>, window_params = [{transform_indices = @transform_0, window_bounds = array<i64: 8, 144>}, {pipeline_mode = #tpu.pipeline_mode<synchronous>, transform_indices = @transform_1, window_bounds = array<i64: 1, 144, 4>}, {pipeline_mode = #tpu.pipeline_mode<synchronous>, transform_indices = @transform_2, window_bounds = array<i64: 1, 4>}, {pipeline_mode = #tpu.pipeline_mode<synchronous>, transform_indices = @transform_3, window_bounds = array<i64: 1, 4>}, {transform_indices = @transform_4, window_bounds = array<i64: 1, 8, 4>}]} {
    %c0_i32 = arith.constant 0 : i32
    %0 = arith.cmpi eq, %arg0, %c0_i32 : i32
    %1 = arith.extui %0 : i1 to i32
    %c0_i32_0 = arith.constant 0 : i32
    %2 = arith.cmpi ne, %1, %c0_i32_0 : i32
    scf.if %2 {
      %c0_i32_5 = arith.constant 0 : i32
      %11 = arith.cmpi eq, %arg1, %c0_i32_5 : i32
      %12 = arith.extui %11 : i1 to i32
      %c0_i32_6 = arith.constant 0 : i32
      %13 = arith.cmpi ne, %12, %c0_i32_6 : i32
      scf.if %13 {
        %cst_23 = arith.constant 0.000000e+00 : f32
        %35 = vector.broadcast %cst_23 : f32 to vector<1x4xf32>
        %c0_24 = arith.constant 0 : index
        %c0_25 = arith.constant 0 : index
        %36 = vector.load %arg8[%c0_24, %c0_25] : memref<1x4xf32, #tpu.memory_space<vmem>>, vector<1x4xf32>
        tpu.vector_store %arg8[%c0_24, %c0_25], %35 {strides = array<i32>} : memref<1x4xf32, #tpu.memory_space<vmem>>, vector<1x4xf32>,
        %cst_26 = arith.constant 0.000000e+00 : f32
        %37 = vector.broadcast %cst_26 : f32 to vector<1x4xf32>
        %c0_27 = arith.constant 0 : index
        %c0_28 = arith.constant 0 : index
        %38 = vector.load %arg9[%c0_27, %c0_28] : memref<1x4xf32, #tpu.memory_space<vmem>>, vector<1x4xf32>
        tpu.vector_store %arg9[%c0_27, %c0_28], %37 {strides = array<i32>} : memref<1x4xf32, #tpu.memory_space<vmem>>, vector<1x4xf32>,
      } else {
      }
      %c0 = arith.constant 0 : index
      %c0_7 = arith.constant 0 : index
      %14 = vector.load %arg2[%c0, %c0_7] : memref<8x144xbf16, #tpu.memory_space<vmem>>, vector<8x144xbf16>
      %c8_i32 = arith.constant 8 : i32
      %15 = arith.muli %arg1, %c8_i32 : i32
      %16 = tpu.assume_multiple %15, 8 : i32
      %c0_8 = arith.constant 0 : index
      %c0_9 = arith.constant 0 : index
      %c0_10 = arith.constant 0 : index
      %17 = vector.load %arg3[%c0_8, %c0_9, %c0_10] : memref<1x144x4xbf16, #tpu.memory_space<vmem>>, vector<1x144x4xbf16>
      %18 = vector.shape_cast %17 : vector<1x144x4xbf16> to vector<144x4xbf16>
      %cst = arith.constant dense<0.000000e+00> : vector<8x4xf32>
      %19 = tpu.matmul %14, %18, %cst {dimension_numbers = #tpu.dot_dimension_numbers<[1], [0], [0], [1], [0, 0, 1, 1], [], []>} : vector<8x144xbf16>, vector<144x4xbf16>, vector<8x4xf32> -> vector<8x4xf32>
      %c0_11 = arith.constant 0 : index
      %20 = arith.index_cast %16 : i32 to index
      %c0_12 = arith.constant 0 : index
      %21 = vector.load %arg7[%c0_11, %20, %c0_12] : memref<1x8x4xf32, #tpu.memory_space<vmem>>, vector<1x8x4xf32>
      %22 = vector.shape_cast %21 : vector<1x8x4xf32> to vector<8x4xf32>
      %23 = vector.shape_cast %19 : vector<8x4xf32> to vector<1x8x4xf32>
      tpu.vector_store %arg7[%c0_11, %20, %c0_12], %23 {strides = array<i32>} : memref<1x8x4xf32, #tpu.memory_space<vmem>>, vector<1x8x4xf32>,
      %c0_13 = arith.constant 0 : index
      %c0_14 = arith.constant 0 : index
      %24 = vector.load %arg8[%c0_13, %c0_14] : memref<1x4xf32, #tpu.memory_space<vmem>>, vector<1x4xf32>
      %cst_15 = arith.constant dense<0.000000e+00> : vector<4xf32>
      %25 = vector.multi_reduction <add>, %19, %cst_15 [0] : vector<8x4xf32> to vector<4xf32>
      %26 = vector.shape_cast %25 : vector<4xf32> to vector<1x4xf32>
      %27 = arith.addf %24, %26 : vector<1x4xf32>
      %c0_16 = arith.constant 0 : index
      %c0_17 = arith.constant 0 : index
      %28 = vector.load %arg8[%c0_16, %c0_17] : memref<1x4xf32, #tpu.memory_space<vmem>>, vector<1x4xf32>
      tpu.vector_store %arg8[%c0_16, %c0_17], %27 {strides = array<i32>} : memref<1x4xf32, #tpu.memory_space<vmem>>, vector<1x4xf32>,
      %c0_18 = arith.constant 0 : index
      %c0_19 = arith.constant 0 : index
      %29 = vector.load %arg9[%c0_18, %c0_19] : memref<1x4xf32, #tpu.memory_space<vmem>>, vector<1x4xf32>
      %30 = arith.mulf %19, %19 : vector<8x4xf32>
      %cst_20 = arith.constant dense<0.000000e+00> : vector<4xf32>
      %31 = vector.multi_reduction <add>, %30, %cst_20 [0] : vector<8x4xf32> to vector<4xf32>
      %32 = vector.shape_cast %31 : vector<4xf32> to vector<1x4xf32>
      %33 = arith.addf %29, %32 : vector<1x4xf32>
      %c0_21 = arith.constant 0 : index
      %c0_22 = arith.constant 0 : index
      %34 = vector.load %arg9[%c0_21, %c0_22] : memref<1x4xf32, #tpu.memory_space<vmem>>, vector<1x4xf32>
      tpu.vector_store %arg9[%c0_21, %c0_22], %33 {strides = array<i32>} : memref<1x4xf32, #tpu.memory_space<vmem>>, vector<1x4xf32>,
    } else {
    }
    %c1_i32 = arith.constant 1 : i32
    %3 = arith.cmpi eq, %arg0, %c1_i32 : i32
    %c0_i32_1 = arith.constant 0 : i32
    %4 = arith.cmpi eq, %arg1, %c0_i32_1 : i32
    %5 = arith.andi %3, %4 : i1
    %6 = arith.extui %5 : i1 to i32
    %c0_i32_2 = arith.constant 0 : i32
    %7 = arith.cmpi ne, %6, %c0_i32_2 : i32
    scf.if %7 {
      %c0 = arith.constant 0 : index
      %c0_5 = arith.constant 0 : index
      %11 = vector.load %arg8[%c0, %c0_5] : memref<1x4xf32, #tpu.memory_space<vmem>>, vector<1x4xf32>
      %cst = arith.constant 1.250000e-01 : f32
      %12 = vector.broadcast %cst : f32 to vector<1x4xf32>
      %13 = arith.mulf %11, %12 : vector<1x4xf32>
      %c0_6 = arith.constant 0 : index
      %c0_7 = arith.constant 0 : index
      %14 = vector.load %arg9[%c0_6, %c0_7] : memref<1x4xf32, #tpu.memory_space<vmem>>, vector<1x4xf32>
      %cst_8 = arith.constant 1.250000e-01 : f32
      %15 = vector.broadcast %cst_8 : f32 to vector<1x4xf32>
      %16 = arith.mulf %14, %15 : vector<1x4xf32>
      %17 = arith.mulf %13, %13 : vector<1x4xf32>
      %18 = arith.subf %16, %17 : vector<1x4xf32>
      %cst_9 = arith.constant 0.000000e+00 : f32
      %19 = vector.broadcast %cst_9 : f32 to vector<1x4xf32>
      %20 = arith.maximumf %18, %19 : vector<1x4xf32>
      %c0_10 = arith.constant 0 : index
      %c0_11 = arith.constant 0 : index
      %21 = vector.load %arg4[%c0_10, %c0_11] : memref<1x4xf32, #tpu.memory_space<vmem>>, vector<1x4xf32>
      %cst_12 = arith.constant 9.99999974E-6 : f32
      %22 = vector.broadcast %cst_12 : f32 to vector<1x4xf32>
      %23 = arith.addf %20, %22 : vector<1x4xf32>
      %24 = math.rsqrt %23 : vector<1x4xf32>
      %25 = arith.mulf %21, %24 : vector<1x4xf32>
      %c0_13 = arith.constant 0 : index
      %c0_14 = arith.constant 0 : index
      %26 = vector.load %arg10[%c0_13, %c0_14] : memref<1x4xf32, #tpu.memory_space<vmem>>, vector<1x4xf32>
      tpu.vector_store %arg10[%c0_13, %c0_14], %25 {strides = array<i32>} : memref<1x4xf32, #tpu.memory_space<vmem>>, vector<1x4xf32>,
      %c0_15 = arith.constant 0 : index
      %c0_16 = arith.constant 0 : index
      %27 = vector.load %arg5[%c0_15, %c0_16] : memref<1x4xf32, #tpu.memory_space<vmem>>, vector<1x4xf32>
      %28 = arith.mulf %13, %25 : vector<1x4xf32>
      %29 = arith.subf %27, %28 : vector<1x4xf32>
      %c0_17 = arith.constant 0 : index
      %c0_18 = arith.constant 0 : index
      %30 = vector.load %arg11[%c0_17, %c0_18] : memref<1x4xf32, #tpu.memory_space<vmem>>, vector<1x4xf32>
      tpu.vector_store %arg11[%c0_17, %c0_18], %29 {strides = array<i32>} : memref<1x4xf32, #tpu.memory_space<vmem>>, vector<1x4xf32>,
    } else {
    }
    %c1_i32_3 = arith.constant 1 : i32
    %8 = arith.cmpi eq, %arg0, %c1_i32_3 : i32
    %9 = arith.extui %8 : i1 to i32
    %c0_i32_4 = arith.constant 0 : i32
    %10 = arith.cmpi ne, %9, %c0_i32_4 : i32
    scf.if %10 {
      %c8_i32 = arith.constant 8 : i32
      %11 = arith.muli %arg1, %c8_i32 : i32
      %12 = tpu.assume_multiple %11, 8 : i32
      %c0 = arith.constant 0 : index
      %c0_5 = arith.constant 0 : index
      %13 = vector.load %arg10[%c0, %c0_5] : memref<1x4xf32, #tpu.memory_space<vmem>>, vector<1x4xf32>
      %c0_6 = arith.constant 0 : index
      %c0_7 = arith.constant 0 : index
      %14 = vector.load %arg11[%c0_6, %c0_7] : memref<1x4xf32, #tpu.memory_space<vmem>>, vector<1x4xf32>
      %c0_8 = arith.constant 0 : index
      %15 = arith.index_cast %12 : i32 to index
      %c0_9 = arith.constant 0 : index
      %16 = vector.load %arg7[%c0_8, %15, %c0_9] : memref<1x8x4xf32, #tpu.memory_space<vmem>>, vector<1x8x4xf32>
      %17 = vector.shape_cast %16 : vector<1x8x4xf32> to vector<8x4xf32>
      %18 = vector.broadcast %13 : vector<1x4xf32> to vector<8x4xf32>
      %19 = arith.mulf %17, %18 : vector<8x4xf32>
      %20 = vector.broadcast %14 : vector<1x4xf32> to vector<8x4xf32>
      %21 = arith.addf %19, %20 : vector<8x4xf32>
      %cst = arith.constant 0.000000e+00 : f32
      %22 = vector.broadcast %cst : f32 to vector<8x4xf32>
      %23 = arith.cmpf ogt, %21, %22 : vector<8x4xf32>
      %cst_10 = arith.constant 0.000000e+00 : f32
      %24 = vector.broadcast %cst_10 : f32 to vector<8x4xf32>
      %25 = arith.minimumf %21, %24 : vector<8x4xf32>
      %26 = math.exp %25 : vector<8x4xf32>
      %cst_11 = arith.constant 1.000000e+00 : f32
      %27 = vector.broadcast %cst_11 : f32 to vector<8x4xf32>
      %28 = arith.subf %26, %27 : vector<8x4xf32>
      %29 = arith.select %23, %21, %28 : vector<8x4xi1>, vector<8x4xf32>
      %30 = arith.truncf %29 : vector<8x4xf32> to vector<8x4xbf16>
      %c0_12 = arith.constant 0 : index
      %c0_13 = arith.constant 0 : index
      %c0_14 = arith.constant 0 : index
      %31 = vector.load %arg6[%c0_12, %c0_13, %c0_14] : memref<1x8x4xbf16, #tpu.memory_space<vmem>>, vector<1x8x4xbf16>
      %32 = vector.shape_cast %31 : vector<1x8x4xbf16> to vector<8x4xbf16>
      %33 = vector.shape_cast %30 : vector<8x4xbf16> to vector<1x8x4xbf16>
      tpu.vector_store %arg6[%c0_12, %c0_13, %c0_14], %33 {strides = array<i32>} : memref<1x8x4xbf16, #tpu.memory_space<vmem>>, vector<1x8x4xbf16>,
    } else {
    }
    return
  }
  func.func @transform_0(%arg0: i32, %arg1: i32) -> (i32, i32) {
    %c1_i32 = arith.constant 1 : i32
    %0 = arith.subi %c1_i32, %arg0 : i32
    %1 = arith.muli %arg1, %0 : i32
    %c0_i32 = arith.constant 0 : i32
    %c0_i32_0 = arith.constant 0 : i32
    return %1, %c0_i32 : i32, i32
  }
  func.func @transform_1(%arg0: i32, %arg1: i32) -> (i32, i32, i32) {
    %c0_i32 = arith.constant 0 : i32
    %c0_i32_0 = arith.constant 0 : i32
    %c0_i32_1 = arith.constant 0 : i32
    %c0_i32_2 = arith.constant 0 : i32
    return %c0_i32, %c0_i32_0, %c0_i32_1 : i32, i32, i32
  }
  func.func @transform_2(%arg0: i32, %arg1: i32) -> (i32, i32) {
    %c0_i32 = arith.constant 0 : i32
    %c0_i32_0 = arith.constant 0 : i32
    %c0_i32_1 = arith.constant 0 : i32
    return %c0_i32, %c0_i32_0 : i32, i32
  }
  func.func @transform_3(%arg0: i32, %arg1: i32) -> (i32, i32) {
    %c0_i32 = arith.constant 0 : i32
    %c0_i32_0 = arith.constant 0 : i32
    %c0_i32_1 = arith.constant 0 : i32
    return %c0_i32, %c0_i32_0 : i32, i32
  }
  func.func @transform_4(%arg0: i32, %arg1: i32) -> (i32, i32, i32) {
    %0 = arith.muli %arg1, %arg0 : i32
    %c0_i32 = arith.constant 0 : i32
    %c0_i32_0 = arith.constant 0 : i32
    %c0_i32_1 = arith.constant 0 : i32
    return %c0_i32, %0, %c0_i32_0 : i32, i32, i32
  }
}

module attributes {stable_mosaic.version = 11 : i64} {
  func.func @_fused_conv_bn_elu_kernel(%arg0: i32, %arg1: i32, %arg2: memref<8x4xbf16, #tpu.memory_space<vmem>>, %arg3: memref<4x4x16xbf16, #tpu.memory_space<vmem>>, %arg4: memref<1x16xf32, #tpu.memory_space<vmem>>, %arg5: memref<1x16xf32, #tpu.memory_space<vmem>>, %arg6: memref<4x8x16xbf16, #tpu.memory_space<vmem>>, %arg7: memref<4x8x16xf32, #tpu.memory_space<vmem>>, %arg8: memref<1x16xf32, #tpu.memory_space<vmem>>, %arg9: memref<1x16xf32, #tpu.memory_space<vmem>>, %arg10: memref<1x16xf32, #tpu.memory_space<vmem>>, %arg11: memref<1x16xf32, #tpu.memory_space<vmem>>) attributes {dimension_semantics = [#tpu.dimension_semantics<arbitrary>, #tpu.dimension_semantics<arbitrary>], iteration_bounds = array<i64: 2, 1>, scalar_prefetch = 0 : i64, scratch_operands = 5 : i64, tpu.core_type = #tpu.core_type<tc>, window_params = [{transform_indices = @transform_0, window_bounds = array<i64: 8, 4>}, {pipeline_mode = #tpu.pipeline_mode<synchronous>, transform_indices = @transform_1, window_bounds = array<i64: 4, 4, 16>}, {pipeline_mode = #tpu.pipeline_mode<synchronous>, transform_indices = @transform_2, window_bounds = array<i64: 1, 16>}, {pipeline_mode = #tpu.pipeline_mode<synchronous>, transform_indices = @transform_3, window_bounds = array<i64: 1, 16>}, {transform_indices = @transform_4, window_bounds = array<i64: 4, 8, 16>}]} {
    %c0_i32 = arith.constant 0 : i32
    %0 = arith.cmpi eq, %arg0, %c0_i32 : i32
    %1 = arith.extui %0 : i1 to i32
    %c0_i32_0 = arith.constant 0 : i32
    %2 = arith.cmpi ne, %1, %c0_i32_0 : i32
    scf.if %2 {
      %c0_i32_5 = arith.constant 0 : i32
      %11 = arith.cmpi eq, %arg1, %c0_i32_5 : i32
      %12 = arith.extui %11 : i1 to i32
      %c0_i32_6 = arith.constant 0 : i32
      %13 = arith.cmpi ne, %12, %c0_i32_6 : i32
      scf.if %13 {
        %cst_68 = arith.constant 0.000000e+00 : f32
        %89 = vector.broadcast %cst_68 : f32 to vector<1x16xf32>
        %c0_69 = arith.constant 0 : index
        %c0_70 = arith.constant 0 : index
        %90 = vector.load %arg8[%c0_69, %c0_70] : memref<1x16xf32, #tpu.memory_space<vmem>>, vector<1x16xf32>
        tpu.vector_store %arg8[%c0_69, %c0_70], %89 {strides = array<i32>} : memref<1x16xf32, #tpu.memory_space<vmem>>, vector<1x16xf32>,
        %cst_71 = arith.constant 0.000000e+00 : f32
        %91 = vector.broadcast %cst_71 : f32 to vector<1x16xf32>
        %c0_72 = arith.constant 0 : index
        %c0_73 = arith.constant 0 : index
        %92 = vector.load %arg9[%c0_72, %c0_73] : memref<1x16xf32, #tpu.memory_space<vmem>>, vector<1x16xf32>
        tpu.vector_store %arg9[%c0_72, %c0_73], %91 {strides = array<i32>} : memref<1x16xf32, #tpu.memory_space<vmem>>, vector<1x16xf32>,
      } else {
      }
      %c0 = arith.constant 0 : index
      %c0_7 = arith.constant 0 : index
      %14 = vector.load %arg2[%c0, %c0_7] : memref<8x4xbf16, #tpu.memory_space<vmem>>, vector<8x4xbf16>
      %c8_i32 = arith.constant 8 : i32
      %15 = arith.muli %arg1, %c8_i32 : i32
      %16 = tpu.assume_multiple %15, 8 : i32
      %c0_8 = arith.constant 0 : index
      %c0_9 = arith.constant 0 : index
      %c0_10 = arith.constant 0 : index
      %17 = vector.load %arg3[%c0_8, %c0_9, %c0_10] : memref<4x4x16xbf16, #tpu.memory_space<vmem>>, vector<1x4x16xbf16>
      %18 = vector.shape_cast %17 : vector<1x4x16xbf16> to vector<4x16xbf16>
      %cst = arith.constant dense<0.000000e+00> : vector<8x16xf32>
      %19 = tpu.matmul %14, %18, %cst {dimension_numbers = #tpu.dot_dimension_numbers<[1], [0], [0], [1], [0, 0, 1, 1], [], []>} : vector<8x4xbf16>, vector<4x16xbf16>, vector<8x16xf32> -> vector<8x16xf32>
      %c0_11 = arith.constant 0 : index
      %20 = arith.index_cast %16 : i32 to index
      %c0_12 = arith.constant 0 : index
      %21 = vector.load %arg7[%c0_11, %20, %c0_12] : memref<4x8x16xf32, #tpu.memory_space<vmem>>, vector<1x8x16xf32>
      %22 = vector.shape_cast %21 : vector<1x8x16xf32> to vector<8x16xf32>
      %23 = vector.shape_cast %19 : vector<8x16xf32> to vector<1x8x16xf32>
      tpu.vector_store %arg7[%c0_11, %20, %c0_12], %23 {strides = array<i32>} : memref<4x8x16xf32, #tpu.memory_space<vmem>>, vector<1x8x16xf32>,
      %c0_13 = arith.constant 0 : index
      %c0_14 = arith.constant 0 : index
      %24 = vector.load %arg8[%c0_13, %c0_14] : memref<1x16xf32, #tpu.memory_space<vmem>>, vector<1x16xf32>
      %cst_15 = arith.constant dense<0.000000e+00> : vector<16xf32>
      %25 = vector.multi_reduction <add>, %19, %cst_15 [0] : vector<8x16xf32> to vector<16xf32>
      %26 = vector.shape_cast %25 : vector<16xf32> to vector<1x16xf32>
      %27 = arith.addf %24, %26 : vector<1x16xf32>
      %c0_16 = arith.constant 0 : index
      %c0_17 = arith.constant 0 : index
      %28 = vector.load %arg8[%c0_16, %c0_17] : memref<1x16xf32, #tpu.memory_space<vmem>>, vector<1x16xf32>
      tpu.vector_store %arg8[%c0_16, %c0_17], %27 {strides = array<i32>} : memref<1x16xf32, #tpu.memory_space<vmem>>, vector<1x16xf32>,
      %c0_18 = arith.constant 0 : index
      %c0_19 = arith.constant 0 : index
      %29 = vector.load %arg9[%c0_18, %c0_19] : memref<1x16xf32, #tpu.memory_space<vmem>>, vector<1x16xf32>
      %30 = arith.mulf %19, %19 : vector<8x16xf32>
      %cst_20 = arith.constant dense<0.000000e+00> : vector<16xf32>
      %31 = vector.multi_reduction <add>, %30, %cst_20 [0] : vector<8x16xf32> to vector<16xf32>
      %32 = vector.shape_cast %31 : vector<16xf32> to vector<1x16xf32>
      %33 = arith.addf %29, %32 : vector<1x16xf32>
      %c0_21 = arith.constant 0 : index
      %c0_22 = arith.constant 0 : index
      %34 = vector.load %arg9[%c0_21, %c0_22] : memref<1x16xf32, #tpu.memory_space<vmem>>, vector<1x16xf32>
      tpu.vector_store %arg9[%c0_21, %c0_22], %33 {strides = array<i32>} : memref<1x16xf32, #tpu.memory_space<vmem>>, vector<1x16xf32>,
      %c1 = arith.constant 1 : index
      %c0_23 = arith.constant 0 : index
      %c0_24 = arith.constant 0 : index
      %35 = vector.load %arg3[%c1, %c0_23, %c0_24] : memref<4x4x16xbf16, #tpu.memory_space<vmem>>, vector<1x4x16xbf16>
      %36 = vector.shape_cast %35 : vector<1x4x16xbf16> to vector<4x16xbf16>
      %cst_25 = arith.constant dense<0.000000e+00> : vector<8x16xf32>
      %37 = tpu.matmul %14, %36, %cst_25 {dimension_numbers = #tpu.dot_dimension_numbers<[1], [0], [0], [1], [0, 0, 1, 1], [], []>} : vector<8x4xbf16>, vector<4x16xbf16>, vector<8x16xf32> -> vector<8x16xf32>
      %c1_26 = arith.constant 1 : index
      %38 = arith.index_cast %16 : i32 to index
      %c0_27 = arith.constant 0 : index
      %39 = vector.load %arg7[%c1_26, %38, %c0_27] : memref<4x8x16xf32, #tpu.memory_space<vmem>>, vector<1x8x16xf32>
      %40 = vector.shape_cast %39 : vector<1x8x16xf32> to vector<8x16xf32>
      %41 = vector.shape_cast %37 : vector<8x16xf32> to vector<1x8x16xf32>
      tpu.vector_store %arg7[%c1_26, %38, %c0_27], %41 {strides = array<i32>} : memref<4x8x16xf32, #tpu.memory_space<vmem>>, vector<1x8x16xf32>,
      %c0_28 = arith.constant 0 : index
      %c0_29 = arith.constant 0 : index
      %42 = vector.load %arg8[%c0_28, %c0_29] : memref<1x16xf32, #tpu.memory_space<vmem>>, vector<1x16xf32>
      %cst_30 = arith.constant dense<0.000000e+00> : vector<16xf32>
      %43 = vector.multi_reduction <add>, %37, %cst_30 [0] : vector<8x16xf32> to vector<16xf32>
      %44 = vector.shape_cast %43 : vector<16xf32> to vector<1x16xf32>
      %45 = arith.addf %42, %44 : vector<1x16xf32>
      %c0_31 = arith.constant 0 : index
      %c0_32 = arith.constant 0 : index
      %46 = vector.load %arg8[%c0_31, %c0_32] : memref<1x16xf32, #tpu.memory_space<vmem>>, vector<1x16xf32>
      tpu.vector_store %arg8[%c0_31, %c0_32], %45 {strides = array<i32>} : memref<1x16xf32, #tpu.memory_space<vmem>>, vector<1x16xf32>,
      %c0_33 = arith.constant 0 : index
      %c0_34 = arith.constant 0 : index
      %47 = vector.load %arg9[%c0_33, %c0_34] : memref<1x16xf32, #tpu.memory_space<vmem>>, vector<1x16xf32>
      %48 = arith.mulf %37, %37 : vector<8x16xf32>
      %cst_35 = arith.constant dense<0.000000e+00> : vector<16xf32>
      %49 = vector.multi_reduction <add>, %48, %cst_35 [0] : vector<8x16xf32> to vector<16xf32>
      %50 = vector.shape_cast %49 : vector<16xf32> to vector<1x16xf32>
      %51 = arith.addf %47, %50 : vector<1x16xf32>
      %c0_36 = arith.constant 0 : index
      %c0_37 = arith.constant 0 : index
      %52 = vector.load %arg9[%c0_36, %c0_37] : memref<1x16xf32, #tpu.memory_space<vmem>>, vector<1x16xf32>
      tpu.vector_store %arg9[%c0_36, %c0_37], %51 {strides = array<i32>} : memref<1x16xf32, #tpu.memory_space<vmem>>, vector<1x16xf32>,
      %c2 = arith.constant 2 : index
      %c0_38 = arith.constant 0 : index
      %c0_39 = arith.constant 0 : index
      %53 = vector.load %arg3[%c2, %c0_38, %c0_39] : memref<4x4x16xbf16, #tpu.memory_space<vmem>>, vector<1x4x16xbf16>
      %54 = vector.shape_cast %53 : vector<1x4x16xbf16> to vector<4x16xbf16>
      %cst_40 = arith.constant dense<0.000000e+00> : vector<8x16xf32>
      %55 = tpu.matmul %14, %54, %cst_40 {dimension_numbers = #tpu.dot_dimension_numbers<[1], [0], [0], [1], [0, 0, 1, 1], [], []>} : vector<8x4xbf16>, vector<4x16xbf16>, vector<8x16xf32> -> vector<8x16xf32>
      %c2_41 = arith.constant 2 : index
      %56 = arith.index_cast %16 : i32 to index
      %c0_42 = arith.constant 0 : index
      %57 = vector.load %arg7[%c2_41, %56, %c0_42] : memref<4x8x16xf32, #tpu.memory_space<vmem>>, vector<1x8x16xf32>
      %58 = vector.shape_cast %57 : vector<1x8x16xf32> to vector<8x16xf32>
      %59 = vector.shape_cast %55 : vector<8x16xf32> to vector<1x8x16xf32>
      tpu.vector_store %arg7[%c2_41, %56, %c0_42], %59 {strides = array<i32>} : memref<4x8x16xf32, #tpu.memory_space<vmem>>, vector<1x8x16xf32>,
      %c0_43 = arith.constant 0 : index
      %c0_44 = arith.constant 0 : index
      %60 = vector.load %arg8[%c0_43, %c0_44] : memref<1x16xf32, #tpu.memory_space<vmem>>, vector<1x16xf32>
      %cst_45 = arith.constant dense<0.000000e+00> : vector<16xf32>
      %61 = vector.multi_reduction <add>, %55, %cst_45 [0] : vector<8x16xf32> to vector<16xf32>
      %62 = vector.shape_cast %61 : vector<16xf32> to vector<1x16xf32>
      %63 = arith.addf %60, %62 : vector<1x16xf32>
      %c0_46 = arith.constant 0 : index
      %c0_47 = arith.constant 0 : index
      %64 = vector.load %arg8[%c0_46, %c0_47] : memref<1x16xf32, #tpu.memory_space<vmem>>, vector<1x16xf32>
      tpu.vector_store %arg8[%c0_46, %c0_47], %63 {strides = array<i32>} : memref<1x16xf32, #tpu.memory_space<vmem>>, vector<1x16xf32>,
      %c0_48 = arith.constant 0 : index
      %c0_49 = arith.constant 0 : index
      %65 = vector.load %arg9[%c0_48, %c0_49] : memref<1x16xf32, #tpu.memory_space<vmem>>, vector<1x16xf32>
      %66 = arith.mulf %55, %55 : vector<8x16xf32>
      %cst_50 = arith.constant dense<0.000000e+00> : vector<16xf32>
      %67 = vector.multi_reduction <add>, %66, %cst_50 [0] : vector<8x16xf32> to vector<16xf32>
      %68 = vector.shape_cast %67 : vector<16xf32> to vector<1x16xf32>
      %69 = arith.addf %65, %68 : vector<1x16xf32>
      %c0_51 = arith.constant 0 : index
      %c0_52 = arith.constant 0 : index
      %70 = vector.load %arg9[%c0_51, %c0_52] : memref<1x16xf32, #tpu.memory_space<vmem>>, vector<1x16xf32>
      tpu.vector_store %arg9[%c0_51, %c0_52], %69 {strides = array<i32>} : memref<1x16xf32, #tpu.memory_space<vmem>>, vector<1x16xf32>,
      %c3 = arith.constant 3 : index
      %c0_53 = arith.constant 0 : index
      %c0_54 = arith.constant 0 : index
      %71 = vector.load %arg3[%c3, %c0_53, %c0_54] : memref<4x4x16xbf16, #tpu.memory_space<vmem>>, vector<1x4x16xbf16>
      %72 = vector.shape_cast %71 : vector<1x4x16xbf16> to vector<4x16xbf16>
      %cst_55 = arith.constant dense<0.000000e+00> : vector<8x16xf32>
      %73 = tpu.matmul %14, %72, %cst_55 {dimension_numbers = #tpu.dot_dimension_numbers<[1], [0], [0], [1], [0, 0, 1, 1], [], []>} : vector<8x4xbf16>, vector<4x16xbf16>, vector<8x16xf32> -> vector<8x16xf32>
      %c3_56 = arith.constant 3 : index
      %74 = arith.index_cast %16 : i32 to index
      %c0_57 = arith.constant 0 : index
      %75 = vector.load %arg7[%c3_56, %74, %c0_57] : memref<4x8x16xf32, #tpu.memory_space<vmem>>, vector<1x8x16xf32>
      %76 = vector.shape_cast %75 : vector<1x8x16xf32> to vector<8x16xf32>
      %77 = vector.shape_cast %73 : vector<8x16xf32> to vector<1x8x16xf32>
      tpu.vector_store %arg7[%c3_56, %74, %c0_57], %77 {strides = array<i32>} : memref<4x8x16xf32, #tpu.memory_space<vmem>>, vector<1x8x16xf32>,
      %c0_58 = arith.constant 0 : index
      %c0_59 = arith.constant 0 : index
      %78 = vector.load %arg8[%c0_58, %c0_59] : memref<1x16xf32, #tpu.memory_space<vmem>>, vector<1x16xf32>
      %cst_60 = arith.constant dense<0.000000e+00> : vector<16xf32>
      %79 = vector.multi_reduction <add>, %73, %cst_60 [0] : vector<8x16xf32> to vector<16xf32>
      %80 = vector.shape_cast %79 : vector<16xf32> to vector<1x16xf32>
      %81 = arith.addf %78, %80 : vector<1x16xf32>
      %c0_61 = arith.constant 0 : index
      %c0_62 = arith.constant 0 : index
      %82 = vector.load %arg8[%c0_61, %c0_62] : memref<1x16xf32, #tpu.memory_space<vmem>>, vector<1x16xf32>
      tpu.vector_store %arg8[%c0_61, %c0_62], %81 {strides = array<i32>} : memref<1x16xf32, #tpu.memory_space<vmem>>, vector<1x16xf32>,
      %c0_63 = arith.constant 0 : index
      %c0_64 = arith.constant 0 : index
      %83 = vector.load %arg9[%c0_63, %c0_64] : memref<1x16xf32, #tpu.memory_space<vmem>>, vector<1x16xf32>
      %84 = arith.mulf %73, %73 : vector<8x16xf32>
      %cst_65 = arith.constant dense<0.000000e+00> : vector<16xf32>
      %85 = vector.multi_reduction <add>, %84, %cst_65 [0] : vector<8x16xf32> to vector<16xf32>
      %86 = vector.shape_cast %85 : vector<16xf32> to vector<1x16xf32>
      %87 = arith.addf %83, %86 : vector<1x16xf32>
      %c0_66 = arith.constant 0 : index
      %c0_67 = arith.constant 0 : index
      %88 = vector.load %arg9[%c0_66, %c0_67] : memref<1x16xf32, #tpu.memory_space<vmem>>, vector<1x16xf32>
      tpu.vector_store %arg9[%c0_66, %c0_67], %87 {strides = array<i32>} : memref<1x16xf32, #tpu.memory_space<vmem>>, vector<1x16xf32>,
    } else {
    }
    %c1_i32 = arith.constant 1 : i32
    %3 = arith.cmpi eq, %arg0, %c1_i32 : i32
    %c0_i32_1 = arith.constant 0 : i32
    %4 = arith.cmpi eq, %arg1, %c0_i32_1 : i32
    %5 = arith.andi %3, %4 : i1
    %6 = arith.extui %5 : i1 to i32
    %c0_i32_2 = arith.constant 0 : i32
    %7 = arith.cmpi ne, %6, %c0_i32_2 : i32
    scf.if %7 {
      %c0 = arith.constant 0 : index
      %c0_5 = arith.constant 0 : index
      %11 = vector.load %arg8[%c0, %c0_5] : memref<1x16xf32, #tpu.memory_space<vmem>>, vector<1x16xf32>
      %cst = arith.constant 3.125000e-02 : f32
      %12 = vector.broadcast %cst : f32 to vector<1x16xf32>
      %13 = arith.mulf %11, %12 : vector<1x16xf32>
      %c0_6 = arith.constant 0 : index
      %c0_7 = arith.constant 0 : index
      %14 = vector.load %arg9[%c0_6, %c0_7] : memref<1x16xf32, #tpu.memory_space<vmem>>, vector<1x16xf32>
      %cst_8 = arith.constant 3.125000e-02 : f32
      %15 = vector.broadcast %cst_8 : f32 to vector<1x16xf32>
      %16 = arith.mulf %14, %15 : vector<1x16xf32>
      %17 = arith.mulf %13, %13 : vector<1x16xf32>
      %18 = arith.subf %16, %17 : vector<1x16xf32>
      %cst_9 = arith.constant 0.000000e+00 : f32
      %19 = vector.broadcast %cst_9 : f32 to vector<1x16xf32>
      %20 = arith.maximumf %18, %19 : vector<1x16xf32>
      %c0_10 = arith.constant 0 : index
      %c0_11 = arith.constant 0 : index
      %21 = vector.load %arg4[%c0_10, %c0_11] : memref<1x16xf32, #tpu.memory_space<vmem>>, vector<1x16xf32>
      %cst_12 = arith.constant 9.99999974E-6 : f32
      %22 = vector.broadcast %cst_12 : f32 to vector<1x16xf32>
      %23 = arith.addf %20, %22 : vector<1x16xf32>
      %24 = math.rsqrt %23 : vector<1x16xf32>
      %25 = arith.mulf %21, %24 : vector<1x16xf32>
      %c0_13 = arith.constant 0 : index
      %c0_14 = arith.constant 0 : index
      %26 = vector.load %arg10[%c0_13, %c0_14] : memref<1x16xf32, #tpu.memory_space<vmem>>, vector<1x16xf32>
      tpu.vector_store %arg10[%c0_13, %c0_14], %25 {strides = array<i32>} : memref<1x16xf32, #tpu.memory_space<vmem>>, vector<1x16xf32>,
      %c0_15 = arith.constant 0 : index
      %c0_16 = arith.constant 0 : index
      %27 = vector.load %arg5[%c0_15, %c0_16] : memref<1x16xf32, #tpu.memory_space<vmem>>, vector<1x16xf32>
      %28 = arith.mulf %13, %25 : vector<1x16xf32>
      %29 = arith.subf %27, %28 : vector<1x16xf32>
      %c0_17 = arith.constant 0 : index
      %c0_18 = arith.constant 0 : index
      %30 = vector.load %arg11[%c0_17, %c0_18] : memref<1x16xf32, #tpu.memory_space<vmem>>, vector<1x16xf32>
      tpu.vector_store %arg11[%c0_17, %c0_18], %29 {strides = array<i32>} : memref<1x16xf32, #tpu.memory_space<vmem>>, vector<1x16xf32>,
    } else {
    }
    %c1_i32_3 = arith.constant 1 : i32
    %8 = arith.cmpi eq, %arg0, %c1_i32_3 : i32
    %9 = arith.extui %8 : i1 to i32
    %c0_i32_4 = arith.constant 0 : i32
    %10 = arith.cmpi ne, %9, %c0_i32_4 : i32
    scf.if %10 {
      %c8_i32 = arith.constant 8 : i32
      %11 = arith.muli %arg1, %c8_i32 : i32
      %12 = tpu.assume_multiple %11, 8 : i32
      %c0 = arith.constant 0 : index
      %c0_5 = arith.constant 0 : index
      %13 = vector.load %arg10[%c0, %c0_5] : memref<1x16xf32, #tpu.memory_space<vmem>>, vector<1x16xf32>
      %c0_6 = arith.constant 0 : index
      %c0_7 = arith.constant 0 : index
      %14 = vector.load %arg11[%c0_6, %c0_7] : memref<1x16xf32, #tpu.memory_space<vmem>>, vector<1x16xf32>
      %c0_8 = arith.constant 0 : index
      %15 = arith.index_cast %12 : i32 to index
      %c0_9 = arith.constant 0 : index
      %16 = vector.load %arg7[%c0_8, %15, %c0_9] : memref<4x8x16xf32, #tpu.memory_space<vmem>>, vector<1x8x16xf32>
      %17 = vector.shape_cast %16 : vector<1x8x16xf32> to vector<8x16xf32>
      %18 = vector.broadcast %13 : vector<1x16xf32> to vector<8x16xf32>
      %19 = arith.mulf %17, %18 : vector<8x16xf32>
      %20 = vector.broadcast %14 : vector<1x16xf32> to vector<8x16xf32>
      %21 = arith.addf %19, %20 : vector<8x16xf32>
      %cst = arith.constant 0.000000e+00 : f32
      %22 = vector.broadcast %cst : f32 to vector<8x16xf32>
      %23 = arith.cmpf ogt, %21, %22 : vector<8x16xf32>
      %cst_10 = arith.constant 0.000000e+00 : f32
      %24 = vector.broadcast %cst_10 : f32 to vector<8x16xf32>
      %25 = arith.minimumf %21, %24 : vector<8x16xf32>
      %26 = math.exp %25 : vector<8x16xf32>
      %cst_11 = arith.constant 1.000000e+00 : f32
      %27 = vector.broadcast %cst_11 : f32 to vector<8x16xf32>
      %28 = arith.subf %26, %27 : vector<8x16xf32>
      %29 = arith.select %23, %21, %28 : vector<8x16xi1>, vector<8x16xf32>
      %30 = arith.truncf %29 : vector<8x16xf32> to vector<8x16xbf16>
      %c0_12 = arith.constant 0 : index
      %c0_13 = arith.constant 0 : index
      %c0_14 = arith.constant 0 : index
      %31 = vector.load %arg6[%c0_12, %c0_13, %c0_14] : memref<4x8x16xbf16, #tpu.memory_space<vmem>>, vector<1x8x16xbf16>
      %32 = vector.shape_cast %31 : vector<1x8x16xbf16> to vector<8x16xbf16>
      %33 = vector.shape_cast %30 : vector<8x16xbf16> to vector<1x8x16xbf16>
      tpu.vector_store %arg6[%c0_12, %c0_13, %c0_14], %33 {strides = array<i32>} : memref<4x8x16xbf16, #tpu.memory_space<vmem>>, vector<1x8x16xbf16>,
      %c1 = arith.constant 1 : index
      %34 = arith.index_cast %12 : i32 to index
      %c0_15 = arith.constant 0 : index
      %35 = vector.load %arg7[%c1, %34, %c0_15] : memref<4x8x16xf32, #tpu.memory_space<vmem>>, vector<1x8x16xf32>
      %36 = vector.shape_cast %35 : vector<1x8x16xf32> to vector<8x16xf32>
      %37 = vector.broadcast %13 : vector<1x16xf32> to vector<8x16xf32>
      %38 = arith.mulf %36, %37 : vector<8x16xf32>
      %39 = vector.broadcast %14 : vector<1x16xf32> to vector<8x16xf32>
      %40 = arith.addf %38, %39 : vector<8x16xf32>
      %cst_16 = arith.constant 0.000000e+00 : f32
      %41 = vector.broadcast %cst_16 : f32 to vector<8x16xf32>
      %42 = arith.cmpf ogt, %40, %41 : vector<8x16xf32>
      %cst_17 = arith.constant 0.000000e+00 : f32
      %43 = vector.broadcast %cst_17 : f32 to vector<8x16xf32>
      %44 = arith.minimumf %40, %43 : vector<8x16xf32>
      %45 = math.exp %44 : vector<8x16xf32>
      %cst_18 = arith.constant 1.000000e+00 : f32
      %46 = vector.broadcast %cst_18 : f32 to vector<8x16xf32>
      %47 = arith.subf %45, %46 : vector<8x16xf32>
      %48 = arith.select %42, %40, %47 : vector<8x16xi1>, vector<8x16xf32>
      %49 = arith.truncf %48 : vector<8x16xf32> to vector<8x16xbf16>
      %c1_19 = arith.constant 1 : index
      %c0_20 = arith.constant 0 : index
      %c0_21 = arith.constant 0 : index
      %50 = vector.load %arg6[%c1_19, %c0_20, %c0_21] : memref<4x8x16xbf16, #tpu.memory_space<vmem>>, vector<1x8x16xbf16>
      %51 = vector.shape_cast %50 : vector<1x8x16xbf16> to vector<8x16xbf16>
      %52 = vector.shape_cast %49 : vector<8x16xbf16> to vector<1x8x16xbf16>
      tpu.vector_store %arg6[%c1_19, %c0_20, %c0_21], %52 {strides = array<i32>} : memref<4x8x16xbf16, #tpu.memory_space<vmem>>, vector<1x8x16xbf16>,
      %c2 = arith.constant 2 : index
      %53 = arith.index_cast %12 : i32 to index
      %c0_22 = arith.constant 0 : index
      %54 = vector.load %arg7[%c2, %53, %c0_22] : memref<4x8x16xf32, #tpu.memory_space<vmem>>, vector<1x8x16xf32>
      %55 = vector.shape_cast %54 : vector<1x8x16xf32> to vector<8x16xf32>
      %56 = vector.broadcast %13 : vector<1x16xf32> to vector<8x16xf32>
      %57 = arith.mulf %55, %56 : vector<8x16xf32>
      %58 = vector.broadcast %14 : vector<1x16xf32> to vector<8x16xf32>
      %59 = arith.addf %57, %58 : vector<8x16xf32>
      %cst_23 = arith.constant 0.000000e+00 : f32
      %60 = vector.broadcast %cst_23 : f32 to vector<8x16xf32>
      %61 = arith.cmpf ogt, %59, %60 : vector<8x16xf32>
      %cst_24 = arith.constant 0.000000e+00 : f32
      %62 = vector.broadcast %cst_24 : f32 to vector<8x16xf32>
      %63 = arith.minimumf %59, %62 : vector<8x16xf32>
      %64 = math.exp %63 : vector<8x16xf32>
      %cst_25 = arith.constant 1.000000e+00 : f32
      %65 = vector.broadcast %cst_25 : f32 to vector<8x16xf32>
      %66 = arith.subf %64, %65 : vector<8x16xf32>
      %67 = arith.select %61, %59, %66 : vector<8x16xi1>, vector<8x16xf32>
      %68 = arith.truncf %67 : vector<8x16xf32> to vector<8x16xbf16>
      %c2_26 = arith.constant 2 : index
      %c0_27 = arith.constant 0 : index
      %c0_28 = arith.constant 0 : index
      %69 = vector.load %arg6[%c2_26, %c0_27, %c0_28] : memref<4x8x16xbf16, #tpu.memory_space<vmem>>, vector<1x8x16xbf16>
      %70 = vector.shape_cast %69 : vector<1x8x16xbf16> to vector<8x16xbf16>
      %71 = vector.shape_cast %68 : vector<8x16xbf16> to vector<1x8x16xbf16>
      tpu.vector_store %arg6[%c2_26, %c0_27, %c0_28], %71 {strides = array<i32>} : memref<4x8x16xbf16, #tpu.memory_space<vmem>>, vector<1x8x16xbf16>,
      %c3 = arith.constant 3 : index
      %72 = arith.index_cast %12 : i32 to index
      %c0_29 = arith.constant 0 : index
      %73 = vector.load %arg7[%c3, %72, %c0_29] : memref<4x8x16xf32, #tpu.memory_space<vmem>>, vector<1x8x16xf32>
      %74 = vector.shape_cast %73 : vector<1x8x16xf32> to vector<8x16xf32>
      %75 = vector.broadcast %13 : vector<1x16xf32> to vector<8x16xf32>
      %76 = arith.mulf %74, %75 : vector<8x16xf32>
      %77 = vector.broadcast %14 : vector<1x16xf32> to vector<8x16xf32>
      %78 = arith.addf %76, %77 : vector<8x16xf32>
      %cst_30 = arith.constant 0.000000e+00 : f32
      %79 = vector.broadcast %cst_30 : f32 to vector<8x16xf32>
      %80 = arith.cmpf ogt, %78, %79 : vector<8x16xf32>
      %cst_31 = arith.constant 0.000000e+00 : f32
      %81 = vector.broadcast %cst_31 : f32 to vector<8x16xf32>
      %82 = arith.minimumf %78, %81 : vector<8x16xf32>
      %83 = math.exp %82 : vector<8x16xf32>
      %cst_32 = arith.constant 1.000000e+00 : f32
      %84 = vector.broadcast %cst_32 : f32 to vector<8x16xf32>
      %85 = arith.subf %83, %84 : vector<8x16xf32>
      %86 = arith.select %80, %78, %85 : vector<8x16xi1>, vector<8x16xf32>
      %87 = arith.truncf %86 : vector<8x16xf32> to vector<8x16xbf16>
      %c3_33 = arith.constant 3 : index
      %c0_34 = arith.constant 0 : index
      %c0_35 = arith.constant 0 : index
      %88 = vector.load %arg6[%c3_33, %c0_34, %c0_35] : memref<4x8x16xbf16, #tpu.memory_space<vmem>>, vector<1x8x16xbf16>
      %89 = vector.shape_cast %88 : vector<1x8x16xbf16> to vector<8x16xbf16>
      %90 = vector.shape_cast %87 : vector<8x16xbf16> to vector<1x8x16xbf16>
      tpu.vector_store %arg6[%c3_33, %c0_34, %c0_35], %90 {strides = array<i32>} : memref<4x8x16xbf16, #tpu.memory_space<vmem>>, vector<1x8x16xbf16>,
    } else {
    }
    return
  }
  func.func @transform_0(%arg0: i32, %arg1: i32) -> (i32, i32) {
    %c1_i32 = arith.constant 1 : i32
    %0 = arith.subi %c1_i32, %arg0 : i32
    %1 = arith.muli %arg1, %0 : i32
    %c0_i32 = arith.constant 0 : i32
    %c0_i32_0 = arith.constant 0 : i32
    return %1, %c0_i32 : i32, i32
  }
  func.func @transform_1(%arg0: i32, %arg1: i32) -> (i32, i32, i32) {
    %c0_i32 = arith.constant 0 : i32
    %c0_i32_0 = arith.constant 0 : i32
    %c0_i32_1 = arith.constant 0 : i32
    %c0_i32_2 = arith.constant 0 : i32
    return %c0_i32, %c0_i32_0, %c0_i32_1 : i32, i32, i32
  }
  func.func @transform_2(%arg0: i32, %arg1: i32) -> (i32, i32) {
    %c0_i32 = arith.constant 0 : i32
    %c0_i32_0 = arith.constant 0 : i32
    %c0_i32_1 = arith.constant 0 : i32
    return %c0_i32, %c0_i32_0 : i32, i32
  }
  func.func @transform_3(%arg0: i32, %arg1: i32) -> (i32, i32) {
    %c0_i32 = arith.constant 0 : i32
    %c0_i32_0 = arith.constant 0 : i32
    %c0_i32_1 = arith.constant 0 : i32
    return %c0_i32, %c0_i32_0 : i32, i32
  }
  func.func @transform_4(%arg0: i32, %arg1: i32) -> (i32, i32, i32) {
    %0 = arith.muli %arg1, %arg0 : i32
    %c0_i32 = arith.constant 0 : i32
    %c0_i32_0 = arith.constant 0 : i32
    %c0_i32_1 = arith.constant 0 : i32
    return %c0_i32, %0, %c0_i32_0 : i32, i32, i32
  }
}

module attributes {stable_mosaic.version = 11 : i64} {
  func.func @_fused_conv_bn_elu_kernel(%arg0: i32, %arg1: i32, %arg2: memref<32x16xbf16, #tpu.memory_space<vmem>>, %arg3: memref<4x16x8xbf16, #tpu.memory_space<vmem>>, %arg4: memref<1x8xf32, #tpu.memory_space<vmem>>, %arg5: memref<1x8xf32, #tpu.memory_space<vmem>>, %arg6: memref<4x32x8xbf16, #tpu.memory_space<vmem>>, %arg7: memref<4x32x8xf32, #tpu.memory_space<vmem>>, %arg8: memref<1x8xf32, #tpu.memory_space<vmem>>, %arg9: memref<1x8xf32, #tpu.memory_space<vmem>>, %arg10: memref<1x8xf32, #tpu.memory_space<vmem>>, %arg11: memref<1x8xf32, #tpu.memory_space<vmem>>) attributes {dimension_semantics = [#tpu.dimension_semantics<arbitrary>, #tpu.dimension_semantics<arbitrary>], iteration_bounds = array<i64: 2, 1>, scalar_prefetch = 0 : i64, scratch_operands = 5 : i64, tpu.core_type = #tpu.core_type<tc>, window_params = [{transform_indices = @transform_0, window_bounds = array<i64: 32, 16>}, {pipeline_mode = #tpu.pipeline_mode<synchronous>, transform_indices = @transform_1, window_bounds = array<i64: 4, 16, 8>}, {pipeline_mode = #tpu.pipeline_mode<synchronous>, transform_indices = @transform_2, window_bounds = array<i64: 1, 8>}, {pipeline_mode = #tpu.pipeline_mode<synchronous>, transform_indices = @transform_3, window_bounds = array<i64: 1, 8>}, {transform_indices = @transform_4, window_bounds = array<i64: 4, 32, 8>}]} {
    %c0_i32 = arith.constant 0 : i32
    %0 = arith.cmpi eq, %arg0, %c0_i32 : i32
    %1 = arith.extui %0 : i1 to i32
    %c0_i32_0 = arith.constant 0 : i32
    %2 = arith.cmpi ne, %1, %c0_i32_0 : i32
    scf.if %2 {
      %c0_i32_5 = arith.constant 0 : i32
      %11 = arith.cmpi eq, %arg1, %c0_i32_5 : i32
      %12 = arith.extui %11 : i1 to i32
      %c0_i32_6 = arith.constant 0 : i32
      %13 = arith.cmpi ne, %12, %c0_i32_6 : i32
      scf.if %13 {
        %cst_68 = arith.constant 0.000000e+00 : f32
        %89 = vector.broadcast %cst_68 : f32 to vector<1x8xf32>
        %c0_69 = arith.constant 0 : index
        %c0_70 = arith.constant 0 : index
        %90 = vector.load %arg8[%c0_69, %c0_70] : memref<1x8xf32, #tpu.memory_space<vmem>>, vector<1x8xf32>
        tpu.vector_store %arg8[%c0_69, %c0_70], %89 {strides = array<i32>} : memref<1x8xf32, #tpu.memory_space<vmem>>, vector<1x8xf32>,
        %cst_71 = arith.constant 0.000000e+00 : f32
        %91 = vector.broadcast %cst_71 : f32 to vector<1x8xf32>
        %c0_72 = arith.constant 0 : index
        %c0_73 = arith.constant 0 : index
        %92 = vector.load %arg9[%c0_72, %c0_73] : memref<1x8xf32, #tpu.memory_space<vmem>>, vector<1x8xf32>
        tpu.vector_store %arg9[%c0_72, %c0_73], %91 {strides = array<i32>} : memref<1x8xf32, #tpu.memory_space<vmem>>, vector<1x8xf32>,
      } else {
      }
      %c0 = arith.constant 0 : index
      %c0_7 = arith.constant 0 : index
      %14 = vector.load %arg2[%c0, %c0_7] : memref<32x16xbf16, #tpu.memory_space<vmem>>, vector<32x16xbf16>
      %c32_i32 = arith.constant 32 : i32
      %15 = arith.muli %arg1, %c32_i32 : i32
      %16 = tpu.assume_multiple %15, 32 : i32
      %c0_8 = arith.constant 0 : index
      %c0_9 = arith.constant 0 : index
      %c0_10 = arith.constant 0 : index
      %17 = vector.load %arg3[%c0_8, %c0_9, %c0_10] : memref<4x16x8xbf16, #tpu.memory_space<vmem>>, vector<1x16x8xbf16>
      %18 = vector.shape_cast %17 : vector<1x16x8xbf16> to vector<16x8xbf16>
      %cst = arith.constant dense<0.000000e+00> : vector<32x8xf32>
      %19 = tpu.matmul %14, %18, %cst {dimension_numbers = #tpu.dot_dimension_numbers<[1], [0], [0], [1], [0, 0, 1, 1], [], []>} : vector<32x16xbf16>, vector<16x8xbf16>, vector<32x8xf32> -> vector<32x8xf32>
      %c0_11 = arith.constant 0 : index
      %20 = arith.index_cast %16 : i32 to index
      %c0_12 = arith.constant 0 : index
      %21 = vector.load %arg7[%c0_11, %20, %c0_12] : memref<4x32x8xf32, #tpu.memory_space<vmem>>, vector<1x32x8xf32>
      %22 = vector.shape_cast %21 : vector<1x32x8xf32> to vector<32x8xf32>
      %23 = vector.shape_cast %19 : vector<32x8xf32> to vector<1x32x8xf32>
      tpu.vector_store %arg7[%c0_11, %20, %c0_12], %23 {strides = array<i32>} : memref<4x32x8xf32, #tpu.memory_space<vmem>>, vector<1x32x8xf32>,
      %c0_13 = arith.constant 0 : index
      %c0_14 = arith.constant 0 : index
      %24 = vector.load %arg8[%c0_13, %c0_14] : memref<1x8xf32, #tpu.memory_space<vmem>>, vector<1x8xf32>
      %cst_15 = arith.constant dense<0.000000e+00> : vector<8xf32>
      %25 = vector.multi_reduction <add>, %19, %cst_15 [0] : vector<32x8xf32> to vector<8xf32>
      %26 = vector.shape_cast %25 : vector<8xf32> to vector<1x8xf32>
      %27 = arith.addf %24, %26 : vector<1x8xf32>
      %c0_16 = arith.constant 0 : index
      %c0_17 = arith.constant 0 : index
      %28 = vector.load %arg8[%c0_16, %c0_17] : memref<1x8xf32, #tpu.memory_space<vmem>>, vector<1x8xf32>
      tpu.vector_store %arg8[%c0_16, %c0_17], %27 {strides = array<i32>} : memref<1x8xf32, #tpu.memory_space<vmem>>, vector<1x8xf32>,
      %c0_18 = arith.constant 0 : index
      %c0_19 = arith.constant 0 : index
      %29 = vector.load %arg9[%c0_18, %c0_19] : memref<1x8xf32, #tpu.memory_space<vmem>>, vector<1x8xf32>
      %30 = arith.mulf %19, %19 : vector<32x8xf32>
      %cst_20 = arith.constant dense<0.000000e+00> : vector<8xf32>
      %31 = vector.multi_reduction <add>, %30, %cst_20 [0] : vector<32x8xf32> to vector<8xf32>
      %32 = vector.shape_cast %31 : vector<8xf32> to vector<1x8xf32>
      %33 = arith.addf %29, %32 : vector<1x8xf32>
      %c0_21 = arith.constant 0 : index
      %c0_22 = arith.constant 0 : index
      %34 = vector.load %arg9[%c0_21, %c0_22] : memref<1x8xf32, #tpu.memory_space<vmem>>, vector<1x8xf32>
      tpu.vector_store %arg9[%c0_21, %c0_22], %33 {strides = array<i32>} : memref<1x8xf32, #tpu.memory_space<vmem>>, vector<1x8xf32>,
      %c1 = arith.constant 1 : index
      %c0_23 = arith.constant 0 : index
      %c0_24 = arith.constant 0 : index
      %35 = vector.load %arg3[%c1, %c0_23, %c0_24] : memref<4x16x8xbf16, #tpu.memory_space<vmem>>, vector<1x16x8xbf16>
      %36 = vector.shape_cast %35 : vector<1x16x8xbf16> to vector<16x8xbf16>
      %cst_25 = arith.constant dense<0.000000e+00> : vector<32x8xf32>
      %37 = tpu.matmul %14, %36, %cst_25 {dimension_numbers = #tpu.dot_dimension_numbers<[1], [0], [0], [1], [0, 0, 1, 1], [], []>} : vector<32x16xbf16>, vector<16x8xbf16>, vector<32x8xf32> -> vector<32x8xf32>
      %c1_26 = arith.constant 1 : index
      %38 = arith.index_cast %16 : i32 to index
      %c0_27 = arith.constant 0 : index
      %39 = vector.load %arg7[%c1_26, %38, %c0_27] : memref<4x32x8xf32, #tpu.memory_space<vmem>>, vector<1x32x8xf32>
      %40 = vector.shape_cast %39 : vector<1x32x8xf32> to vector<32x8xf32>
      %41 = vector.shape_cast %37 : vector<32x8xf32> to vector<1x32x8xf32>
      tpu.vector_store %arg7[%c1_26, %38, %c0_27], %41 {strides = array<i32>} : memref<4x32x8xf32, #tpu.memory_space<vmem>>, vector<1x32x8xf32>,
      %c0_28 = arith.constant 0 : index
      %c0_29 = arith.constant 0 : index
      %42 = vector.load %arg8[%c0_28, %c0_29] : memref<1x8xf32, #tpu.memory_space<vmem>>, vector<1x8xf32>
      %cst_30 = arith.constant dense<0.000000e+00> : vector<8xf32>
      %43 = vector.multi_reduction <add>, %37, %cst_30 [0] : vector<32x8xf32> to vector<8xf32>
      %44 = vector.shape_cast %43 : vector<8xf32> to vector<1x8xf32>
      %45 = arith.addf %42, %44 : vector<1x8xf32>
      %c0_31 = arith.constant 0 : index
      %c0_32 = arith.constant 0 : index
      %46 = vector.load %arg8[%c0_31, %c0_32] : memref<1x8xf32, #tpu.memory_space<vmem>>, vector<1x8xf32>
      tpu.vector_store %arg8[%c0_31, %c0_32], %45 {strides = array<i32>} : memref<1x8xf32, #tpu.memory_space<vmem>>, vector<1x8xf32>,
      %c0_33 = arith.constant 0 : index
      %c0_34 = arith.constant 0 : index
      %47 = vector.load %arg9[%c0_33, %c0_34] : memref<1x8xf32, #tpu.memory_space<vmem>>, vector<1x8xf32>
      %48 = arith.mulf %37, %37 : vector<32x8xf32>
      %cst_35 = arith.constant dense<0.000000e+00> : vector<8xf32>
      %49 = vector.multi_reduction <add>, %48, %cst_35 [0] : vector<32x8xf32> to vector<8xf32>
      %50 = vector.shape_cast %49 : vector<8xf32> to vector<1x8xf32>
      %51 = arith.addf %47, %50 : vector<1x8xf32>
      %c0_36 = arith.constant 0 : index
      %c0_37 = arith.constant 0 : index
      %52 = vector.load %arg9[%c0_36, %c0_37] : memref<1x8xf32, #tpu.memory_space<vmem>>, vector<1x8xf32>
      tpu.vector_store %arg9[%c0_36, %c0_37], %51 {strides = array<i32>} : memref<1x8xf32, #tpu.memory_space<vmem>>, vector<1x8xf32>,
      %c2 = arith.constant 2 : index
      %c0_38 = arith.constant 0 : index
      %c0_39 = arith.constant 0 : index
      %53 = vector.load %arg3[%c2, %c0_38, %c0_39] : memref<4x16x8xbf16, #tpu.memory_space<vmem>>, vector<1x16x8xbf16>
      %54 = vector.shape_cast %53 : vector<1x16x8xbf16> to vector<16x8xbf16>
      %cst_40 = arith.constant dense<0.000000e+00> : vector<32x8xf32>
      %55 = tpu.matmul %14, %54, %cst_40 {dimension_numbers = #tpu.dot_dimension_numbers<[1], [0], [0], [1], [0, 0, 1, 1], [], []>} : vector<32x16xbf16>, vector<16x8xbf16>, vector<32x8xf32> -> vector<32x8xf32>
      %c2_41 = arith.constant 2 : index
      %56 = arith.index_cast %16 : i32 to index
      %c0_42 = arith.constant 0 : index
      %57 = vector.load %arg7[%c2_41, %56, %c0_42] : memref<4x32x8xf32, #tpu.memory_space<vmem>>, vector<1x32x8xf32>
      %58 = vector.shape_cast %57 : vector<1x32x8xf32> to vector<32x8xf32>
      %59 = vector.shape_cast %55 : vector<32x8xf32> to vector<1x32x8xf32>
      tpu.vector_store %arg7[%c2_41, %56, %c0_42], %59 {strides = array<i32>} : memref<4x32x8xf32, #tpu.memory_space<vmem>>, vector<1x32x8xf32>,
      %c0_43 = arith.constant 0 : index
      %c0_44 = arith.constant 0 : index
      %60 = vector.load %arg8[%c0_43, %c0_44] : memref<1x8xf32, #tpu.memory_space<vmem>>, vector<1x8xf32>
      %cst_45 = arith.constant dense<0.000000e+00> : vector<8xf32>
      %61 = vector.multi_reduction <add>, %55, %cst_45 [0] : vector<32x8xf32> to vector<8xf32>
      %62 = vector.shape_cast %61 : vector<8xf32> to vector<1x8xf32>
      %63 = arith.addf %60, %62 : vector<1x8xf32>
      %c0_46 = arith.constant 0 : index
      %c0_47 = arith.constant 0 : index
      %64 = vector.load %arg8[%c0_46, %c0_47] : memref<1x8xf32, #tpu.memory_space<vmem>>, vector<1x8xf32>
      tpu.vector_store %arg8[%c0_46, %c0_47], %63 {strides = array<i32>} : memref<1x8xf32, #tpu.memory_space<vmem>>, vector<1x8xf32>,
      %c0_48 = arith.constant 0 : index
      %c0_49 = arith.constant 0 : index
      %65 = vector.load %arg9[%c0_48, %c0_49] : memref<1x8xf32, #tpu.memory_space<vmem>>, vector<1x8xf32>
      %66 = arith.mulf %55, %55 : vector<32x8xf32>
      %cst_50 = arith.constant dense<0.000000e+00> : vector<8xf32>
      %67 = vector.multi_reduction <add>, %66, %cst_50 [0] : vector<32x8xf32> to vector<8xf32>
      %68 = vector.shape_cast %67 : vector<8xf32> to vector<1x8xf32>
      %69 = arith.addf %65, %68 : vector<1x8xf32>
      %c0_51 = arith.constant 0 : index
      %c0_52 = arith.constant 0 : index
      %70 = vector.load %arg9[%c0_51, %c0_52] : memref<1x8xf32, #tpu.memory_space<vmem>>, vector<1x8xf32>
      tpu.vector_store %arg9[%c0_51, %c0_52], %69 {strides = array<i32>} : memref<1x8xf32, #tpu.memory_space<vmem>>, vector<1x8xf32>,
      %c3 = arith.constant 3 : index
      %c0_53 = arith.constant 0 : index
      %c0_54 = arith.constant 0 : index
      %71 = vector.load %arg3[%c3, %c0_53, %c0_54] : memref<4x16x8xbf16, #tpu.memory_space<vmem>>, vector<1x16x8xbf16>
      %72 = vector.shape_cast %71 : vector<1x16x8xbf16> to vector<16x8xbf16>
      %cst_55 = arith.constant dense<0.000000e+00> : vector<32x8xf32>
      %73 = tpu.matmul %14, %72, %cst_55 {dimension_numbers = #tpu.dot_dimension_numbers<[1], [0], [0], [1], [0, 0, 1, 1], [], []>} : vector<32x16xbf16>, vector<16x8xbf16>, vector<32x8xf32> -> vector<32x8xf32>
      %c3_56 = arith.constant 3 : index
      %74 = arith.index_cast %16 : i32 to index
      %c0_57 = arith.constant 0 : index
      %75 = vector.load %arg7[%c3_56, %74, %c0_57] : memref<4x32x8xf32, #tpu.memory_space<vmem>>, vector<1x32x8xf32>
      %76 = vector.shape_cast %75 : vector<1x32x8xf32> to vector<32x8xf32>
      %77 = vector.shape_cast %73 : vector<32x8xf32> to vector<1x32x8xf32>
      tpu.vector_store %arg7[%c3_56, %74, %c0_57], %77 {strides = array<i32>} : memref<4x32x8xf32, #tpu.memory_space<vmem>>, vector<1x32x8xf32>,
      %c0_58 = arith.constant 0 : index
      %c0_59 = arith.constant 0 : index
      %78 = vector.load %arg8[%c0_58, %c0_59] : memref<1x8xf32, #tpu.memory_space<vmem>>, vector<1x8xf32>
      %cst_60 = arith.constant dense<0.000000e+00> : vector<8xf32>
      %79 = vector.multi_reduction <add>, %73, %cst_60 [0] : vector<32x8xf32> to vector<8xf32>
      %80 = vector.shape_cast %79 : vector<8xf32> to vector<1x8xf32>
      %81 = arith.addf %78, %80 : vector<1x8xf32>
      %c0_61 = arith.constant 0 : index
      %c0_62 = arith.constant 0 : index
      %82 = vector.load %arg8[%c0_61, %c0_62] : memref<1x8xf32, #tpu.memory_space<vmem>>, vector<1x8xf32>
      tpu.vector_store %arg8[%c0_61, %c0_62], %81 {strides = array<i32>} : memref<1x8xf32, #tpu.memory_space<vmem>>, vector<1x8xf32>,
      %c0_63 = arith.constant 0 : index
      %c0_64 = arith.constant 0 : index
      %83 = vector.load %arg9[%c0_63, %c0_64] : memref<1x8xf32, #tpu.memory_space<vmem>>, vector<1x8xf32>
      %84 = arith.mulf %73, %73 : vector<32x8xf32>
      %cst_65 = arith.constant dense<0.000000e+00> : vector<8xf32>
      %85 = vector.multi_reduction <add>, %84, %cst_65 [0] : vector<32x8xf32> to vector<8xf32>
      %86 = vector.shape_cast %85 : vector<8xf32> to vector<1x8xf32>
      %87 = arith.addf %83, %86 : vector<1x8xf32>
      %c0_66 = arith.constant 0 : index
      %c0_67 = arith.constant 0 : index
      %88 = vector.load %arg9[%c0_66, %c0_67] : memref<1x8xf32, #tpu.memory_space<vmem>>, vector<1x8xf32>
      tpu.vector_store %arg9[%c0_66, %c0_67], %87 {strides = array<i32>} : memref<1x8xf32, #tpu.memory_space<vmem>>, vector<1x8xf32>,
    } else {
    }
    %c1_i32 = arith.constant 1 : i32
    %3 = arith.cmpi eq, %arg0, %c1_i32 : i32
    %c0_i32_1 = arith.constant 0 : i32
    %4 = arith.cmpi eq, %arg1, %c0_i32_1 : i32
    %5 = arith.andi %3, %4 : i1
    %6 = arith.extui %5 : i1 to i32
    %c0_i32_2 = arith.constant 0 : i32
    %7 = arith.cmpi ne, %6, %c0_i32_2 : i32
    scf.if %7 {
      %c0 = arith.constant 0 : index
      %c0_5 = arith.constant 0 : index
      %11 = vector.load %arg8[%c0, %c0_5] : memref<1x8xf32, #tpu.memory_space<vmem>>, vector<1x8xf32>
      %cst = arith.constant 7.812500e-03 : f32
      %12 = vector.broadcast %cst : f32 to vector<1x8xf32>
      %13 = arith.mulf %11, %12 : vector<1x8xf32>
      %c0_6 = arith.constant 0 : index
      %c0_7 = arith.constant 0 : index
      %14 = vector.load %arg9[%c0_6, %c0_7] : memref<1x8xf32, #tpu.memory_space<vmem>>, vector<1x8xf32>
      %cst_8 = arith.constant 7.812500e-03 : f32
      %15 = vector.broadcast %cst_8 : f32 to vector<1x8xf32>
      %16 = arith.mulf %14, %15 : vector<1x8xf32>
      %17 = arith.mulf %13, %13 : vector<1x8xf32>
      %18 = arith.subf %16, %17 : vector<1x8xf32>
      %cst_9 = arith.constant 0.000000e+00 : f32
      %19 = vector.broadcast %cst_9 : f32 to vector<1x8xf32>
      %20 = arith.maximumf %18, %19 : vector<1x8xf32>
      %c0_10 = arith.constant 0 : index
      %c0_11 = arith.constant 0 : index
      %21 = vector.load %arg4[%c0_10, %c0_11] : memref<1x8xf32, #tpu.memory_space<vmem>>, vector<1x8xf32>
      %cst_12 = arith.constant 9.99999974E-6 : f32
      %22 = vector.broadcast %cst_12 : f32 to vector<1x8xf32>
      %23 = arith.addf %20, %22 : vector<1x8xf32>
      %24 = math.rsqrt %23 : vector<1x8xf32>
      %25 = arith.mulf %21, %24 : vector<1x8xf32>
      %c0_13 = arith.constant 0 : index
      %c0_14 = arith.constant 0 : index
      %26 = vector.load %arg10[%c0_13, %c0_14] : memref<1x8xf32, #tpu.memory_space<vmem>>, vector<1x8xf32>
      tpu.vector_store %arg10[%c0_13, %c0_14], %25 {strides = array<i32>} : memref<1x8xf32, #tpu.memory_space<vmem>>, vector<1x8xf32>,
      %c0_15 = arith.constant 0 : index
      %c0_16 = arith.constant 0 : index
      %27 = vector.load %arg5[%c0_15, %c0_16] : memref<1x8xf32, #tpu.memory_space<vmem>>, vector<1x8xf32>
      %28 = arith.mulf %13, %25 : vector<1x8xf32>
      %29 = arith.subf %27, %28 : vector<1x8xf32>
      %c0_17 = arith.constant 0 : index
      %c0_18 = arith.constant 0 : index
      %30 = vector.load %arg11[%c0_17, %c0_18] : memref<1x8xf32, #tpu.memory_space<vmem>>, vector<1x8xf32>
      tpu.vector_store %arg11[%c0_17, %c0_18], %29 {strides = array<i32>} : memref<1x8xf32, #tpu.memory_space<vmem>>, vector<1x8xf32>,
    } else {
    }
    %c1_i32_3 = arith.constant 1 : i32
    %8 = arith.cmpi eq, %arg0, %c1_i32_3 : i32
    %9 = arith.extui %8 : i1 to i32
    %c0_i32_4 = arith.constant 0 : i32
    %10 = arith.cmpi ne, %9, %c0_i32_4 : i32
    scf.if %10 {
      %c32_i32 = arith.constant 32 : i32
      %11 = arith.muli %arg1, %c32_i32 : i32
      %12 = tpu.assume_multiple %11, 32 : i32
      %c0 = arith.constant 0 : index
      %c0_5 = arith.constant 0 : index
      %13 = vector.load %arg10[%c0, %c0_5] : memref<1x8xf32, #tpu.memory_space<vmem>>, vector<1x8xf32>
      %c0_6 = arith.constant 0 : index
      %c0_7 = arith.constant 0 : index
      %14 = vector.load %arg11[%c0_6, %c0_7] : memref<1x8xf32, #tpu.memory_space<vmem>>, vector<1x8xf32>
      %c0_8 = arith.constant 0 : index
      %15 = arith.index_cast %12 : i32 to index
      %c0_9 = arith.constant 0 : index
      %16 = vector.load %arg7[%c0_8, %15, %c0_9] : memref<4x32x8xf32, #tpu.memory_space<vmem>>, vector<1x32x8xf32>
      %17 = vector.shape_cast %16 : vector<1x32x8xf32> to vector<32x8xf32>
      %18 = vector.broadcast %13 : vector<1x8xf32> to vector<32x8xf32>
      %19 = arith.mulf %17, %18 : vector<32x8xf32>
      %20 = vector.broadcast %14 : vector<1x8xf32> to vector<32x8xf32>
      %21 = arith.addf %19, %20 : vector<32x8xf32>
      %cst = arith.constant 0.000000e+00 : f32
      %22 = vector.broadcast %cst : f32 to vector<32x8xf32>
      %23 = arith.cmpf ogt, %21, %22 : vector<32x8xf32>
      %cst_10 = arith.constant 0.000000e+00 : f32
      %24 = vector.broadcast %cst_10 : f32 to vector<32x8xf32>
      %25 = arith.minimumf %21, %24 : vector<32x8xf32>
      %26 = math.exp %25 : vector<32x8xf32>
      %cst_11 = arith.constant 1.000000e+00 : f32
      %27 = vector.broadcast %cst_11 : f32 to vector<32x8xf32>
      %28 = arith.subf %26, %27 : vector<32x8xf32>
      %29 = arith.select %23, %21, %28 : vector<32x8xi1>, vector<32x8xf32>
      %30 = arith.truncf %29 : vector<32x8xf32> to vector<32x8xbf16>
      %c0_12 = arith.constant 0 : index
      %c0_13 = arith.constant 0 : index
      %c0_14 = arith.constant 0 : index
      %31 = vector.load %arg6[%c0_12, %c0_13, %c0_14] : memref<4x32x8xbf16, #tpu.memory_space<vmem>>, vector<1x32x8xbf16>
      %32 = vector.shape_cast %31 : vector<1x32x8xbf16> to vector<32x8xbf16>
      %33 = vector.shape_cast %30 : vector<32x8xbf16> to vector<1x32x8xbf16>
      tpu.vector_store %arg6[%c0_12, %c0_13, %c0_14], %33 {strides = array<i32>} : memref<4x32x8xbf16, #tpu.memory_space<vmem>>, vector<1x32x8xbf16>,
      %c1 = arith.constant 1 : index
      %34 = arith.index_cast %12 : i32 to index
      %c0_15 = arith.constant 0 : index
      %35 = vector.load %arg7[%c1, %34, %c0_15] : memref<4x32x8xf32, #tpu.memory_space<vmem>>, vector<1x32x8xf32>
      %36 = vector.shape_cast %35 : vector<1x32x8xf32> to vector<32x8xf32>
      %37 = vector.broadcast %13 : vector<1x8xf32> to vector<32x8xf32>
      %38 = arith.mulf %36, %37 : vector<32x8xf32>
      %39 = vector.broadcast %14 : vector<1x8xf32> to vector<32x8xf32>
      %40 = arith.addf %38, %39 : vector<32x8xf32>
      %cst_16 = arith.constant 0.000000e+00 : f32
      %41 = vector.broadcast %cst_16 : f32 to vector<32x8xf32>
      %42 = arith.cmpf ogt, %40, %41 : vector<32x8xf32>
      %cst_17 = arith.constant 0.000000e+00 : f32
      %43 = vector.broadcast %cst_17 : f32 to vector<32x8xf32>
      %44 = arith.minimumf %40, %43 : vector<32x8xf32>
      %45 = math.exp %44 : vector<32x8xf32>
      %cst_18 = arith.constant 1.000000e+00 : f32
      %46 = vector.broadcast %cst_18 : f32 to vector<32x8xf32>
      %47 = arith.subf %45, %46 : vector<32x8xf32>
      %48 = arith.select %42, %40, %47 : vector<32x8xi1>, vector<32x8xf32>
      %49 = arith.truncf %48 : vector<32x8xf32> to vector<32x8xbf16>
      %c1_19 = arith.constant 1 : index
      %c0_20 = arith.constant 0 : index
      %c0_21 = arith.constant 0 : index
      %50 = vector.load %arg6[%c1_19, %c0_20, %c0_21] : memref<4x32x8xbf16, #tpu.memory_space<vmem>>, vector<1x32x8xbf16>
      %51 = vector.shape_cast %50 : vector<1x32x8xbf16> to vector<32x8xbf16>
      %52 = vector.shape_cast %49 : vector<32x8xbf16> to vector<1x32x8xbf16>
      tpu.vector_store %arg6[%c1_19, %c0_20, %c0_21], %52 {strides = array<i32>} : memref<4x32x8xbf16, #tpu.memory_space<vmem>>, vector<1x32x8xbf16>,
      %c2 = arith.constant 2 : index
      %53 = arith.index_cast %12 : i32 to index
      %c0_22 = arith.constant 0 : index
      %54 = vector.load %arg7[%c2, %53, %c0_22] : memref<4x32x8xf32, #tpu.memory_space<vmem>>, vector<1x32x8xf32>
      %55 = vector.shape_cast %54 : vector<1x32x8xf32> to vector<32x8xf32>
      %56 = vector.broadcast %13 : vector<1x8xf32> to vector<32x8xf32>
      %57 = arith.mulf %55, %56 : vector<32x8xf32>
      %58 = vector.broadcast %14 : vector<1x8xf32> to vector<32x8xf32>
      %59 = arith.addf %57, %58 : vector<32x8xf32>
      %cst_23 = arith.constant 0.000000e+00 : f32
      %60 = vector.broadcast %cst_23 : f32 to vector<32x8xf32>
      %61 = arith.cmpf ogt, %59, %60 : vector<32x8xf32>
      %cst_24 = arith.constant 0.000000e+00 : f32
      %62 = vector.broadcast %cst_24 : f32 to vector<32x8xf32>
      %63 = arith.minimumf %59, %62 : vector<32x8xf32>
      %64 = math.exp %63 : vector<32x8xf32>
      %cst_25 = arith.constant 1.000000e+00 : f32
      %65 = vector.broadcast %cst_25 : f32 to vector<32x8xf32>
      %66 = arith.subf %64, %65 : vector<32x8xf32>
      %67 = arith.select %61, %59, %66 : vector<32x8xi1>, vector<32x8xf32>
      %68 = arith.truncf %67 : vector<32x8xf32> to vector<32x8xbf16>
      %c2_26 = arith.constant 2 : index
      %c0_27 = arith.constant 0 : index
      %c0_28 = arith.constant 0 : index
      %69 = vector.load %arg6[%c2_26, %c0_27, %c0_28] : memref<4x32x8xbf16, #tpu.memory_space<vmem>>, vector<1x32x8xbf16>
      %70 = vector.shape_cast %69 : vector<1x32x8xbf16> to vector<32x8xbf16>
      %71 = vector.shape_cast %68 : vector<32x8xbf16> to vector<1x32x8xbf16>
      tpu.vector_store %arg6[%c2_26, %c0_27, %c0_28], %71 {strides = array<i32>} : memref<4x32x8xbf16, #tpu.memory_space<vmem>>, vector<1x32x8xbf16>,
      %c3 = arith.constant 3 : index
      %72 = arith.index_cast %12 : i32 to index
      %c0_29 = arith.constant 0 : index
      %73 = vector.load %arg7[%c3, %72, %c0_29] : memref<4x32x8xf32, #tpu.memory_space<vmem>>, vector<1x32x8xf32>
      %74 = vector.shape_cast %73 : vector<1x32x8xf32> to vector<32x8xf32>
      %75 = vector.broadcast %13 : vector<1x8xf32> to vector<32x8xf32>
      %76 = arith.mulf %74, %75 : vector<32x8xf32>
      %77 = vector.broadcast %14 : vector<1x8xf32> to vector<32x8xf32>
      %78 = arith.addf %76, %77 : vector<32x8xf32>
      %cst_30 = arith.constant 0.000000e+00 : f32
      %79 = vector.broadcast %cst_30 : f32 to vector<32x8xf32>
      %80 = arith.cmpf ogt, %78, %79 : vector<32x8xf32>
      %cst_31 = arith.constant 0.000000e+00 : f32
      %81 = vector.broadcast %cst_31 : f32 to vector<32x8xf32>
      %82 = arith.minimumf %78, %81 : vector<32x8xf32>
      %83 = math.exp %82 : vector<32x8xf32>
      %cst_32 = arith.constant 1.000000e+00 : f32
      %84 = vector.broadcast %cst_32 : f32 to vector<32x8xf32>
      %85 = arith.subf %83, %84 : vector<32x8xf32>
      %86 = arith.select %80, %78, %85 : vector<32x8xi1>, vector<32x8xf32>
      %87 = arith.truncf %86 : vector<32x8xf32> to vector<32x8xbf16>
      %c3_33 = arith.constant 3 : index
      %c0_34 = arith.constant 0 : index
      %c0_35 = arith.constant 0 : index
      %88 = vector.load %arg6[%c3_33, %c0_34, %c0_35] : memref<4x32x8xbf16, #tpu.memory_space<vmem>>, vector<1x32x8xbf16>
      %89 = vector.shape_cast %88 : vector<1x32x8xbf16> to vector<32x8xbf16>
      %90 = vector.shape_cast %87 : vector<32x8xbf16> to vector<1x32x8xbf16>
      tpu.vector_store %arg6[%c3_33, %c0_34, %c0_35], %90 {strides = array<i32>} : memref<4x32x8xbf16, #tpu.memory_space<vmem>>, vector<1x32x8xbf16>,
    } else {
    }
    return
  }
  func.func @transform_0(%arg0: i32, %arg1: i32) -> (i32, i32) {
    %c1_i32 = arith.constant 1 : i32
    %0 = arith.subi %c1_i32, %arg0 : i32
    %1 = arith.muli %arg1, %0 : i32
    %c0_i32 = arith.constant 0 : i32
    %c0_i32_0 = arith.constant 0 : i32
    return %1, %c0_i32 : i32, i32
  }
  func.func @transform_1(%arg0: i32, %arg1: i32) -> (i32, i32, i32) {
    %c0_i32 = arith.constant 0 : i32
    %c0_i32_0 = arith.constant 0 : i32
    %c0_i32_1 = arith.constant 0 : i32
    %c0_i32_2 = arith.constant 0 : i32
    return %c0_i32, %c0_i32_0, %c0_i32_1 : i32, i32, i32
  }
  func.func @transform_2(%arg0: i32, %arg1: i32) -> (i32, i32) {
    %c0_i32 = arith.constant 0 : i32
    %c0_i32_0 = arith.constant 0 : i32
    %c0_i32_1 = arith.constant 0 : i32
    return %c0_i32, %c0_i32_0 : i32, i32
  }
  func.func @transform_3(%arg0: i32, %arg1: i32) -> (i32, i32) {
    %c0_i32 = arith.constant 0 : i32
    %c0_i32_0 = arith.constant 0 : i32
    %c0_i32_1 = arith.constant 0 : i32
    return %c0_i32, %c0_i32_0 : i32, i32
  }
  func.func @transform_4(%arg0: i32, %arg1: i32) -> (i32, i32, i32) {
    %0 = arith.muli %arg1, %arg0 : i32
    %c0_i32 = arith.constant 0 : i32
    %c0_i32_0 = arith.constant 0 : i32
    %c0_i32_1 = arith.constant 0 : i32
    return %c0_i32, %0, %c0_i32_0 : i32, i32, i32
  }
}

module attributes {stable_mosaic.version = 11 : i64} {
  func.func @_fused_conv_bn_elu_kernel(%arg0: i32, %arg1: i32, %arg2: memref<128x8xbf16, #tpu.memory_space<vmem>>, %arg3: memref<4x8x8xbf16, #tpu.memory_space<vmem>>, %arg4: memref<1x8xf32, #tpu.memory_space<vmem>>, %arg5: memref<1x8xf32, #tpu.memory_space<vmem>>, %arg6: memref<4x128x8xbf16, #tpu.memory_space<vmem>>, %arg7: memref<4x128x8xf32, #tpu.memory_space<vmem>>, %arg8: memref<1x8xf32, #tpu.memory_space<vmem>>, %arg9: memref<1x8xf32, #tpu.memory_space<vmem>>, %arg10: memref<1x8xf32, #tpu.memory_space<vmem>>, %arg11: memref<1x8xf32, #tpu.memory_space<vmem>>) attributes {dimension_semantics = [#tpu.dimension_semantics<arbitrary>, #tpu.dimension_semantics<arbitrary>], iteration_bounds = array<i64: 2, 1>, scalar_prefetch = 0 : i64, scratch_operands = 5 : i64, tpu.core_type = #tpu.core_type<tc>, window_params = [{transform_indices = @transform_0, window_bounds = array<i64: 128, 8>}, {pipeline_mode = #tpu.pipeline_mode<synchronous>, transform_indices = @transform_1, window_bounds = array<i64: 4, 8, 8>}, {pipeline_mode = #tpu.pipeline_mode<synchronous>, transform_indices = @transform_2, window_bounds = array<i64: 1, 8>}, {pipeline_mode = #tpu.pipeline_mode<synchronous>, transform_indices = @transform_3, window_bounds = array<i64: 1, 8>}, {transform_indices = @transform_4, window_bounds = array<i64: 4, 128, 8>}]} {
    %c0_i32 = arith.constant 0 : i32
    %0 = arith.cmpi eq, %arg0, %c0_i32 : i32
    %1 = arith.extui %0 : i1 to i32
    %c0_i32_0 = arith.constant 0 : i32
    %2 = arith.cmpi ne, %1, %c0_i32_0 : i32
    scf.if %2 {
      %c0_i32_5 = arith.constant 0 : i32
      %11 = arith.cmpi eq, %arg1, %c0_i32_5 : i32
      %12 = arith.extui %11 : i1 to i32
      %c0_i32_6 = arith.constant 0 : i32
      %13 = arith.cmpi ne, %12, %c0_i32_6 : i32
      scf.if %13 {
        %cst_68 = arith.constant 0.000000e+00 : f32
        %89 = vector.broadcast %cst_68 : f32 to vector<1x8xf32>
        %c0_69 = arith.constant 0 : index
        %c0_70 = arith.constant 0 : index
        %90 = vector.load %arg8[%c0_69, %c0_70] : memref<1x8xf32, #tpu.memory_space<vmem>>, vector<1x8xf32>
        tpu.vector_store %arg8[%c0_69, %c0_70], %89 {strides = array<i32>} : memref<1x8xf32, #tpu.memory_space<vmem>>, vector<1x8xf32>,
        %cst_71 = arith.constant 0.000000e+00 : f32
        %91 = vector.broadcast %cst_71 : f32 to vector<1x8xf32>
        %c0_72 = arith.constant 0 : index
        %c0_73 = arith.constant 0 : index
        %92 = vector.load %arg9[%c0_72, %c0_73] : memref<1x8xf32, #tpu.memory_space<vmem>>, vector<1x8xf32>
        tpu.vector_store %arg9[%c0_72, %c0_73], %91 {strides = array<i32>} : memref<1x8xf32, #tpu.memory_space<vmem>>, vector<1x8xf32>,
      } else {
      }
      %c0 = arith.constant 0 : index
      %c0_7 = arith.constant 0 : index
      %14 = vector.load %arg2[%c0, %c0_7] : memref<128x8xbf16, #tpu.memory_space<vmem>>, vector<128x8xbf16>
      %c128_i32 = arith.constant 128 : i32
      %15 = arith.muli %arg1, %c128_i32 : i32
      %16 = tpu.assume_multiple %15, 128 : i32
      %c0_8 = arith.constant 0 : index
      %c0_9 = arith.constant 0 : index
      %c0_10 = arith.constant 0 : index
      %17 = vector.load %arg3[%c0_8, %c0_9, %c0_10] : memref<4x8x8xbf16, #tpu.memory_space<vmem>>, vector<1x8x8xbf16>
      %18 = vector.shape_cast %17 : vector<1x8x8xbf16> to vector<8x8xbf16>
      %cst = arith.constant dense<0.000000e+00> : vector<128x8xf32>
      %19 = tpu.matmul %14, %18, %cst {dimension_numbers = #tpu.dot_dimension_numbers<[1], [0], [0], [1], [0, 0, 1, 1], [], []>} : vector<128x8xbf16>, vector<8x8xbf16>, vector<128x8xf32> -> vector<128x8xf32>
      %c0_11 = arith.constant 0 : index
      %20 = arith.index_cast %16 : i32 to index
      %c0_12 = arith.constant 0 : index
      %21 = vector.load %arg7[%c0_11, %20, %c0_12] : memref<4x128x8xf32, #tpu.memory_space<vmem>>, vector<1x128x8xf32>
      %22 = vector.shape_cast %21 : vector<1x128x8xf32> to vector<128x8xf32>
      %23 = vector.shape_cast %19 : vector<128x8xf32> to vector<1x128x8xf32>
      tpu.vector_store %arg7[%c0_11, %20, %c0_12], %23 {strides = array<i32>} : memref<4x128x8xf32, #tpu.memory_space<vmem>>, vector<1x128x8xf32>,
      %c0_13 = arith.constant 0 : index
      %c0_14 = arith.constant 0 : index
      %24 = vector.load %arg8[%c0_13, %c0_14] : memref<1x8xf32, #tpu.memory_space<vmem>>, vector<1x8xf32>
      %cst_15 = arith.constant dense<0.000000e+00> : vector<8xf32>
      %25 = vector.multi_reduction <add>, %19, %cst_15 [0] : vector<128x8xf32> to vector<8xf32>
      %26 = vector.shape_cast %25 : vector<8xf32> to vector<1x8xf32>
      %27 = arith.addf %24, %26 : vector<1x8xf32>
      %c0_16 = arith.constant 0 : index
      %c0_17 = arith.constant 0 : index
      %28 = vector.load %arg8[%c0_16, %c0_17] : memref<1x8xf32, #tpu.memory_space<vmem>>, vector<1x8xf32>
      tpu.vector_store %arg8[%c0_16, %c0_17], %27 {strides = array<i32>} : memref<1x8xf32, #tpu.memory_space<vmem>>, vector<1x8xf32>,
      %c0_18 = arith.constant 0 : index
      %c0_19 = arith.constant 0 : index
      %29 = vector.load %arg9[%c0_18, %c0_19] : memref<1x8xf32, #tpu.memory_space<vmem>>, vector<1x8xf32>
      %30 = arith.mulf %19, %19 : vector<128x8xf32>
      %cst_20 = arith.constant dense<0.000000e+00> : vector<8xf32>
      %31 = vector.multi_reduction <add>, %30, %cst_20 [0] : vector<128x8xf32> to vector<8xf32>
      %32 = vector.shape_cast %31 : vector<8xf32> to vector<1x8xf32>
      %33 = arith.addf %29, %32 : vector<1x8xf32>
      %c0_21 = arith.constant 0 : index
      %c0_22 = arith.constant 0 : index
      %34 = vector.load %arg9[%c0_21, %c0_22] : memref<1x8xf32, #tpu.memory_space<vmem>>, vector<1x8xf32>
      tpu.vector_store %arg9[%c0_21, %c0_22], %33 {strides = array<i32>} : memref<1x8xf32, #tpu.memory_space<vmem>>, vector<1x8xf32>,
      %c1 = arith.constant 1 : index
      %c0_23 = arith.constant 0 : index
      %c0_24 = arith.constant 0 : index
      %35 = vector.load %arg3[%c1, %c0_23, %c0_24] : memref<4x8x8xbf16, #tpu.memory_space<vmem>>, vector<1x8x8xbf16>
      %36 = vector.shape_cast %35 : vector<1x8x8xbf16> to vector<8x8xbf16>
      %cst_25 = arith.constant dense<0.000000e+00> : vector<128x8xf32>
      %37 = tpu.matmul %14, %36, %cst_25 {dimension_numbers = #tpu.dot_dimension_numbers<[1], [0], [0], [1], [0, 0, 1, 1], [], []>} : vector<128x8xbf16>, vector<8x8xbf16>, vector<128x8xf32> -> vector<128x8xf32>
      %c1_26 = arith.constant 1 : index
      %38 = arith.index_cast %16 : i32 to index
      %c0_27 = arith.constant 0 : index
      %39 = vector.load %arg7[%c1_26, %38, %c0_27] : memref<4x128x8xf32, #tpu.memory_space<vmem>>, vector<1x128x8xf32>
      %40 = vector.shape_cast %39 : vector<1x128x8xf32> to vector<128x8xf32>
      %41 = vector.shape_cast %37 : vector<128x8xf32> to vector<1x128x8xf32>
      tpu.vector_store %arg7[%c1_26, %38, %c0_27], %41 {strides = array<i32>} : memref<4x128x8xf32, #tpu.memory_space<vmem>>, vector<1x128x8xf32>,
      %c0_28 = arith.constant 0 : index
      %c0_29 = arith.constant 0 : index
      %42 = vector.load %arg8[%c0_28, %c0_29] : memref<1x8xf32, #tpu.memory_space<vmem>>, vector<1x8xf32>
      %cst_30 = arith.constant dense<0.000000e+00> : vector<8xf32>
      %43 = vector.multi_reduction <add>, %37, %cst_30 [0] : vector<128x8xf32> to vector<8xf32>
      %44 = vector.shape_cast %43 : vector<8xf32> to vector<1x8xf32>
      %45 = arith.addf %42, %44 : vector<1x8xf32>
      %c0_31 = arith.constant 0 : index
      %c0_32 = arith.constant 0 : index
      %46 = vector.load %arg8[%c0_31, %c0_32] : memref<1x8xf32, #tpu.memory_space<vmem>>, vector<1x8xf32>
      tpu.vector_store %arg8[%c0_31, %c0_32], %45 {strides = array<i32>} : memref<1x8xf32, #tpu.memory_space<vmem>>, vector<1x8xf32>,
      %c0_33 = arith.constant 0 : index
      %c0_34 = arith.constant 0 : index
      %47 = vector.load %arg9[%c0_33, %c0_34] : memref<1x8xf32, #tpu.memory_space<vmem>>, vector<1x8xf32>
      %48 = arith.mulf %37, %37 : vector<128x8xf32>
      %cst_35 = arith.constant dense<0.000000e+00> : vector<8xf32>
      %49 = vector.multi_reduction <add>, %48, %cst_35 [0] : vector<128x8xf32> to vector<8xf32>
      %50 = vector.shape_cast %49 : vector<8xf32> to vector<1x8xf32>
      %51 = arith.addf %47, %50 : vector<1x8xf32>
      %c0_36 = arith.constant 0 : index
      %c0_37 = arith.constant 0 : index
      %52 = vector.load %arg9[%c0_36, %c0_37] : memref<1x8xf32, #tpu.memory_space<vmem>>, vector<1x8xf32>
      tpu.vector_store %arg9[%c0_36, %c0_37], %51 {strides = array<i32>} : memref<1x8xf32, #tpu.memory_space<vmem>>, vector<1x8xf32>,
      %c2 = arith.constant 2 : index
      %c0_38 = arith.constant 0 : index
      %c0_39 = arith.constant 0 : index
      %53 = vector.load %arg3[%c2, %c0_38, %c0_39] : memref<4x8x8xbf16, #tpu.memory_space<vmem>>, vector<1x8x8xbf16>
      %54 = vector.shape_cast %53 : vector<1x8x8xbf16> to vector<8x8xbf16>
      %cst_40 = arith.constant dense<0.000000e+00> : vector<128x8xf32>
      %55 = tpu.matmul %14, %54, %cst_40 {dimension_numbers = #tpu.dot_dimension_numbers<[1], [0], [0], [1], [0, 0, 1, 1], [], []>} : vector<128x8xbf16>, vector<8x8xbf16>, vector<128x8xf32> -> vector<128x8xf32>
      %c2_41 = arith.constant 2 : index
      %56 = arith.index_cast %16 : i32 to index
      %c0_42 = arith.constant 0 : index
      %57 = vector.load %arg7[%c2_41, %56, %c0_42] : memref<4x128x8xf32, #tpu.memory_space<vmem>>, vector<1x128x8xf32>
      %58 = vector.shape_cast %57 : vector<1x128x8xf32> to vector<128x8xf32>
      %59 = vector.shape_cast %55 : vector<128x8xf32> to vector<1x128x8xf32>
      tpu.vector_store %arg7[%c2_41, %56, %c0_42], %59 {strides = array<i32>} : memref<4x128x8xf32, #tpu.memory_space<vmem>>, vector<1x128x8xf32>,
      %c0_43 = arith.constant 0 : index
      %c0_44 = arith.constant 0 : index
      %60 = vector.load %arg8[%c0_43, %c0_44] : memref<1x8xf32, #tpu.memory_space<vmem>>, vector<1x8xf32>
      %cst_45 = arith.constant dense<0.000000e+00> : vector<8xf32>
      %61 = vector.multi_reduction <add>, %55, %cst_45 [0] : vector<128x8xf32> to vector<8xf32>
      %62 = vector.shape_cast %61 : vector<8xf32> to vector<1x8xf32>
      %63 = arith.addf %60, %62 : vector<1x8xf32>
      %c0_46 = arith.constant 0 : index
      %c0_47 = arith.constant 0 : index
      %64 = vector.load %arg8[%c0_46, %c0_47] : memref<1x8xf32, #tpu.memory_space<vmem>>, vector<1x8xf32>
      tpu.vector_store %arg8[%c0_46, %c0_47], %63 {strides = array<i32>} : memref<1x8xf32, #tpu.memory_space<vmem>>, vector<1x8xf32>,
      %c0_48 = arith.constant 0 : index
      %c0_49 = arith.constant 0 : index
      %65 = vector.load %arg9[%c0_48, %c0_49] : memref<1x8xf32, #tpu.memory_space<vmem>>, vector<1x8xf32>
      %66 = arith.mulf %55, %55 : vector<128x8xf32>
      %cst_50 = arith.constant dense<0.000000e+00> : vector<8xf32>
      %67 = vector.multi_reduction <add>, %66, %cst_50 [0] : vector<128x8xf32> to vector<8xf32>
      %68 = vector.shape_cast %67 : vector<8xf32> to vector<1x8xf32>
      %69 = arith.addf %65, %68 : vector<1x8xf32>
      %c0_51 = arith.constant 0 : index
      %c0_52 = arith.constant 0 : index
      %70 = vector.load %arg9[%c0_51, %c0_52] : memref<1x8xf32, #tpu.memory_space<vmem>>, vector<1x8xf32>
      tpu.vector_store %arg9[%c0_51, %c0_52], %69 {strides = array<i32>} : memref<1x8xf32, #tpu.memory_space<vmem>>, vector<1x8xf32>,
      %c3 = arith.constant 3 : index
      %c0_53 = arith.constant 0 : index
      %c0_54 = arith.constant 0 : index
      %71 = vector.load %arg3[%c3, %c0_53, %c0_54] : memref<4x8x8xbf16, #tpu.memory_space<vmem>>, vector<1x8x8xbf16>
      %72 = vector.shape_cast %71 : vector<1x8x8xbf16> to vector<8x8xbf16>
      %cst_55 = arith.constant dense<0.000000e+00> : vector<128x8xf32>
      %73 = tpu.matmul %14, %72, %cst_55 {dimension_numbers = #tpu.dot_dimension_numbers<[1], [0], [0], [1], [0, 0, 1, 1], [], []>} : vector<128x8xbf16>, vector<8x8xbf16>, vector<128x8xf32> -> vector<128x8xf32>
      %c3_56 = arith.constant 3 : index
      %74 = arith.index_cast %16 : i32 to index
      %c0_57 = arith.constant 0 : index
      %75 = vector.load %arg7[%c3_56, %74, %c0_57] : memref<4x128x8xf32, #tpu.memory_space<vmem>>, vector<1x128x8xf32>
      %76 = vector.shape_cast %75 : vector<1x128x8xf32> to vector<128x8xf32>
      %77 = vector.shape_cast %73 : vector<128x8xf32> to vector<1x128x8xf32>
      tpu.vector_store %arg7[%c3_56, %74, %c0_57], %77 {strides = array<i32>} : memref<4x128x8xf32, #tpu.memory_space<vmem>>, vector<1x128x8xf32>,
      %c0_58 = arith.constant 0 : index
      %c0_59 = arith.constant 0 : index
      %78 = vector.load %arg8[%c0_58, %c0_59] : memref<1x8xf32, #tpu.memory_space<vmem>>, vector<1x8xf32>
      %cst_60 = arith.constant dense<0.000000e+00> : vector<8xf32>
      %79 = vector.multi_reduction <add>, %73, %cst_60 [0] : vector<128x8xf32> to vector<8xf32>
      %80 = vector.shape_cast %79 : vector<8xf32> to vector<1x8xf32>
      %81 = arith.addf %78, %80 : vector<1x8xf32>
      %c0_61 = arith.constant 0 : index
      %c0_62 = arith.constant 0 : index
      %82 = vector.load %arg8[%c0_61, %c0_62] : memref<1x8xf32, #tpu.memory_space<vmem>>, vector<1x8xf32>
      tpu.vector_store %arg8[%c0_61, %c0_62], %81 {strides = array<i32>} : memref<1x8xf32, #tpu.memory_space<vmem>>, vector<1x8xf32>,
      %c0_63 = arith.constant 0 : index
      %c0_64 = arith.constant 0 : index
      %83 = vector.load %arg9[%c0_63, %c0_64] : memref<1x8xf32, #tpu.memory_space<vmem>>, vector<1x8xf32>
      %84 = arith.mulf %73, %73 : vector<128x8xf32>
      %cst_65 = arith.constant dense<0.000000e+00> : vector<8xf32>
      %85 = vector.multi_reduction <add>, %84, %cst_65 [0] : vector<128x8xf32> to vector<8xf32>
      %86 = vector.shape_cast %85 : vector<8xf32> to vector<1x8xf32>
      %87 = arith.addf %83, %86 : vector<1x8xf32>
      %c0_66 = arith.constant 0 : index
      %c0_67 = arith.constant 0 : index
      %88 = vector.load %arg9[%c0_66, %c0_67] : memref<1x8xf32, #tpu.memory_space<vmem>>, vector<1x8xf32>
      tpu.vector_store %arg9[%c0_66, %c0_67], %87 {strides = array<i32>} : memref<1x8xf32, #tpu.memory_space<vmem>>, vector<1x8xf32>,
    } else {
    }
    %c1_i32 = arith.constant 1 : i32
    %3 = arith.cmpi eq, %arg0, %c1_i32 : i32
    %c0_i32_1 = arith.constant 0 : i32
    %4 = arith.cmpi eq, %arg1, %c0_i32_1 : i32
    %5 = arith.andi %3, %4 : i1
    %6 = arith.extui %5 : i1 to i32
    %c0_i32_2 = arith.constant 0 : i32
    %7 = arith.cmpi ne, %6, %c0_i32_2 : i32
    scf.if %7 {
      %c0 = arith.constant 0 : index
      %c0_5 = arith.constant 0 : index
      %11 = vector.load %arg8[%c0, %c0_5] : memref<1x8xf32, #tpu.memory_space<vmem>>, vector<1x8xf32>
      %cst = arith.constant 0.001953125 : f32
      %12 = vector.broadcast %cst : f32 to vector<1x8xf32>
      %13 = arith.mulf %11, %12 : vector<1x8xf32>
      %c0_6 = arith.constant 0 : index
      %c0_7 = arith.constant 0 : index
      %14 = vector.load %arg9[%c0_6, %c0_7] : memref<1x8xf32, #tpu.memory_space<vmem>>, vector<1x8xf32>
      %cst_8 = arith.constant 0.001953125 : f32
      %15 = vector.broadcast %cst_8 : f32 to vector<1x8xf32>
      %16 = arith.mulf %14, %15 : vector<1x8xf32>
      %17 = arith.mulf %13, %13 : vector<1x8xf32>
      %18 = arith.subf %16, %17 : vector<1x8xf32>
      %cst_9 = arith.constant 0.000000e+00 : f32
      %19 = vector.broadcast %cst_9 : f32 to vector<1x8xf32>
      %20 = arith.maximumf %18, %19 : vector<1x8xf32>
      %c0_10 = arith.constant 0 : index
      %c0_11 = arith.constant 0 : index
      %21 = vector.load %arg4[%c0_10, %c0_11] : memref<1x8xf32, #tpu.memory_space<vmem>>, vector<1x8xf32>
      %cst_12 = arith.constant 9.99999974E-6 : f32
      %22 = vector.broadcast %cst_12 : f32 to vector<1x8xf32>
      %23 = arith.addf %20, %22 : vector<1x8xf32>
      %24 = math.rsqrt %23 : vector<1x8xf32>
      %25 = arith.mulf %21, %24 : vector<1x8xf32>
      %c0_13 = arith.constant 0 : index
      %c0_14 = arith.constant 0 : index
      %26 = vector.load %arg10[%c0_13, %c0_14] : memref<1x8xf32, #tpu.memory_space<vmem>>, vector<1x8xf32>
      tpu.vector_store %arg10[%c0_13, %c0_14], %25 {strides = array<i32>} : memref<1x8xf32, #tpu.memory_space<vmem>>, vector<1x8xf32>,
      %c0_15 = arith.constant 0 : index
      %c0_16 = arith.constant 0 : index
      %27 = vector.load %arg5[%c0_15, %c0_16] : memref<1x8xf32, #tpu.memory_space<vmem>>, vector<1x8xf32>
      %28 = arith.mulf %13, %25 : vector<1x8xf32>
      %29 = arith.subf %27, %28 : vector<1x8xf32>
      %c0_17 = arith.constant 0 : index
      %c0_18 = arith.constant 0 : index
      %30 = vector.load %arg11[%c0_17, %c0_18] : memref<1x8xf32, #tpu.memory_space<vmem>>, vector<1x8xf32>
      tpu.vector_store %arg11[%c0_17, %c0_18], %29 {strides = array<i32>} : memref<1x8xf32, #tpu.memory_space<vmem>>, vector<1x8xf32>,
    } else {
    }
    %c1_i32_3 = arith.constant 1 : i32
    %8 = arith.cmpi eq, %arg0, %c1_i32_3 : i32
    %9 = arith.extui %8 : i1 to i32
    %c0_i32_4 = arith.constant 0 : i32
    %10 = arith.cmpi ne, %9, %c0_i32_4 : i32
    scf.if %10 {
      %c128_i32 = arith.constant 128 : i32
      %11 = arith.muli %arg1, %c128_i32 : i32
      %12 = tpu.assume_multiple %11, 128 : i32
      %c0 = arith.constant 0 : index
      %c0_5 = arith.constant 0 : index
      %13 = vector.load %arg10[%c0, %c0_5] : memref<1x8xf32, #tpu.memory_space<vmem>>, vector<1x8xf32>
      %c0_6 = arith.constant 0 : index
      %c0_7 = arith.constant 0 : index
      %14 = vector.load %arg11[%c0_6, %c0_7] : memref<1x8xf32, #tpu.memory_space<vmem>>, vector<1x8xf32>
      %c0_8 = arith.constant 0 : index
      %15 = arith.index_cast %12 : i32 to index
      %c0_9 = arith.constant 0 : index
      %16 = vector.load %arg7[%c0_8, %15, %c0_9] : memref<4x128x8xf32, #tpu.memory_space<vmem>>, vector<1x128x8xf32>
      %17 = vector.shape_cast %16 : vector<1x128x8xf32> to vector<128x8xf32>
      %18 = vector.broadcast %13 : vector<1x8xf32> to vector<128x8xf32>
      %19 = arith.mulf %17, %18 : vector<128x8xf32>
      %20 = vector.broadcast %14 : vector<1x8xf32> to vector<128x8xf32>
      %21 = arith.addf %19, %20 : vector<128x8xf32>
      %cst = arith.constant 0.000000e+00 : f32
      %22 = vector.broadcast %cst : f32 to vector<128x8xf32>
      %23 = arith.cmpf ogt, %21, %22 : vector<128x8xf32>
      %cst_10 = arith.constant 0.000000e+00 : f32
      %24 = vector.broadcast %cst_10 : f32 to vector<128x8xf32>
      %25 = arith.minimumf %21, %24 : vector<128x8xf32>
      %26 = math.exp %25 : vector<128x8xf32>
      %cst_11 = arith.constant 1.000000e+00 : f32
      %27 = vector.broadcast %cst_11 : f32 to vector<128x8xf32>
      %28 = arith.subf %26, %27 : vector<128x8xf32>
      %29 = arith.select %23, %21, %28 : vector<128x8xi1>, vector<128x8xf32>
      %30 = arith.truncf %29 : vector<128x8xf32> to vector<128x8xbf16>
      %c0_12 = arith.constant 0 : index
      %c0_13 = arith.constant 0 : index
      %c0_14 = arith.constant 0 : index
      %31 = vector.load %arg6[%c0_12, %c0_13, %c0_14] : memref<4x128x8xbf16, #tpu.memory_space<vmem>>, vector<1x128x8xbf16>
      %32 = vector.shape_cast %31 : vector<1x128x8xbf16> to vector<128x8xbf16>
      %33 = vector.shape_cast %30 : vector<128x8xbf16> to vector<1x128x8xbf16>
      tpu.vector_store %arg6[%c0_12, %c0_13, %c0_14], %33 {strides = array<i32>} : memref<4x128x8xbf16, #tpu.memory_space<vmem>>, vector<1x128x8xbf16>,
      %c1 = arith.constant 1 : index
      %34 = arith.index_cast %12 : i32 to index
      %c0_15 = arith.constant 0 : index
      %35 = vector.load %arg7[%c1, %34, %c0_15] : memref<4x128x8xf32, #tpu.memory_space<vmem>>, vector<1x128x8xf32>
      %36 = vector.shape_cast %35 : vector<1x128x8xf32> to vector<128x8xf32>
      %37 = vector.broadcast %13 : vector<1x8xf32> to vector<128x8xf32>
      %38 = arith.mulf %36, %37 : vector<128x8xf32>
      %39 = vector.broadcast %14 : vector<1x8xf32> to vector<128x8xf32>
      %40 = arith.addf %38, %39 : vector<128x8xf32>
      %cst_16 = arith.constant 0.000000e+00 : f32
      %41 = vector.broadcast %cst_16 : f32 to vector<128x8xf32>
      %42 = arith.cmpf ogt, %40, %41 : vector<128x8xf32>
      %cst_17 = arith.constant 0.000000e+00 : f32
      %43 = vector.broadcast %cst_17 : f32 to vector<128x8xf32>
      %44 = arith.minimumf %40, %43 : vector<128x8xf32>
      %45 = math.exp %44 : vector<128x8xf32>
      %cst_18 = arith.constant 1.000000e+00 : f32
      %46 = vector.broadcast %cst_18 : f32 to vector<128x8xf32>
      %47 = arith.subf %45, %46 : vector<128x8xf32>
      %48 = arith.select %42, %40, %47 : vector<128x8xi1>, vector<128x8xf32>
      %49 = arith.truncf %48 : vector<128x8xf32> to vector<128x8xbf16>
      %c1_19 = arith.constant 1 : index
      %c0_20 = arith.constant 0 : index
      %c0_21 = arith.constant 0 : index
      %50 = vector.load %arg6[%c1_19, %c0_20, %c0_21] : memref<4x128x8xbf16, #tpu.memory_space<vmem>>, vector<1x128x8xbf16>
      %51 = vector.shape_cast %50 : vector<1x128x8xbf16> to vector<128x8xbf16>
      %52 = vector.shape_cast %49 : vector<128x8xbf16> to vector<1x128x8xbf16>
      tpu.vector_store %arg6[%c1_19, %c0_20, %c0_21], %52 {strides = array<i32>} : memref<4x128x8xbf16, #tpu.memory_space<vmem>>, vector<1x128x8xbf16>,
      %c2 = arith.constant 2 : index
      %53 = arith.index_cast %12 : i32 to index
      %c0_22 = arith.constant 0 : index
      %54 = vector.load %arg7[%c2, %53, %c0_22] : memref<4x128x8xf32, #tpu.memory_space<vmem>>, vector<1x128x8xf32>
      %55 = vector.shape_cast %54 : vector<1x128x8xf32> to vector<128x8xf32>
      %56 = vector.broadcast %13 : vector<1x8xf32> to vector<128x8xf32>
      %57 = arith.mulf %55, %56 : vector<128x8xf32>
      %58 = vector.broadcast %14 : vector<1x8xf32> to vector<128x8xf32>
      %59 = arith.addf %57, %58 : vector<128x8xf32>
      %cst_23 = arith.constant 0.000000e+00 : f32
      %60 = vector.broadcast %cst_23 : f32 to vector<128x8xf32>
      %61 = arith.cmpf ogt, %59, %60 : vector<128x8xf32>
      %cst_24 = arith.constant 0.000000e+00 : f32
      %62 = vector.broadcast %cst_24 : f32 to vector<128x8xf32>
      %63 = arith.minimumf %59, %62 : vector<128x8xf32>
      %64 = math.exp %63 : vector<128x8xf32>
      %cst_25 = arith.constant 1.000000e+00 : f32
      %65 = vector.broadcast %cst_25 : f32 to vector<128x8xf32>
      %66 = arith.subf %64, %65 : vector<128x8xf32>
      %67 = arith.select %61, %59, %66 : vector<128x8xi1>, vector<128x8xf32>
      %68 = arith.truncf %67 : vector<128x8xf32> to vector<128x8xbf16>
      %c2_26 = arith.constant 2 : index
      %c0_27 = arith.constant 0 : index
      %c0_28 = arith.constant 0 : index
      %69 = vector.load %arg6[%c2_26, %c0_27, %c0_28] : memref<4x128x8xbf16, #tpu.memory_space<vmem>>, vector<1x128x8xbf16>
      %70 = vector.shape_cast %69 : vector<1x128x8xbf16> to vector<128x8xbf16>
      %71 = vector.shape_cast %68 : vector<128x8xbf16> to vector<1x128x8xbf16>
      tpu.vector_store %arg6[%c2_26, %c0_27, %c0_28], %71 {strides = array<i32>} : memref<4x128x8xbf16, #tpu.memory_space<vmem>>, vector<1x128x8xbf16>,
      %c3 = arith.constant 3 : index
      %72 = arith.index_cast %12 : i32 to index
      %c0_29 = arith.constant 0 : index
      %73 = vector.load %arg7[%c3, %72, %c0_29] : memref<4x128x8xf32, #tpu.memory_space<vmem>>, vector<1x128x8xf32>
      %74 = vector.shape_cast %73 : vector<1x128x8xf32> to vector<128x8xf32>
      %75 = vector.broadcast %13 : vector<1x8xf32> to vector<128x8xf32>
      %76 = arith.mulf %74, %75 : vector<128x8xf32>
      %77 = vector.broadcast %14 : vector<1x8xf32> to vector<128x8xf32>
      %78 = arith.addf %76, %77 : vector<128x8xf32>
      %cst_30 = arith.constant 0.000000e+00 : f32
      %79 = vector.broadcast %cst_30 : f32 to vector<128x8xf32>
      %80 = arith.cmpf ogt, %78, %79 : vector<128x8xf32>
      %cst_31 = arith.constant 0.000000e+00 : f32
      %81 = vector.broadcast %cst_31 : f32 to vector<128x8xf32>
      %82 = arith.minimumf %78, %81 : vector<128x8xf32>
      %83 = math.exp %82 : vector<128x8xf32>
      %cst_32 = arith.constant 1.000000e+00 : f32
      %84 = vector.broadcast %cst_32 : f32 to vector<128x8xf32>
      %85 = arith.subf %83, %84 : vector<128x8xf32>
      %86 = arith.select %80, %78, %85 : vector<128x8xi1>, vector<128x8xf32>
      %87 = arith.truncf %86 : vector<128x8xf32> to vector<128x8xbf16>
      %c3_33 = arith.constant 3 : index
      %c0_34 = arith.constant 0 : index
      %c0_35 = arith.constant 0 : index
      %88 = vector.load %arg6[%c3_33, %c0_34, %c0_35] : memref<4x128x8xbf16, #tpu.memory_space<vmem>>, vector<1x128x8xbf16>
      %89 = vector.shape_cast %88 : vector<1x128x8xbf16> to vector<128x8xbf16>
      %90 = vector.shape_cast %87 : vector<128x8xbf16> to vector<1x128x8xbf16>
      tpu.vector_store %arg6[%c3_33, %c0_34, %c0_35], %90 {strides = array<i32>} : memref<4x128x8xbf16, #tpu.memory_space<vmem>>, vector<1x128x8xbf16>,
    } else {
    }
    return
  }
  func.func @transform_0(%arg0: i32, %arg1: i32) -> (i32, i32) {
    %c1_i32 = arith.constant 1 : i32
    %0 = arith.subi %c1_i32, %arg0 : i32
    %1 = arith.muli %arg1, %0 : i32
    %c0_i32 = arith.constant 0 : i32
    %c0_i32_0 = arith.constant 0 : i32
    return %1, %c0_i32 : i32, i32
  }
  func.func @transform_1(%arg0: i32, %arg1: i32) -> (i32, i32, i32) {
    %c0_i32 = arith.constant 0 : i32
    %c0_i32_0 = arith.constant 0 : i32
    %c0_i32_1 = arith.constant 0 : i32
    %c0_i32_2 = arith.constant 0 : i32
    return %c0_i32, %c0_i32_0, %c0_i32_1 : i32, i32, i32
  }
  func.func @transform_2(%arg0: i32, %arg1: i32) -> (i32, i32) {
    %c0_i32 = arith.constant 0 : i32
    %c0_i32_0 = arith.constant 0 : i32
    %c0_i32_1 = arith.constant 0 : i32
    return %c0_i32, %c0_i32_0 : i32, i32
  }
  func.func @transform_3(%arg0: i32, %arg1: i32) -> (i32, i32) {
    %c0_i32 = arith.constant 0 : i32
    %c0_i32_0 = arith.constant 0 : i32
    %c0_i32_1 = arith.constant 0 : i32
    return %c0_i32, %c0_i32_0 : i32, i32
  }
  func.func @transform_4(%arg0: i32, %arg1: i32) -> (i32, i32, i32) {
    %0 = arith.muli %arg1, %arg0 : i32
    %c0_i32 = arith.constant 0 : i32
    %c0_i32_0 = arith.constant 0 : i32
    %c0_i32_1 = arith.constant 0 : i32
    return %c0_i32, %0, %c0_i32_0 : i32, i32, i32
  }
}

module attributes {stable_mosaic.version = 11 : i64} {
  func.func @_matmul_bias_kernel(%arg0: i32, %arg1: memref<512x72xbf16, #tpu.memory_space<vmem>>, %arg2: memref<72x4xbf16, #tpu.memory_space<vmem>>, %arg3: memref<1x4xf32, #tpu.memory_space<vmem>>, %arg4: memref<512x4xf32, #tpu.memory_space<vmem>>) attributes {dimension_semantics = [#tpu.dimension_semantics<parallel>], iteration_bounds = array<i64: 1>, scalar_prefetch = 0 : i64, scratch_operands = 0 : i64, tpu.core_type = #tpu.core_type<tc>, window_params = [{transform_indices = @transform_0, window_bounds = array<i64: 512, 72>}, {pipeline_mode = #tpu.pipeline_mode<synchronous>, transform_indices = @transform_1, window_bounds = array<i64: 72, 4>}, {pipeline_mode = #tpu.pipeline_mode<synchronous>, transform_indices = @transform_2, window_bounds = array<i64: 1, 4>}, {transform_indices = @transform_3, window_bounds = array<i64: 512, 4>}]} {
    %c0 = arith.constant 0 : index
    %c0_0 = arith.constant 0 : index
    %0 = vector.load %arg1[%c0, %c0_0] : memref<512x72xbf16, #tpu.memory_space<vmem>>, vector<512x72xbf16>
    %c0_1 = arith.constant 0 : index
    %c0_2 = arith.constant 0 : index
    %1 = vector.load %arg2[%c0_1, %c0_2] : memref<72x4xbf16, #tpu.memory_space<vmem>>, vector<72x4xbf16>
    %cst = arith.constant dense<0.000000e+00> : vector<512x4xf32>
    %2 = tpu.matmul %0, %1, %cst {dimension_numbers = #tpu.dot_dimension_numbers<[1], [0], [0], [1], [0, 0, 1, 1], [], []>} : vector<512x72xbf16>, vector<72x4xbf16>, vector<512x4xf32> -> vector<512x4xf32>
    %c0_3 = arith.constant 0 : index
    %c0_4 = arith.constant 0 : index
    %3 = vector.load %arg3[%c0_3, %c0_4] : memref<1x4xf32, #tpu.memory_space<vmem>>, vector<1x4xf32>
    %4 = vector.broadcast %3 : vector<1x4xf32> to vector<512x4xf32>
    %5 = arith.addf %2, %4 : vector<512x4xf32>
    %c0_5 = arith.constant 0 : index
    %c0_6 = arith.constant 0 : index
    %6 = vector.load %arg4[%c0_5, %c0_6] : memref<512x4xf32, #tpu.memory_space<vmem>>, vector<512x4xf32>
    tpu.vector_store %arg4[%c0_5, %c0_6], %5 {strides = array<i32>} : memref<512x4xf32, #tpu.memory_space<vmem>>, vector<512x4xf32>,
    return
  }
  func.func @transform_0(%arg0: i32) -> (i32, i32) {
    %c0_i32 = arith.constant 0 : i32
    %c0_i32_0 = arith.constant 0 : i32
    return %arg0, %c0_i32 : i32, i32
  }
  func.func @transform_1(%arg0: i32) -> (i32, i32) {
    %c0_i32 = arith.constant 0 : i32
    %c0_i32_0 = arith.constant 0 : i32
    %c0_i32_1 = arith.constant 0 : i32
    return %c0_i32, %c0_i32_0 : i32, i32
  }
  func.func @transform_2(%arg0: i32) -> (i32, i32) {
    %c0_i32 = arith.constant 0 : i32
    %c0_i32_0 = arith.constant 0 : i32
    %c0_i32_1 = arith.constant 0 : i32
    return %c0_i32, %c0_i32_0 : i32, i32
  }
  func.func @transform_3(%arg0: i32) -> (i32, i32) {
    %c0_i32 = arith.constant 0 : i32
    %c0_i32_0 = arith.constant 0 : i32
    return %arg0, %c0_i32 : i32, i32
  }
}

</mosaic_0001>

<bundles_post_ra>
// kernel: autoencoder_forward.11
= control target key start
LH: loop header
LB: loop body
LE: loop exit
PB: predicated region body
PF: predicated region fallthrough
CT: control target
= control target key end

     0   :  { %s1145_s15 = smov 0   ;;  %s1147_s16 = smov 0   ;;  %s1482_s0 = inlined_call_operand.vmem [shape: bf16[128,36], index: 0, kind: input, shape index: {}]   ;;  %s1483_s1 = inlined_call_operand.vmem [shape: bf16[1,36,8], index: 1, kind: input, shape index: {}]   ;;  %s1484_s2 = inlined_call_operand.vmem [shape: f32[1,8], index: 2, kind: input, shape index: {}]   ;;  %s1485_s3 = inlined_call_operand.vmem [shape: f32[1,8], index: 3, kind: input, shape index: {}]   ;;  %s1486_s4 = inlined_call_operand.vmem [shape: bf16[1,128,8], index: 4, kind: output, shape index: {}]  }
   0x1   :  { %s1149_s17 = smov 0  }
   0x2 LB: > { %s26_s18 = sadd.s32 1, %s1113_s16  ;;  %p906_p0 = scmp.ge.s32.totalorder %s1117_s17, 1  ;;  %s1117_s17 = sphi %s1149_s17, %s14_s17   ;;  %s1113_s16 = sphi %s1147_s16, %s1488_s16   ;;  %s1109_s15 = sphi %s1145_s15, %s1487_s15  }
   0x3   : > { %p28_p1 = scmp.ge.s32.totalorder %s26_s18, 2  ;;  %p185_p2 = scmp.lt.s32.totalorder %s1117_s17, 3 }
   0x5   : > { %s1490_s18 = smov (%p28_p1, %s26_s18), 0  ;;  %p186_p3 = pnand %p906_p0, %p185_p2 }
   0x6   : > { %p907_p4 = scmp.ne.s32.totalorder (!%p186_p3), %s1109_s15, 0 }
   0x7   : > { %189 = sbr.rel (%p186_p3) target bundleno = 377 (0x179), region = 36 }
   0xe   : > { %236 = sbr.rel (%p907_p4) target bundleno = 290 (0x122), region = 40  ;;  %v1050_v0 = vld [vmem:[%s1483_s1] sm:$0xff] (!%p907_p4)   ;;  %v1051_v1 = vld [vmem:[%s1483_s1 + $0x8] sm:$0xff] (!%p907_p4)   ;;  %vm321_vm0 = vcmask (!%p907_p4), 293888   ;;  %vm346_vm1 = vcmask (!%p907_p4), 1041408   ;;  %v1055_v8 = vld [vmem:[%s1482_s0 + $0x10] sm:$0xff] (!%p907_p4)  }
   0xf   : > { %995 = vmatprep.subr.bf16.mxu0 (!%p907_p4), %v1050_v0  ;;  %v1052_v2 = vld [vmem:[%s1483_s1 + $0x10] ss:$0 sps:$4 sm:$0x33] (!%p907_p4)   ;;  %v1053_v3 = vld [vmem:[%s1482_s0] sm:$0xff] (!%p907_p4)   ;;  %1017 = vmatprep.subr.bf16.mxu1 (!%p907_p4), %v1050_v0  ;;  %v1054_v6 = vld [vmem:[%s1482_s0 + $0x8] sm:$0xff] (!%p907_p4)   ;;  %vm241_vm2 = vcmask (!%p907_p4), 57344  }
  0x10   : > { %996 = vmatpush3.bf16.msra.mxu0 (!%p907_p4), %v1050_v0  ;;  %1020 = vmatpush3.bf16.msra.mxu1 (!%p907_p4), %v1050_v0  ;;  %v1057_v4 = vld [vmem:[%s1482_s0 + $0x20] sm:$0xff] (!%p907_p4)   ;;  %v348_v5 = vsel (!%p907_p4), %vm346_vm1, %v1052_v2, 0  ;;  %v1058_v7 = vld [vmem:[%s1482_s0 + $0x28] sm:$0xff] (!%p907_p4)   ;;  %v1059_v9 = vld [vmem:[%s1482_s0 + $0x30] sm:$0xff] (!%p907_p4)   ;;  %v1119_v12 = vmov (!%p907_p4), 0.0   ;;  %vm448_vm3 = vcmask (!%p907_p4), 64512  }
  0x11   : > { %997 = vmatprep.subr.bf16.mxu0 (!%p907_p4), %v1051_v1  ;;  %1001 = vmatprep.mubr.msk.bf16.mxu0 (!%p907_p4), %vm321_vm0, %v1053_v3  ;;  %v1056_v10 = vld [vmem:[%s1482_s0 + $0x18] sm:$0xff] (!%p907_p4)   ;;  %242 = vst.msk [vmem:[#allocation3] sm:$0x1] (!%p907_p4), %vm241_vm2, %v1119_v12  ;;  %243 = vst.msk [vmem:[#allocation4] sm:$0x1] (!%p907_p4), %vm241_vm2, %v1119_v12 }
  0x12   : > { %1018 = vmatprep.subr.bf16.mxu1 (!%p907_p4), %v1051_v1  ;;  %1009 = vmatprep.mubr.msk.bf16.mxu1 (!%p907_p4), %vm321_vm0, %v1057_v4  ;;  %v1060_v11 = vld [vmem:[%s1482_s0 + $0x38] sm:$0xff] (!%p907_p4)  }
  0x14   : > { %998 = vmatpush3.bf16.msra.mxu0 (!%p907_p4), %v1051_v1  ;;  %1021 = vmatpush3.bf16.msra.mxu1 (!%p907_p4), %v1051_v1 }
  0x15   : > { %1023 = vmatprep.subr.msk.bf16.mxu0 %vm346_vm1, %v1052_v2  ;;  %1024 = vmatprep.subr.msk.bf16.mxu1 %vm346_vm1, %v1052_v2 }
  0x18   : > { %1000 = vmatpush3.bf16.msra.mxu0 %v348_v5  ;;  %1022 = vmatpush3.bf16.msra.mxu1 %v348_v5 }
  0x1b   : > { %1002 = vmatmul.mubr.msk.bf16.vlgmr.msra.gmra.mrb[0].mxu0 %vm321_vm0, %v1054_v6  ;;  %1010 = vmatmul.mubr.msk.bf16.vlgmr.msra.gmra.mrb[0].mxu1 %vm321_vm0, %v1058_v7 }
  0x1c   : > { %1005 = vmatprep.mubr.msk.bf16.mxu0 %vm321_vm0, %v1055_v8  ;;  %1013 = vmatprep.mubr.msk.bf16.mxu1 %vm321_vm0, %v1059_v9 }
  0x23   : > { %1006 = vmatmul.mubr.msk.bf16.gmra.mrb[4].mxu0 %vm321_vm0, %v1056_v10  ;;  %1014 = vmatmul.mubr.msk.bf16.gmra.mrb[4].mxu1 %vm321_vm0, %v1060_v11 }
  0xee   : > { %v1003_v13 = vpop.f32.mrb[0].mxu0  ;;  %v1209_v14 = vpop.f32.mrb[0].mxu1 }
  0xef   : > { %451 = vst.msk [vmem:[#allocation2 + $0x10] sm:$0xff] %vm448_vm3, %v1003_v13  ;;  %v384_v15 = vpop.f32.mrb[1].mxu0  ;;  %459 = vst.msk [vmem:[#allocation2 + $0x50] sm:$0xff] %vm448_vm3, %v1209_v14  ;;  %v416_v16 = vpop.f32.mrb[1].mxu1  ;;  %v509_v22 = vmul.f32 %v1003_v13, %v1003_v13  ;;  %v469_v27 = vsel %vm448_vm3, %v1003_v13, 0.0  ;;  %v517_v8 = vmul.f32 %v1209_v14, %v1209_v14  ;;  %v485_v12 = vsel %vm448_vm3, %v1209_v14, 0.0 }
  0xf0   : > { %449 = vst.msk [vmem:[#allocation2] sm:$0xff] %vm448_vm3, %v384_v15  ;;  %v507_v17 = vmul.f32 %v384_v15, %v384_v15  ;;  %v1004_v18 = vpop.f32.mrb[2].mxu0  ;;  %457 = vst.msk [vmem:[#allocation2 + $0x40] sm:$0xff] %vm448_vm3, %v416_v16  ;;  %v1216_v19 = vpop.f32.mrb[2].mxu1  ;;  %v466_v23 = vsel %vm448_vm3, %v384_v15, 0.0  ;;  %v515_v59 = vmul.f32 %v416_v16, %v416_v16  ;;  %v481_v0 = vsel %vm448_vm3, %v416_v16, 0.0 }
  0xf1   : > { %452 = vst.msk [vmem:[#allocation2 + $0x18] sm:$0xff] %vm448_vm3, %v1004_v18  ;;  %v387_v20 = vpop.f32.mrb[3].mxu0  ;;  %460 = vst.msk [vmem:[#allocation2 + $0x58] sm:$0xff] %vm448_vm3, %v1216_v19  ;;  %v419_v21 = vpop.f32.mrb[3].mxu1  ;;  %v510_v29 = vmul.f32 %v1004_v18, %v1004_v18  ;;  %v526_v33 = vsel %vm448_vm3, %v509_v22, 0.0  ;;  %v471_v34 = vsel %vm448_vm3, %v1004_v18, 0.0  ;;  %v518_v13 = vmul.f32 %v1216_v19, %v1216_v19 }
  0xf2   : > { %450 = vst.msk [vmem:[#allocation2 + $0x8] sm:$0xff] %vm448_vm3, %v387_v20  ;;  %v467_v24 = vsel %vm448_vm3, %v387_v20, 0.0  ;;  %v508_v25 = vmul.f32 %v387_v20, %v387_v20  ;;  %458 = vst.msk [vmem:[#allocation2 + $0x48] sm:$0xff] %vm448_vm3, %v419_v21  ;;  %v523_v28 = vsel %vm448_vm3, %v507_v17, 0.0  ;;  %v538_v4 = vsel %vm448_vm3, %v515_v59, 0.0 }
  0xf3   : > { %v468_v26 = vadd.f32 %v467_v24, %v466_v23  ;;  %v528_v41 = vsel %vm448_vm3, %v510_v29, 0.0  ;;  %v516_v5 = vmul.f32 %v419_v21, %v419_v21  ;;  %v483_v9 = vsel %vm448_vm3, %v419_v21, 0.0 }
  0xf4   : > { %v524_v30 = vsel %vm448_vm3, %v508_v25, 0.0  ;;  %v542_v20 = vsel %vm448_vm3, %v517_v8, 0.0  ;;  %v487_v22 = vsel %vm448_vm3, %v1216_v19, 0.0  ;;  %v544_v25 = vsel %vm448_vm3, %v518_v13, 0.0 }
  0xf5   : > { %v470_v31 = vadd.f32 %v469_v27, %v468_v26  ;;  %v525_v32 = vadd.f32 %v524_v30, %v523_v28  ;;  %v540_v15 = vsel %vm448_vm3, %v516_v5, 0.0 }
  0xf6   : > { %v1007_v35 = vpop.f32.mrb[4].mxu0  ;;  %v1230_v36 = vpop.f32.mrb[4].mxu1 }
  0xf7   : > { %v527_v37 = vadd.f32 %v526_v33, %v525_v32  ;;  %455 = vst.msk [vmem:[#allocation2 + $0x30] sm:$0xff] %vm448_vm3, %v1007_v35  ;;  %v400_v38 = vpop.f32.mrb[5].mxu0  ;;  %v472_v39 = vadd.f32 %v471_v34, %v470_v31  ;;  %463 = vst.msk [vmem:[#allocation2 + $0x70] sm:$0xff] %vm448_vm3, %v1230_v36  ;;  %v432_v40 = vpop.f32.mrb[5].mxu1  ;;  %v513_v50 = vmul.f32 %v1007_v35, %v1007_v35  ;;  %v477_v56 = vsel %vm448_vm3, %v1007_v35, 0.0 }
  0xf8   : > { %453 = vst.msk [vmem:[#allocation2 + $0x20] sm:$0xff] %vm448_vm3, %v400_v38  ;;  %v473_v42 = vsel %vm448_vm3, %v400_v38, 0.0  ;;  %v511_v43 = vmul.f32 %v400_v38, %v400_v38  ;;  %v1008_v44 = vpop.f32.mrb[6].mxu0  ;;  %461 = vst.msk [vmem:[#allocation2 + $0x60] sm:$0xff] %vm448_vm3, %v432_v40  ;;  %v1016_v45 = vpop.f32.mrb[6].mxu1  ;;  %v519_v16 = vmul.f32 %v432_v40, %v432_v40  ;;  %v489_v21 = vsel %vm448_vm3, %v432_v40, 0.0 }
  0xf9   : > { %v474_v46 = vadd.f32 %v473_v42, %v472_v39  ;;  %v529_v47 = vadd.f32 %v528_v41, %v527_v37  ;;  %456 = vst.msk [vmem:[#allocation2 + $0x38] sm:$0xff] %vm448_vm3, %v1008_v44  ;;  %v403_v48 = vpop.f32.mrb[7].mxu0  ;;  %464 = vst.msk [vmem:[#allocation2 + $0x78] sm:$0xff] %vm448_vm3, %v1016_v45  ;;  %v435_v49 = vpop.f32.mrb[7].mxu1  ;;  %v514_v57 = vmul.f32 %v1008_v44, %v1008_v44  ;;  %v534_v62 = vsel %vm448_vm3, %v513_v50, 0.0 }
  0xfa   : > { %v530_v51 = vsel %vm448_vm3, %v511_v43, 0.0  ;;  %454 = vst.msk [vmem:[#allocation2 + $0x28] sm:$0xff] %vm448_vm3, %v403_v48  ;;  %v475_v52 = vsel %vm448_vm3, %v403_v48, 0.0  ;;  %v512_v53 = vmul.f32 %v403_v48, %v403_v48  ;;  %462 = vst.msk [vmem:[#allocation2 + $0x68] sm:$0xff] %vm448_vm3, %v435_v49  ;;  %v479_v63 = vsel %vm448_vm3, %v1008_v44, 0.0 }
  0xfb   : > { %v531_v54 = vadd.f32 %v530_v51, %v529_v47  ;;  %v476_v55 = vadd.f32 %v475_v52, %v474_v46  ;;  %v536_v3 = vsel %vm448_vm3, %v514_v57, 0.0  ;;  %v546_v14 = vsel %vm448_vm3, %v519_v16, 0.0 }
  0xfc   : > { %v532_v58 = vsel %vm448_vm3, %v512_v53, 0.0  ;;  %v520_v26 = vmul.f32 %v435_v49, %v435_v49  ;;  %v521_v29 = vmul.f32 %v1230_v36, %v1230_v36  ;;  %v491_v30 = vsel %vm448_vm3, %v435_v49, 0.0  ;;  %v465_v53 = vld [vmem:[#allocation3] sm:$0x1] }
  0xfd   : > { %v478_v60 = vadd.f32 %v477_v56, %v476_v55  ;;  %v533_v61 = vadd.f32 %v532_v58, %v531_v54  ;;  %v493_v19 = vsel %vm448_vm3, %v1230_v36, 0.0  ;;  %v522_v33 = vmul.f32 %v1016_v45, %v1016_v45  ;;  %v506_v56 = vld [vmem:[#allocation4] sm:$0x1] }
  0xfe   : > { %v548_v34 = vsel %vm448_vm3, %v520_v26, 0.0  ;;  %v550_v38 = vsel %vm448_vm3, %v521_v29, 0.0  ;;  %v495_v39 = vsel %vm448_vm3, %v1016_v45, 0.0 }
  0xff   : > { %v535_v1 = vadd.f32 %v534_v62, %v533_v61  ;;  %v480_v2 = vadd.f32 %v479_v63, %v478_v60  ;;  %v552_v42 = vsel %vm448_vm3, %v522_v33, 0.0 }
 0x101   : > { %v482_v6 = vadd.f32 %v481_v0, %v480_v2  ;;  %v537_v7 = vadd.f32 %v536_v3, %v535_v1 }
 0x103   : > { %v539_v10 = vadd.f32 %v538_v4, %v537_v7  ;;  %v484_v11 = vadd.f32 %v483_v9, %v482_v6 }
 0x105   : > { %v486_v17 = vadd.f32 %v485_v12, %v484_v11  ;;  %v541_v18 = vadd.f32 %v540_v15, %v539_v10 }
 0x107   : > { %v543_v23 = vadd.f32 %v542_v20, %v541_v18  ;;  %v488_v24 = vadd.f32 %v487_v22, %v486_v17 }
 0x109   : > { %v490_v27 = vadd.f32 %v489_v21, %v488_v24  ;;  %v545_v28 = vadd.f32 %v544_v25, %v543_v23 }
 0x10b   : > { %v547_v31 = vadd.f32 %v546_v14, %v545_v28  ;;  %v492_v32 = vadd.f32 %v491_v30, %v490_v27 }
 0x10d   : > { %v494_v35 = vadd.f32 %v493_v19, %v492_v32  ;;  %v549_v37 = vadd.f32 %v548_v34, %v547_v31 }
 0x10f   : > { %v496_v40 = vadd.f32 %v495_v39, %v494_v35  ;;  %v551_v41 = vadd.f32 %v550_v38, %v549_v37 }
 0x111   : > { %v497_v43 = vrot.slane %v496_v40, 4  ;;  %v553_v44 = vadd.f32 %v552_v42, %v551_v41 }
 0x113   : > { %v498_v46 = vadd.f32 %v497_v43, %v496_v40  ;;  %v554_v47 = vrot.slane %v553_v44, 4 }
 0x115   : > { %v499_v48 = vrot.slane %v498_v46, 2  ;;  %v555_v49 = vadd.f32 %v554_v47, %v553_v44 }
 0x117   : > { %v500_v36 = vadd.f32 %v499_v48, %v498_v46  ;;  %v556_v50 = vrot.slane %v555_v49, 2 }
 0x119   : > { %v501_v51 = vrot.slane %v500_v36, 1  ;;  %v557_v52 = vadd.f32 %v556_v50, %v555_v49 }
 0x11b   : > { %v502_v54 = vadd.f32 %v501_v51, %v500_v36  ;;  %v558_v55 = vrot.slane %v557_v52, 1 }
 0x11d   : > { %v503_v57 = vadd.f32 %v502_v54, %v465_v53  ;;  %v559_v45 = vadd.f32 %v558_v55, %v557_v52 }
 0x11f   : > { %505 = vst.msk [vmem:[#allocation3] sm:$0x1] %vm241_vm2, %v503_v57  ;;  %v560_v58 = vadd.f32 %v559_v45, %v506_v56 }
 0x121   : > { %561 = vst.msk [vmem:[#allocation4] sm:$0x1] %vm241_vm2, %v560_v58 }
 0x122 PF: > { %p562_p5 = scmp.eq.s32.totalorder %s1109_s15, 1 }
 0x123   : > { %v575_v3 = vld [vmem:[%s1484_s2] sm:$0x1] (%p562_p5)  ;;  %vm579_vm4 = vcmask (%p562_p5), 57344  }
 0x124   : > { %567 = sbr.rel (!%p562_p5) target bundleno = 323 (0x143), region = 48  ;;  %v581_v6 = vld [vmem:[%s1485_s3] sm:$0x1] (%p562_p5) }
 0x126   : > { %v568_v59 = vld [vmem:[#allocation3] sm:$0x1] (%p562_p5) }
 0x127   : > { %v569_v61 = vmul.f32 (%p562_p5), 0.0078125, %v568_v59 }
 0x128   : > { %v570_v60 = vld [vmem:[#allocation4] sm:$0x1] (%p562_p5) }
 0x129   : > { %v571_v62 = vmul.f32 (%p562_p5), 0.0078125, %v570_v60  ;;  %v572_v63 = vmul.f32 (%p562_p5), %v569_v61, %v569_v61 }
 0x12b   : > { %v573_v0 = vsub.f32 %v571_v62, %v572_v63 }
 0x12d   : > { %v574_v1 = vmax.f32 %v573_v0, 0.0 }
 0x12f   : > { %v576_v2 = vadd.f32 1e-05, %v574_v1 }
 0x131   : > { %1061 = vrsqrt.f32 %v576_v2 }
 0x13b   : > { %v1062_v4 = vpop.eup %1061 }
 0x13c   : > { %v578_v5 = vmul.f32 %v1062_v4, %v575_v3 }
 0x13e   : > { %580 = vst.msk [vmem:[#allocation5] sm:$0x1] %vm579_vm4, %v578_v5  ;;  %v582_v7 = vmul.f32 %v578_v5, %v569_v61 }
 0x140   : > { %v583_v8 = vsub.f32 %v581_v6, %v582_v7 }
 0x142   : > { %584 = vst.msk [vmem:[#allocation6] sm:$0x1] %vm579_vm4, %v583_v8 }
 0x143 PF: > { %p928_p6 = scmp.ne.s32.totalorder %s1109_s15, 1 }
 0x144   : > { %v592_v11 = vld [vmem:[#allocation2] sm:$0xff] (!%p928_p6)  ;;  %v593_v13 = vld [vmem:[#allocation2 + $0x8] sm:$0xff] (!%p928_p6)  ;;  %v594_v15 = vld [vmem:[#allocation2 + $0x10] sm:$0xff] (!%p928_p6)  ;;  %vm812_vm7 = vcmask (!%p928_p6), 60416  }
 0x145   : > { %587 = sbr.rel (%p928_p6) target bundleno = 377 (0x179), region = 52  ;;  %v1285_v9 = vld [vmem:[#allocation5] ss:$0 sm:$0xff] (!%p928_p6)  ;;  %v595_v16 = vld [vmem:[#allocation2 + $0x18] sm:$0xff] (!%p928_p6)  ;;  %v597_v21 = vld [vmem:[#allocation2 + $0x28] sm:$0xff] (!%p928_p6) }
 0x146   : > { %v614_v12 = vmul.f32 (!%p928_p6), %v1285_v9, %v592_v11  ;;  %v615_v17 = vmul.f32 (!%p928_p6), %v1285_v9, %v593_v13  ;;  %v616_v18 = vmul.f32 (!%p928_p6), %v1285_v9, %v594_v15  ;;  %v617_v20 = vmul.f32 (!%p928_p6), %v1285_v9, %v595_v16  ;;  %v596_v22 = vld [vmem:[#allocation2 + $0x20] sm:$0xff] (!%p928_p6)  ;;  %v598_v23 = vld [vmem:[#allocation2 + $0x30] sm:$0xff] (!%p928_p6)  ;;  %v599_v26 = vld [vmem:[#allocation2 + $0x38] sm:$0xff] (!%p928_p6) }
 0x147   : > { %v618_v25 = vmul.f32 (!%p928_p6), %v1285_v9, %v596_v22  ;;  %v619_v14 = vmul.f32 (!%p928_p6), %v1285_v9, %v597_v21  ;;  %v620_v19 = vmul.f32 (!%p928_p6), %v1285_v9, %v598_v23  ;;  %v621_v35 = vmul.f32 (!%p928_p6), %v1285_v9, %v599_v26  ;;  %v600_v39 = vld [vmem:[#allocation2 + $0x40] sm:$0xff] (!%p928_p6)  ;;  %v601_v36 = vld [vmem:[#allocation2 + $0x48] sm:$0xff] (!%p928_p6)  ;;  %v602_v50 = vld [vmem:[#allocation2 + $0x50] sm:$0xff] (!%p928_p6) }
 0x148   : > { %v622_v49 = vmul.f32 (!%p928_p6), %v1285_v9, %v600_v39  ;;  %v603_v55 = vld [vmem:[#allocation2 + $0x58] sm:$0xff] (!%p928_p6)  ;;  %v623_v57 = vmul.f32 (!%p928_p6), %v1285_v9, %v601_v36  ;;  %v624_v45 = vmul.f32 (!%p928_p6), %v1285_v9, %v602_v50  ;;  %v604_v58 = vld [vmem:[#allocation2 + $0x60] sm:$0xff] (!%p928_p6)  ;;  %v605_v59 = vld [vmem:[#allocation2 + $0x68] sm:$0xff] (!%p928_p6) }
 0x149   : > { %v1287_v10 = vld [vmem:[#allocation6] ss:$0 sm:$0xff] (!%p928_p6)  ;;  %v625_v0 = vmul.f32 (!%p928_p6), %v1285_v9, %v603_v55  ;;  %v626_v2 = vmul.f32 (!%p928_p6), %v1285_v9, %v604_v58  ;;  %v627_v3 = vmul.f32 (!%p928_p6), %v1285_v9, %v605_v59  ;;  %v606_v6 = vld [vmem:[#allocation2 + $0x70] sm:$0xff] (!%p928_p6)  ;;  %v607_v11 = vld [vmem:[#allocation2 + $0x78] sm:$0xff] (!%p928_p6) }
 0x14a   : > { %v1294_v24 = vadd.f32 (!%p928_p6), %v1287_v10, %v614_v12  ;;  %v1299_v27 = vadd.f32 (!%p928_p6), %v1287_v10, %v615_v17  ;;  %v1302_v28 = vadd.f32 (!%p928_p6), %v1287_v10, %v616_v18  ;;  %v1305_v29 = vadd.f32 (!%p928_p6), %v1287_v10, %v617_v20 }
 0x14b   : > { %v1309_v31 = vadd.f32 (!%p928_p6), %v1287_v10, %v618_v25  ;;  %v1312_v32 = vadd.f32 (!%p928_p6), %v1287_v10, %v619_v14  ;;  %v1322_v46 = vadd.f32 (!%p928_p6), %v1287_v10, %v620_v19  ;;  %v1325_v48 = vadd.f32 (!%p928_p6), %v1287_v10, %v621_v35 }
 0x14c   : > { %v668_v30 = vmin.f32 %v1294_v24, 0.0  ;;  %v669_v33 = vmin.f32 %v1299_v27, 0.0  ;;  %v670_v34 = vmin.f32 %v1302_v28, 0.0  ;;  %v671_v38 = vmin.f32 %v1305_v29, 0.0 }
 0x14d   : > { %v672_v42 = vmin.f32 %v1309_v31, 0.0  ;;  %v673_v44 = vmin.f32 %v1312_v32, 0.0  ;;  %vm652_vm5 = vcmp.gt.f32.partialorder %v1294_v24, 0.0  ;;  %v674_v52 = vmin.f32 %v1322_v46, 0.0 }
 0x14e   : > { %v684_v37 = vmul.f32 1.442695, %v668_v30  ;;  %v686_v40 = vmul.f32 1.442695, %v669_v33  ;;  %v688_v41 = vmul.f32 1.442695, %v670_v34  ;;  %v1333_v54 = vadd.f32 %v1287_v10, %v622_v49 }
 0x14f   : > { %v690_v43 = vmul.f32 1.442695, %v671_v38  ;;  %v692_v47 = vmul.f32 1.442695, %v672_v42  ;;  %v694_v51 = vmul.f32 1.442695, %v673_v44  ;;  %v1340_v62 = vadd.f32 %v1287_v10, %v623_v57 }
 0x150   : > { %1063 = vpow2.f32 %v684_v37  ;;  %vm653_vm6 = vcmp.gt.f32.partialorder %v1299_v27, 0.0  ;;  %v675_v53 = vmin.f32 %v1325_v48, 0.0  ;;  %v696_v56 = vmul.f32 1.442695, %v674_v52 }
 0x151   : > { %1065 = vpow2.f32 %v686_v40  ;;  %vm654_vm8 = vcmp.gt.f32.partialorder %v1302_v28, 0.0  ;;  %v676_v61 = vmin.f32 %v1333_v54, 0.0  ;;  %v1343_v63 = vadd.f32 %v1287_v10, %v624_v45 }
 0x152   : > { %1067 = vpow2.f32 %v688_v41  ;;  %v698_v60 = vmul.f32 1.442695, %v675_v53  ;;  %vm655_vm9 = vcmp.gt.f32.partialorder %v1305_v29, 0.0  ;;  %vm656_vm10 = vcmp.gt.f32.partialorder %v1309_v31, 0.0 }
 0x153   : > { %1069 = vpow2.f32 %v690_v43  ;;  %v700_v1 = vmul.f32 1.442695, %v676_v61  ;;  %v677_v4 = vmin.f32 %v1340_v62, 0.0  ;;  %v678_v5 = vmin.f32 %v1343_v63, 0.0 }
 0x154   : > { %1071 = vpow2.f32 %v692_v47  ;;  %vm657_vm11 = vcmp.gt.f32.partialorder %v1312_v32, 0.0  ;;  %v1354_v7 = vadd.f32 %v1287_v10, %v625_v0  ;;  %v1357_v8 = vadd.f32 %v1287_v10, %v626_v2 }
 0x155   : > { %1073 = vpow2.f32 %v694_v51  ;;  %vm658_vm12 = vcmp.gt.f32.partialorder %v1322_v46, 0.0  ;;  %vm659_vm13 = vcmp.gt.f32.partialorder %v1325_v48, 0.0  ;;  %v702_v13 = vmul.f32 1.442695, %v677_v4 }
 0x156   : > { %1075 = vpow2.f32 %v696_v56  ;;  %v704_v15 = vmul.f32 1.442695, %v678_v5  ;;  %vm660_vm14 = vcmp.gt.f32.partialorder %v1333_v54, 0.0  ;;  %v679_v18 = vmin.f32 %v1354_v7, 0.0 }
 0x157   : > { %1077 = vpow2.f32 %v698_v60  ;;  %v1364_v20 = vadd.f32 %v1287_v10, %v627_v3  ;;  %v628_v22 = vmul.f32 %v1285_v9, %v606_v6  ;;  %v680_v25 = vmin.f32 %v1357_v8, 0.0 }
 0x158   : > { %1079 = vpow2.f32 %v700_v1  ;;  %v629_v14 = vmul.f32 %v1285_v9, %v607_v11  ;;  %v706_v33 = vmul.f32 1.442695, %v679_v18  ;;  %vm661_vm15 = vcmp.gt.f32.partialorder %v1340_v62, 0.0 }
 0x159   : > { %1081 = vpow2.f32 %v702_v13  ;;  %v708_v39 = vmul.f32 1.442695, %v680_v25  ;;  %v681_v50 = vmin.f32 %v1364_v20, 0.0  ;;  %v650_v53 = vadd.f32 %v1287_v10, %v628_v22 }
 0x15a   : > { %v1064_v12 = vpop.eup %1063  ;;  %1083 = vpow2.f32 %v704_v15  ;;  %v651_v45 = vadd.f32 %v1287_v10, %v629_v14  ;;  %vm662_vm0 = vcmp.gt.f32.partialorder %v1343_v63, 0.0  ;;  %vm663_vm1 = vcmp.gt.f32.partialorder %v1354_v7, 0.0 }
 0x15b   : > { %v1066_v16 = vpop.eup %1065  ;;  %v931_v17 = vadd.f32 -1.0, %v1064_v12  ;;  %1085 = vpow2.f32 %v706_v33  ;;  %v710_v57 = vmul.f32 1.442695, %v681_v50  ;;  %v682_v60 = vmin.f32 %v650_v53, 0.0 }
 0x15c   : > { %v1068_v21 = vpop.eup %1067  ;;  %v932_v23 = vadd.f32 -1.0, %v1066_v16  ;;  %1087 = vpow2.f32 %v708_v39  ;;  %vm664_vm2 = vcmp.gt.f32.partialorder %v1357_v8, 0.0  ;;  %vm665_vm3 = vcmp.gt.f32.partialorder %v1364_v20, 0.0 }
 0x15d   : > { %v1070_v26 = vpop.eup %1069  ;;  %v732_v30 = vsel %vm652_vm5, %v1294_v24, %v931_v17  ;;  %v933_v19 = vadd.f32 -1.0, %v1068_v21  ;;  %1089 = vpow2.f32 %v710_v57  ;;  %v712_v3 = vmul.f32 1.442695, %v682_v60 }
 0x15e   : > { %v1072_v34 = vpop.eup %1071  ;;  %v968_v35 = vpack.c.bf16 %v732_v30, %v732_v30  ;;  %v733_v37 = vsel %vm653_vm6, %v1299_v27, %v932_v23  ;;  %v934_v38 = vadd.f32 -1.0, %v1070_v26  ;;  %vm666_vm4 = vcmp.gt.f32.partialorder %v650_v53, 0.0 }
 0x15f   : > { %v1074_v40 = vpop.eup %1073  ;;  %v969_v41 = vpack.c.bf16 %v733_v37, %v733_v37  ;;  %v734_v9 = vsel %vm654_vm8, %v1302_v28, %v933_v19  ;;  %v935_v42 = vadd.f32 -1.0, %v1072_v34  ;;  %1091 = vpow2.f32 %v712_v3 }
 0x160   : > { %v1076_v24 = vpop.eup %1075  ;;  %813 = vst.msk [vmem:[%s1486_s4] sm:$0xf] %vm812_vm7, %v968_v35  ;;  %v970_v43 = vpack.c.bf16 %v734_v9, %v734_v9  ;;  %v735_v27 = vsel %vm655_vm9, %v1305_v29, %v934_v38  ;;  %v936_v44 = vadd.f32 -1.0, %v1074_v40  ;;  %vm667_vm5 = vcmp.gt.f32.partialorder %v651_v45, 0.0 }
 0x161   : > { %v1078_v47 = vpop.eup %1077  ;;  %814 = vst.msk [vmem:[%s1486_s4 + $0x4] sm:$0xf] %vm812_vm7, %v969_v41  ;;  %v971_v28 = vpack.c.bf16 %v735_v27, %v735_v27  ;;  %v736_v49 = vsel %vm656_vm10, %v1309_v31, %v935_v42  ;;  %v937_v36 = vadd.f32 -1.0, %v1076_v24 }
 0x162   : > { %815 = vst.msk [vmem:[%s1486_s4 + $0x8] sm:$0xf] %vm812_vm7, %v970_v43  ;;  %v972_v29 = vpack.c.bf16 %v736_v49, %v736_v49  ;;  %v737_v51 = vsel %vm657_vm11, %v1312_v32, %v936_v44  ;;  %v938_v52 = vadd.f32 -1.0, %v1078_v47  ;;  %v1080_v55 = vpop.eup %1079 }
 0x163   : > { %816 = vst.msk [vmem:[%s1486_s4 + $0xc] sm:$0xf] %vm812_vm7, %v971_v28  ;;  %v973_v31 = vpack.c.bf16 %v737_v51, %v737_v51  ;;  %v738_v56 = vsel %vm658_vm12, %v1322_v46, %v937_v36  ;;  %v939_v59 = vadd.f32 -1.0, %v1080_v55  ;;  %v1082_v10 = vpop.eup %1081 }
 0x164   : > { %817 = vst.msk [vmem:[%s1486_s4 + $0x10] sm:$0xf] %vm812_vm7, %v972_v29  ;;  %v974_v32 = vpack.c.bf16 %v738_v56, %v738_v56  ;;  %v739_v58 = vsel %vm659_vm13, %v1325_v48, %v938_v52  ;;  %v683_v48 = vmin.f32 %v651_v45, 0.0  ;;  %v1084_v0 = vpop.eup %1083  ;;  %v940_v2 = vadd.f32 -1.0, %v1082_v10 }
 0x165   : > { %818 = vst.msk [vmem:[%s1486_s4 + $0x14] sm:$0xf] %vm812_vm7, %v973_v31  ;;  %v975_v46 = vpack.c.bf16 %v739_v58, %v739_v58  ;;  %v740_v61 = vsel %vm660_vm14, %v1333_v54, %v939_v59  ;;  %v941_v4 = vadd.f32 -1.0, %v1084_v0  ;;  %v1086_v6 = vpop.eup %1085 }
 0x166   : > { %819 = vst.msk [vmem:[%s1486_s4 + $0x18] sm:$0xf] %vm812_vm7, %v974_v32  ;;  %v976_v1 = vpack.c.bf16 %v740_v61, %v740_v61  ;;  %v714_v5 = vmul.f32 1.442695, %v683_v48  ;;  %v741_v54 = vsel %vm661_vm15, %v1340_v62, %v940_v2  ;;  %v1088_v11 = vpop.eup %1087  ;;  %v942_v15 = vadd.f32 -1.0, %v1086_v6 }
 0x167   : > { %820 = vst.msk [vmem:[%s1486_s4 + $0x1c] sm:$0xf] %vm812_vm7, %v975_v46  ;;  %v977_v12 = vpack.c.bf16 %v741_v54, %v741_v54  ;;  %v742_v13 = vsel %vm662_vm0, %v1343_v63, %v941_v4  ;;  %v943_v17 = vadd.f32 -1.0, %v1088_v11  ;;  %v1090_v21 = vpop.eup %1089 }
 0x168   : > { %821 = vst.msk [vmem:[%s1486_s4 + $0x20] sm:$0xf] %vm812_vm7, %v976_v1  ;;  %1093 = vpow2.f32 %v714_v5  ;;  %v978_v16 = vpack.c.bf16 %v742_v13, %v742_v13  ;;  %v743_v62 = vsel %vm663_vm1, %v1354_v7, %v942_v15  ;;  %v944_v7 = vadd.f32 -1.0, %v1090_v21 }
 0x169   : > { %822 = vst.msk [vmem:[%s1486_s4 + $0x24] sm:$0xf] %vm812_vm7, %v977_v12  ;;  %v979_v18 = vpack.c.bf16 %v743_v62, %v743_v62  ;;  %v744_v22 = vsel %vm664_vm2, %v1357_v8, %v943_v17  ;;  %v1092_v25 = vpop.eup %1091 }
 0x16a   : > { %823 = vst.msk [vmem:[%s1486_s4 + $0x28] sm:$0xf] %vm812_vm7, %v978_v16  ;;  %v980_v63 = vpack.c.bf16 %v744_v22, %v744_v22  ;;  %v745_v23 = vsel %vm665_vm3, %v1364_v20, %v944_v7  ;;  %v945_v26 = vadd.f32 -1.0, %v1092_v25 }
 0x16b   : > { %824 = vst.msk [vmem:[%s1486_s4 + $0x2c] sm:$0xf] %vm812_vm7, %v979_v18  ;;  %v981_v14 = vpack.c.bf16 %v745_v23, %v745_v23 }
 0x16c   : > { %825 = vst.msk [vmem:[%s1486_s4 + $0x30] sm:$0xf] %vm812_vm7, %v980_v63  ;;  %v746_v19 = vsel %vm666_vm4, %v650_v53, %v945_v26 }
 0x16d   : > { %826 = vst.msk [vmem:[%s1486_s4 + $0x34] sm:$0xf] %vm812_vm7, %v981_v14  ;;  %v982_v33 = vpack.c.bf16 %v746_v19, %v746_v19 }
 0x16f   : > { %827 = vst.msk [vmem:[%s1486_s4 + $0x38] sm:$0xf] %vm812_vm7, %v982_v33 }
 0x172   : > { %v1094_v8 = vpop.eup %1093 }
 0x173   : > { %v946_v30 = vadd.f32 -1.0, %v1094_v8 }
 0x175   : > { %v747_v34 = vsel %vm667_vm5, %v651_v45, %v946_v30 }
 0x176   : > { %v983_v35 = vpack.c.bf16 %v747_v34, %v747_v34 }
 0x178   : > { %828 = vst.msk [vmem:[%s1486_s4 + $0x3c] sm:$0xf] %vm812_vm7, %v983_v35 }
 0x179 PF: > { %s14_s17 = sadd.s32 1, %s1117_s17   ;;  %s1487_s15 = smov %s1113_s16 }
 0x17a   : > { %p11_p7 = scmp.ge.s32.totalorder %s14_s17, 4   ;;  %s1488_s16 = smov %s1490_s18 }
 0x17c   :  { %13 = sbr.rel (!%p11_p7) target bundleno = 2 (0x2), region = 84 }

// kernel: autoencoder_forward.12
= control target key start
LH: loop header
LB: loop body
LE: loop exit
PB: predicated region body
PF: predicated region fallthrough
CT: control target
= control target key end

     0   :  { %s1175_s15 = smov 0   ;;  %s1177_s16 = smov 0   ;;  %s1518_s0 = inlined_call_operand.vmem [shape: bf16[128,72], index: 0, kind: input, shape index: {}]   ;;  %s1519_s1 = inlined_call_operand.vmem [shape: bf16[1,72,8], index: 1, kind: input, shape index: {}]   ;;  %s1520_s2 = inlined_call_operand.vmem [shape: f32[1,8], index: 2, kind: input, shape index: {}]   ;;  %s1521_s3 = inlined_call_operand.vmem [shape: f32[1,8], index: 3, kind: input, shape index: {}]   ;;  %s1522_s4 = inlined_call_operand.vmem [shape: bf16[1,128,8], index: 4, kind: output, shape index: {}]  }
   0x1   :  { %s1179_s17 = smov 0  }
   0x2 LB: > { %s26_s18 = sadd.s32 1, %s1143_s16  ;;  %p922_p0 = scmp.ge.s32.totalorder %s1147_s17, 1  ;;  %s1147_s17 = sphi %s1179_s17, %s14_s17   ;;  %s1143_s16 = sphi %s1177_s16, %s1524_s16   ;;  %s1139_s15 = sphi %s1175_s15, %s1523_s15  }
   0x3   : > { %p28_p1 = scmp.ge.s32.totalorder %s26_s18, 2  ;;  %p185_p2 = scmp.lt.s32.totalorder %s1147_s17, 3 }
   0x5   : > { %s1526_s18 = smov (%p28_p1, %s26_s18), 0  ;;  %p186_p3 = pnand %p922_p0, %p185_p2 }
   0x6   : > { %p923_p4 = scmp.ne.s32.totalorder (!%p186_p3), %s1139_s15, 0 }
   0x7   : > { %189 = sbr.rel (%p186_p3) target bundleno = 385 (0x181), region = 36 }
   0xe   : > { %236 = sbr.rel (%p923_p4) target bundleno = 298 (0x12a), region = 40  ;;  %v1078_v0 = vld [vmem:[%s1519_s1] sm:$0xff] (!%p923_p4)   ;;  %v1079_v1 = vld [vmem:[%s1519_s1 + $0x8] sm:$0xff] (!%p923_p4)   ;;  %v1080_v2 = vld [vmem:[%s1519_s1 + $0x10] sm:$0xff] (!%p923_p4)   ;;  %vm337_vm0 = vcmask (!%p923_p4), 588800   ;;  %vm362_vm1 = vcmask (!%p923_p4), 1043456  }
   0xf   : > { %1015 = vmatprep.subr.bf16.mxu0 (!%p923_p4), %v1078_v0  ;;  %1041 = vmatprep.subr.bf16.mxu1 (!%p923_p4), %v1078_v0  ;;  %v1083_v3 = vld [vmem:[%s1518_s0] sm:$0xff] (!%p923_p4)   ;;  %v1081_v4 = vld [vmem:[%s1519_s1 + $0x18] sm:$0xff] (!%p923_p4)   ;;  %v1084_v8 = vld [vmem:[%s1518_s0 + $0x8] sm:$0xff] (!%p923_p4)   ;;  %vm241_vm2 = vcmask (!%p923_p4), 57344   ;;  %v1149_v14 = vmov (!%p923_p4), 0.0   ;;  %vm464_vm3 = vcmask (!%p923_p4), 64512  }
  0x10   : > { %1016 = vmatpush3.bf16.msra.mxu0 (!%p923_p4), %v1078_v0  ;;  %1046 = vmatpush3.bf16.msra.mxu1 (!%p923_p4), %v1078_v0  ;;  %v1087_v5 = vld [vmem:[%s1518_s0 + $0x20] sm:$0xff] (!%p923_p4)   ;;  %v1088_v9 = vld [vmem:[%s1518_s0 + $0x28] sm:$0xff] (!%p923_p4)   ;;  %v1085_v10 = vld [vmem:[%s1518_s0 + $0x10] sm:$0xff] (!%p923_p4)   ;;  %242 = vst.msk [vmem:[#allocation3] sm:$0x1] (!%p923_p4), %vm241_vm2, %v1149_v14 }
  0x11   : > { %1017 = vmatprep.subr.bf16.mxu0 (!%p923_p4), %v1079_v1  ;;  %1042 = vmatprep.subr.bf16.mxu1 (!%p923_p4), %v1079_v1  ;;  %v1082_v6 = vld [vmem:[%s1519_s1 + $0x20] ss:$0 sps:$4 sm:$0xff] (!%p923_p4)   ;;  %v1089_v11 = vld [vmem:[%s1518_s0 + $0x30] sm:$0xff] (!%p923_p4)   ;;  %v1086_v12 = vld [vmem:[%s1518_s0 + $0x18] sm:$0xff] (!%p923_p4)   ;;  %243 = vst.msk [vmem:[#allocation4] sm:$0x1] (!%p923_p4), %vm241_vm2, %v1149_v14 }
  0x12   : > { %1025 = vmatprep.mubr.msk.bf16.mxu0 (!%p923_p4), %vm337_vm0, %v1083_v3  ;;  %1033 = vmatprep.mubr.msk.bf16.mxu1 (!%p923_p4), %vm337_vm0, %v1087_v5  ;;  %v364_v7 = vsel (!%p923_p4), %vm362_vm1, %v1082_v6, 0  ;;  %v1090_v13 = vld [vmem:[%s1518_s0 + $0x38] sm:$0xff] (!%p923_p4)  }
  0x14   : > { %1018 = vmatpush3.bf16.msra.mxu0 (!%p923_p4), %v1079_v1  ;;  %1047 = vmatpush3.bf16.msra.mxu1 (!%p923_p4), %v1079_v1 }
  0x15   : > { %1019 = vmatprep.subr.bf16.mxu0 %v1080_v2  ;;  %1043 = vmatprep.subr.bf16.mxu1 %v1080_v2 }
  0x18   : > { %1020 = vmatpush3.bf16.msra.mxu0 %v1080_v2  ;;  %1048 = vmatpush3.bf16.msra.mxu1 %v1080_v2 }
  0x19   : > { %1021 = vmatprep.subr.bf16.mxu0 %v1081_v4  ;;  %1044 = vmatprep.subr.bf16.mxu1 %v1081_v4 }
  0x1c   : > { %1022 = vmatpush3.bf16.msra.mxu0 %v1081_v4  ;;  %1049 = vmatpush3.bf16.msra.mxu1 %v1081_v4 }
  0x1d   : > { %1051 = vmatprep.subr.msk.bf16.mxu0 %vm362_vm1, %v1082_v6  ;;  %1052 = vmatprep.subr.msk.bf16.mxu1 %vm362_vm1, %v1082_v6 }
  0x20   : > { %1024 = vmatpush3.bf16.msra.mxu0 %v364_v7  ;;  %1050 = vmatpush3.bf16.msra.mxu1 %v364_v7 }
  0x23   : > { %1026 = vmatmul.mubr.msk.bf16.vlgmr.msra.gmra.mrb[0].mxu0 %vm337_vm0, %v1084_v8  ;;  %1034 = vmatmul.mubr.msk.bf16.vlgmr.msra.gmra.mrb[0].mxu1 %vm337_vm0, %v1088_v9 }
  0x24   : > { %1029 = vmatprep.mubr.msk.bf16.mxu0 %vm337_vm0, %v1085_v10  ;;  %1037 = vmatprep.mubr.msk.bf16.mxu1 %vm337_vm0, %v1089_v11 }
  0x2b   : > { %1030 = vmatmul.mubr.msk.bf16.gmra.mrb[4].mxu0 %vm337_vm0, %v1086_v12  ;;  %1038 = vmatmul.mubr.msk.bf16.gmra.mrb[4].mxu1 %vm337_vm0, %v1090_v13 }
  0xf6   : > { %v1027_v15 = vpop.f32.mrb[0].mxu0  ;;  %v1245_v16 = vpop.f32.mrb[0].mxu1 }
  0xf7   : > { %467 = vst.msk [vmem:[#allocation2 + $0x10] sm:$0xff] %vm464_vm3, %v1027_v15  ;;  %v400_v17 = vpop.f32.mrb[1].mxu0  ;;  %475 = vst.msk [vmem:[#allocation2 + $0x50] sm:$0xff] %vm464_vm3, %v1245_v16  ;;  %v432_v18 = vpop.f32.mrb[1].mxu1  ;;  %v525_v24 = vmul.f32 %v1027_v15, %v1027_v15  ;;  %v485_v29 = vsel %vm464_vm3, %v1027_v15, 0.0  ;;  %v533_v10 = vmul.f32 %v1245_v16, %v1245_v16  ;;  %v501_v14 = vsel %vm464_vm3, %v1245_v16, 0.0 }
  0xf8   : > { %465 = vst.msk [vmem:[#allocation2] sm:$0xff] %vm464_vm3, %v400_v17  ;;  %v523_v19 = vmul.f32 %v400_v17, %v400_v17  ;;  %v1028_v20 = vpop.f32.mrb[2].mxu0  ;;  %473 = vst.msk [vmem:[#allocation2 + $0x40] sm:$0xff] %vm464_vm3, %v432_v18  ;;  %v1252_v21 = vpop.f32.mrb[2].mxu1  ;;  %v482_v25 = vsel %vm464_vm3, %v400_v17, 0.0  ;;  %v531_v61 = vmul.f32 %v432_v18, %v432_v18  ;;  %v497_v2 = vsel %vm464_vm3, %v432_v18, 0.0 }
  0xf9   : > { %468 = vst.msk [vmem:[#allocation2 + $0x18] sm:$0xff] %vm464_vm3, %v1028_v20  ;;  %v403_v22 = vpop.f32.mrb[3].mxu0  ;;  %476 = vst.msk [vmem:[#allocation2 + $0x58] sm:$0xff] %vm464_vm3, %v1252_v21  ;;  %v435_v23 = vpop.f32.mrb[3].mxu1  ;;  %v526_v31 = vmul.f32 %v1028_v20, %v1028_v20  ;;  %v542_v35 = vsel %vm464_vm3, %v525_v24, 0.0  ;;  %v487_v36 = vsel %vm464_vm3, %v1028_v20, 0.0  ;;  %v534_v15 = vmul.f32 %v1252_v21, %v1252_v21 }
  0xfa   : > { %466 = vst.msk [vmem:[#allocation2 + $0x8] sm:$0xff] %vm464_vm3, %v403_v22  ;;  %v483_v26 = vsel %vm464_vm3, %v403_v22, 0.0  ;;  %v524_v27 = vmul.f32 %v403_v22, %v403_v22  ;;  %474 = vst.msk [vmem:[#allocation2 + $0x48] sm:$0xff] %vm464_vm3, %v435_v23  ;;  %v539_v30 = vsel %vm464_vm3, %v523_v19, 0.0  ;;  %v554_v6 = vsel %vm464_vm3, %v531_v61, 0.0 }
  0xfb   : > { %v484_v28 = vadd.f32 %v483_v26, %v482_v25  ;;  %v544_v43 = vsel %vm464_vm3, %v526_v31, 0.0  ;;  %v532_v7 = vmul.f32 %v435_v23, %v435_v23  ;;  %v499_v11 = vsel %vm464_vm3, %v435_v23, 0.0 }
  0xfc   : > { %v540_v32 = vsel %vm464_vm3, %v524_v27, 0.0  ;;  %v558_v22 = vsel %vm464_vm3, %v533_v10, 0.0  ;;  %v503_v24 = vsel %vm464_vm3, %v1252_v21, 0.0  ;;  %v560_v27 = vsel %vm464_vm3, %v534_v15, 0.0 }
  0xfd   : > { %v486_v33 = vadd.f32 %v485_v29, %v484_v28  ;;  %v541_v34 = vadd.f32 %v540_v32, %v539_v30  ;;  %v556_v17 = vsel %vm464_vm3, %v532_v7, 0.0 }
  0xfe   : > { %v1031_v37 = vpop.f32.mrb[4].mxu0  ;;  %v1266_v38 = vpop.f32.mrb[4].mxu1 }
  0xff   : > { %v543_v39 = vadd.f32 %v542_v35, %v541_v34  ;;  %471 = vst.msk [vmem:[#allocation2 + $0x30] sm:$0xff] %vm464_vm3, %v1031_v37  ;;  %v416_v40 = vpop.f32.mrb[5].mxu0  ;;  %v488_v41 = vadd.f32 %v487_v36, %v486_v33  ;;  %479 = vst.msk [vmem:[#allocation2 + $0x70] sm:$0xff] %vm464_vm3, %v1266_v38  ;;  %v448_v42 = vpop.f32.mrb[5].mxu1  ;;  %v529_v52 = vmul.f32 %v1031_v37, %v1031_v37  ;;  %v493_v58 = vsel %vm464_vm3, %v1031_v37, 0.0 }
 0x100   : > { %469 = vst.msk [vmem:[#allocation2 + $0x20] sm:$0xff] %vm464_vm3, %v416_v40  ;;  %v489_v44 = vsel %vm464_vm3, %v416_v40, 0.0  ;;  %v527_v45 = vmul.f32 %v416_v40, %v416_v40  ;;  %v1032_v46 = vpop.f32.mrb[6].mxu0  ;;  %477 = vst.msk [vmem:[#allocation2 + $0x60] sm:$0xff] %vm464_vm3, %v448_v42  ;;  %v1040_v47 = vpop.f32.mrb[6].mxu1  ;;  %v535_v18 = vmul.f32 %v448_v42, %v448_v42  ;;  %v505_v23 = vsel %vm464_vm3, %v448_v42, 0.0 }
 0x101   : > { %v490_v48 = vadd.f32 %v489_v44, %v488_v41  ;;  %v545_v49 = vadd.f32 %v544_v43, %v543_v39  ;;  %472 = vst.msk [vmem:[#allocation2 + $0x38] sm:$0xff] %vm464_vm3, %v1032_v46  ;;  %v419_v50 = vpop.f32.mrb[7].mxu0  ;;  %480 = vst.msk [vmem:[#allocation2 + $0x78] sm:$0xff] %vm464_vm3, %v1040_v47  ;;  %v451_v51 = vpop.f32.mrb[7].mxu1  ;;  %v530_v59 = vmul.f32 %v1032_v46, %v1032_v46  ;;  %v550_v0 = vsel %vm464_vm3, %v529_v52, 0.0 }
 0x102   : > { %v546_v53 = vsel %vm464_vm3, %v527_v45, 0.0  ;;  %470 = vst.msk [vmem:[#allocation2 + $0x28] sm:$0xff] %vm464_vm3, %v419_v50  ;;  %v491_v54 = vsel %vm464_vm3, %v419_v50, 0.0  ;;  %v528_v55 = vmul.f32 %v419_v50, %v419_v50  ;;  %478 = vst.msk [vmem:[#allocation2 + $0x68] sm:$0xff] %vm464_vm3, %v451_v51  ;;  %v495_v1 = vsel %vm464_vm3, %v1032_v46, 0.0 }
 0x103   : > { %v547_v56 = vadd.f32 %v546_v53, %v545_v49  ;;  %v492_v57 = vadd.f32 %v491_v54, %v490_v48  ;;  %v552_v5 = vsel %vm464_vm3, %v530_v59, 0.0  ;;  %v562_v16 = vsel %vm464_vm3, %v535_v18, 0.0 }
 0x104   : > { %v548_v60 = vsel %vm464_vm3, %v528_v55, 0.0  ;;  %v536_v28 = vmul.f32 %v451_v51, %v451_v51  ;;  %v537_v31 = vmul.f32 %v1266_v38, %v1266_v38  ;;  %v507_v32 = vsel %vm464_vm3, %v451_v51, 0.0  ;;  %v481_v55 = vld [vmem:[#allocation3] sm:$0x1] }
 0x105   : > { %v494_v62 = vadd.f32 %v493_v58, %v492_v57  ;;  %v549_v63 = vadd.f32 %v548_v60, %v547_v56  ;;  %v509_v21 = vsel %vm464_vm3, %v1266_v38, 0.0  ;;  %v538_v35 = vmul.f32 %v1040_v47, %v1040_v47  ;;  %v522_v58 = vld [vmem:[#allocation4] sm:$0x1] }
 0x106   : > { %v564_v36 = vsel %vm464_vm3, %v536_v28, 0.0  ;;  %v566_v40 = vsel %vm464_vm3, %v537_v31, 0.0  ;;  %v511_v41 = vsel %vm464_vm3, %v1040_v47, 0.0 }
 0x107   : > { %v551_v3 = vadd.f32 %v550_v0, %v549_v63  ;;  %v496_v4 = vadd.f32 %v495_v1, %v494_v62  ;;  %v568_v44 = vsel %vm464_vm3, %v538_v35, 0.0 }
 0x109   : > { %v498_v8 = vadd.f32 %v497_v2, %v496_v4  ;;  %v553_v9 = vadd.f32 %v552_v5, %v551_v3 }
 0x10b   : > { %v555_v12 = vadd.f32 %v554_v6, %v553_v9  ;;  %v500_v13 = vadd.f32 %v499_v11, %v498_v8 }
 0x10d   : > { %v502_v19 = vadd.f32 %v501_v14, %v500_v13  ;;  %v557_v20 = vadd.f32 %v556_v17, %v555_v12 }
 0x10f   : > { %v559_v25 = vadd.f32 %v558_v22, %v557_v20  ;;  %v504_v26 = vadd.f32 %v503_v24, %v502_v19 }
 0x111   : > { %v506_v29 = vadd.f32 %v505_v23, %v504_v26  ;;  %v561_v30 = vadd.f32 %v560_v27, %v559_v25 }
 0x113   : > { %v563_v33 = vadd.f32 %v562_v16, %v561_v30  ;;  %v508_v34 = vadd.f32 %v507_v32, %v506_v29 }
 0x115   : > { %v510_v37 = vadd.f32 %v509_v21, %v508_v34  ;;  %v565_v39 = vadd.f32 %v564_v36, %v563_v33 }
 0x117   : > { %v512_v42 = vadd.f32 %v511_v41, %v510_v37  ;;  %v567_v43 = vadd.f32 %v566_v40, %v565_v39 }
 0x119   : > { %v513_v45 = vrot.slane %v512_v42, 4  ;;  %v569_v46 = vadd.f32 %v568_v44, %v567_v43 }
 0x11b   : > { %v514_v48 = vadd.f32 %v513_v45, %v512_v42  ;;  %v570_v49 = vrot.slane %v569_v46, 4 }
 0x11d   : > { %v515_v50 = vrot.slane %v514_v48, 2  ;;  %v571_v51 = vadd.f32 %v570_v49, %v569_v46 }
 0x11f   : > { %v516_v38 = vadd.f32 %v515_v50, %v514_v48  ;;  %v572_v52 = vrot.slane %v571_v51, 2 }
 0x121   : > { %v517_v53 = vrot.slane %v516_v38, 1  ;;  %v573_v54 = vadd.f32 %v572_v52, %v571_v51 }
 0x123   : > { %v518_v56 = vadd.f32 %v517_v53, %v516_v38  ;;  %v574_v57 = vrot.slane %v573_v54, 1 }
 0x125   : > { %v519_v59 = vadd.f32 %v518_v56, %v481_v55  ;;  %v575_v47 = vadd.f32 %v574_v57, %v573_v54 }
 0x127   : > { %521 = vst.msk [vmem:[#allocation3] sm:$0x1] %vm241_vm2, %v519_v59  ;;  %v576_v60 = vadd.f32 %v575_v47, %v522_v58 }
 0x129   : > { %577 = vst.msk [vmem:[#allocation4] sm:$0x1] %vm241_vm2, %v576_v60 }
 0x12a PF: > { %p578_p5 = scmp.eq.s32.totalorder %s1139_s15, 1 }
 0x12b   : > { %v591_v5 = vld [vmem:[%s1520_s2] sm:$0x1] (%p578_p5)  ;;  %vm595_vm4 = vcmask (%p578_p5), 57344  }
 0x12c   : > { %583 = sbr.rel (!%p578_p5) target bundleno = 331 (0x14b), region = 48  ;;  %v597_v8 = vld [vmem:[%s1521_s3] sm:$0x1] (%p578_p5) }
 0x12e   : > { %v584_v61 = vld [vmem:[#allocation3] sm:$0x1] (%p578_p5) }
 0x12f   : > { %v585_v63 = vmul.f32 (%p578_p5), 0.0078125, %v584_v61 }
 0x130   : > { %v586_v62 = vld [vmem:[#allocation4] sm:$0x1] (%p578_p5) }
 0x131   : > { %v587_v0 = vmul.f32 (%p578_p5), 0.0078125, %v586_v62  ;;  %v588_v1 = vmul.f32 (%p578_p5), %v585_v63, %v585_v63 }
 0x133   : > { %v589_v2 = vsub.f32 %v587_v0, %v588_v1 }
 0x135   : > { %v590_v3 = vmax.f32 %v589_v2, 0.0 }
 0x137   : > { %v592_v4 = vadd.f32 1e-05, %v590_v3 }
 0x139   : > { %1091 = vrsqrt.f32 %v592_v4 }
 0x143   : > { %v1092_v6 = vpop.eup %1091 }
 0x144   : > { %v594_v7 = vmul.f32 %v1092_v6, %v591_v5 }
 0x146   : > { %596 = vst.msk [vmem:[#allocation5] sm:$0x1] %vm595_vm4, %v594_v7  ;;  %v598_v9 = vmul.f32 %v594_v7, %v585_v63 }
 0x148   : > { %v599_v10 = vsub.f32 %v597_v8, %v598_v9 }
 0x14a   : > { %600 = vst.msk [vmem:[#allocation6] sm:$0x1] %vm595_vm4, %v599_v10 }
 0x14b PF: > { %p946_p6 = scmp.ne.s32.totalorder %s1139_s15, 1 }
 0x14c   : > { %v608_v13 = vld [vmem:[#allocation2] sm:$0xff] (!%p946_p6)  ;;  %v609_v15 = vld [vmem:[#allocation2 + $0x8] sm:$0xff] (!%p946_p6)  ;;  %v610_v17 = vld [vmem:[#allocation2 + $0x10] sm:$0xff] (!%p946_p6)  ;;  %vm828_vm7 = vcmask (!%p946_p6), 60416  }
 0x14d   : > { %603 = sbr.rel (%p946_p6) target bundleno = 385 (0x181), region = 52  ;;  %v1321_v11 = vld [vmem:[#allocation5] ss:$0 sm:$0xff] (!%p946_p6)  ;;  %v611_v18 = vld [vmem:[#allocation2 + $0x18] sm:$0xff] (!%p946_p6)  ;;  %v613_v23 = vld [vmem:[#allocation2 + $0x28] sm:$0xff] (!%p946_p6) }
 0x14e   : > { %v630_v14 = vmul.f32 (!%p946_p6), %v1321_v11, %v608_v13  ;;  %v631_v19 = vmul.f32 (!%p946_p6), %v1321_v11, %v609_v15  ;;  %v632_v20 = vmul.f32 (!%p946_p6), %v1321_v11, %v610_v17  ;;  %v633_v22 = vmul.f32 (!%p946_p6), %v1321_v11, %v611_v18  ;;  %v612_v24 = vld [vmem:[#allocation2 + $0x20] sm:$0xff] (!%p946_p6)  ;;  %v614_v25 = vld [vmem:[#allocation2 + $0x30] sm:$0xff] (!%p946_p6)  ;;  %v615_v28 = vld [vmem:[#allocation2 + $0x38] sm:$0xff] (!%p946_p6) }
 0x14f   : > { %v634_v27 = vmul.f32 (!%p946_p6), %v1321_v11, %v612_v24  ;;  %v635_v16 = vmul.f32 (!%p946_p6), %v1321_v11, %v613_v23  ;;  %v636_v21 = vmul.f32 (!%p946_p6), %v1321_v11, %v614_v25  ;;  %v637_v37 = vmul.f32 (!%p946_p6), %v1321_v11, %v615_v28  ;;  %v616_v41 = vld [vmem:[#allocation2 + $0x40] sm:$0xff] (!%p946_p6)  ;;  %v617_v38 = vld [vmem:[#allocation2 + $0x48] sm:$0xff] (!%p946_p6)  ;;  %v618_v52 = vld [vmem:[#allocation2 + $0x50] sm:$0xff] (!%p946_p6) }
 0x150   : > { %v638_v51 = vmul.f32 (!%p946_p6), %v1321_v11, %v616_v41  ;;  %v619_v57 = vld [vmem:[#allocation2 + $0x58] sm:$0xff] (!%p946_p6)  ;;  %v639_v59 = vmul.f32 (!%p946_p6), %v1321_v11, %v617_v38  ;;  %v640_v47 = vmul.f32 (!%p946_p6), %v1321_v11, %v618_v52  ;;  %v620_v60 = vld [vmem:[#allocation2 + $0x60] sm:$0xff] (!%p946_p6)  ;;  %v621_v61 = vld [vmem:[#allocation2 + $0x68] sm:$0xff] (!%p946_p6) }
 0x151   : > { %v1323_v12 = vld [vmem:[#allocation6] ss:$0 sm:$0xff] (!%p946_p6)  ;;  %v641_v2 = vmul.f32 (!%p946_p6), %v1321_v11, %v619_v57  ;;  %v642_v4 = vmul.f32 (!%p946_p6), %v1321_v11, %v620_v60  ;;  %v643_v5 = vmul.f32 (!%p946_p6), %v1321_v11, %v621_v61  ;;  %v622_v8 = vld [vmem:[#allocation2 + $0x70] sm:$0xff] (!%p946_p6)  ;;  %v623_v13 = vld [vmem:[#allocation2 + $0x78] sm:$0xff] (!%p946_p6) }
 0x152   : > { %v1330_v26 = vadd.f32 (!%p946_p6), %v1323_v12, %v630_v14  ;;  %v1335_v29 = vadd.f32 (!%p946_p6), %v1323_v12, %v631_v19  ;;  %v1338_v30 = vadd.f32 (!%p946_p6), %v1323_v12, %v632_v20  ;;  %v1341_v31 = vadd.f32 (!%p946_p6), %v1323_v12, %v633_v22 }
 0x153   : > { %v1345_v33 = vadd.f32 (!%p946_p6), %v1323_v12, %v634_v27  ;;  %v1348_v34 = vadd.f32 (!%p946_p6), %v1323_v12, %v635_v16  ;;  %v1358_v48 = vadd.f32 (!%p946_p6), %v1323_v12, %v636_v21  ;;  %v1361_v50 = vadd.f32 (!%p946_p6), %v1323_v12, %v637_v37 }
 0x154   : > { %v684_v32 = vmin.f32 %v1330_v26, 0.0  ;;  %v685_v35 = vmin.f32 %v1335_v29, 0.0  ;;  %v686_v36 = vmin.f32 %v1338_v30, 0.0  ;;  %v687_v40 = vmin.f32 %v1341_v31, 0.0 }
 0x155   : > { %v688_v44 = vmin.f32 %v1345_v33, 0.0  ;;  %v689_v46 = vmin.f32 %v1348_v34, 0.0  ;;  %vm668_vm5 = vcmp.gt.f32.partialorder %v1330_v26, 0.0  ;;  %v690_v54 = vmin.f32 %v1358_v48, 0.0 }
 0x156   : > { %v700_v39 = vmul.f32 1.442695, %v684_v32  ;;  %v702_v42 = vmul.f32 1.442695, %v685_v35  ;;  %v704_v43 = vmul.f32 1.442695, %v686_v36  ;;  %v1369_v56 = vadd.f32 %v1323_v12, %v638_v51 }
 0x157   : > { %v706_v45 = vmul.f32 1.442695, %v687_v40  ;;  %v708_v49 = vmul.f32 1.442695, %v688_v44  ;;  %v710_v53 = vmul.f32 1.442695, %v689_v46  ;;  %v1376_v0 = vadd.f32 %v1323_v12, %v639_v59 }
 0x158   : > { %1093 = vpow2.f32 %v700_v39  ;;  %vm669_vm6 = vcmp.gt.f32.partialorder %v1335_v29, 0.0  ;;  %v691_v55 = vmin.f32 %v1361_v50, 0.0  ;;  %v712_v58 = vmul.f32 1.442695, %v690_v54 }
 0x159   : > { %1095 = vpow2.f32 %v702_v42  ;;  %vm670_vm8 = vcmp.gt.f32.partialorder %v1338_v30, 0.0  ;;  %v692_v63 = vmin.f32 %v1369_v56, 0.0  ;;  %v1379_v1 = vadd.f32 %v1323_v12, %v640_v47 }
 0x15a   : > { %1097 = vpow2.f32 %v704_v43  ;;  %v714_v62 = vmul.f32 1.442695, %v691_v55  ;;  %vm671_vm9 = vcmp.gt.f32.partialorder %v1341_v31, 0.0  ;;  %vm672_vm10 = vcmp.gt.f32.partialorder %v1345_v33, 0.0 }
 0x15b   : > { %1099 = vpow2.f32 %v706_v45  ;;  %v716_v3 = vmul.f32 1.442695, %v692_v63  ;;  %v693_v6 = vmin.f32 %v1376_v0, 0.0  ;;  %v694_v7 = vmin.f32 %v1379_v1, 0.0 }
 0x15c   : > { %1101 = vpow2.f32 %v708_v49  ;;  %vm673_vm11 = vcmp.gt.f32.partialorder %v1348_v34, 0.0  ;;  %v1390_v9 = vadd.f32 %v1323_v12, %v641_v2  ;;  %v1393_v10 = vadd.f32 %v1323_v12, %v642_v4 }
 0x15d   : > { %1103 = vpow2.f32 %v710_v53  ;;  %vm674_vm12 = vcmp.gt.f32.partialorder %v1358_v48, 0.0  ;;  %vm675_vm13 = vcmp.gt.f32.partialorder %v1361_v50, 0.0  ;;  %v718_v15 = vmul.f32 1.442695, %v693_v6 }
 0x15e   : > { %1105 = vpow2.f32 %v712_v58  ;;  %v720_v17 = vmul.f32 1.442695, %v694_v7  ;;  %vm676_vm14 = vcmp.gt.f32.partialorder %v1369_v56, 0.0  ;;  %v695_v20 = vmin.f32 %v1390_v9, 0.0 }
 0x15f   : > { %1107 = vpow2.f32 %v714_v62  ;;  %v1400_v22 = vadd.f32 %v1323_v12, %v643_v5  ;;  %v644_v24 = vmul.f32 %v1321_v11, %v622_v8  ;;  %v696_v27 = vmin.f32 %v1393_v10, 0.0 }
 0x160   : > { %1109 = vpow2.f32 %v716_v3  ;;  %v645_v16 = vmul.f32 %v1321_v11, %v623_v13  ;;  %v722_v35 = vmul.f32 1.442695, %v695_v20  ;;  %vm677_vm15 = vcmp.gt.f32.partialorder %v1376_v0, 0.0 }
 0x161   : > { %1111 = vpow2.f32 %v718_v15  ;;  %v724_v41 = vmul.f32 1.442695, %v696_v27  ;;  %v697_v52 = vmin.f32 %v1400_v22, 0.0  ;;  %v666_v55 = vadd.f32 %v1323_v12, %v644_v24 }
 0x162   : > { %v1094_v14 = vpop.eup %1093  ;;  %1113 = vpow2.f32 %v720_v17  ;;  %v667_v47 = vadd.f32 %v1323_v12, %v645_v16  ;;  %vm678_vm0 = vcmp.gt.f32.partialorder %v1379_v1, 0.0  ;;  %vm679_vm1 = vcmp.gt.f32.partialorder %v1390_v9, 0.0 }
 0x163   : > { %v1096_v18 = vpop.eup %1095  ;;  %v949_v19 = vadd.f32 -1.0, %v1094_v14  ;;  %1115 = vpow2.f32 %v722_v35  ;;  %v726_v59 = vmul.f32 1.442695, %v697_v52  ;;  %v698_v62 = vmin.f32 %v666_v55, 0.0 }
 0x164   : > { %v1098_v23 = vpop.eup %1097  ;;  %v950_v25 = vadd.f32 -1.0, %v1096_v18  ;;  %1117 = vpow2.f32 %v724_v41  ;;  %vm680_vm2 = vcmp.gt.f32.partialorder %v1393_v10, 0.0  ;;  %vm681_vm3 = vcmp.gt.f32.partialorder %v1400_v22, 0.0 }
 0x165   : > { %v1100_v28 = vpop.eup %1099  ;;  %v748_v32 = vsel %vm668_vm5, %v1330_v26, %v949_v19  ;;  %v951_v21 = vadd.f32 -1.0, %v1098_v23  ;;  %1119 = vpow2.f32 %v726_v59  ;;  %v728_v5 = vmul.f32 1.442695, %v698_v62 }
 0x166   : > { %v1102_v36 = vpop.eup %1101  ;;  %v986_v37 = vpack.c.bf16 %v748_v32, %v748_v32  ;;  %v749_v39 = vsel %vm669_vm6, %v1335_v29, %v950_v25  ;;  %v952_v40 = vadd.f32 -1.0, %v1100_v28  ;;  %vm682_vm4 = vcmp.gt.f32.partialorder %v666_v55, 0.0 }
 0x167   : > { %v1104_v42 = vpop.eup %1103  ;;  %v987_v43 = vpack.c.bf16 %v749_v39, %v749_v39  ;;  %v750_v11 = vsel %vm670_vm8, %v1338_v30, %v951_v21  ;;  %v953_v44 = vadd.f32 -1.0, %v1102_v36  ;;  %1121 = vpow2.f32 %v728_v5 }
 0x168   : > { %v1106_v26 = vpop.eup %1105  ;;  %829 = vst.msk [vmem:[%s1522_s4] sm:$0xf] %vm828_vm7, %v986_v37  ;;  %v988_v45 = vpack.c.bf16 %v750_v11, %v750_v11  ;;  %v751_v29 = vsel %vm671_vm9, %v1341_v31, %v952_v40  ;;  %v954_v46 = vadd.f32 -1.0, %v1104_v42  ;;  %vm683_vm5 = vcmp.gt.f32.partialorder %v667_v47, 0.0 }
 0x169   : > { %v1108_v49 = vpop.eup %1107  ;;  %830 = vst.msk [vmem:[%s1522_s4 + $0x4] sm:$0xf] %vm828_vm7, %v987_v43  ;;  %v989_v30 = vpack.c.bf16 %v751_v29, %v751_v29  ;;  %v752_v51 = vsel %vm672_vm10, %v1345_v33, %v953_v44  ;;  %v955_v38 = vadd.f32 -1.0, %v1106_v26 }
 0x16a   : > { %831 = vst.msk [vmem:[%s1522_s4 + $0x8] sm:$0xf] %vm828_vm7, %v988_v45  ;;  %v990_v31 = vpack.c.bf16 %v752_v51, %v752_v51  ;;  %v753_v53 = vsel %vm673_vm11, %v1348_v34, %v954_v46  ;;  %v956_v54 = vadd.f32 -1.0, %v1108_v49  ;;  %v1110_v57 = vpop.eup %1109 }
 0x16b   : > { %832 = vst.msk [vmem:[%s1522_s4 + $0xc] sm:$0xf] %vm828_vm7, %v989_v30  ;;  %v991_v33 = vpack.c.bf16 %v753_v53, %v753_v53  ;;  %v754_v58 = vsel %vm674_vm12, %v1358_v48, %v955_v38  ;;  %v957_v61 = vadd.f32 -1.0, %v1110_v57  ;;  %v1112_v12 = vpop.eup %1111 }
 0x16c   : > { %833 = vst.msk [vmem:[%s1522_s4 + $0x10] sm:$0xf] %vm828_vm7, %v990_v31  ;;  %v992_v34 = vpack.c.bf16 %v754_v58, %v754_v58  ;;  %v755_v60 = vsel %vm675_vm13, %v1361_v50, %v956_v54  ;;  %v699_v50 = vmin.f32 %v667_v47, 0.0  ;;  %v1114_v2 = vpop.eup %1113  ;;  %v958_v4 = vadd.f32 -1.0, %v1112_v12 }
 0x16d   : > { %834 = vst.msk [vmem:[%s1522_s4 + $0x14] sm:$0xf] %vm828_vm7, %v991_v33  ;;  %v993_v48 = vpack.c.bf16 %v755_v60, %v755_v60  ;;  %v756_v63 = vsel %vm676_vm14, %v1369_v56, %v957_v61  ;;  %v959_v6 = vadd.f32 -1.0, %v1114_v2  ;;  %v1116_v8 = vpop.eup %1115 }
 0x16e   : > { %835 = vst.msk [vmem:[%s1522_s4 + $0x18] sm:$0xf] %vm828_vm7, %v992_v34  ;;  %v994_v3 = vpack.c.bf16 %v756_v63, %v756_v63  ;;  %v730_v7 = vmul.f32 1.442695, %v699_v50  ;;  %v757_v56 = vsel %vm677_vm15, %v1376_v0, %v958_v4  ;;  %v1118_v13 = vpop.eup %1117  ;;  %v960_v17 = vadd.f32 -1.0, %v1116_v8 }
 0x16f   : > { %836 = vst.msk [vmem:[%s1522_s4 + $0x1c] sm:$0xf] %vm828_vm7, %v993_v48  ;;  %v995_v14 = vpack.c.bf16 %v757_v56, %v757_v56  ;;  %v758_v15 = vsel %vm678_vm0, %v1379_v1, %v959_v6  ;;  %v961_v19 = vadd.f32 -1.0, %v1118_v13  ;;  %v1120_v23 = vpop.eup %1119 }
 0x170   : > { %837 = vst.msk [vmem:[%s1522_s4 + $0x20] sm:$0xf] %vm828_vm7, %v994_v3  ;;  %1123 = vpow2.f32 %v730_v7  ;;  %v996_v18 = vpack.c.bf16 %v758_v15, %v758_v15  ;;  %v759_v0 = vsel %vm679_vm1, %v1390_v9, %v960_v17  ;;  %v962_v9 = vadd.f32 -1.0, %v1120_v23 }
 0x171   : > { %838 = vst.msk [vmem:[%s1522_s4 + $0x24] sm:$0xf] %vm828_vm7, %v995_v14  ;;  %v997_v20 = vpack.c.bf16 %v759_v0, %v759_v0  ;;  %v760_v24 = vsel %vm680_vm2, %v1393_v10, %v961_v19  ;;  %v1122_v27 = vpop.eup %1121 }
 0x172   : > { %839 = vst.msk [vmem:[%s1522_s4 + $0x28] sm:$0xf] %vm828_vm7, %v996_v18  ;;  %v998_v1 = vpack.c.bf16 %v760_v24, %v760_v24  ;;  %v761_v25 = vsel %vm681_vm3, %v1400_v22, %v962_v9  ;;  %v963_v28 = vadd.f32 -1.0, %v1122_v27 }
 0x173   : > { %840 = vst.msk [vmem:[%s1522_s4 + $0x2c] sm:$0xf] %vm828_vm7, %v997_v20  ;;  %v999_v16 = vpack.c.bf16 %v761_v25, %v761_v25 }
 0x174   : > { %841 = vst.msk [vmem:[%s1522_s4 + $0x30] sm:$0xf] %vm828_vm7, %v998_v1  ;;  %v762_v21 = vsel %vm682_vm4, %v666_v55, %v963_v28 }
 0x175   : > { %842 = vst.msk [vmem:[%s1522_s4 + $0x34] sm:$0xf] %vm828_vm7, %v999_v16  ;;  %v1000_v35 = vpack.c.bf16 %v762_v21, %v762_v21 }
 0x177   : > { %843 = vst.msk [vmem:[%s1522_s4 + $0x38] sm:$0xf] %vm828_vm7, %v1000_v35 }
 0x17a   : > { %v1124_v10 = vpop.eup %1123 }
 0x17b   : > { %v964_v32 = vadd.f32 -1.0, %v1124_v10 }
 0x17d   : > { %v763_v36 = vsel %vm683_vm5, %v667_v47, %v964_v32 }
 0x17e   : > { %v1001_v37 = vpack.c.bf16 %v763_v36, %v763_v36 }
 0x180   : > { %844 = vst.msk [vmem:[%s1522_s4 + $0x3c] sm:$0xf] %vm828_vm7, %v1001_v37 }
 0x181 PF: > { %s14_s17 = sadd.s32 1, %s1147_s17   ;;  %s1523_s15 = smov %s1143_s16 }
 0x182   : > { %p11_p7 = scmp.ge.s32.totalorder %s14_s17, 4   ;;  %s1524_s16 = smov %s1526_s18 }
 0x184   :  { %13 = sbr.rel (!%p11_p7) target bundleno = 2 (0x2), region = 84 }

// kernel: autoencoder_forward.13
= control target key start
LH: loop header
LB: loop body
LE: loop exit
PB: predicated region body
PF: predicated region fallthrough
CT: control target
= control target key end

     0   :  { %s720_s15 = smov 0   ;;  %s722_s16 = smov 0   ;;  %s807_s0 = inlined_call_operand.vmem [shape: bf16[32,72], index: 0, kind: input, shape index: {}]   ;;  %s808_s1 = inlined_call_operand.vmem [shape: bf16[1,72,16], index: 1, kind: input, shape index: {}]   ;;  %s809_s2 = inlined_call_operand.vmem [shape: f32[1,16], index: 2, kind: input, shape index: {}]   ;;  %s810_s3 = inlined_call_operand.vmem [shape: f32[1,16], index: 3, kind: input, shape index: {}]   ;;  %s811_s4 = inlined_call_operand.vmem [shape: bf16[1,32,16], index: 4, kind: output, shape index: {}]  }
   0x1   :  { %s724_s17 = smov 0  }
   0x2 LB: > { %s26_s18 = sadd.s32 1, %s688_s16  ;;  %p574_p0 = scmp.ge.s32.totalorder %s692_s17, 1  ;;  %s692_s17 = sphi %s724_s17, %s14_s17   ;;  %s688_s16 = sphi %s722_s16, %s813_s16   ;;  %s684_s15 = sphi %s720_s15, %s812_s15  }
   0x3   : > { %p28_p1 = scmp.ge.s32.totalorder %s26_s18, 2  ;;  %p185_p2 = scmp.lt.s32.totalorder %s692_s17, 3 }
   0x5   : > { %s815_s18 = smov (%p28_p1, %s26_s18), 0  ;;  %p186_p3 = pnand %p574_p0, %p185_p2 }
   0x6   : > { %p575_p4 = scmp.ne.s32.totalorder (!%p186_p3), %s684_s15, 0 }
   0x7   : > { %189 = sbr.rel (%p186_p3) target bundleno = 340 (0x154), region = 36 }
   0xe   : > { %236 = sbr.rel (%p575_p4) target bundleno = 274 (0x112), region = 40  ;;  %v653_v0 = vld [vmem:[%s808_s1] sm:$0xff] (!%p575_p4)   ;;  %v654_v1 = vld [vmem:[%s808_s1 + $0x8] sm:$0xff] (!%p575_p4)   ;;  %v655_v2 = vld [vmem:[%s808_s1 + $0x10] sm:$0xff] (!%p575_p4)   ;;  %vm295_vm0 = vcmask (!%p575_p4), 588800   ;;  %vm302_vm1 = vcmask (!%p575_p4), 1043456  }
   0xf   : > { %613 = vmatprep.subr.bf16.mxu0 (!%p575_p4), %v653_v0  ;;  %v658_v3 = vld [vmem:[%s807_s0] sm:$0xff] (!%p575_p4)   ;;  %v656_v4 = vld [vmem:[%s808_s1 + $0x18] sm:$0xff] (!%p575_p4)   ;;  %v659_v7 = vld [vmem:[%s807_s0 + $0x8] sm:$0xff] (!%p575_p4)   ;;  %vm241_vm2 = vcmask (!%p575_p4), 122880   ;;  %v694_v8 = vmov (!%p575_p4), 0.0   ;;  %vm356_vm3 = vcmask (!%p575_p4), 130048  }
  0x10   : > { %614 = vmatpush3.bf16.msra.mxu0 (!%p575_p4), %v653_v0  ;;  %623 = vmatprep.mubr.msk.bf16.mxu0 (!%p575_p4), %vm295_vm0, %v658_v3  ;;  %v657_v5 = vld [vmem:[%s808_s1 + $0x20] ss:$0 sps:$4 sm:$0xff] (!%p575_p4)   ;;  %242 = vst.msk [vmem:[#allocation3] sm:$0x1] (!%p575_p4), %vm241_vm2, %v694_v8  ;;  %243 = vst.msk [vmem:[#allocation4] sm:$0x1] (!%p575_p4), %vm241_vm2, %v694_v8 }
  0x11   : > { %615 = vmatprep.subr.bf16.mxu0 (!%p575_p4), %v654_v1  ;;  %v304_v6 = vsel (!%p575_p4), %vm302_vm1, %v657_v5, 0 }
  0x14   : > { %616 = vmatpush3.bf16.msra.mxu0 (!%p575_p4), %v654_v1 }
  0x15   : > { %617 = vmatprep.subr.bf16.mxu0 %v655_v2 }
  0x17   : > { %v361_v40 = vld [vmem:[#allocation3] sm:$0x1]  ;;  %v378_v43 = vld [vmem:[#allocation4] sm:$0x1] }
  0x18   : > { %618 = vmatpush3.bf16.msra.mxu0 %v655_v2 }
  0x19   : > { %619 = vmatprep.subr.bf16.mxu0 %v656_v4 }
  0x1c   : > { %620 = vmatpush3.bf16.msra.mxu0 %v656_v4 }
  0x1d   : > { %627 = vmatprep.subr.msk.bf16.mxu0 %vm302_vm1, %v657_v5 }
  0x20   : > { %622 = vmatpush3.bf16.msra.mxu0 %v304_v6 }
  0x23   : > { %624 = vmatmul.mubr.msk.bf16.vlgmr.msra.gmra.mrb[0].mxu0 %vm295_vm0, %v659_v7 }
  0xf6   : > { %v625_v9 = vpop.f32.mrb[0].mxu0 }
  0xf7   : > { %359 = vst.msk [vmem:[#allocation2 + $0x10] sm:$0xff] %vm356_vm3, %v625_v9  ;;  %v340_v10 = vpop.f32.mrb[1].mxu0  ;;  %v381_v14 = vmul.f32 %v625_v9, %v625_v9  ;;  %v365_v19 = vsel %vm356_vm3, %v625_v9, 0.0 }
  0xf8   : > { %357 = vst.msk [vmem:[#allocation2] sm:$0xff] %vm356_vm3, %v340_v10  ;;  %v379_v11 = vmul.f32 %v340_v10, %v340_v10  ;;  %v626_v12 = vpop.f32.mrb[2].mxu0  ;;  %v362_v15 = vsel %vm356_vm3, %v340_v10, 0.0 }
  0xf9   : > { %360 = vst.msk [vmem:[#allocation2 + $0x18] sm:$0xff] %vm356_vm3, %v626_v12  ;;  %v343_v13 = vpop.f32.mrb[3].mxu0  ;;  %v382_v21 = vmul.f32 %v626_v12, %v626_v12  ;;  %v386_v25 = vsel %vm356_vm3, %v381_v14, 0.0  ;;  %v367_v26 = vsel %vm356_vm3, %v626_v12, 0.0 }
  0xfa   : > { %358 = vst.msk [vmem:[#allocation2 + $0x8] sm:$0xff] %vm356_vm3, %v343_v13  ;;  %v363_v16 = vsel %vm356_vm3, %v343_v13, 0.0  ;;  %v380_v17 = vmul.f32 %v343_v13, %v343_v13  ;;  %v383_v20 = vsel %vm356_vm3, %v379_v11, 0.0 }
  0xfb   : > { %v364_v18 = vadd.f32 %v363_v16, %v362_v15  ;;  %v388_v29 = vsel %vm356_vm3, %v382_v21, 0.0 }
  0xfc   : > { %v384_v22 = vsel %vm356_vm3, %v380_v17, 0.0 }
  0xfd   : > { %v366_v23 = vadd.f32 %v365_v19, %v364_v18  ;;  %v385_v24 = vadd.f32 %v384_v22, %v383_v20 }
  0xff   : > { %v368_v27 = vadd.f32 %v367_v26, %v366_v23  ;;  %v387_v28 = vadd.f32 %v386_v25, %v385_v24 }
 0x101   : > { %v369_v30 = vrot.slane %v368_v27, 4  ;;  %v389_v31 = vadd.f32 %v388_v29, %v387_v28 }
 0x103   : > { %v370_v32 = vadd.f32 %v369_v30, %v368_v27  ;;  %v390_v33 = vrot.slane %v389_v31, 4 }
 0x105   : > { %v371_v34 = vrot.slane %v370_v32, 2  ;;  %v391_v35 = vadd.f32 %v390_v33, %v389_v31 }
 0x107   : > { %v372_v36 = vadd.f32 %v371_v34, %v370_v32  ;;  %v392_v37 = vrot.slane %v391_v35, 2 }
 0x109   : > { %v373_v38 = vrot.slane %v372_v36, 1  ;;  %v393_v39 = vadd.f32 %v392_v37, %v391_v35 }
 0x10b   : > { %v374_v41 = vadd.f32 %v373_v38, %v372_v36  ;;  %v394_v42 = vrot.slane %v393_v39, 1 }
 0x10d   : > { %v375_v44 = vadd.f32 %v374_v41, %v361_v40  ;;  %v395_v45 = vadd.f32 %v394_v42, %v393_v39 }
 0x10f   : > { %377 = vst.msk [vmem:[#allocation3] sm:$0x1] %vm241_vm2, %v375_v44  ;;  %v396_v46 = vadd.f32 %v395_v45, %v378_v43 }
 0x111   : > { %397 = vst.msk [vmem:[#allocation4] sm:$0x1] %vm241_vm2, %v396_v46 }
 0x112 PF: > { %p398_p5 = scmp.eq.s32.totalorder %s684_s15, 1 }
 0x113   : > { %v411_v55 = vld [vmem:[%s809_s2] sm:$0x1] (%p398_p5)  ;;  %vm415_vm4 = vcmask (%p398_p5), 122880  }
 0x114   : > { %403 = sbr.rel (!%p398_p5) target bundleno = 307 (0x133), region = 48  ;;  %v417_v58 = vld [vmem:[%s810_s3] sm:$0x1] (%p398_p5) }
 0x116   : > { %v404_v47 = vld [vmem:[#allocation3] sm:$0x1] (%p398_p5) }
 0x117   : > { %v405_v49 = vmul.f32 (%p398_p5), 0.03125, %v404_v47 }
 0x118   : > { %v406_v48 = vld [vmem:[#allocation4] sm:$0x1] (%p398_p5) }
 0x119   : > { %v407_v50 = vmul.f32 (%p398_p5), 0.03125, %v406_v48  ;;  %v408_v51 = vmul.f32 (%p398_p5), %v405_v49, %v405_v49 }
 0x11b   : > { %v409_v52 = vsub.f32 %v407_v50, %v408_v51 }
 0x11d   : > { %v410_v53 = vmax.f32 %v409_v52, 0.0 }
 0x11f   : > { %v412_v54 = vadd.f32 1e-05, %v410_v53 }
 0x121   : > { %660 = vrsqrt.f32 %v412_v54 }
 0x12b   : > { %v661_v56 = vpop.eup %660 }
 0x12c   : > { %v414_v57 = vmul.f32 %v661_v56, %v411_v55 }
 0x12e   : > { %416 = vst.msk [vmem:[#allocation5] sm:$0x1] %vm415_vm4, %v414_v57  ;;  %v418_v59 = vmul.f32 %v414_v57, %v405_v49 }
 0x130   : > { %v419_v60 = vsub.f32 %v417_v58, %v418_v59 }
 0x132   : > { %420 = vst.msk [vmem:[#allocation6] sm:$0x1] %vm415_vm4, %v419_v60 }
 0x133 PF: > { %p586_p6 = scmp.ne.s32.totalorder %s684_s15, 1 }
 0x134   : > { %v428_v63 = vld [vmem:[#allocation2] sm:$0xff] (!%p586_p6)  ;;  %v429_v1 = vld [vmem:[#allocation2 + $0x8] sm:$0xff] (!%p586_p6)  ;;  %v430_v2 = vld [vmem:[#allocation2 + $0x10] sm:$0xff] (!%p586_p6)  ;;  %vm492_vm8 = vcmask (!%p586_p6), 125952  }
 0x135   : > { %423 = sbr.rel (%p586_p6) target bundleno = 340 (0x154), region = 52  ;;  %v587_v61 = vld [vmem:[#allocation5] ss:$0 sm:$0xff] (!%p586_p6)  ;;  %v431_v3 = vld [vmem:[#allocation2 + $0x18] sm:$0xff] (!%p586_p6) }
 0x136   : > { %v438_v0 = vmul.f32 (!%p586_p6), %v587_v61, %v428_v63  ;;  %v439_v4 = vmul.f32 (!%p586_p6), %v587_v61, %v429_v1  ;;  %v440_v5 = vmul.f32 (!%p586_p6), %v587_v61, %v430_v2  ;;  %v441_v6 = vmul.f32 (!%p586_p6), %v587_v61, %v431_v3 }
 0x139   : > { %v588_v62 = vld [vmem:[#allocation6] ss:$0 sm:$0xff] (!%p586_p6) }
 0x13a   : > { %v448_v7 = vadd.f32 (!%p586_p6), %v588_v62, %v438_v0  ;;  %v449_v8 = vadd.f32 (!%p586_p6), %v588_v62, %v439_v4  ;;  %v450_v9 = vadd.f32 (!%p586_p6), %v588_v62, %v440_v5  ;;  %v451_v10 = vadd.f32 (!%p586_p6), %v588_v62, %v441_v6 }
 0x13c   : > { %v456_v11 = vmin.f32 %v448_v7, 0.0  ;;  %v457_v12 = vmin.f32 %v449_v8, 0.0  ;;  %v458_v13 = vmin.f32 %v450_v9, 0.0  ;;  %v459_v15 = vmin.f32 %v451_v10, 0.0 }
 0x13d   : > { %vm452_vm5 = vcmp.gt.f32.partialorder %v448_v7, 0.0  ;;  %vm453_vm6 = vcmp.gt.f32.partialorder %v449_v8, 0.0  ;;  %vm454_vm7 = vcmp.gt.f32.partialorder %v450_v9, 0.0  ;;  %vm455_vm9 = vcmp.gt.f32.partialorder %v451_v10, 0.0 }
 0x13e   : > { %v460_v14 = vmul.f32 1.442695, %v456_v11  ;;  %v462_v16 = vmul.f32 1.442695, %v457_v12  ;;  %v464_v17 = vmul.f32 1.442695, %v458_v13 }
 0x13f   : > { %v466_v18 = vmul.f32 1.442695, %v459_v15 }
 0x140   : > { %662 = vpow2.f32 %v460_v14 }
 0x141   : > { %664 = vpow2.f32 %v462_v16 }
 0x142   : > { %666 = vpow2.f32 %v464_v17 }
 0x143   : > { %668 = vpow2.f32 %v466_v18 }
 0x14a   : > { %v663_v19 = vpop.eup %662 }
 0x14b   : > { %v665_v20 = vpop.eup %664  ;;  %v589_v21 = vadd.f32 -1.0, %v663_v19 }
 0x14c   : > { %v667_v22 = vpop.eup %666  ;;  %v590_v23 = vadd.f32 -1.0, %v665_v20 }
 0x14d   : > { %v669_v24 = vpop.eup %668  ;;  %v472_v25 = vsel %vm452_vm5, %v448_v7, %v589_v21  ;;  %v591_v26 = vadd.f32 -1.0, %v667_v22 }
 0x14e   : > { %v602_v27 = vpack.c.bf16 %v472_v25, %v472_v25  ;;  %v473_v28 = vsel %vm453_vm6, %v449_v8, %v590_v23  ;;  %v592_v29 = vadd.f32 -1.0, %v669_v24 }
 0x14f   : > { %v603_v30 = vpack.c.bf16 %v473_v28, %v473_v28  ;;  %v474_v31 = vsel %vm454_vm7, %v450_v9, %v591_v26 }
 0x150   : > { %493 = vst.msk [vmem:[%s811_s4] sm:$0xf] %vm492_vm8, %v602_v27  ;;  %v604_v32 = vpack.c.bf16 %v474_v31, %v474_v31  ;;  %v475_v33 = vsel %vm455_vm9, %v451_v10, %v592_v29 }
 0x151   : > { %494 = vst.msk [vmem:[%s811_s4 + $0x4] sm:$0xf] %vm492_vm8, %v603_v30  ;;  %v605_v34 = vpack.c.bf16 %v475_v33, %v475_v33 }
 0x152   : > { %495 = vst.msk [vmem:[%s811_s4 + $0x8] sm:$0xf] %vm492_vm8, %v604_v32 }
 0x153   : > { %496 = vst.msk [vmem:[%s811_s4 + $0xc] sm:$0xf] %vm492_vm8, %v605_v34 }
 0x154 PF: > { %s14_s17 = sadd.s32 1, %s692_s17   ;;  %s812_s15 = smov %s688_s16 }
 0x155   : > { %p11_p7 = scmp.ge.s32.totalorder %s14_s17, 4   ;;  %s813_s16 = smov %s815_s18 }
 0x157   :  { %13 = sbr.rel (!%p11_p7) target bundleno = 2 (0x2), region = 84 }

// kernel: autoencoder_forward.14
= control target key start
LH: loop header
LB: loop body
LE: loop exit
PB: predicated region body
PF: predicated region fallthrough
CT: control target
= control target key end

     0   :  { %s774_s15 = smov 0   ;;  %s776_s16 = smov 0   ;;  %s881_s0 = inlined_call_operand.vmem [shape: bf16[32,144], index: 0, kind: input, shape index: {}]   ;;  %s882_s1 = inlined_call_operand.vmem [shape: bf16[1,144,16], index: 1, kind: input, shape index: {}]   ;;  %s883_s2 = inlined_call_operand.vmem [shape: f32[1,16], index: 2, kind: input, shape index: {}]   ;;  %s884_s3 = inlined_call_operand.vmem [shape: f32[1,16], index: 3, kind: input, shape index: {}]   ;;  %s885_s4 = inlined_call_operand.vmem [shape: bf16[1,32,16], index: 4, kind: output, shape index: {}]  }
   0x1   :  { %s778_s17 = smov 0  }
   0x2 LB: > { %s26_s18 = sadd.s32 1, %s741_s16  ;;  %p616_p0 = scmp.ge.s32.totalorder %s745_s17, 1  ;;  %s745_s17 = sphi %s778_s17, %s14_s17   ;;  %s741_s16 = sphi %s776_s16, %s887_s16   ;;  %s737_s15 = sphi %s774_s15, %s886_s15  }
   0x3   : > { %p28_p1 = scmp.ge.s32.totalorder %s26_s18, 2  ;;  %p186_p2 = scmp.lt.s32.totalorder %s745_s17, 3 }
   0x5   : > { %s889_s18 = smov (%p28_p1, %s26_s18), 0  ;;  %p187_p3 = pnand %p616_p0, %p186_p2 }
   0x6   : > { %p617_p4 = scmp.ne.s32.totalorder (!%p187_p3), %s737_s15, 0 }
   0x7   : > { %190 = sbr.rel (%p187_p3) target bundleno = 355 (0x163), region = 36 }
   0xe   : > { %239 = sbr.rel (%p617_p4) target bundleno = 289 (0x121), region = 40  ;;  %v698_v0 = vld [vmem:[%s882_s1] sm:$0xff] (!%p617_p4)   ;;  %v747_v1 = vmov (!%p617_p4), 0   ;;  %v699_v2 = vld [vmem:[%s882_s1 + $0x8] sm:$0xff] (!%p617_p4)   ;;  %v700_v3 = vld [vmem:[%s882_s1 + $0x10] sm:$0xff] (!%p617_p4)   ;;  %vm342_vm0 = vcmask (!%p617_p4), 130048  }
   0xf   : > { %349 = vmatprep.subr.bf16.mxu0 (!%p617_p4), %v747_v1  ;;  %654 = vmatprep.subr.bf16.mxu1 (!%p617_p4), %v747_v1  ;;  %v701_v4 = vld [vmem:[%s882_s1 + $0x18] sm:$0xff] (!%p617_p4)   ;;  %v709_v5 = vld [vmem:[%s881_s0 + $0x4] ss:$8 sps:$4 sm:$0xff] (!%p617_p4)   ;;  %v704_v9 = vld [vmem:[%s882_s1 + $0x30] sm:$0xff] (!%p617_p4)   ;;  %vm244_vm1 = vcmask (!%p617_p4), 122880   ;;  %v748_v14 = vmov (!%p617_p4), 0.0  }
  0x10   : > { %350 = vmatpush1.bf16.msra.mxu0 (!%p617_p4), %v698_v0  ;;  %663 = vmatpush1.bf16.msra.mxu1 (!%p617_p4), %v698_v0  ;;  %v712_v6 = vld [vmem:[%s881_s0 + $0x14] ss:$8 sps:$4 sm:$0xff] (!%p617_p4)   ;;  %v702_v7 = vld [vmem:[%s882_s1 + $0x20] sm:$0xff] (!%p617_p4)   ;;  %v703_v8 = vld [vmem:[%s882_s1 + $0x28] sm:$0xff] (!%p617_p4)   ;;  %245 = vst.msk [vmem:[#allocation3] sm:$0x1] (!%p617_p4), %vm244_vm1, %v748_v14 }
  0x11   : > { %351 = vmatprep.subr.bf16.mxu0 (!%p617_p4), %v747_v1  ;;  %655 = vmatprep.subr.bf16.mxu1 (!%p617_p4), %v747_v1  ;;  %v705_v10 = vld [vmem:[%s882_s1 + $0x38] sm:$0xff] (!%p617_p4)   ;;  %v706_v11 = vld [vmem:[%s882_s1 + $0x40] sm:$0xff] (!%p617_p4)   ;;  %246 = vst.msk [vmem:[#allocation4] sm:$0x1] (!%p617_p4), %vm244_vm1, %v748_v14 }
  0x12   : > { %631 = vmatprep.mubr.msk.bf16.mxu0 (!%p617_p4), %vm342_vm0, %v709_v5  ;;  %632 = vmatprep.mubr.msk.bf16.mxu1 (!%p617_p4), %vm342_vm0, %v712_v6  ;;  %v707_v12 = vld [vmem:[%s881_s0] ss:$8 sps:$4 sm:$0xff] (!%p617_p4)   ;;  %v710_v13 = vld [vmem:[%s881_s0 + $0x10] ss:$8 sps:$4 sm:$0xff] (!%p617_p4)  }
  0x14   : > { %352 = vmatpush1.bf16.msra.mxu0 (!%p617_p4), %v699_v2  ;;  %664 = vmatpush1.bf16.msra.mxu1 (!%p617_p4), %v699_v2 }
  0x15   : > { %353 = vmatprep.subr.bf16.mxu0 %v747_v1  ;;  %656 = vmatprep.subr.bf16.mxu1 %v747_v1 }
  0x17   : > { %v403_v50 = vld [vmem:[#allocation3] sm:$0x1] }
  0x18   : > { %354 = vmatpush1.bf16.msra.mxu0 %v700_v3  ;;  %665 = vmatpush1.bf16.msra.mxu1 %v700_v3  ;;  %v420_v53 = vld [vmem:[#allocation4] sm:$0x1] }
  0x19   : > { %355 = vmatprep.subr.bf16.mxu0 %v747_v1  ;;  %657 = vmatprep.subr.bf16.mxu1 %v747_v1 }
  0x1c   : > { %356 = vmatpush1.bf16.msra.mxu0 %v701_v4  ;;  %666 = vmatpush1.bf16.msra.mxu1 %v701_v4 }
  0x1d   : > { %357 = vmatprep.subr.bf16.mxu0 %v747_v1  ;;  %658 = vmatprep.subr.bf16.mxu1 %v747_v1 }
  0x20   : > { %358 = vmatpush1.bf16.msra.mxu0 %v702_v7  ;;  %667 = vmatpush1.bf16.msra.mxu1 %v702_v7 }
  0x21   : > { %359 = vmatprep.subr.bf16.mxu0 %v747_v1  ;;  %659 = vmatprep.subr.bf16.mxu1 %v747_v1 }
  0x24   : > { %360 = vmatpush1.bf16.msra.mxu0 %v703_v8  ;;  %668 = vmatpush1.bf16.msra.mxu1 %v703_v8 }
  0x25   : > { %361 = vmatprep.subr.bf16.mxu0 %v747_v1  ;;  %660 = vmatprep.subr.bf16.mxu1 %v747_v1 }
  0x28   : > { %362 = vmatpush1.bf16.msra.mxu0 %v704_v9  ;;  %669 = vmatpush1.bf16.msra.mxu1 %v704_v9 }
  0x29   : > { %363 = vmatprep.subr.bf16.mxu0 %v747_v1  ;;  %661 = vmatprep.subr.bf16.mxu1 %v747_v1 }
  0x2c   : > { %364 = vmatpush1.bf16.msra.mxu0 %v705_v10  ;;  %670 = vmatpush1.bf16.msra.mxu1 %v705_v10 }
  0x2d   : > { %365 = vmatprep.subr.bf16.mxu0 %v747_v1  ;;  %662 = vmatprep.subr.bf16.mxu1 %v747_v1 }
  0x30   : > { %366 = vmatpush1.bf16.msra.mxu0 %v706_v11  ;;  %671 = vmatpush1.bf16.msra.mxu1 %v706_v11 }
  0x33   : > { %382 = vmatmul.mubr.bf16.vlgmr.msra.gmra.mrb[0].mxu0 %v707_v12  ;;  %390 = vmatmul.mubr.bf16.vlgmr.msra.gmra.mrb[0].mxu1 %v710_v13 }
 0x106   : > { %v383_v15 = vpop.f32.mrb[0].mxu0  ;;  %v391_v16 = vpop.f32.mrb[0].mxu1 }
 0x107   : > { %399 = vst.msk [vmem:[#allocation2] sm:$0xff] %vm342_vm0, %v383_v15  ;;  %v421_v17 = vmul.f32 %v383_v15, %v383_v15  ;;  %v385_v18 = vpop.f32.mrb[1].mxu0  ;;  %401 = vst.msk [vmem:[#allocation2 + $0x10] sm:$0xff] %vm342_vm0, %v391_v16  ;;  %v423_v19 = vmul.f32 %v391_v16, %v391_v16  ;;  %v393_v20 = vpop.f32.mrb[1].mxu1  ;;  %v404_v23 = vsel %vm342_vm0, %v383_v15, 0.0  ;;  %v407_v24 = vsel %vm342_vm0, %v391_v16, 0.0 }
 0x108   : > { %v386_v21 = vpop.f32.mrb[2].mxu0  ;;  %v394_v22 = vpop.f32.mrb[2].mxu1 }
 0x109   : > { %400 = vst.msk [vmem:[#allocation2 + $0x8] sm:$0xff] %vm342_vm0, %v386_v21  ;;  %v405_v25 = vsel %vm342_vm0, %v386_v21, 0.0  ;;  %v422_v26 = vmul.f32 %v386_v21, %v386_v21  ;;  %v388_v27 = vpop.f32.mrb[3].mxu0  ;;  %402 = vst.msk [vmem:[#allocation2 + $0x18] sm:$0xff] %vm342_vm0, %v394_v22  ;;  %v396_v28 = vpop.f32.mrb[3].mxu1  ;;  %v425_v30 = vsel %vm342_vm0, %v421_v17, 0.0  ;;  %v424_v33 = vmul.f32 %v394_v22, %v394_v22 }
 0x10a   : > { %v406_v29 = vadd.f32 %v405_v25, %v404_v23  ;;  %v428_v31 = vsel %vm342_vm0, %v423_v19, 0.0  ;;  %v409_v36 = vsel %vm342_vm0, %v394_v22, 0.0 }
 0x10b   : > { %v426_v32 = vsel %vm342_vm0, %v422_v26, 0.0  ;;  %v430_v39 = vsel %vm342_vm0, %v424_v33, 0.0 }
 0x10c   : > { %v427_v34 = vadd.f32 %v426_v32, %v425_v30  ;;  %v408_v35 = vadd.f32 %v407_v24, %v406_v29 }
 0x10e   : > { %v410_v37 = vadd.f32 %v409_v36, %v408_v35  ;;  %v429_v38 = vadd.f32 %v428_v31, %v427_v34 }
 0x110   : > { %v411_v40 = vrot.slane %v410_v37, 4  ;;  %v431_v41 = vadd.f32 %v430_v39, %v429_v38 }
 0x112   : > { %v412_v42 = vadd.f32 %v411_v40, %v410_v37  ;;  %v432_v43 = vrot.slane %v431_v41, 4 }
 0x114   : > { %v413_v44 = vrot.slane %v412_v42, 2  ;;  %v433_v45 = vadd.f32 %v432_v43, %v431_v41 }
 0x116   : > { %v414_v46 = vadd.f32 %v413_v44, %v412_v42  ;;  %v434_v47 = vrot.slane %v433_v45, 2 }
 0x118   : > { %v415_v48 = vrot.slane %v414_v46, 1  ;;  %v435_v49 = vadd.f32 %v434_v47, %v433_v45 }
 0x11a   : > { %v416_v51 = vadd.f32 %v415_v48, %v414_v46  ;;  %v436_v52 = vrot.slane %v435_v49, 1 }
 0x11c   : > { %v417_v54 = vadd.f32 %v416_v51, %v403_v50  ;;  %v437_v55 = vadd.f32 %v436_v52, %v435_v49 }
 0x11e   : > { %419 = vst.msk [vmem:[#allocation3] sm:$0x1] %vm244_vm1, %v417_v54  ;;  %v438_v56 = vadd.f32 %v437_v55, %v420_v53 }
 0x120   : > { %439 = vst.msk [vmem:[#allocation4] sm:$0x1] %vm244_vm1, %v438_v56 }
 0x121 PF: > { %p440_p5 = scmp.eq.s32.totalorder %s737_s15, 1 }
 0x122   : > { %v453_v1 = vld [vmem:[%s883_s2] sm:$0x1] (%p440_p5)  ;;  %vm457_vm2 = vcmask (%p440_p5), 122880  }
 0x123   : > { %445 = sbr.rel (!%p440_p5) target bundleno = 322 (0x142), region = 48  ;;  %v459_v4 = vld [vmem:[%s884_s3] sm:$0x1] (%p440_p5) }
 0x125   : > { %v446_v57 = vld [vmem:[#allocation3] sm:$0x1] (%p440_p5) }
 0x126   : > { %v447_v59 = vmul.f32 (%p440_p5), 0.03125, %v446_v57 }
 0x127   : > { %v448_v58 = vld [vmem:[#allocation4] sm:$0x1] (%p440_p5) }
 0x128   : > { %v449_v60 = vmul.f32 (%p440_p5), 0.03125, %v448_v58  ;;  %v450_v61 = vmul.f32 (%p440_p5), %v447_v59, %v447_v59 }
 0x12a   : > { %v451_v62 = vsub.f32 %v449_v60, %v450_v61 }
 0x12c   : > { %v452_v63 = vmax.f32 %v451_v62, 0.0 }
 0x12e   : > { %v454_v0 = vadd.f32 1e-05, %v452_v63 }
 0x130   : > { %713 = vrsqrt.f32 %v454_v0 }
 0x13a   : > { %v714_v2 = vpop.eup %713 }
 0x13b   : > { %v456_v3 = vmul.f32 %v714_v2, %v453_v1 }
 0x13d   : > { %458 = vst.msk [vmem:[#allocation5] sm:$0x1] %vm457_vm2, %v456_v3  ;;  %v460_v5 = vmul.f32 %v456_v3, %v447_v59 }
 0x13f   : > { %v461_v6 = vsub.f32 %v459_v4, %v460_v5 }
 0x141   : > { %462 = vst.msk [vmem:[#allocation6] sm:$0x1] %vm457_vm2, %v461_v6 }
 0x142 PF: > { %p634_p6 = scmp.ne.s32.totalorder %s737_s15, 1 }
 0x143   : > { %v470_v9 = vld [vmem:[#allocation2] sm:$0xff] (!%p634_p6)  ;;  %v471_v11 = vld [vmem:[#allocation2 + $0x8] sm:$0xff] (!%p634_p6)  ;;  %v472_v12 = vld [vmem:[#allocation2 + $0x10] sm:$0xff] (!%p634_p6)  ;;  %vm534_vm6 = vcmask (!%p634_p6), 125952  }
 0x144   : > { %465 = sbr.rel (%p634_p6) target bundleno = 355 (0x163), region = 52  ;;  %v635_v7 = vld [vmem:[#allocation5] ss:$0 sm:$0xff] (!%p634_p6)  ;;  %v473_v13 = vld [vmem:[#allocation2 + $0x18] sm:$0xff] (!%p634_p6) }
 0x145   : > { %v480_v10 = vmul.f32 (!%p634_p6), %v635_v7, %v470_v9  ;;  %v481_v14 = vmul.f32 (!%p634_p6), %v635_v7, %v471_v11  ;;  %v482_v15 = vmul.f32 (!%p634_p6), %v635_v7, %v472_v12  ;;  %v483_v16 = vmul.f32 (!%p634_p6), %v635_v7, %v473_v13 }
 0x148   : > { %v636_v8 = vld [vmem:[#allocation6] ss:$0 sm:$0xff] (!%p634_p6) }
 0x149   : > { %v490_v17 = vadd.f32 (!%p634_p6), %v636_v8, %v480_v10  ;;  %v491_v18 = vadd.f32 (!%p634_p6), %v636_v8, %v481_v14  ;;  %v492_v19 = vadd.f32 (!%p634_p6), %v636_v8, %v482_v15  ;;  %v493_v20 = vadd.f32 (!%p634_p6), %v636_v8, %v483_v16 }
 0x14b   : > { %v498_v21 = vmin.f32 %v490_v17, 0.0  ;;  %v499_v22 = vmin.f32 %v491_v18, 0.0  ;;  %v500_v23 = vmin.f32 %v492_v19, 0.0  ;;  %v501_v25 = vmin.f32 %v493_v20, 0.0 }
 0x14c   : > { %vm494_vm3 = vcmp.gt.f32.partialorder %v490_v17, 0.0  ;;  %vm495_vm4 = vcmp.gt.f32.partialorder %v491_v18, 0.0  ;;  %vm496_vm5 = vcmp.gt.f32.partialorder %v492_v19, 0.0  ;;  %vm497_vm7 = vcmp.gt.f32.partialorder %v493_v20, 0.0 }
 0x14d   : > { %v502_v24 = vmul.f32 1.442695, %v498_v21  ;;  %v504_v26 = vmul.f32 1.442695, %v499_v22  ;;  %v506_v27 = vmul.f32 1.442695, %v500_v23 }
 0x14e   : > { %v508_v28 = vmul.f32 1.442695, %v501_v25 }
 0x14f   : > { %715 = vpow2.f32 %v502_v24 }
 0x150   : > { %717 = vpow2.f32 %v504_v26 }
 0x151   : > { %719 = vpow2.f32 %v506_v27 }
 0x152   : > { %721 = vpow2.f32 %v508_v28 }
 0x159   : > { %v716_v29 = vpop.eup %715 }
 0x15a   : > { %v718_v30 = vpop.eup %717  ;;  %v637_v31 = vadd.f32 -1.0, %v716_v29 }
 0x15b   : > { %v720_v32 = vpop.eup %719  ;;  %v638_v33 = vadd.f32 -1.0, %v718_v30 }
 0x15c   : > { %v722_v34 = vpop.eup %721  ;;  %v514_v35 = vsel %vm494_vm3, %v490_v17, %v637_v31  ;;  %v639_v36 = vadd.f32 -1.0, %v720_v32 }
 0x15d   : > { %v650_v37 = vpack.c.bf16 %v514_v35, %v514_v35  ;;  %v515_v38 = vsel %vm495_vm4, %v491_v18, %v638_v33  ;;  %v640_v39 = vadd.f32 -1.0, %v722_v34 }
 0x15e   : > { %v651_v40 = vpack.c.bf16 %v515_v38, %v515_v38  ;;  %v516_v41 = vsel %vm496_vm5, %v492_v19, %v639_v36 }
 0x15f   : > { %535 = vst.msk [vmem:[%s885_s4] sm:$0xf] %vm534_vm6, %v650_v37  ;;  %v652_v42 = vpack.c.bf16 %v516_v41, %v516_v41  ;;  %v517_v43 = vsel %vm497_vm7, %v493_v20, %v640_v39 }
 0x160   : > { %536 = vst.msk [vmem:[%s885_s4 + $0x4] sm:$0xf] %vm534_vm6, %v651_v40  ;;  %v653_v44 = vpack.c.bf16 %v517_v43, %v517_v43 }
 0x161   : > { %537 = vst.msk [vmem:[%s885_s4 + $0x8] sm:$0xf] %vm534_vm6, %v652_v42 }
 0x162   : > { %538 = vst.msk [vmem:[%s885_s4 + $0xc] sm:$0xf] %vm534_vm6, %v653_v44 }
 0x163 PF: > { %s14_s17 = sadd.s32 1, %s745_s17   ;;  %s886_s15 = smov %s741_s16 }
 0x164   : > { %p11_p7 = scmp.ge.s32.totalorder %s14_s17, 4   ;;  %s887_s16 = smov %s889_s18 }
 0x166   :  { %13 = sbr.rel (!%p11_p7) target bundleno = 2 (0x2), region = 84 }

// kernel: autoencoder_forward.15
= control target key start
LH: loop header
LB: loop body
LE: loop exit
PB: predicated region body
PF: predicated region fallthrough
CT: control target
= control target key end

     0   :  { %s632_s15 = smov 0   ;;  %s634_s16 = smov 0   ;;  %s707_s0 = inlined_call_operand.vmem [shape: bf16[8,144], index: 0, kind: input, shape index: {}]   ;;  %s708_s1 = inlined_call_operand.vmem [shape: bf16[1,144,4], index: 1, kind: input, shape index: {}]   ;;  %s709_s2 = inlined_call_operand.vmem [shape: f32[1,4], index: 2, kind: input, shape index: {}]   ;;  %s710_s3 = inlined_call_operand.vmem [shape: f32[1,4], index: 3, kind: input, shape index: {}]   ;;  %s711_s4 = inlined_call_operand.vmem [shape: bf16[1,8,4], index: 4, kind: output, shape index: {}]  }
   0x1   :  { %s636_s17 = smov 0  }
   0x2 LB: > { %s26_s18 = sadd.s32 1, %s599_s16  ;;  %p516_p0 = scmp.ge.s32.totalorder %s603_s17, 1  ;;  %s603_s17 = sphi %s636_s17, %s14_s17   ;;  %s599_s16 = sphi %s634_s16, %s713_s16   ;;  %s595_s15 = sphi %s632_s15, %s712_s15  }
   0x3   : > { %p28_p1 = scmp.ge.s32.totalorder %s26_s18, 2  ;;  %p184_p2 = scmp.lt.s32.totalorder %s603_s17, 3 }
   0x5   : > { %s715_s18 = smov (%p28_p1, %s26_s18), 0  ;;  %p185_p3 = pnand %p516_p0, %p184_p2 }
   0x6   : > { %p517_p4 = scmp.ne.s32.totalorder (!%p185_p3), %s595_s15, 0 }
   0x7   : > { %188 = sbr.rel (%p185_p3) target bundleno = 344 (0x158), region = 36 }
   0xe   : > { %231 = sbr.rel (%p517_p4) target bundleno = 281 (0x119), region = 40  ;;  %v566_v0 = vld [vmem:[%s708_s1] sm:$0xff] (!%p517_p4)   ;;  %v605_v1 = vmov (!%p517_p4), 0   ;;  %v567_v2 = vld [vmem:[%s708_s1 + $0x8] sm:$0xff] (!%p517_p4)   ;;  %vm236_vm0 = vcmask (!%p517_p4), 24576   ;;  %v606_v3 = vmov (!%p517_p4), 0.0  }
   0xf   : > { %323 = vmatprep.subr.bf16.mxu0 (!%p517_p4), %v605_v1  ;;  %237 = vst.msk [vmem:[#allocation3] sm:$0x1] (!%p517_p4), %vm236_vm0, %v606_v3  ;;  %238 = vst.msk [vmem:[#allocation4] sm:$0x1] (!%p517_p4), %vm236_vm0, %v606_v3  ;;  %v568_v4 = vld [vmem:[%s708_s1 + $0x10] sm:$0xff] (!%p517_p4)   ;;  %v239_v5 = vld [vmem:[%s707_s0] sm:$0xff] (!%p517_p4) }
  0x10   : > { %324 = vmatpush1.bf16.msra.mxu0 (!%p517_p4), %v566_v0  ;;  %vm319_vm1 = vcmask (!%p517_p4), 130048   ;;  %v569_v6 = vld [vmem:[%s708_s1 + $0x18] sm:$0xff] (!%p517_p4)   ;;  %v519_v7 = vcombine.high (!%p517_p4), %v239_v5, %v239_v5  ;;  %v570_v8 = vld [vmem:[%s708_s1 + $0x20] sm:$0xff] (!%p517_p4)   ;;  %v571_v9 = vld [vmem:[%s708_s1 + $0x28] sm:$0xff] (!%p517_p4)   ;;  %v518_v13 = vcombine.low (!%p517_p4), %v239_v5, %v239_v5  ;;  %vm364_vm2 = vcmask (!%p517_p4), 31744  }
  0x11   : > { %325 = vmatprep.subr.bf16.mxu0 (!%p517_p4), %v605_v1  ;;  %v572_v10 = vld [vmem:[%s708_s1 + $0x30] sm:$0xff] (!%p517_p4)   ;;  %v573_v11 = vld [vmem:[%s708_s1 + $0x38] sm:$0xff] (!%p517_p4)   ;;  %v574_v12 = vld [vmem:[%s708_s1 + $0x40] sm:$0xff] (!%p517_p4)  }
  0x12   : > { %529 = vmatprep.mubr.msk.bf16.mxu0 (!%p517_p4), %vm319_vm1, %v519_v7 }
  0x14   : > { %326 = vmatpush1.bf16.msra.mxu0 (!%p517_p4), %v567_v2 }
  0x15   : > { %327 = vmatprep.subr.bf16.mxu0 %v605_v1 }
  0x16   : > { %v366_v30 = vld [vmem:[#allocation3] sm:$0x1]  ;;  %v377_v33 = vld [vmem:[#allocation4] sm:$0x1] }
  0x18   : > { %328 = vmatpush1.bf16.msra.mxu0 %v568_v4 }
  0x19   : > { %329 = vmatprep.subr.bf16.mxu0 %v605_v1 }
  0x1c   : > { %330 = vmatpush1.bf16.msra.mxu0 %v569_v6 }
  0x1d   : > { %331 = vmatprep.subr.bf16.mxu0 %v605_v1 }
  0x20   : > { %332 = vmatpush1.bf16.msra.mxu0 %v570_v8 }
  0x21   : > { %333 = vmatprep.subr.bf16.mxu0 %v605_v1 }
  0x24   : > { %334 = vmatpush1.bf16.msra.mxu0 %v571_v9 }
  0x25   : > { %335 = vmatprep.subr.bf16.mxu0 %v605_v1 }
  0x28   : > { %336 = vmatpush1.bf16.msra.mxu0 %v572_v10 }
  0x29   : > { %337 = vmatprep.subr.bf16.mxu0 %v605_v1 }
  0x2c   : > { %338 = vmatpush1.bf16.msra.mxu0 %v573_v11 }
  0x2d   : > { %339 = vmatprep.subr.bf16.mxu0 %v605_v1 }
  0x30   : > { %340 = vmatpush1.bf16.msra.mxu0 %v574_v12 }
  0x33   : > { %356 = vmatmul.mubr.bf16.vlgmr.msra.gmra.mrb[0].mxu0 %v518_v13 }
 0x106   : > { %v357_v14 = vpop.f32.mrb[0].mxu0 }
 0x107   : > { %365 = vst.msk [vmem:[#allocation2] sm:$0xff] %vm364_vm2, %v357_v14  ;;  %v367_v15 = vsel %vm364_vm2, %v357_v14, 0.0  ;;  %v378_v16 = vmul.f32 %v357_v14, %v357_v14  ;;  %v359_v17 = vpop.f32.mrb[1].mxu0 }
 0x108   : > { %v368_v18 = vrot.slane %v367_v15, 4  ;;  %v360_v19 = vpop.f32.mrb[2].mxu0 }
 0x109   : > { %v379_v20 = vsel %vm364_vm2, %v378_v16, 0.0  ;;  %v361_v21 = vpop.f32.mrb[3].mxu0 }
 0x10a   : > { %v369_v22 = vadd.f32 %v368_v18, %v367_v15  ;;  %v380_v23 = vrot.slane %v379_v20, 4 }
 0x10c   : > { %v370_v24 = vrot.slane %v369_v22, 2  ;;  %v381_v25 = vadd.f32 %v380_v23, %v379_v20 }
 0x10e   : > { %v371_v26 = vadd.f32 %v370_v24, %v369_v22  ;;  %v382_v27 = vrot.slane %v381_v25, 2 }
 0x110   : > { %v372_v28 = vrot.slane %v371_v26, 1  ;;  %v383_v29 = vadd.f32 %v382_v27, %v381_v25 }
 0x112   : > { %v373_v31 = vadd.f32 %v372_v28, %v371_v26  ;;  %v384_v32 = vrot.slane %v383_v29, 1 }
 0x114   : > { %v374_v34 = vadd.f32 %v373_v31, %v366_v30  ;;  %v385_v35 = vadd.f32 %v384_v32, %v383_v29 }
 0x116   : > { %376 = vst.msk [vmem:[#allocation3] sm:$0x1] %vm236_vm0, %v374_v34  ;;  %v386_v36 = vadd.f32 %v385_v35, %v377_v33 }
 0x118   : > { %387 = vst.msk [vmem:[#allocation4] sm:$0x1] %vm236_vm0, %v386_v36 }
 0x119 PF: > { %p388_p5 = scmp.eq.s32.totalorder %s595_s15, 1 }
 0x11a   : > { %v401_v45 = vld [vmem:[%s709_s2] sm:$0x1] (%p388_p5)  ;;  %vm405_vm3 = vcmask (%p388_p5), 24576  }
 0x11b   : > { %393 = sbr.rel (!%p388_p5) target bundleno = 314 (0x13a), region = 48  ;;  %v407_v48 = vld [vmem:[%s710_s3] sm:$0x1] (%p388_p5) }
 0x11d   : > { %v394_v37 = vld [vmem:[#allocation3] sm:$0x1] (%p388_p5) }
 0x11e   : > { %v395_v39 = vmul.f32 (%p388_p5), 0.125, %v394_v37 }
 0x11f   : > { %v396_v38 = vld [vmem:[#allocation4] sm:$0x1] (%p388_p5) }
 0x120   : > { %v397_v40 = vmul.f32 (%p388_p5), 0.125, %v396_v38  ;;  %v398_v41 = vmul.f32 (%p388_p5), %v395_v39, %v395_v39 }
 0x122   : > { %v399_v42 = vsub.f32 %v397_v40, %v398_v41 }
 0x124   : > { %v400_v43 = vmax.f32 %v399_v42, 0.0 }
 0x126   : > { %v402_v44 = vadd.f32 1e-05, %v400_v43 }
 0x128   : > { %577 = vrsqrt.f32 %v402_v44 }
 0x132   : > { %v578_v46 = vpop.eup %577 }
 0x133   : > { %v404_v47 = vmul.f32 %v578_v46, %v401_v45 }
 0x135   : > { %406 = vst.msk [vmem:[#allocation5] sm:$0x1] %vm405_vm3, %v404_v47  ;;  %v408_v49 = vmul.f32 %v404_v47, %v395_v39 }
 0x137   : > { %v409_v50 = vsub.f32 %v407_v48, %v408_v49 }
 0x139   : > { %410 = vst.msk [vmem:[#allocation6] sm:$0x1] %vm405_vm3, %v409_v50 }
 0x13a PF: > { %p531_p6 = scmp.ne.s32.totalorder %s595_s15, 1 }
 0x13b   : > { %v418_v53 = vld [vmem:[#allocation2] sm:$0xff] (!%p531_p6)  ;;  %vm440_vm5 = vcmask (!%p531_p6), 27648  }
 0x13c   : > { %413 = sbr.rel (%p531_p6) target bundleno = 344 (0x158), region = 52  ;;  %v532_v51 = vld [vmem:[#allocation5] ss:$0 sm:$0xff] (!%p531_p6) }
 0x13d   : > { %v425_v54 = vmul.f32 (!%p531_p6), %v532_v51, %v418_v53 }
 0x140   : > { %v533_v52 = vld [vmem:[#allocation6] ss:$0 sm:$0xff] (!%p531_p6) }
 0x141   : > { %v432_v55 = vadd.f32 (!%p531_p6), %v533_v52, %v425_v54 }
 0x143   : > { %v434_v56 = vmin.f32 %v432_v55, 0.0  ;;  %vm433_vm4 = vcmp.gt.f32.partialorder %v432_v55, 0.0 }
 0x145   : > { %v435_v57 = vmul.f32 1.442695, %v434_v56 }
 0x147   : > { %579 = vpow2.f32 %v435_v57 }
 0x151   : > { %v580_v58 = vpop.eup %579 }
 0x152   : > { %v534_v59 = vadd.f32 -1.0, %v580_v58 }
 0x154   : > { %v438_v60 = vsel %vm433_vm4, %v432_v55, %v534_v59 }
 0x155   : > { %v439_v61 = vpack.c.bf16 %v438_v60, %v438_v60 }
 0x157   : > { %441 = vst.msk [vmem:[%s711_s4] sm:$0xf] %vm440_vm5, %v439_v61 }
 0x158 PF: > { %s14_s17 = sadd.s32 1, %s603_s17   ;;  %s712_s15 = smov %s599_s16 }
 0x159   : > { %p11_p7 = scmp.ge.s32.totalorder %s14_s17, 4   ;;  %s713_s16 = smov %s715_s18 }
 0x15b   :  { %13 = sbr.rel (!%p11_p7) target bundleno = 2 (0x2), region = 84 }

// kernel: autoencoder_forward.16
= control target key start
LH: loop header
LB: loop body
LE: loop exit
PB: predicated region body
PF: predicated region fallthrough
CT: control target
= control target key end

     0   :  { %s857_s15 = smov 0   ;;  %s859_s16 = smov 0   ;;  %s956_s0 = inlined_call_operand.vmem [shape: bf16[8,4], index: 0, kind: input, shape index: {}]   ;;  %s957_s1 = inlined_call_operand.vmem [shape: bf16[4,4,16], index: 1, kind: input, shape index: {}]   ;;  %s958_s2 = inlined_call_operand.vmem [shape: f32[1,16], index: 2, kind: input, shape index: {}]   ;;  %s959_s3 = inlined_call_operand.vmem [shape: f32[1,16], index: 3, kind: input, shape index: {}]   ;;  %s960_s4 = inlined_call_operand.vmem [shape: bf16[4,8,16], index: 4, kind: output, shape index: {}]  }
   0x1   :  { %s861_s17 = smov 0  }
   0x2 LB: > { %s26_s18 = sadd.s32 1, %s824_s16  ;;  %p707_p0 = scmp.ge.s32.totalorder %s828_s17, 1  ;;  %s828_s17 = sphi %s861_s17, %s14_s17   ;;  %s824_s16 = sphi %s859_s16, %s962_s16   ;;  %s820_s15 = sphi %s857_s15, %s961_s15  }
   0x3   : > { %p28_p1 = scmp.ge.s32.totalorder %s26_s18, 2  ;;  %p183_p2 = scmp.lt.s32.totalorder %s828_s17, 3 }
   0x5   : > { %s964_s18 = smov (%p28_p1, %s26_s18), 0  ;;  %p184_p3 = pnand %p707_p0, %p183_p2 }
   0x6   : > { %p708_p4 = scmp.ne.s32.totalorder (!%p184_p3), %s820_s15, 0 }
   0x7   : > { %187 = sbr.rel (%p184_p3) target bundleno = 345 (0x159), region = 36 }
   0xe   : > { %228 = sbr.rel (%p708_p4) target bundleno = 279 (0x117), region = 40  ;;  %v238_v0 = vld [vmem:[%s957_s1] sm:$0x3] (!%p708_p4)  ;;  %vm243_vm0 = vcmask (!%p708_p4), 1041408   ;;  %v830_v1 = vmov (!%p708_p4), 0.0   ;;  %vm831_vm1 = vmmov (!%p708_p4), 0  }
   0xf   : > { %746 = vmatprep.subr.bf16.mxu0 (!%p708_p4), %v830_v1  ;;  %v245_v2 = vsel (!%p708_p4), %vm243_vm0, %v238_v0, 0  ;;  %748 = vmatprep.mubr.msk.bf16.mxu0 (!%p708_p4), %vm831_vm1, %v830_v1  ;;  %v236_v3 = vld [vmem:[%s956_s0] sm:$0xf] (!%p708_p4)  ;;  %vm233_vm2 = vcmask (!%p708_p4), 122880   ;;  %vm239_vm3 = vcmask (!%p708_p4), 31744   ;;  %vm288_vm4 = vcmask (!%p708_p4), 130048  }
  0x10   : > { %v710_v4 = vld [vmem:[%s957_s1 + $0x2] sm:$0x3] (!%p708_p4)  ;;  %747 = vmatpush3.bf16.msra.mxu0 (!%p708_p4), %v245_v2  ;;  %752 = vmatprep.subr.bf16.mxu1 (!%p708_p4), %v830_v1  ;;  %v713_v6 = vld [vmem:[%s957_s1 + $0x4] sm:$0x3] (!%p708_p4)  ;;  %v716_v7 = vld [vmem:[%s957_s1 + $0x6] sm:$0x3] (!%p708_p4) }
  0x11   : > { %v315_v5 = vsel (!%p708_p4), %vm243_vm0, %v710_v4, 0  ;;  %234 = vst.msk [vmem:[#allocation3] sm:$0x1] (!%p708_p4), %vm233_vm2, %v830_v1  ;;  %235 = vst.msk [vmem:[#allocation4] sm:$0x1] (!%p708_p4), %vm233_vm2, %v830_v1  ;;  %754 = vmatprep.mubr.msk.bf16.mxu1 (!%p708_p4), %vm831_vm1, %v830_v1  ;;  %v384_v8 = vsel (!%p708_p4), %vm243_vm0, %v713_v6, 0  ;;  %758 = vmatprep.subr.bf16.mxu0 (!%p708_p4), %v830_v1 }
  0x12   : > { %753 = vmatpush3.bf16.msra.mxu1 (!%p708_p4), %v315_v5  ;;  %v453_v9 = vsel (!%p708_p4), %vm243_vm0, %v716_v7, 0 }
  0x13   : > { %764 = vmatprep.subr.bf16.mxu1 (!%p708_p4), %v830_v1  ;;  %749 = vmatmul.mubr.msk.bf16.vlgmr.msra.gmra.mrb[0].mxu0 (!%p708_p4), %vm239_vm3, %v236_v3 }
  0x14   : > { %759 = vmatpush3.bf16.msra.mxu0 (!%p708_p4), %v384_v8  ;;  %760 = vmatprep.mubr.msk.bf16.mxu0 (!%p708_p4), %vm831_vm1, %v830_v1 }
  0x15   : > { %755 = vmatmul.mubr.msk.bf16.vlgmr.msra.gmra.mrb[0].mxu1 %vm239_vm3, %v236_v3 }
  0x16   : > { %765 = vmatpush3.bf16.msra.mxu1 %v453_v9  ;;  %766 = vmatprep.mubr.msk.bf16.mxu1 %vm831_vm1, %v830_v1 }
  0x18   : > { %v290_v45 = vld [vmem:[#allocation3] sm:$0x1]  ;;  %v301_v54 = vld [vmem:[#allocation4] sm:$0x1] }
  0x1b   : > { %761 = vmatmul.mubr.msk.bf16.vlgmr.msra.gmra.mrb[4].mxu0 %vm239_vm3, %v236_v3 }
  0x1d   : > { %767 = vmatmul.mubr.msk.bf16.vlgmr.msra.gmra.mrb[4].mxu1 %vm239_vm3, %v236_v3 }
  0xe6   : > { %v281_v10 = vpop.f32.mrb[0].mxu0 }
  0xe7   : > { %289 = vst.msk [vmem:[#allocation2] sm:$0xff] %vm288_vm4, %v281_v10  ;;  %v291_v11 = vsel %vm288_vm4, %v281_v10, 0.0  ;;  %v302_v12 = vmul.f32 %v281_v10, %v281_v10  ;;  %v750_v13 = vpop.f32.mrb[1].mxu0 }
  0xe8   : > { %v351_v14 = vpop.f32.mrb[0].mxu1  ;;  %v292_v15 = vrot.slane %v291_v11, 4  ;;  %v284_v16 = vpop.f32.mrb[2].mxu0 }
  0xe9   : > { %712 = vst.msk [vmem:[#allocation2 + $0x8] sm:$0xff] %vm288_vm4, %v351_v14  ;;  %v361_v17 = vsel %vm288_vm4, %v351_v14, 0.0  ;;  %v371_v18 = vmul.f32 %v351_v14, %v351_v14  ;;  %v756_v19 = vpop.f32.mrb[1].mxu1  ;;  %v303_v20 = vsel %vm288_vm4, %v302_v12, 0.0  ;;  %v751_v21 = vpop.f32.mrb[3].mxu0 }
  0xea   : > { %v362_v22 = vrot.slane %v361_v17, 4  ;;  %v354_v23 = vpop.f32.mrb[2].mxu1  ;;  %v293_v24 = vadd.f32 %v292_v15, %v291_v11  ;;  %v304_v25 = vrot.slane %v303_v20, 4 }
  0xeb   : > { %v372_v26 = vsel %vm288_vm4, %v371_v18, 0.0  ;;  %v757_v27 = vpop.f32.mrb[3].mxu1 }
  0xec   : > { %v373_v28 = vrot.slane %v372_v26, 4  ;;  %v294_v29 = vrot.slane %v293_v24, 2  ;;  %v305_v30 = vadd.f32 %v304_v25, %v303_v20  ;;  %v363_v31 = vadd.f32 %v362_v22, %v361_v17 }
  0xee   : > { %v295_v32 = vadd.f32 %v294_v29, %v293_v24  ;;  %v306_v33 = vrot.slane %v305_v30, 2  ;;  %v374_v34 = vadd.f32 %v373_v28, %v372_v26  ;;  %v420_v35 = vpop.f32.mrb[4].mxu0  ;;  %v364_v42 = vrot.slane %v363_v31, 2 }
  0xef   : > { %715 = vst.msk [vmem:[#allocation2 + $0x10] sm:$0xff] %vm288_vm4, %v420_v35  ;;  %v430_v36 = vsel %vm288_vm4, %v420_v35, 0.0  ;;  %v440_v37 = vmul.f32 %v420_v35, %v420_v35  ;;  %v762_v38 = vpop.f32.mrb[5].mxu0 }
  0xf0   : > { %v489_v39 = vpop.f32.mrb[4].mxu1  ;;  %v296_v40 = vrot.slane %v295_v32, 1  ;;  %v307_v41 = vadd.f32 %v306_v33, %v305_v30  ;;  %v423_v43 = vpop.f32.mrb[6].mxu0  ;;  %v375_v51 = vrot.slane %v374_v34, 2  ;;  %v431_v52 = vrot.slane %v430_v36, 4 }
  0xf1   : > { %718 = vst.msk [vmem:[#allocation2 + $0x18] sm:$0xff] %vm288_vm4, %v489_v39  ;;  %v768_v44 = vpop.f32.mrb[5].mxu1  ;;  %v441_v46 = vsel %vm288_vm4, %v440_v37, 0.0  ;;  %v763_v47 = vpop.f32.mrb[7].mxu0  ;;  %v365_v57 = vadd.f32 %v364_v42, %v363_v31  ;;  %v509_v62 = vmul.f32 %v489_v39, %v489_v39  ;;  %v499_v1 = vsel %vm288_vm4, %v489_v39, 0.0 }
  0xf2   : > { %v492_v48 = vpop.f32.mrb[6].mxu1  ;;  %v297_v49 = vadd.f32 %v296_v40, %v295_v32  ;;  %v308_v50 = vrot.slane %v307_v41, 1  ;;  %v442_v58 = vrot.slane %v441_v46, 4  ;;  %v376_v60 = vadd.f32 %v375_v51, %v374_v34 }
  0xf3   : > { %v769_v53 = vpop.f32.mrb[7].mxu1  ;;  %v432_v61 = vadd.f32 %v431_v52, %v430_v36  ;;  %v366_v63 = vrot.slane %v365_v57, 1  ;;  %v510_v4 = vsel %vm288_vm4, %v509_v62, 0.0  ;;  %v500_v7 = vrot.slane %v499_v1, 4 }
  0xf4   : > { %v298_v55 = vadd.f32 %v297_v49, %v290_v45  ;;  %v309_v56 = vadd.f32 %v308_v50, %v307_v41  ;;  %v443_v0 = vadd.f32 %v442_v58, %v441_v46  ;;  %v377_v2 = vrot.slane %v376_v60, 1 }
  0xf5   : > { %v433_v3 = vrot.slane %v432_v61, 2  ;;  %v367_v5 = vadd.f32 %v366_v63, %v365_v57  ;;  %v511_v12 = vrot.slane %v510_v4, 4  ;;  %v501_v16 = vadd.f32 %v500_v7, %v499_v1 }
  0xf6   : > { %300 = vst.msk [vmem:[#allocation3] sm:$0x1] %vm233_vm2, %v298_v55  ;;  %v310_v59 = vadd.f32 %v309_v56, %v301_v54  ;;  %v444_v6 = vrot.slane %v443_v0, 2  ;;  %v378_v10 = vadd.f32 %v377_v2, %v376_v60 }
  0xf7   : > { %v434_v11 = vadd.f32 %v433_v3, %v432_v61  ;;  %v512_v18 = vadd.f32 %v511_v12, %v510_v4  ;;  %v502_v20 = vrot.slane %v501_v16, 2 }
  0xf8   : > { %311 = vst.msk [vmem:[#allocation4] sm:$0x1] %vm233_vm2, %v310_v59  ;;  %v445_v15 = vadd.f32 %v444_v6, %v443_v0 }
  0xf9   : > { %v435_v17 = vrot.slane %v434_v11, 1  ;;  %v513_v22 = vrot.slane %v512_v18, 2  ;;  %v503_v26 = vadd.f32 %v502_v20, %v501_v16 }
  0xfa   : > { %v446_v19 = vrot.slane %v445_v15, 1 }
  0xfb   : > { %v436_v21 = vadd.f32 %v435_v17, %v434_v11  ;;  %v514_v29 = vadd.f32 %v513_v22, %v512_v18  ;;  %v504_v30 = vrot.slane %v503_v26, 1 }
  0xfc   : > { %v447_v25 = vadd.f32 %v446_v19, %v445_v15 }
  0xfd   : > { %v360_v8 = vld [vmem:[#allocation3] sm:$0x1]  ;;  %v515_v31 = vrot.slane %v514_v29, 1  ;;  %v505_v32 = vadd.f32 %v504_v30, %v503_v26 }
  0xfe   : > { %v368_v9 = vadd.f32 %v367_v5, %v360_v8 }
  0xff   : > { %v370_v13 = vld [vmem:[#allocation4] sm:$0x1]  ;;  %v516_v35 = vadd.f32 %v515_v31, %v514_v29 }
 0x100   : > { %369 = vst.msk [vmem:[#allocation3] sm:$0x1] %vm233_vm2, %v368_v9  ;;  %v379_v14 = vadd.f32 %v378_v10, %v370_v13 }
 0x102   : > { %380 = vst.msk [vmem:[#allocation4] sm:$0x1] %vm233_vm2, %v379_v14 }
 0x107   : > { %v429_v23 = vld [vmem:[#allocation3] sm:$0x1] }
 0x108   : > { %v437_v24 = vadd.f32 %v436_v21, %v429_v23 }
 0x109   : > { %v439_v27 = vld [vmem:[#allocation4] sm:$0x1] }
 0x10a   : > { %438 = vst.msk [vmem:[#allocation3] sm:$0x1] %vm233_vm2, %v437_v24  ;;  %v448_v28 = vadd.f32 %v447_v25, %v439_v27 }
 0x10c   : > { %449 = vst.msk [vmem:[#allocation4] sm:$0x1] %vm233_vm2, %v448_v28 }
 0x111   : > { %v498_v33 = vld [vmem:[#allocation3] sm:$0x1] }
 0x112   : > { %v506_v34 = vadd.f32 %v505_v32, %v498_v33 }
 0x113   : > { %v508_v36 = vld [vmem:[#allocation4] sm:$0x1] }
 0x114   : > { %507 = vst.msk [vmem:[#allocation3] sm:$0x1] %vm233_vm2, %v506_v34  ;;  %v517_v37 = vadd.f32 %v516_v35, %v508_v36 }
 0x116   : > { %518 = vst.msk [vmem:[#allocation4] sm:$0x1] %vm233_vm2, %v517_v37 }
 0x117 PF: > { %p519_p5 = scmp.eq.s32.totalorder %s820_s15, 1 }
 0x118   : > { %v532_v46 = vld [vmem:[%s958_s2] sm:$0x1] (%p519_p5)  ;;  %vm536_vm5 = vcmask (%p519_p5), 122880  }
 0x119   : > { %524 = sbr.rel (!%p519_p5) target bundleno = 312 (0x138), region = 48  ;;  %v538_v49 = vld [vmem:[%s959_s3] sm:$0x1] (%p519_p5) }
 0x11b   : > { %v525_v38 = vld [vmem:[#allocation3] sm:$0x1] (%p519_p5) }
 0x11c   : > { %v526_v40 = vmul.f32 (%p519_p5), 0.03125, %v525_v38 }
 0x11d   : > { %v527_v39 = vld [vmem:[#allocation4] sm:$0x1] (%p519_p5) }
 0x11e   : > { %v528_v41 = vmul.f32 (%p519_p5), 0.03125, %v527_v39  ;;  %v529_v42 = vmul.f32 (%p519_p5), %v526_v40, %v526_v40 }
 0x120   : > { %v530_v43 = vsub.f32 %v528_v41, %v529_v42 }
 0x122   : > { %v531_v44 = vmax.f32 %v530_v43, 0.0 }
 0x124   : > { %v533_v45 = vadd.f32 1e-05, %v531_v44 }
 0x126   : > { %796 = vrsqrt.f32 %v533_v45 }
 0x130   : > { %v797_v47 = vpop.eup %796 }
 0x131   : > { %v535_v48 = vmul.f32 %v797_v47, %v532_v46 }
 0x133   : > { %537 = vst.msk [vmem:[#allocation5] sm:$0x1] %vm536_vm5, %v535_v48  ;;  %v539_v50 = vmul.f32 %v535_v48, %v526_v40 }
 0x135   : > { %v540_v51 = vsub.f32 %v538_v49, %v539_v50 }
 0x137   : > { %541 = vst.msk [vmem:[#allocation6] sm:$0x1] %vm536_vm5, %v540_v51 }
 0x138 PF: > { %p720_p6 = scmp.ne.s32.totalorder %s820_s15, 1 }
 0x139   : > { %v549_v54 = vld [vmem:[#allocation2] sm:$0xff] (!%p720_p6)  ;;  %v724_v56 = vld [vmem:[#allocation2 + $0x8] sm:$0xff] (!%p720_p6)  ;;  %v727_v57 = vld [vmem:[#allocation2 + $0x10] sm:$0xff] (!%p720_p6)  ;;  %vm571_vm9 = vcmask (!%p720_p6), 125952  }
 0x13a   : > { %544 = sbr.rel (%p720_p6) target bundleno = 345 (0x159), region = 52  ;;  %v721_v52 = vld [vmem:[#allocation5] ss:$0 sm:$0xff] (!%p720_p6)  ;;  %v730_v58 = vld [vmem:[#allocation2 + $0x18] sm:$0xff] (!%p720_p6) }
 0x13b   : > { %v556_v55 = vmul.f32 (!%p720_p6), %v721_v52, %v549_v54  ;;  %v576_v59 = vmul.f32 (!%p720_p6), %v724_v56, %v721_v52  ;;  %v590_v60 = vmul.f32 (!%p720_p6), %v727_v57, %v721_v52  ;;  %v604_v61 = vmul.f32 (!%p720_p6), %v730_v58, %v721_v52 }
 0x13e   : > { %v722_v53 = vld [vmem:[#allocation6] ss:$0 sm:$0xff] (!%p720_p6) }
 0x13f   : > { %v563_v62 = vadd.f32 (!%p720_p6), %v722_v53, %v556_v55  ;;  %v577_v63 = vadd.f32 (!%p720_p6), %v722_v53, %v576_v59  ;;  %v591_v0 = vadd.f32 (!%p720_p6), %v722_v53, %v590_v60  ;;  %v605_v1 = vadd.f32 (!%p720_p6), %v722_v53, %v604_v61 }
 0x141   : > { %v565_v2 = vmin.f32 %v563_v62, 0.0  ;;  %v579_v3 = vmin.f32 %v577_v63, 0.0  ;;  %v593_v4 = vmin.f32 %v591_v0, 0.0  ;;  %v607_v6 = vmin.f32 %v605_v1, 0.0 }
 0x142   : > { %vm564_vm6 = vcmp.gt.f32.partialorder %v563_v62, 0.0  ;;  %vm578_vm7 = vcmp.gt.f32.partialorder %v577_v63, 0.0  ;;  %vm592_vm8 = vcmp.gt.f32.partialorder %v591_v0, 0.0  ;;  %vm606_vm10 = vcmp.gt.f32.partialorder %v605_v1, 0.0 }
 0x143   : > { %v566_v5 = vmul.f32 1.442695, %v565_v2  ;;  %v580_v7 = vmul.f32 1.442695, %v579_v3  ;;  %v594_v8 = vmul.f32 1.442695, %v593_v4 }
 0x144   : > { %v608_v9 = vmul.f32 1.442695, %v607_v6 }
 0x145   : > { %798 = vpow2.f32 %v566_v5 }
 0x146   : > { %800 = vpow2.f32 %v580_v7 }
 0x147   : > { %802 = vpow2.f32 %v594_v8 }
 0x148   : > { %804 = vpow2.f32 %v608_v9 }
 0x14f   : > { %v799_v10 = vpop.eup %798 }
 0x150   : > { %v801_v11 = vpop.eup %800  ;;  %v723_v12 = vadd.f32 -1.0, %v799_v10 }
 0x151   : > { %v803_v13 = vpop.eup %802  ;;  %v725_v14 = vadd.f32 -1.0, %v801_v11 }
 0x152   : > { %v805_v15 = vpop.eup %804  ;;  %v569_v16 = vsel %vm564_vm6, %v563_v62, %v723_v12  ;;  %v728_v17 = vadd.f32 -1.0, %v803_v13 }
 0x153   : > { %v570_v18 = vpack.c.bf16 %v569_v16, %v569_v16  ;;  %v583_v19 = vsel %vm578_vm7, %v577_v63, %v725_v14  ;;  %v731_v20 = vadd.f32 -1.0, %v805_v15 }
 0x154   : > { %v584_v21 = vpack.c.bf16 %v583_v19, %v583_v19  ;;  %v597_v22 = vsel %vm592_vm8, %v591_v0, %v728_v17 }
 0x155   : > { %572 = vst.msk [vmem:[%s960_s4] sm:$0xf] %vm571_vm9, %v570_v18  ;;  %v598_v23 = vpack.c.bf16 %v597_v22, %v597_v22  ;;  %v611_v24 = vsel %vm606_vm10, %v605_v1, %v731_v20 }
 0x156   : > { %726 = vst.msk [vmem:[%s960_s4 + $0x4] sm:$0xf] %vm571_vm9, %v584_v21  ;;  %v612_v25 = vpack.c.bf16 %v611_v24, %v611_v24 }
 0x157   : > { %729 = vst.msk [vmem:[%s960_s4 + $0x8] sm:$0xf] %vm571_vm9, %v598_v23 }
 0x158   : > { %732 = vst.msk [vmem:[%s960_s4 + $0xc] sm:$0xf] %vm571_vm9, %v612_v25 }
 0x159 PF: > { %s14_s17 = sadd.s32 1, %s828_s17   ;;  %s961_s15 = smov %s824_s16 }
 0x15a   : > { %p11_p7 = scmp.ge.s32.totalorder %s14_s17, 4   ;;  %s962_s16 = smov %s964_s18 }
 0x15c   :  { %13 = sbr.rel (!%p11_p7) target bundleno = 2 (0x2), region = 96 }

// kernel: autoencoder_forward.18
= control target key start
LH: loop header
LB: loop body
LE: loop exit
PB: predicated region body
PF: predicated region fallthrough
CT: control target
= control target key end

     0   :  { %s1303_s15 = smov 0   ;;  %s1305_s16 = smov 0   ;;  %s1613_s0 = inlined_call_operand.vmem [shape: bf16[32,16], index: 0, kind: input, shape index: {}]   ;;  %s1614_s1 = inlined_call_operand.vmem [shape: bf16[4,16,8], index: 1, kind: input, shape index: {}]   ;;  %s1615_s2 = inlined_call_operand.vmem [shape: f32[1,8], index: 2, kind: input, shape index: {}]   ;;  %s1616_s3 = inlined_call_operand.vmem [shape: f32[1,8], index: 3, kind: input, shape index: {}]   ;;  %s1617_s4 = inlined_call_operand.vmem [shape: bf16[4,32,8], index: 4, kind: output, shape index: {}]  }
   0x1   :  { %s1307_s17 = smov 0  }
   0x2 LB: > { %s26_s18 = sadd.s32 1, %s1271_s16  ;;  %p1037_p0 = scmp.ge.s32.totalorder %s1275_s17, 1  ;;  %s1275_s17 = sphi %s1307_s17, %s14_s17   ;;  %s1271_s16 = sphi %s1305_s16, %s1619_s16   ;;  %s1267_s15 = sphi %s1303_s15, %s1618_s15  }
   0x3   : > { %p28_p1 = scmp.ge.s32.totalorder %s26_s18, 2  ;;  %p185_p2 = scmp.lt.s32.totalorder %s1275_s17, 3 }
   0x5   : > { %s1621_s18 = smov (%p28_p1, %s26_s18), 0  ;;  %p186_p3 = pnand %p1037_p0, %p185_p2 }
   0x6   : > { %p1038_p4 = scmp.ne.s32.totalorder (!%p186_p3), %s1267_s15, 0 }
   0x7   : > { %189 = sbr.rel (%p186_p3) target bundleno = 375 (0x177), region = 36 }
   0xe   : > { %236 = sbr.rel (%p1038_p4) target bundleno = 288 (0x120), region = 40  ;;  %v1213_v0 = vld [vmem:[%s1614_s1] sm:$0xff] (!%p1038_p4)   ;;  %v1214_v1 = vld [vmem:[%s1614_s1 + $0x8] sm:$0xff] (!%p1038_p4)   ;;  %vm267_vm0 = vcmask (!%p1038_p4), 130048   ;;  %v1217_v4 = vld [vmem:[%s1614_s1 + $0x10] sm:$0xff] (!%p1038_p4)   ;;  %vm241_vm1 = vcmask (!%p1038_p4), 57344  }
   0xf   : > { %1164 = vmatprep.subr.bf16.mxu0 (!%p1038_p4), %v1213_v0  ;;  %v1215_v2 = vld [vmem:[%s1613_s0] sm:$0xff] (!%p1038_p4)   ;;  %1170 = vmatprep.subr.bf16.mxu1 (!%p1038_p4), %v1214_v1  ;;  %v1216_v3 = vld [vmem:[%s1613_s0 + $0x8] sm:$0xff] (!%p1038_p4)   ;;  %v1218_v5 = vld [vmem:[%s1614_s1 + $0x18] sm:$0xff] (!%p1038_p4)   ;;  %v1277_v6 = vmov (!%p1038_p4), 0.0   ;;  %vm324_vm2 = vcmask (!%p1038_p4), 64512  }
  0x10   : > { %1165 = vmatpush3.bf16.msra.mxu0 (!%p1038_p4), %v1213_v0  ;;  %1171 = vmatpush3.bf16.msra.mxu1 (!%p1038_p4), %v1214_v1  ;;  %242 = vst.msk [vmem:[#allocation3] sm:$0x1] (!%p1038_p4), %vm241_vm1, %v1277_v6  ;;  %243 = vst.msk [vmem:[#allocation4] sm:$0x1] (!%p1038_p4), %vm241_vm1, %v1277_v6 }
  0x11   : > { %1166 = vmatprep.mubr.msk.bf16.mxu0 (!%p1038_p4), %vm267_vm0, %v1215_v2  ;;  %1172 = vmatprep.mubr.msk.bf16.mxu1 (!%p1038_p4), %vm267_vm0, %v1215_v2 }
  0x12   : > { %1176 = vmatprep.subr.bf16.mxu0 (!%p1038_p4), %v1217_v4  ;;  %1182 = vmatprep.subr.bf16.mxu1 (!%p1038_p4), %v1218_v5 }
  0x13   : > { %1167 = vmatmul.mubr.msk.bf16.vlgmr.msra.gmra.mrb[0].mxu0 (!%p1038_p4), %vm267_vm0, %v1216_v3  ;;  %1173 = vmatmul.mubr.msk.bf16.vlgmr.msra.gmra.mrb[0].mxu1 (!%p1038_p4), %vm267_vm0, %v1216_v3 }
  0x14   : > { %1177 = vmatpush3.bf16.msra.mxu0 (!%p1038_p4), %v1217_v4  ;;  %1178 = vmatprep.mubr.msk.bf16.mxu0 (!%p1038_p4), %vm267_vm0, %v1215_v2 }
  0x15   : > { %1183 = vmatpush3.bf16.msra.mxu1 %v1218_v5  ;;  %1184 = vmatprep.mubr.msk.bf16.mxu1 %vm267_vm0, %v1215_v2 }
  0x1b   : > { %1179 = vmatmul.mubr.msk.bf16.vlgmr.msra.gmra.mrb[4].mxu0 %vm267_vm0, %v1216_v3  ;;  %1185 = vmatmul.mubr.msk.bf16.vlgmr.msra.gmra.mrb[4].mxu1 %vm267_vm0, %v1216_v3 }
  0xe6   : > { %v1168_v7 = vpop.f32.mrb[0].mxu0  ;;  %v1174_v9 = vpop.f32.mrb[0].mxu1 }
  0xe7   : > { %327 = vst.msk [vmem:[#allocation2 + $0x10] sm:$0xff] %vm324_vm2, %v1168_v7  ;;  %v349_v8 = vmul.f32 %v1168_v7, %v1168_v7  ;;  %v308_v10 = vpop.f32.mrb[1].mxu0  ;;  %v333_v11 = vsel %vm324_vm2, %v1168_v7, 0.0  ;;  %1051 = vst.msk [vmem:[#allocation2 + $0x30] sm:$0xff] %vm324_vm2, %v1174_v9  ;;  %v409_v12 = vpop.f32.mrb[1].mxu1  ;;  %v434_v14 = vsel %vm324_vm2, %v1174_v9, 0.0  ;;  %v449_v15 = vmul.f32 %v1174_v9, %v1174_v9 }
  0xe8   : > { %325 = vst.msk [vmem:[#allocation2] sm:$0xff] %vm324_vm2, %v308_v10  ;;  %v1169_v13 = vpop.f32.mrb[2].mxu0  ;;  %v347_v16 = vmul.f32 %v308_v10, %v308_v10  ;;  %1049 = vst.msk [vmem:[#allocation2 + $0x20] sm:$0xff] %vm324_vm2, %v409_v12  ;;  %v447_v17 = vmul.f32 %v409_v12, %v409_v12  ;;  %v1175_v18 = vpop.f32.mrb[2].mxu1  ;;  %v330_v21 = vsel %vm324_vm2, %v308_v10, 0.0  ;;  %v431_v22 = vsel %vm324_vm2, %v409_v12, 0.0 }
  0xe9   : > { %328 = vst.msk [vmem:[#allocation2 + $0x18] sm:$0xff] %vm324_vm2, %v1169_v13  ;;  %v311_v19 = vpop.f32.mrb[3].mxu0  ;;  %v354_v20 = vsel %vm324_vm2, %v349_v8, 0.0  ;;  %v335_v23 = vsel %vm324_vm2, %v1169_v13, 0.0  ;;  %1052 = vst.msk [vmem:[#allocation2 + $0x38] sm:$0xff] %vm324_vm2, %v1175_v18  ;;  %v412_v24 = vpop.f32.mrb[3].mxu1  ;;  %v350_v25 = vmul.f32 %v1169_v13, %v1169_v13  ;;  %v450_v26 = vmul.f32 %v1175_v18, %v1175_v18 }
  0xea   : > { %326 = vst.msk [vmem:[#allocation2 + $0x8] sm:$0xff] %vm324_vm2, %v311_v19  ;;  %v331_v27 = vsel %vm324_vm2, %v311_v19, 0.0  ;;  %v348_v28 = vmul.f32 %v311_v19, %v311_v19  ;;  %1050 = vst.msk [vmem:[#allocation2 + $0x28] sm:$0xff] %vm324_vm2, %v412_v24  ;;  %v451_v29 = vsel %vm324_vm2, %v447_v17, 0.0  ;;  %v432_v31 = vsel %vm324_vm2, %v412_v24, 0.0 }
  0xeb   : > { %v332_v30 = vadd.f32 %v331_v27, %v330_v21  ;;  %v448_v32 = vmul.f32 %v412_v24, %v412_v24  ;;  %v454_v33 = vsel %vm324_vm2, %v449_v15, 0.0  ;;  %v351_v34 = vsel %vm324_vm2, %v347_v16, 0.0  ;;  %v329_v27 = vld [vmem:[#allocation3] sm:$0x1] }
  0xec   : > { %v352_v35 = vsel %vm324_vm2, %v348_v28, 0.0  ;;  %v433_v36 = vadd.f32 %v432_v31, %v431_v22  ;;  %v436_v37 = vsel %vm324_vm2, %v1175_v18, 0.0  ;;  %v356_v42 = vsel %vm324_vm2, %v350_v25, 0.0 }
  0xed   : > { %v334_v38 = vadd.f32 %v333_v11, %v332_v30  ;;  %v353_v39 = vadd.f32 %v352_v35, %v351_v34  ;;  %v452_v40 = vsel %vm324_vm2, %v448_v32, 0.0  ;;  %v456_v43 = vsel %vm324_vm2, %v450_v26, 0.0  ;;  %v346_v34 = vld [vmem:[#allocation4] sm:$0x1] }
  0xee   : > { %v1180_v41 = vpop.f32.mrb[4].mxu0  ;;  %v435_v44 = vadd.f32 %v434_v14, %v433_v36  ;;  %v453_v45 = vadd.f32 %v452_v40, %v451_v29  ;;  %v1186_v47 = vpop.f32.mrb[4].mxu1 }
  0xef   : > { %1060 = vst.msk [vmem:[#allocation2 + $0x50] sm:$0xff] %vm324_vm2, %v1180_v41  ;;  %v509_v46 = vpop.f32.mrb[5].mxu0  ;;  %v336_v48 = vadd.f32 %v335_v23, %v334_v38  ;;  %v355_v49 = vadd.f32 %v354_v20, %v353_v39  ;;  %v549_v50 = vmul.f32 %v1180_v41, %v1180_v41  ;;  %1069 = vst.msk [vmem:[#allocation2 + $0x70] sm:$0xff] %vm324_vm2, %v1186_v47  ;;  %v609_v53 = vpop.f32.mrb[5].mxu1  ;;  %v534_v56 = vsel %vm324_vm2, %v1180_v41, 0.0 }
  0xf0   : > { %1058 = vst.msk [vmem:[#allocation2 + $0x40] sm:$0xff] %vm324_vm2, %v509_v46  ;;  %v547_v51 = vmul.f32 %v509_v46, %v509_v46  ;;  %v1181_v52 = vpop.f32.mrb[6].mxu0  ;;  %v437_v54 = vadd.f32 %v436_v37, %v435_v44  ;;  %v455_v55 = vadd.f32 %v454_v33, %v453_v45  ;;  %v531_v57 = vsel %vm324_vm2, %v509_v46, 0.0  ;;  %1067 = vst.msk [vmem:[#allocation2 + $0x60] sm:$0xff] %vm324_vm2, %v609_v53  ;;  %v1187_v59 = vpop.f32.mrb[6].mxu1 }
  0xf1   : > { %1061 = vst.msk [vmem:[#allocation2 + $0x58] sm:$0xff] %vm324_vm2, %v1181_v52  ;;  %v512_v58 = vpop.f32.mrb[7].mxu0  ;;  %v337_v60 = vrot.slane %v336_v48, 4  ;;  %v357_v61 = vadd.f32 %v356_v42, %v355_v49  ;;  %v550_v63 = vmul.f32 %v1181_v52, %v1181_v52  ;;  %1070 = vst.msk [vmem:[#allocation2 + $0x78] sm:$0xff] %vm324_vm2, %v1187_v59  ;;  %v612_v0 = vpop.f32.mrb[7].mxu1  ;;  %v554_v7 = vsel %vm324_vm2, %v549_v50, 0.0 }
  0xf2   : > { %v551_v62 = vsel %vm324_vm2, %v547_v51, 0.0  ;;  %1059 = vst.msk [vmem:[#allocation2 + $0x48] sm:$0xff] %vm324_vm2, %v512_v58  ;;  %v438_v1 = vrot.slane %v437_v54, 4  ;;  %v457_v2 = vadd.f32 %v456_v43, %v455_v55  ;;  %v532_v3 = vsel %vm324_vm2, %v512_v58, 0.0  ;;  %1068 = vst.msk [vmem:[#allocation2 + $0x68] sm:$0xff] %vm324_vm2, %v612_v0 }
  0xf3   : > { %v548_v4 = vmul.f32 %v512_v58, %v512_v58  ;;  %v338_v5 = vadd.f32 %v337_v60, %v336_v48  ;;  %v358_v6 = vrot.slane %v357_v61, 4  ;;  %v533_v8 = vadd.f32 %v532_v3, %v531_v57 }
  0xf4   : > { %v439_v9 = vadd.f32 %v438_v1, %v437_v54  ;;  %v458_v10 = vrot.slane %v457_v2, 4  ;;  %v536_v11 = vsel %vm324_vm2, %v1181_v52, 0.0  ;;  %v556_v18 = vsel %vm324_vm2, %v550_v63, 0.0 }
  0xf5   : > { %v552_v12 = vsel %vm324_vm2, %v548_v4, 0.0  ;;  %v339_v13 = vrot.slane %v338_v5, 2  ;;  %v359_v14 = vadd.f32 %v358_v6, %v357_v61  ;;  %v535_v15 = vadd.f32 %v534_v56, %v533_v8 }
  0xf6   : > { %v553_v16 = vadd.f32 %v552_v12, %v551_v62  ;;  %v459_v17 = vadd.f32 %v458_v10, %v457_v2  ;;  %v440_v25 = vrot.slane %v439_v9, 2  ;;  %v631_v28 = vsel %vm324_vm2, %v609_v53, 0.0 }
  0xf7   : > { %v340_v19 = vadd.f32 %v339_v13, %v338_v5  ;;  %v360_v20 = vrot.slane %v359_v14, 2  ;;  %v537_v21 = vadd.f32 %v536_v11, %v535_v15  ;;  %v647_v29 = vmul.f32 %v609_v53, %v609_v53 }
  0xf8   : > { %v555_v22 = vadd.f32 %v554_v7, %v553_v16  ;;  %v460_v32 = vrot.slane %v459_v17, 2  ;;  %v634_v35 = vsel %vm324_vm2, %v1186_v47, 0.0  ;;  %v649_v36 = vmul.f32 %v1186_v47, %v1186_v47 }
  0xf9   : > { %v341_v23 = vrot.slane %v340_v19, 1  ;;  %v361_v24 = vadd.f32 %v360_v20, %v359_v14  ;;  %v538_v33 = vrot.slane %v537_v21, 4  ;;  %v632_v37 = vsel %vm324_vm2, %v612_v0, 0.0 }
  0xfa   : > { %v557_v26 = vadd.f32 %v556_v18, %v555_v22  ;;  %v441_v40 = vadd.f32 %v440_v25, %v439_v9  ;;  %v651_v42 = vsel %vm324_vm2, %v647_v29, 0.0  ;;  %v650_v43 = vmul.f32 %v1187_v59, %v1187_v59 }
  0xfb   : > { %v342_v30 = vadd.f32 %v341_v23, %v340_v19  ;;  %v362_v31 = vrot.slane %v361_v24, 1  ;;  %v633_v44 = vadd.f32 %v632_v37, %v631_v28  ;;  %v648_v45 = vmul.f32 %v612_v0, %v612_v0 }
  0xfc   : > { %v558_v41 = vrot.slane %v557_v26, 4  ;;  %v461_v48 = vadd.f32 %v460_v32, %v459_v17  ;;  %v539_v49 = vadd.f32 %v538_v33, %v537_v21  ;;  %v636_v50 = vsel %vm324_vm2, %v1187_v59, 0.0 }
  0xfd   : > { %v343_v38 = vadd.f32 %v342_v30, %v329_v27  ;;  %v363_v39 = vadd.f32 %v362_v31, %v361_v24  ;;  %v654_v47 = vsel %vm324_vm2, %v649_v36, 0.0  ;;  %v635_v51 = vadd.f32 %v634_v35, %v633_v44 }
  0xfe   : > { %v652_v52 = vsel %vm324_vm2, %v648_v45, 0.0  ;;  %v442_v53 = vrot.slane %v441_v40, 1  ;;  %v559_v54 = vadd.f32 %v558_v41, %v557_v26  ;;  %v656_v56 = vsel %vm324_vm2, %v650_v43, 0.0 }
  0xff   : > { %345 = vst.msk [vmem:[#allocation3] sm:$0x1] %vm241_vm1, %v343_v38  ;;  %v364_v46 = vadd.f32 %v363_v39, %v346_v34  ;;  %v653_v55 = vadd.f32 %v652_v52, %v651_v42  ;;  %v637_v57 = vadd.f32 %v636_v50, %v635_v51  ;;  %v462_v58 = vrot.slane %v461_v48, 1 }
 0x100   : > { %v540_v60 = vrot.slane %v539_v49, 2  ;;  %v443_v62 = vadd.f32 %v442_v53, %v441_v40  ;;  %v560_v63 = vrot.slane %v559_v54, 2 }
 0x101   : > { %365 = vst.msk [vmem:[#allocation4] sm:$0x1] %vm241_vm1, %v364_v46  ;;  %v655_v61 = vadd.f32 %v654_v47, %v653_v55  ;;  %v638_v0 = vrot.slane %v637_v57, 4  ;;  %v463_v3 = vadd.f32 %v462_v58, %v461_v48 }
 0x102   : > { %v541_v4 = vadd.f32 %v540_v60, %v539_v49  ;;  %v561_v8 = vadd.f32 %v560_v63, %v559_v54 }
 0x103   : > { %v657_v59 = vadd.f32 %v656_v56, %v655_v61  ;;  %v639_v9 = vadd.f32 %v638_v0, %v637_v57 }
 0x104   : > { %v542_v10 = vrot.slane %v541_v4, 1  ;;  %v562_v12 = vrot.slane %v561_v8, 1 }
 0x105   : > { %v658_v5 = vrot.slane %v657_v59, 4  ;;  %v640_v13 = vrot.slane %v639_v9, 2 }
 0x106   : > { %v430_v1 = vld [vmem:[#allocation3] sm:$0x1]  ;;  %v543_v14 = vadd.f32 %v542_v10, %v541_v4  ;;  %v563_v18 = vadd.f32 %v562_v12, %v561_v8 }
 0x107   : > { %v444_v2 = vadd.f32 %v443_v62, %v430_v1  ;;  %v659_v11 = vadd.f32 %v658_v5, %v657_v59  ;;  %v641_v19 = vadd.f32 %v640_v13, %v639_v9 }
 0x108   : > { %v446_v6 = vld [vmem:[#allocation4] sm:$0x1] }
 0x109   : > { %445 = vst.msk [vmem:[#allocation3] sm:$0x1] %vm241_vm1, %v444_v2  ;;  %v464_v7 = vadd.f32 %v463_v3, %v446_v6  ;;  %v660_v15 = vrot.slane %v659_v11, 2  ;;  %v642_v23 = vrot.slane %v641_v19, 1 }
 0x10b   : > { %465 = vst.msk [vmem:[#allocation4] sm:$0x1] %vm241_vm1, %v464_v7  ;;  %v661_v22 = vadd.f32 %v660_v15, %v659_v11  ;;  %v643_v25 = vadd.f32 %v642_v23, %v641_v19 }
 0x10d   : > { %v662_v24 = vrot.slane %v661_v22, 1 }
 0x10f   : > { %v663_v28 = vadd.f32 %v662_v24, %v661_v22 }
 0x110   : > { %v530_v16 = vld [vmem:[#allocation3] sm:$0x1] }
 0x111   : > { %v544_v17 = vadd.f32 %v543_v14, %v530_v16 }
 0x112   : > { %v546_v20 = vld [vmem:[#allocation4] sm:$0x1] }
 0x113   : > { %545 = vst.msk [vmem:[#allocation3] sm:$0x1] %vm241_vm1, %v544_v17  ;;  %v564_v21 = vadd.f32 %v563_v18, %v546_v20 }
 0x115   : > { %565 = vst.msk [vmem:[#allocation4] sm:$0x1] %vm241_vm1, %v564_v21 }
 0x11a   : > { %v630_v26 = vld [vmem:[#allocation3] sm:$0x1] }
 0x11b   : > { %v644_v27 = vadd.f32 %v643_v25, %v630_v26 }
 0x11c   : > { %v646_v29 = vld [vmem:[#allocation4] sm:$0x1] }
 0x11d   : > { %645 = vst.msk [vmem:[#allocation3] sm:$0x1] %vm241_vm1, %v644_v27  ;;  %v664_v30 = vadd.f32 %v663_v28, %v646_v29 }
 0x11f   : > { %665 = vst.msk [vmem:[#allocation4] sm:$0x1] %vm241_vm1, %v664_v30 }
 0x120 PF: > { %p666_p5 = scmp.eq.s32.totalorder %s1267_s15, 1 }
 0x121   : > { %v679_v39 = vld [vmem:[%s1615_s2] sm:$0x1] (%p666_p5)  ;;  %vm683_vm3 = vcmask (%p666_p5), 57344  }
 0x122   : > { %671 = sbr.rel (!%p666_p5) target bundleno = 321 (0x141), region = 48  ;;  %v685_v42 = vld [vmem:[%s1616_s3] sm:$0x1] (%p666_p5) }
 0x124   : > { %v672_v31 = vld [vmem:[#allocation3] sm:$0x1] (%p666_p5) }
 0x125   : > { %v673_v33 = vmul.f32 (%p666_p5), 0.0078125, %v672_v31 }
 0x126   : > { %v674_v32 = vld [vmem:[#allocation4] sm:$0x1] (%p666_p5) }
 0x127   : > { %v675_v34 = vmul.f32 (%p666_p5), 0.0078125, %v674_v32  ;;  %v676_v35 = vmul.f32 (%p666_p5), %v673_v33, %v673_v33 }
 0x129   : > { %v677_v36 = vsub.f32 %v675_v34, %v676_v35 }
 0x12b   : > { %v678_v37 = vmax.f32 %v677_v36, 0.0 }
 0x12d   : > { %v680_v38 = vadd.f32 1e-05, %v678_v37 }
 0x12f   : > { %1219 = vrsqrt.f32 %v680_v38 }
 0x139   : > { %v1220_v40 = vpop.eup %1219 }
 0x13a   : > { %v682_v41 = vmul.f32 %v1220_v40, %v679_v39 }
 0x13c   : > { %684 = vst.msk [vmem:[#allocation5] sm:$0x1] %vm683_vm3, %v682_v41  ;;  %v686_v43 = vmul.f32 %v682_v41, %v673_v33 }
 0x13e   : > { %v687_v44 = vsub.f32 %v685_v42, %v686_v43 }
 0x140   : > { %688 = vst.msk [vmem:[#allocation6] sm:$0x1] %vm683_vm3, %v687_v44 }
 0x141 PF: > { %p1072_p6 = scmp.ne.s32.totalorder %s1267_s15, 1 }
 0x142   : > { %v696_v48 = vld [vmem:[#allocation2] sm:$0xff] (!%p1072_p6)  ;;  %v697_v50 = vld [vmem:[#allocation2 + $0x8] sm:$0xff] (!%p1072_p6)  ;;  %v698_v47 = vld [vmem:[#allocation2 + $0x10] sm:$0xff] (!%p1072_p6)  ;;  %vm760_vm6 = vcmask (!%p1072_p6), 60416  }
 0x143   : > { %691 = sbr.rel (%p1072_p6) target bundleno = 375 (0x177), region = 52  ;;  %v1416_v45 = vld [vmem:[#allocation5] ss:$0 sm:$0xff] (!%p1072_p6)  ;;  %v699_v51 = vld [vmem:[#allocation2 + $0x18] sm:$0xff] (!%p1072_p6)  ;;  %v1084_v56 = vld [vmem:[#allocation2 + $0x28] sm:$0xff] (!%p1072_p6) }
 0x144   : > { %v706_v49 = vmul.f32 (!%p1072_p6), %v1416_v45, %v696_v48  ;;  %v707_v52 = vmul.f32 (!%p1072_p6), %v1416_v45, %v697_v50  ;;  %v708_v53 = vmul.f32 (!%p1072_p6), %v1416_v45, %v698_v47  ;;  %v709_v54 = vmul.f32 (!%p1072_p6), %v1416_v45, %v699_v51  ;;  %v1083_v55 = vld [vmem:[#allocation2 + $0x20] sm:$0xff] (!%p1072_p6)  ;;  %v1085_v57 = vld [vmem:[#allocation2 + $0x30] sm:$0xff] (!%p1072_p6)  ;;  %v1086_v62 = vld [vmem:[#allocation2 + $0x38] sm:$0xff] (!%p1072_p6) }
 0x145   : > { %v771_v60 = vmul.f32 (!%p1072_p6), %v1083_v55, %v1416_v45  ;;  %v772_v61 = vmul.f32 (!%p1072_p6), %v1084_v56, %v1416_v45  ;;  %v773_v4 = vmul.f32 (!%p1072_p6), %v1085_v57, %v1416_v45  ;;  %v774_v7 = vmul.f32 (!%p1072_p6), %v1086_v62, %v1416_v45  ;;  %v1099_v10 = vld [vmem:[#allocation2 + $0x40] sm:$0xff] (!%p1072_p6)  ;;  %v1100_v20 = vld [vmem:[#allocation2 + $0x48] sm:$0xff] (!%p1072_p6)  ;;  %v1101_v21 = vld [vmem:[#allocation2 + $0x50] sm:$0xff] (!%p1072_p6) }
 0x146   : > { %v830_v19 = vmul.f32 (!%p1072_p6), %v1099_v10, %v1416_v45  ;;  %v1102_v26 = vld [vmem:[#allocation2 + $0x58] sm:$0xff] (!%p1072_p6)  ;;  %v831_v28 = vmul.f32 (!%p1072_p6), %v1100_v20, %v1416_v45  ;;  %v832_v29 = vmul.f32 (!%p1072_p6), %v1101_v21, %v1416_v45  ;;  %v1115_v30 = vld [vmem:[#allocation2 + $0x60] sm:$0xff] (!%p1072_p6)  ;;  %v1116_v31 = vld [vmem:[#allocation2 + $0x68] sm:$0xff] (!%p1072_p6) }
 0x147   : > { %v1418_v46 = vld [vmem:[#allocation6] ss:$0 sm:$0xff] (!%p1072_p6)  ;;  %v833_v36 = vmul.f32 (!%p1072_p6), %v1102_v26, %v1416_v45  ;;  %v889_v38 = vmul.f32 (!%p1072_p6), %v1115_v30, %v1416_v45  ;;  %v890_v39 = vmul.f32 (!%p1072_p6), %v1116_v31, %v1416_v45  ;;  %v1117_v42 = vld [vmem:[#allocation2 + $0x70] sm:$0xff] (!%p1072_p6)  ;;  %v1118_v48 = vld [vmem:[#allocation2 + $0x78] sm:$0xff] (!%p1072_p6) }
 0x148   : > { %v1425_v58 = vadd.f32 (!%p1072_p6), %v1418_v46, %v706_v49  ;;  %v1430_v63 = vadd.f32 (!%p1072_p6), %v1418_v46, %v707_v52  ;;  %v1433_v0 = vadd.f32 (!%p1072_p6), %v1418_v46, %v708_v53  ;;  %v1436_v59 = vadd.f32 (!%p1072_p6), %v1418_v46, %v709_v54 }
 0x149   : > { %v1440_v2 = vadd.f32 (!%p1072_p6), %v1418_v46, %v771_v60  ;;  %v1443_v3 = vadd.f32 (!%p1072_p6), %v1418_v46, %v772_v61  ;;  %v1453_v16 = vadd.f32 (!%p1072_p6), %v1418_v46, %v773_v4  ;;  %v1456_v18 = vadd.f32 (!%p1072_p6), %v1418_v46, %v774_v7 }
 0x14a   : > { %v724_v1 = vmin.f32 %v1425_v58, 0.0  ;;  %v725_v5 = vmin.f32 %v1430_v63, 0.0  ;;  %v726_v6 = vmin.f32 %v1433_v0, 0.0  ;;  %v727_v9 = vmin.f32 %v1436_v59, 0.0 }
 0x14b   : > { %v783_v13 = vmin.f32 %v1440_v2, 0.0  ;;  %v784_v15 = vmin.f32 %v1443_v3, 0.0  ;;  %vm720_vm4 = vcmp.gt.f32.partialorder %v1425_v58, 0.0  ;;  %v785_v23 = vmin.f32 %v1453_v16, 0.0 }
 0x14c   : > { %v728_v8 = vmul.f32 1.442695, %v724_v1  ;;  %v730_v11 = vmul.f32 1.442695, %v725_v5  ;;  %v732_v12 = vmul.f32 1.442695, %v726_v6  ;;  %v1464_v25 = vadd.f32 %v1418_v46, %v830_v19 }
 0x14d   : > { %v734_v14 = vmul.f32 1.442695, %v727_v9  ;;  %v787_v17 = vmul.f32 1.442695, %v783_v13  ;;  %v789_v22 = vmul.f32 1.442695, %v784_v15  ;;  %v1471_v34 = vadd.f32 %v1418_v46, %v831_v28 }
 0x14e   : > { %1221 = vpow2.f32 %v728_v8  ;;  %vm721_vm5 = vcmp.gt.f32.partialorder %v1430_v63, 0.0  ;;  %v786_v24 = vmin.f32 %v1456_v18, 0.0  ;;  %v791_v27 = vmul.f32 1.442695, %v785_v23 }
 0x14f   : > { %1223 = vpow2.f32 %v730_v11  ;;  %vm722_vm7 = vcmp.gt.f32.partialorder %v1433_v0, 0.0  ;;  %v842_v33 = vmin.f32 %v1464_v25, 0.0  ;;  %v1474_v35 = vadd.f32 %v1418_v46, %v832_v29 }
 0x150   : > { %1225 = vpow2.f32 %v732_v12  ;;  %v793_v32 = vmul.f32 1.442695, %v786_v24  ;;  %vm723_vm8 = vcmp.gt.f32.partialorder %v1436_v59, 0.0  ;;  %vm779_vm9 = vcmp.gt.f32.partialorder %v1440_v2, 0.0 }
 0x151   : > { %1227 = vpow2.f32 %v734_v14  ;;  %v846_v37 = vmul.f32 1.442695, %v842_v33  ;;  %v843_v40 = vmin.f32 %v1471_v34, 0.0  ;;  %v844_v41 = vmin.f32 %v1474_v35, 0.0 }
 0x152   : > { %1229 = vpow2.f32 %v787_v17  ;;  %vm780_vm10 = vcmp.gt.f32.partialorder %v1443_v3, 0.0  ;;  %v1485_v43 = vadd.f32 %v1418_v46, %v833_v36  ;;  %v1488_v44 = vadd.f32 %v1418_v46, %v889_v38 }
 0x153   : > { %1231 = vpow2.f32 %v789_v22  ;;  %vm781_vm11 = vcmp.gt.f32.partialorder %v1453_v16, 0.0  ;;  %vm782_vm12 = vcmp.gt.f32.partialorder %v1456_v18, 0.0  ;;  %v848_v50 = vmul.f32 1.442695, %v843_v40 }
 0x154   : > { %1233 = vpow2.f32 %v791_v27  ;;  %v850_v47 = vmul.f32 1.442695, %v844_v41  ;;  %vm838_vm13 = vcmp.gt.f32.partialorder %v1464_v25, 0.0  ;;  %v845_v53 = vmin.f32 %v1485_v43, 0.0 }
 0x155   : > { %1235 = vpow2.f32 %v793_v32  ;;  %v1495_v54 = vadd.f32 %v1418_v46, %v890_v39  ;;  %v891_v55 = vmul.f32 %v1117_v42, %v1416_v45  ;;  %v901_v60 = vmin.f32 %v1488_v44, 0.0 }
 0x156   : > { %1237 = vpow2.f32 %v846_v37  ;;  %v892_v61 = vmul.f32 %v1118_v48, %v1416_v45  ;;  %v852_v5 = vmul.f32 1.442695, %v845_v53  ;;  %vm839_vm14 = vcmp.gt.f32.partialorder %v1471_v34, 0.0 }
 0x157   : > { %1239 = vpow2.f32 %v848_v50  ;;  %v905_v10 = vmul.f32 1.442695, %v901_v60  ;;  %v902_v21 = vmin.f32 %v1495_v54, 0.0  ;;  %v895_v24 = vadd.f32 %v1418_v46, %v891_v55 }
 0x158   : > { %v1222_v49 = vpop.eup %1221  ;;  %1241 = vpow2.f32 %v850_v47  ;;  %v896_v29 = vadd.f32 %v1418_v46, %v892_v61  ;;  %vm840_vm15 = vcmp.gt.f32.partialorder %v1474_v35, 0.0  ;;  %vm841_vm0 = vcmp.gt.f32.partialorder %v1485_v43, 0.0 }
 0x159   : > { %v1224_v51 = vpop.eup %1223  ;;  %v1075_v52 = vadd.f32 -1.0, %v1222_v49  ;;  %1243 = vpow2.f32 %v852_v5  ;;  %v907_v28 = vmul.f32 1.442695, %v902_v21  ;;  %v903_v32 = vmin.f32 %v895_v24, 0.0 }
 0x15a   : > { %v1226_v56 = vpop.eup %1225  ;;  %v1076_v57 = vadd.f32 -1.0, %v1224_v51  ;;  %1245 = vpow2.f32 %v905_v10  ;;  %vm897_vm1 = vcmp.gt.f32.partialorder %v1488_v44, 0.0  ;;  %vm898_vm2 = vcmp.gt.f32.partialorder %v1495_v54, 0.0 }
 0x15b   : > { %v1228_v62 = vpop.eup %1227  ;;  %v740_v1 = vsel %vm720_vm4, %v1425_v58, %v1075_v52  ;;  %v1077_v4 = vadd.f32 -1.0, %v1226_v56  ;;  %1247 = vpow2.f32 %v907_v28  ;;  %v909_v39 = vmul.f32 1.442695, %v903_v32 }
 0x15c   : > { %v1230_v6 = vpop.eup %1229  ;;  %v1136_v7 = vpack.c.bf16 %v740_v1, %v740_v1  ;;  %v741_v8 = vsel %vm721_vm5, %v1430_v63, %v1076_v57  ;;  %v1078_v9 = vadd.f32 -1.0, %v1228_v62  ;;  %vm899_vm3 = vcmp.gt.f32.partialorder %v895_v24, 0.0 }
 0x15d   : > { %v1232_v11 = vpop.eup %1231  ;;  %v1137_v12 = vpack.c.bf16 %v741_v8, %v741_v8  ;;  %v742_v45 = vsel %vm722_vm7, %v1433_v0, %v1077_v4  ;;  %v1087_v13 = vadd.f32 -1.0, %v1230_v6  ;;  %1249 = vpow2.f32 %v909_v39 }
 0x15e   : > { %v1234_v58 = vpop.eup %1233  ;;  %761 = vst.msk [vmem:[%s1617_s4] sm:$0xf] %vm760_vm6, %v1136_v7  ;;  %v1138_v14 = vpack.c.bf16 %v742_v45, %v742_v45  ;;  %v743_v63 = vsel %vm723_vm8, %v1436_v59, %v1078_v9  ;;  %v1088_v15 = vadd.f32 -1.0, %v1232_v11  ;;  %vm900_vm4 = vcmp.gt.f32.partialorder %v896_v29, 0.0 }
 0x15f   : > { %v1236_v17 = vpop.eup %1235  ;;  %762 = vst.msk [vmem:[%s1617_s4 + $0x4] sm:$0xf] %vm760_vm6, %v1137_v12  ;;  %v1139_v0 = vpack.c.bf16 %v743_v63, %v743_v63  ;;  %v799_v19 = vsel %vm779_vm9, %v1440_v2, %v1087_v13  ;;  %v1089_v20 = vadd.f32 -1.0, %v1234_v58 }
 0x160   : > { %763 = vst.msk [vmem:[%s1617_s4 + $0x8] sm:$0xf] %vm760_vm6, %v1138_v14  ;;  %v1140_v59 = vpack.c.bf16 %v799_v19, %v799_v19  ;;  %v800_v22 = vsel %vm780_vm10, %v1443_v3, %v1088_v15  ;;  %v1090_v23 = vadd.f32 -1.0, %v1236_v17  ;;  %v1238_v26 = vpop.eup %1237 }
 0x161   : > { %764 = vst.msk [vmem:[%s1617_s4 + $0xc] sm:$0xf] %vm760_vm6, %v1139_v0  ;;  %v1141_v2 = vpack.c.bf16 %v800_v22, %v800_v22  ;;  %v801_v27 = vsel %vm781_vm11, %v1453_v16, %v1089_v20  ;;  %v1103_v31 = vadd.f32 -1.0, %v1238_v26  ;;  %v1240_v46 = vpop.eup %1239 }
 0x162   : > { %1095 = vst.msk [vmem:[%s1617_s4 + $0x10] sm:$0xf] %vm760_vm6, %v1140_v59  ;;  %v1142_v3 = vpack.c.bf16 %v801_v27, %v801_v27  ;;  %v802_v30 = vsel %vm782_vm12, %v1456_v18, %v1090_v23  ;;  %v904_v18 = vmin.f32 %v896_v29, 0.0  ;;  %v1242_v36 = vpop.eup %1241  ;;  %v1104_v38 = vadd.f32 -1.0, %v1240_v46 }
 0x163   : > { %1096 = vst.msk [vmem:[%s1617_s4 + $0x14] sm:$0xf] %vm760_vm6, %v1141_v2  ;;  %v1143_v16 = vpack.c.bf16 %v802_v30, %v802_v30  ;;  %v858_v33 = vsel %vm838_vm13, %v1464_v25, %v1103_v31  ;;  %v1105_v40 = vadd.f32 -1.0, %v1242_v36  ;;  %v1244_v42 = vpop.eup %1243 }
 0x164   : > { %1097 = vst.msk [vmem:[%s1617_s4 + $0x18] sm:$0xf] %vm760_vm6, %v1142_v3  ;;  %v1144_v37 = vpack.c.bf16 %v858_v33, %v858_v33  ;;  %v911_v41 = vmul.f32 1.442695, %v904_v18  ;;  %v859_v25 = vsel %vm839_vm14, %v1471_v34, %v1104_v38  ;;  %v1246_v48 = vpop.eup %1245  ;;  %v1106_v47 = vadd.f32 -1.0, %v1244_v42 }
 0x165   : > { %1098 = vst.msk [vmem:[%s1617_s4 + $0x1c] sm:$0xf] %vm760_vm6, %v1143_v16  ;;  %v1145_v49 = vpack.c.bf16 %v859_v25, %v859_v25  ;;  %v860_v50 = vsel %vm840_vm15, %v1474_v35, %v1105_v40  ;;  %v1119_v52 = vadd.f32 -1.0, %v1246_v48  ;;  %v1248_v56 = vpop.eup %1247 }
 0x166   : > { %1111 = vst.msk [vmem:[%s1617_s4 + $0x20] sm:$0xf] %vm760_vm6, %v1144_v37  ;;  %1251 = vpow2.f32 %v911_v41  ;;  %v1146_v51 = vpack.c.bf16 %v860_v50, %v860_v50  ;;  %v861_v34 = vsel %vm841_vm0, %v1485_v43, %v1106_v47  ;;  %v1120_v43 = vadd.f32 -1.0, %v1248_v56 }
 0x167   : > { %1112 = vst.msk [vmem:[%s1617_s4 + $0x24] sm:$0xf] %vm760_vm6, %v1145_v49  ;;  %v1147_v53 = vpack.c.bf16 %v861_v34, %v861_v34  ;;  %v917_v55 = vsel %vm897_vm1, %v1488_v44, %v1119_v52  ;;  %v1250_v60 = vpop.eup %1249 }
 0x168   : > { %1113 = vst.msk [vmem:[%s1617_s4 + $0x28] sm:$0xf] %vm760_vm6, %v1146_v51  ;;  %v1148_v35 = vpack.c.bf16 %v917_v55, %v917_v55  ;;  %v918_v57 = vsel %vm898_vm2, %v1495_v54, %v1120_v43  ;;  %v1121_v62 = vadd.f32 -1.0, %v1250_v60 }
 0x169   : > { %1114 = vst.msk [vmem:[%s1617_s4 + $0x2c] sm:$0xf] %vm760_vm6, %v1147_v53  ;;  %v1149_v61 = vpack.c.bf16 %v918_v57, %v918_v57 }
 0x16a   : > { %1127 = vst.msk [vmem:[%s1617_s4 + $0x30] sm:$0xf] %vm760_vm6, %v1148_v35  ;;  %v919_v4 = vsel %vm899_vm3, %v895_v24, %v1121_v62 }
 0x16b   : > { %1128 = vst.msk [vmem:[%s1617_s4 + $0x34] sm:$0xf] %vm760_vm6, %v1149_v61  ;;  %v1150_v5 = vpack.c.bf16 %v919_v4, %v919_v4 }
 0x16d   : > { %1129 = vst.msk [vmem:[%s1617_s4 + $0x38] sm:$0xf] %vm760_vm6, %v1150_v5 }
 0x170   : > { %v1252_v44 = vpop.eup %1251 }
 0x171   : > { %v1122_v1 = vadd.f32 -1.0, %v1252_v44 }
 0x173   : > { %v920_v6 = vsel %vm900_vm4, %v896_v29, %v1122_v1 }
 0x174   : > { %v1151_v7 = vpack.c.bf16 %v920_v6, %v920_v6 }
 0x176   : > { %1130 = vst.msk [vmem:[%s1617_s4 + $0x3c] sm:$0xf] %vm760_vm6, %v1151_v7 }
 0x177 PF: > { %s14_s17 = sadd.s32 1, %s1275_s17   ;;  %s1618_s15 = smov %s1271_s16 }
 0x178   : > { %p11_p7 = scmp.ge.s32.totalorder %s14_s17, 4   ;;  %s1619_s16 = smov %s1621_s18 }
 0x17a   :  { %13 = sbr.rel (!%p11_p7) target bundleno = 2 (0x2), region = 96 }

// kernel: autoencoder_forward.20
= control target key start
LH: loop header
LB: loop body
LE: loop exit
PB: predicated region body
PF: predicated region fallthrough
CT: control target
= control target key end

     0   :  { %s2950_s15 = smov 0   ;;  %s2952_s16 = smov 0   ;;  %s4295_s0 = inlined_call_operand.vmem [shape: bf16[128,8], index: 0, kind: input, shape index: {}]   ;;  %s4296_s1 = inlined_call_operand.vmem [shape: bf16[4,8,8], index: 1, kind: input, shape index: {}]   ;;  %s4297_s2 = inlined_call_operand.vmem [shape: f32[1,8], index: 2, kind: input, shape index: {}]   ;;  %s4298_s3 = inlined_call_operand.vmem [shape: f32[1,8], index: 3, kind: input, shape index: {}]   ;;  %s4299_s4 = inlined_call_operand.vmem [shape: bf16[4,128,8], index: 4, kind: output, shape index: {}]  }
   0x1   :  { %s2954_s17 = smov 0  }
   0x2 LB: > { %s26_s18 = sadd.s32 1, %s2918_s16  ;;  %p2233_p0 = scmp.ge.s32.totalorder %s2922_s17, 1  ;;  %s2922_s17 = sphi %s2954_s17, %s14_s17   ;;  %s2918_s16 = sphi %s2952_s16, %s4301_s16   ;;  %s2914_s15 = sphi %s2950_s15, %s4300_s15  }
   0x3   : > { %p28_p1 = scmp.ge.s32.totalorder %s26_s18, 2  ;;  %p185_p2 = scmp.lt.s32.totalorder %s2922_s17, 3 }
   0x5   : > { %s4303_s18 = smov (%p28_p1, %s26_s18), 0  ;;  %p186_p3 = pnand %p2233_p0, %p185_p2 }
   0x6   : > { %p2234_p4 = scmp.ne.s32.totalorder (!%p186_p3), %s2914_s15, 0 }
   0x7   : > { %189 = sbr.rel (%p186_p3) target bundleno = 535 (0x217), region = 36 }
   0xe   : > { %236 = sbr.rel (%p2234_p4) target bundleno = 344 (0x158), region = 40  ;;  %v261_v0 = vld [vmem:[%s4296_s1] sm:$0xf] (!%p2234_p4)  ;;  %vm327_vm0 = vcmask (!%p2234_p4), 1043456   ;;  %v2251_v1 = vld [vmem:[%s4296_s1 + $0x4] sm:$0xf] (!%p2234_p4) }
   0xf   : > { %v2760_v2 = vld [vmem:[%s4295_s0] sm:$0xff] (!%p2234_p4)   ;;  %2731 = vmatprep.subr.msk.bf16.mxu0 (!%p2234_p4), %vm327_vm0, %v261_v0  ;;  %2732 = vmatprep.subr.msk.bf16.mxu1 (!%p2234_p4), %vm327_vm0, %v2251_v1  ;;  %v329_v3 = vsel (!%p2234_p4), %vm327_vm0, %v261_v0, 0  ;;  %v545_v4 = vsel (!%p2234_p4), %vm327_vm0, %v2251_v1, 0  ;;  %vm302_vm1 = vcmask (!%p2234_p4), 64512   ;;  %v2761_v5 = vld [vmem:[%s4295_s0 + $0x8] sm:$0xff] (!%p2234_p4)   ;;  %v2762_v8 = vld [vmem:[%s4295_s0 + $0x10] sm:$0xff] (!%p2234_p4)  }
  0x10   : > { %2660 = vmatpush3.bf16.msra.mxu0 (!%p2234_p4), %v329_v3  ;;  %2678 = vmatpush3.bf16.msra.mxu1 (!%p2234_p4), %v545_v4  ;;  %v2276_v6 = vld [vmem:[%s4296_s1 + $0x8] sm:$0xf] (!%p2234_p4)  ;;  %v2301_v9 = vld [vmem:[%s4296_s1 + $0xc] sm:$0xf] (!%p2234_p4)  ;;  %v2763_v11 = vld [vmem:[%s4295_s0 + $0x18] sm:$0xff] (!%p2234_p4)   ;;  %vm241_vm2 = vcmask (!%p2234_p4), 57344  }
  0x11   : > { %2661 = vmatprep.mubr.msk.bf16.mxu0 (!%p2234_p4), %vm302_vm1, %v2760_v2  ;;  %2679 = vmatprep.mubr.msk.bf16.mxu1 (!%p2234_p4), %vm302_vm1, %v2760_v2  ;;  %v761_v7 = vsel (!%p2234_p4), %vm327_vm0, %v2276_v6, 0  ;;  %v977_v10 = vsel (!%p2234_p4), %vm327_vm0, %v2301_v9, 0  ;;  %v2764_v12 = vld [vmem:[%s4295_s0 + $0x20] sm:$0xff] (!%p2234_p4)   ;;  %v2765_v13 = vld [vmem:[%s4295_s0 + $0x28] sm:$0xff] (!%p2234_p4)   ;;  %v2766_v14 = vld [vmem:[%s4295_s0 + $0x30] sm:$0xff] (!%p2234_p4)   ;;  %v2924_v16 = vmov (!%p2234_p4), 0.0  }
  0x12   : > { %2733 = vmatprep.subr.msk.bf16.mxu0 (!%p2234_p4), %vm327_vm0, %v2276_v6  ;;  %2734 = vmatprep.subr.msk.bf16.mxu1 (!%p2234_p4), %vm327_vm0, %v2301_v9  ;;  %v2767_v15 = vld [vmem:[%s4295_s0 + $0x38] sm:$0xff] (!%p2234_p4)   ;;  %242 = vst.msk [vmem:[#allocation3] sm:$0x1] (!%p2234_p4), %vm241_vm2, %v2924_v16  ;;  %243 = vst.msk [vmem:[#allocation4] sm:$0x1] (!%p2234_p4), %vm241_vm2, %v2924_v16 }
  0x13   : > { %2662 = vmatmul.mubr.msk.bf16.vlgmr.msra.gmra.mrb[0].mxu0 (!%p2234_p4), %vm302_vm1, %v2761_v5  ;;  %2680 = vmatmul.mubr.msk.bf16.vlgmr.msra.gmra.mrb[0].mxu1 (!%p2234_p4), %vm302_vm1, %v2761_v5 }
  0x14   : > { %2696 = vmatpush3.bf16.msra.mxu0 (!%p2234_p4), %v761_v7  ;;  %2665 = vmatprep.mubr.msk.bf16.mxu0 (!%p2234_p4), %vm302_vm1, %v2762_v8 }
  0x15   : > { %2683 = vmatprep.mubr.msk.bf16.mxu1 %vm302_vm1, %v2762_v8  ;;  %2714 = vmatpush3.bf16.msra.mxu1 %v977_v10 }
  0x1b   : > { %2666 = vmatmul.mubr.msk.bf16.gmra.mrb[4].mxu0 %vm302_vm1, %v2763_v11  ;;  %2684 = vmatmul.mubr.msk.bf16.gmra.mrb[4].mxu1 %vm302_vm1, %v2763_v11 }
  0x1c   : > { %2669 = vmatprep.mubr.msk.bf16.mxu0 %vm302_vm1, %v2764_v12  ;;  %2687 = vmatprep.mubr.msk.bf16.mxu1 %vm302_vm1, %v2764_v12 }
  0x23   : > { %2670 = vmatmul.mubr.msk.bf16.gmra.mrb[8].mxu0 %vm302_vm1, %v2765_v13  ;;  %2688 = vmatmul.mubr.msk.bf16.gmra.mrb[8].mxu1 %vm302_vm1, %v2765_v13 }
  0x24   : > { %2673 = vmatprep.mubr.msk.bf16.mxu0 %vm302_vm1, %v2766_v14  ;;  %2691 = vmatprep.mubr.msk.bf16.mxu1 %vm302_vm1, %v2766_v14 }
  0x2b   : > { %2674 = vmatmul.mubr.msk.bf16.gmra.mrb[12].mxu0 %vm302_vm1, %v2767_v15  ;;  %2692 = vmatmul.mubr.msk.bf16.gmra.mrb[12].mxu1 %vm302_vm1, %v2767_v15 }
  0x2c   : > { %2697 = vmatprep.mubr.msk.bf16.mxu0 %vm302_vm1, %v2760_v2  ;;  %2715 = vmatprep.mubr.msk.bf16.mxu1 %vm302_vm1, %v2760_v2 }
  0x33   : > { %2698 = vmatmul.mubr.msk.bf16.vlgmr.msra.gmra.mrb[16].mxu0 %vm302_vm1, %v2761_v5  ;;  %2716 = vmatmul.mubr.msk.bf16.vlgmr.msra.gmra.mrb[16].mxu1 %vm302_vm1, %v2761_v5 }
  0x34   : > { %2701 = vmatprep.mubr.msk.bf16.mxu0 %vm302_vm1, %v2762_v8  ;;  %2719 = vmatprep.mubr.msk.bf16.mxu1 %vm302_vm1, %v2762_v8 }
  0x3b   : > { %2702 = vmatmul.mubr.msk.bf16.gmra.mrb[20].mxu0 %vm302_vm1, %v2763_v11  ;;  %2720 = vmatmul.mubr.msk.bf16.gmra.mrb[20].mxu1 %vm302_vm1, %v2763_v11 }
  0x3c   : > { %2705 = vmatprep.mubr.msk.bf16.mxu0 %vm302_vm1, %v2764_v12  ;;  %2723 = vmatprep.mubr.msk.bf16.mxu1 %vm302_vm1, %v2764_v12 }
  0x43   : > { %2706 = vmatmul.mubr.msk.bf16.gmra.mrb[24].mxu0 %vm302_vm1, %v2765_v13  ;;  %2724 = vmatmul.mubr.msk.bf16.gmra.mrb[24].mxu1 %vm302_vm1, %v2765_v13 }
  0x44   : > { %2709 = vmatprep.mubr.msk.bf16.mxu0 %vm302_vm1, %v2766_v14  ;;  %2727 = vmatprep.mubr.msk.bf16.mxu1 %vm302_vm1, %v2766_v14 }
  0x4b   : > { %2710 = vmatmul.mubr.msk.bf16.gmra.mrb[28].mxu0 %vm302_vm1, %v2767_v15  ;;  %2728 = vmatmul.mubr.msk.bf16.gmra.mrb[28].mxu1 %vm302_vm1, %v2767_v15 }
  0xe6   : > { %v2663_v17 = vpop.f32.mrb[0].mxu0  ;;  %v2681_v18 = vpop.f32.mrb[0].mxu1 }
  0xe7   : > { %431 = vst.msk [vmem:[#allocation2 + $0x10] sm:$0xff] %vm302_vm1, %v2663_v17  ;;  %2262 = vst.msk [vmem:[#allocation2 + $0x90] sm:$0xff] %vm302_vm1, %v2681_v18  ;;  %v705_v19 = vmul.f32 %v2681_v18, %v2681_v18  ;;  %v365_v20 = vpop.f32.mrb[1].mxu0  ;;  %v581_v21 = vpop.f32.mrb[1].mxu1  ;;  %v449_v25 = vsel %vm302_vm1, %v2663_v17, 0.0  ;;  %v489_v30 = vmul.f32 %v2663_v17, %v2663_v17  ;;  %v666_v31 = vsel %vm302_vm1, %v2681_v18, 0.0 }
  0xe8   : > { %429 = vst.msk [vmem:[#allocation2] sm:$0xff] %vm302_vm1, %v365_v20  ;;  %2260 = vst.msk [vmem:[#allocation2 + $0x80] sm:$0xff] %vm302_vm1, %v581_v21  ;;  %v703_v22 = vmul.f32 %v581_v21, %v581_v21  ;;  %v2664_v23 = vpop.f32.mrb[2].mxu0  ;;  %v2682_v24 = vpop.f32.mrb[2].mxu1  ;;  %v487_v26 = vmul.f32 %v365_v20, %v365_v20  ;;  %v663_v27 = vsel %vm302_vm1, %v581_v21, 0.0  ;;  %v446_v33 = vsel %vm302_vm1, %v365_v20, 0.0 }
  0xe9   : > { %432 = vst.msk [vmem:[#allocation2 + $0x18] sm:$0xff] %vm302_vm1, %v2664_v23  ;;  %2263 = vst.msk [vmem:[#allocation2 + $0x98] sm:$0xff] %vm302_vm1, %v2682_v24  ;;  %v368_v28 = vpop.f32.mrb[3].mxu0  ;;  %v584_v29 = vpop.f32.mrb[3].mxu1  ;;  %v722_v32 = vsel %vm302_vm1, %v705_v19, 0.0  ;;  %v706_v38 = vmul.f32 %v2682_v24, %v2682_v24  ;;  %v490_v43 = vmul.f32 %v2664_v23, %v2664_v23  ;;  %v668_v44 = vsel %vm302_vm1, %v2682_v24, 0.0 }
  0xea   : > { %430 = vst.msk [vmem:[#allocation2 + $0x8] sm:$0xff] %vm302_vm1, %v368_v28  ;;  %2261 = vst.msk [vmem:[#allocation2 + $0x88] sm:$0xff] %vm302_vm1, %v584_v29  ;;  %v719_v34 = vsel %vm302_vm1, %v703_v22, 0.0  ;;  %v447_v35 = vsel %vm302_vm1, %v368_v28, 0.0  ;;  %v488_v36 = vmul.f32 %v368_v28, %v368_v28  ;;  %v664_v37 = vsel %vm302_vm1, %v584_v29, 0.0 }
  0xeb   : > { %v448_v39 = vadd.f32 %v447_v35, %v446_v33  ;;  %v665_v40 = vadd.f32 %v664_v37, %v663_v27  ;;  %v704_v41 = vmul.f32 %v584_v29, %v584_v29  ;;  %v503_v42 = vsel %vm302_vm1, %v487_v26, 0.0 }
  0xec   : > { %v504_v45 = vsel %vm302_vm1, %v488_v36, 0.0  ;;  %v506_v52 = vsel %vm302_vm1, %v489_v30, 0.0  ;;  %v451_v53 = vsel %vm302_vm1, %v2664_v23, 0.0  ;;  %v724_v57 = vsel %vm302_vm1, %v706_v38, 0.0 }
  0xed   : > { %v450_v46 = vadd.f32 %v449_v25, %v448_v39  ;;  %v505_v47 = vadd.f32 %v504_v45, %v503_v42  ;;  %v667_v48 = vadd.f32 %v666_v31, %v665_v40  ;;  %v720_v49 = vsel %vm302_vm1, %v704_v41, 0.0 }
  0xee   : > { %v2667_v50 = vpop.f32.mrb[4].mxu0  ;;  %v2685_v51 = vpop.f32.mrb[4].mxu1  ;;  %v721_v54 = vadd.f32 %v720_v49, %v719_v34  ;;  %v508_v63 = vsel %vm302_vm1, %v490_v43, 0.0 }
  0xef   : > { %435 = vst.msk [vmem:[#allocation2 + $0x30] sm:$0xff] %vm302_vm1, %v2667_v50  ;;  %2266 = vst.msk [vmem:[#allocation2 + $0xb0] sm:$0xff] %vm302_vm1, %v2685_v51  ;;  %v381_v55 = vpop.f32.mrb[5].mxu0  ;;  %v597_v56 = vpop.f32.mrb[5].mxu1  ;;  %v507_v58 = vadd.f32 %v506_v52, %v505_v47  ;;  %v452_v59 = vadd.f32 %v451_v53, %v450_v46  ;;  %v669_v2 = vadd.f32 %v668_v44, %v667_v48  ;;  %v457_v13 = vsel %vm302_vm1, %v2667_v50, 0.0 }
  0xf0   : > { %433 = vst.msk [vmem:[#allocation2 + $0x20] sm:$0xff] %vm302_vm1, %v381_v55  ;;  %v453_v60 = vsel %vm302_vm1, %v381_v55, 0.0  ;;  %2264 = vst.msk [vmem:[#allocation2 + $0xa0] sm:$0xff] %vm302_vm1, %v597_v56  ;;  %v2668_v61 = vpop.f32.mrb[6].mxu0  ;;  %v2686_v62 = vpop.f32.mrb[6].mxu1  ;;  %v723_v0 = vadd.f32 %v722_v32, %v721_v54  ;;  %v491_v1 = vmul.f32 %v381_v55, %v381_v55  ;;  %v493_v5 = vmul.f32 %v2667_v50, %v2667_v50 }
  0xf1   : > { %436 = vst.msk [vmem:[#allocation2 + $0x38] sm:$0xff] %vm302_vm1, %v2668_v61  ;;  %2267 = vst.msk [vmem:[#allocation2 + $0xb8] sm:$0xff] %vm302_vm1, %v2686_v62  ;;  %v384_v3 = vpop.f32.mrb[7].mxu0  ;;  %v600_v4 = vpop.f32.mrb[7].mxu1  ;;  %v454_v6 = vadd.f32 %v453_v60, %v452_v59  ;;  %v509_v7 = vadd.f32 %v508_v63, %v507_v58  ;;  %v670_v8 = vsel %vm302_vm1, %v597_v56, 0.0  ;;  %v707_v11 = vmul.f32 %v597_v56, %v597_v56 }
  0xf2   : > { %434 = vst.msk [vmem:[#allocation2 + $0x28] sm:$0xff] %vm302_vm1, %v384_v3  ;;  %2265 = vst.msk [vmem:[#allocation2 + $0xa8] sm:$0xff] %vm302_vm1, %v600_v4  ;;  %v510_v9 = vsel %vm302_vm1, %v491_v1, 0.0  ;;  %v671_v10 = vadd.f32 %v670_v8, %v669_v2  ;;  %v725_v12 = vadd.f32 %v724_v57, %v723_v0  ;;  %v674_v14 = vsel %vm302_vm1, %v2685_v51, 0.0 }
  0xf3   : > { %v709_v15 = vmul.f32 %v2685_v51, %v2685_v51  ;;  %v511_v16 = vadd.f32 %v510_v9, %v509_v7  ;;  %v726_v17 = vsel %vm302_vm1, %v707_v11, 0.0  ;;  %v494_v18 = vmul.f32 %v2668_v61, %v2668_v61 }
  0xf4   : > { %v455_v19 = vsel %vm302_vm1, %v384_v3, 0.0  ;;  %v492_v20 = vmul.f32 %v384_v3, %v384_v3  ;;  %v727_v21 = vadd.f32 %v726_v17, %v725_v12  ;;  %v710_v22 = vmul.f32 %v2686_v62, %v2686_v62 }
  0xf5   : > { %v456_v23 = vadd.f32 %v455_v19, %v454_v6  ;;  %v672_v24 = vsel %vm302_vm1, %v600_v4, 0.0  ;;  %v514_v27 = vsel %vm302_vm1, %v493_v5, 0.0  ;;  %v708_v30 = vmul.f32 %v600_v4, %v600_v4 }
  0xf6   : > { %v2671_v25 = vpop.f32.mrb[8].mxu0  ;;  %v2689_v26 = vpop.f32.mrb[8].mxu1  ;;  %v512_v28 = vsel %vm302_vm1, %v492_v20, 0.0  ;;  %v673_v29 = vadd.f32 %v672_v24, %v671_v10  ;;  %v730_v33 = vsel %vm302_vm1, %v709_v15, 0.0  ;;  %v676_v34 = vsel %vm302_vm1, %v2686_v62, 0.0 }
  0xf7   : > { %439 = vst.msk [vmem:[#allocation2 + $0x50] sm:$0xff] %vm302_vm1, %v2671_v25  ;;  %2270 = vst.msk [vmem:[#allocation2 + $0xd0] sm:$0xff] %vm302_vm1, %v2689_v26  ;;  %v397_v31 = vpop.f32.mrb[9].mxu0  ;;  %v613_v32 = vpop.f32.mrb[9].mxu1  ;;  %v458_v35 = vadd.f32 %v457_v13, %v456_v23  ;;  %v513_v36 = vadd.f32 %v512_v28, %v511_v16  ;;  %v459_v39 = vsel %vm302_vm1, %v2668_v61, 0.0  ;;  %v516_v40 = vsel %vm302_vm1, %v494_v18, 0.0 }
  0xf8   : > { %437 = vst.msk [vmem:[#allocation2 + $0x40] sm:$0xff] %vm302_vm1, %v397_v31  ;;  %2268 = vst.msk [vmem:[#allocation2 + $0xc0] sm:$0xff] %vm302_vm1, %v613_v32  ;;  %v3097_v37 = vpop.f32.mrb[10].mxu0  ;;  %v2690_v38 = vpop.f32.mrb[10].mxu1  ;;  %v675_v41 = vadd.f32 %v674_v14, %v673_v29  ;;  %v728_v42 = vsel %vm302_vm1, %v708_v30, 0.0  ;;  %v732_v45 = vsel %vm302_vm1, %v710_v22, 0.0  ;;  %v495_v51 = vmul.f32 %v397_v31, %v397_v31 }
  0xf9   : > { %440 = vst.msk [vmem:[#allocation2 + $0x58] sm:$0xff] %vm302_vm1, %v3097_v37  ;;  %2271 = vst.msk [vmem:[#allocation2 + $0xd8] sm:$0xff] %vm302_vm1, %v2690_v38  ;;  %v400_v43 = vpop.f32.mrb[11].mxu0  ;;  %v616_v44 = vpop.f32.mrb[11].mxu1  ;;  %v515_v46 = vadd.f32 %v514_v27, %v513_v36  ;;  %v729_v47 = vadd.f32 %v728_v42, %v727_v21  ;;  %v460_v48 = vadd.f32 %v459_v39, %v458_v35  ;;  %v465_v49 = vsel %vm302_vm1, %v2671_v25, 0.0 }
  0xfa   : > { %438 = vst.msk [vmem:[#allocation2 + $0x48] sm:$0xff] %vm302_vm1, %v400_v43  ;;  %2269 = vst.msk [vmem:[#allocation2 + $0xc8] sm:$0xff] %vm302_vm1, %v616_v44  ;;  %v461_v50 = vsel %vm302_vm1, %v397_v31, 0.0  ;;  %v677_v52 = vadd.f32 %v676_v34, %v675_v41  ;;  %v678_v56 = vsel %vm302_vm1, %v613_v32, 0.0  ;;  %v497_v57 = vmul.f32 %v2671_v25, %v2671_v25 }
  0xfb   : > { %v731_v53 = vadd.f32 %v730_v33, %v729_v47  ;;  %v462_v54 = vadd.f32 %v461_v50, %v460_v48  ;;  %v517_v55 = vadd.f32 %v516_v40, %v515_v46  ;;  %v518_v58 = vsel %vm302_vm1, %v495_v51, 0.0 }
  0xfc   : > { %v679_v59 = vadd.f32 %v678_v56, %v677_v52  ;;  %v711_v60 = vmul.f32 %v613_v32, %v613_v32  ;;  %v682_v61 = vsel %vm302_vm1, %v2689_v26, 0.0  ;;  %v713_v62 = vmul.f32 %v2689_v26, %v2689_v26 }
  0xfd   : > { %v519_v63 = vadd.f32 %v518_v58, %v517_v55  ;;  %v733_v0 = vadd.f32 %v732_v45, %v731_v53  ;;  %v498_v4 = vmul.f32 %v3097_v37, %v3097_v37  ;;  %v463_v5 = vsel %vm302_vm1, %v400_v43, 0.0 }
  0xfe   : > { %v2675_v1 = vpop.f32.mrb[12].mxu0  ;;  %v2693_v2 = vpop.f32.mrb[12].mxu1  ;;  %v734_v3 = vsel %vm302_vm1, %v711_v60, 0.0  ;;  %v496_v6 = vmul.f32 %v400_v43, %v400_v43  ;;  %v714_v10 = vmul.f32 %v2690_v38, %v2690_v38  ;;  %v464_v11 = vadd.f32 %v463_v5, %v462_v54 }
  0xff   : > { %443 = vst.msk [vmem:[#allocation2 + $0x70] sm:$0xff] %vm302_vm1, %v2675_v1  ;;  %2274 = vst.msk [vmem:[#allocation2 + $0xf0] sm:$0xff] %vm302_vm1, %v2693_v2  ;;  %v413_v7 = vpop.f32.mrb[13].mxu0  ;;  %v629_v8 = vpop.f32.mrb[13].mxu1  ;;  %v735_v9 = vadd.f32 %v734_v3, %v733_v0  ;;  %v680_v12 = vsel %vm302_vm1, %v616_v44, 0.0  ;;  %v522_v15 = vsel %vm302_vm1, %v497_v57, 0.0  ;;  %v712_v18 = vmul.f32 %v616_v44, %v616_v44 }
 0x100   : > { %441 = vst.msk [vmem:[#allocation2 + $0x60] sm:$0xff] %vm302_vm1, %v413_v7  ;;  %2272 = vst.msk [vmem:[#allocation2 + $0xe0] sm:$0xff] %vm302_vm1, %v629_v8  ;;  %v3122_v13 = vpop.f32.mrb[14].mxu0  ;;  %v3124_v14 = vpop.f32.mrb[14].mxu1  ;;  %v520_v16 = vsel %vm302_vm1, %v496_v6, 0.0  ;;  %v681_v17 = vadd.f32 %v680_v12, %v679_v59  ;;  %v738_v21 = vsel %vm302_vm1, %v713_v62, 0.0  ;;  %v466_v23 = vadd.f32 %v465_v49, %v464_v11 }
 0x101   : > { %444 = vst.msk [vmem:[#allocation2 + $0x78] sm:$0xff] %vm302_vm1, %v3122_v13  ;;  %2275 = vst.msk [vmem:[#allocation2 + $0xf8] sm:$0xff] %vm302_vm1, %v3124_v14  ;;  %v416_v19 = vpop.f32.mrb[15].mxu0  ;;  %v632_v20 = vpop.f32.mrb[15].mxu1  ;;  %v684_v22 = vsel %vm302_vm1, %v2690_v38, 0.0  ;;  %v521_v24 = vadd.f32 %v520_v16, %v519_v63  ;;  %v467_v25 = vsel %vm302_vm1, %v3097_v37, 0.0  ;;  %v501_v33 = vmul.f32 %v2675_v1, %v2675_v1 }
 0x102   : > { %442 = vst.msk [vmem:[#allocation2 + $0x68] sm:$0xff] %vm302_vm1, %v416_v19  ;;  %2273 = vst.msk [vmem:[#allocation2 + $0xe8] sm:$0xff] %vm302_vm1, %v632_v20  ;;  %v524_v26 = vsel %vm302_vm1, %v498_v4, 0.0  ;;  %v683_v27 = vadd.f32 %v682_v61, %v681_v17  ;;  %v736_v28 = vsel %vm302_vm1, %v712_v18, 0.0  ;;  %v740_v29 = vsel %vm302_vm1, %v714_v10, 0.0 }
 0x103   : > { %v523_v30 = vadd.f32 %v522_v15, %v521_v24  ;;  %v737_v31 = vadd.f32 %v736_v28, %v735_v9  ;;  %v468_v32 = vadd.f32 %v467_v25, %v466_v23  ;;  %v469_v34 = vsel %vm302_vm1, %v413_v7, 0.0 }
 0x104   : > { %v499_v35 = vmul.f32 %v413_v7, %v413_v7  ;;  %v685_v36 = vadd.f32 %v684_v22, %v683_v27  ;;  %v686_v37 = vsel %vm302_vm1, %v629_v8, 0.0  ;;  %v473_v43 = vsel %vm302_vm1, %v2675_v1, 0.0 }
 0x105   : > { %v739_v38 = vadd.f32 %v738_v21, %v737_v31  ;;  %v470_v39 = vadd.f32 %v469_v34, %v468_v32  ;;  %v525_v40 = vadd.f32 %v524_v26, %v523_v30  ;;  %v715_v46 = vmul.f32 %v629_v8, %v629_v8 }
 0x106   : > { %v2699_v41 = vpop.f32.mrb[16].mxu0  ;;  %v3143_v42 = vpop.f32.mrb[16].mxu1  ;;  %v526_v44 = vsel %vm302_vm1, %v499_v35, 0.0  ;;  %v687_v45 = vadd.f32 %v686_v37, %v685_v36  ;;  %v690_v49 = vsel %vm302_vm1, %v2693_v2, 0.0  ;;  %v717_v50 = vmul.f32 %v2693_v2, %v2693_v2 }
 0x107   : > { %2287 = vst.msk [vmem:[#allocation2 + $0x110] sm:$0xff] %vm302_vm1, %v2699_v41  ;;  %2312 = vst.msk [vmem:[#allocation2 + $0x190] sm:$0xff] %vm302_vm1, %v3143_v42  ;;  %v3150_v47 = vpop.f32.mrb[17].mxu0  ;;  %v3152_v48 = vpop.f32.mrb[17].mxu1  ;;  %v527_v51 = vadd.f32 %v526_v44, %v525_v40  ;;  %v741_v52 = vadd.f32 %v740_v29, %v739_v38  ;;  %v530_v55 = vsel %vm302_vm1, %v501_v33, 0.0  ;;  %v742_v56 = vsel %vm302_vm1, %v715_v46, 0.0 }
 0x108   : > { %2285 = vst.msk [vmem:[#allocation2 + $0x100] sm:$0xff] %vm302_vm1, %v3150_v47  ;;  %2310 = vst.msk [vmem:[#allocation2 + $0x180] sm:$0xff] %vm302_vm1, %v3152_v48  ;;  %v3159_v53 = vpop.f32.mrb[18].mxu0  ;;  %v3161_v54 = vpop.f32.mrb[18].mxu1  ;;  %v471_v57 = vsel %vm302_vm1, %v416_v19, 0.0  ;;  %v500_v58 = vmul.f32 %v416_v19, %v416_v19  ;;  %v502_v62 = vmul.f32 %v3122_v13, %v3122_v13  ;;  %v688_v0 = vsel %vm302_vm1, %v632_v20, 0.0 }
 0x109   : > { %2288 = vst.msk [vmem:[#allocation2 + $0x118] sm:$0xff] %vm302_vm1, %v3159_v53  ;;  %2313 = vst.msk [vmem:[#allocation2 + $0x198] sm:$0xff] %vm302_vm1, %v3161_v54  ;;  %v3170_v59 = vpop.f32.mrb[19].mxu0  ;;  %v3172_v60 = vpop.f32.mrb[19].mxu1  ;;  %v743_v61 = vadd.f32 %v742_v56, %v741_v52  ;;  %v472_v63 = vadd.f32 %v471_v57, %v470_v39  ;;  %v718_v1 = vmul.f32 %v3124_v14, %v3124_v14  ;;  %v746_v5 = vsel %vm302_vm1, %v717_v50, 0.0 }
 0x10a   : > { %2286 = vst.msk [vmem:[#allocation2 + $0x108] sm:$0xff] %vm302_vm1, %v3170_v59  ;;  %2311 = vst.msk [vmem:[#allocation2 + $0x188] sm:$0xff] %vm302_vm1, %v3172_v60  ;;  %v528_v2 = vsel %vm302_vm1, %v500_v58, 0.0  ;;  %v689_v3 = vadd.f32 %v688_v0, %v687_v45  ;;  %v716_v4 = vmul.f32 %v632_v20, %v632_v20  ;;  %v692_v6 = vsel %vm302_vm1, %v3124_v14, 0.0 }
 0x10b   : > { %v474_v7 = vadd.f32 %v473_v43, %v472_v63  ;;  %v529_v8 = vadd.f32 %v528_v2, %v527_v51  ;;  %v475_v9 = vsel %vm302_vm1, %v3122_v13, 0.0  ;;  %v921_v12 = vmul.f32 %v2699_v41, %v2699_v41 }
 0x10c   : > { %v691_v10 = vadd.f32 %v690_v49, %v689_v3  ;;  %v744_v11 = vsel %vm302_vm1, %v716_v4, 0.0  ;;  %v1137_v18 = vmul.f32 %v3143_v42, %v3143_v42  ;;  %v532_v14 = vsel %vm302_vm1, %v502_v62, 0.0 }
 0x10d   : > { %v476_v15 = vadd.f32 %v475_v9, %v474_v7  ;;  %v531_v16 = vadd.f32 %v530_v55, %v529_v8  ;;  %v745_v17 = vadd.f32 %v744_v11, %v743_v61  ;;  %v748_v21 = vsel %vm302_vm1, %v718_v1, 0.0  ;;  %v445_v9 = vld [vmem:[#allocation3] sm:$0x1] }
 0x10e   : > { %v3192_v19 = vpop.f32.mrb[20].mxu0  ;;  %v3194_v20 = vpop.f32.mrb[20].mxu1  ;;  %v693_v22 = vadd.f32 %v692_v6, %v691_v10  ;;  %v919_v13 = vmul.f32 %v3150_v47, %v3150_v47  ;;  %v882_v28 = vsel %vm302_vm1, %v2699_v41, 0.0  ;;  %v3218_v32 = vsel %vm302_vm1, %v921_v12, 0.0 }
 0x10f   : > { %2291 = vst.msk [vmem:[#allocation2 + $0x130] sm:$0xff] %vm302_vm1, %v3192_v19  ;;  %2316 = vst.msk [vmem:[#allocation2 + $0x1b0] sm:$0xff] %vm302_vm1, %v3194_v20  ;;  %v3204_v23 = vpop.f32.mrb[21].mxu0  ;;  %v3206_v24 = vpop.f32.mrb[21].mxu1  ;;  %v477_v25 = vrot.slane %v476_v15, 4  ;;  %v533_v26 = vadd.f32 %v532_v14, %v531_v16  ;;  %v747_v27 = vadd.f32 %v746_v5, %v745_v17  ;;  %v3222_v33 = vsel %vm302_vm1, %v3143_v42, 0.0 }
 0x110   : > { %2289 = vst.msk [vmem:[#allocation2 + $0x120] sm:$0xff] %vm302_vm1, %v3204_v23  ;;  %2314 = vst.msk [vmem:[#allocation2 + $0x1a0] sm:$0xff] %vm302_vm1, %v3206_v24  ;;  %v3213_v29 = vpop.f32.mrb[22].mxu0  ;;  %v3215_v30 = vpop.f32.mrb[22].mxu1  ;;  %v694_v31 = vrot.slane %v693_v22, 4  ;;  %v1135_v34 = vmul.f32 %v3152_v48, %v3152_v48  ;;  %v1154_v37 = vsel %vm302_vm1, %v1137_v18, 0.0  ;;  %v922_v50 = vmul.f32 %v3159_v53, %v3159_v53 }
 0x111   : > { %2292 = vst.msk [vmem:[#allocation2 + $0x138] sm:$0xff] %vm302_vm1, %v3213_v29  ;;  %2317 = vst.msk [vmem:[#allocation2 + $0x1b8] sm:$0xff] %vm302_vm1, %v3215_v30  ;;  %v3230_v35 = vpop.f32.mrb[23].mxu0  ;;  %v3232_v36 = vpop.f32.mrb[23].mxu1  ;;  %v478_v38 = vadd.f32 %v477_v25, %v476_v15  ;;  %v534_v39 = vrot.slane %v533_v26, 4  ;;  %v749_v40 = vadd.f32 %v748_v21, %v747_v27  ;;  %v879_v42 = vsel %vm302_vm1, %v3150_v47, 0.0 }
 0x112   : > { %2290 = vst.msk [vmem:[#allocation2 + $0x128] sm:$0xff] %vm302_vm1, %v3230_v35  ;;  %2315 = vst.msk [vmem:[#allocation2 + $0x1a8] sm:$0xff] %vm302_vm1, %v3232_v36  ;;  %v695_v41 = vadd.f32 %v694_v31, %v693_v22  ;;  %v935_v43 = vsel %vm302_vm1, %v919_v13, 0.0  ;;  %v1095_v44 = vsel %vm302_vm1, %v3152_v48, 0.0  ;;  %v1151_v52 = vsel %vm302_vm1, %v1135_v34, 0.0 }
 0x113   : > { %v479_v45 = vrot.slane %v478_v38, 2  ;;  %v535_v46 = vadd.f32 %v534_v39, %v533_v26  ;;  %v750_v49 = vrot.slane %v749_v40, 4  ;;  %v880_v55 = vsel %vm302_vm1, %v3170_v59, 0.0  ;;  %v486_v13 = vld [vmem:[#allocation4] sm:$0x1] }
 0x114   : > { %v696_v51 = vrot.slane %v695_v41, 2  ;;  %v920_v47 = vmul.f32 %v3170_v59, %v3170_v59  ;;  %v881_v61 = vadd.f32 %v880_v55, %v879_v42  ;;  %v1096_v1 = vsel %vm302_vm1, %v3172_v60, 0.0 }
 0x115   : > { %v480_v56 = vadd.f32 %v479_v45, %v478_v38  ;;  %v536_v57 = vrot.slane %v535_v46, 2  ;;  %v751_v58 = vadd.f32 %v750_v49, %v749_v40  ;;  %v1136_v2 = vmul.f32 %v3172_v60, %v3172_v60 }
 0x116   : > { %v3251_v48 = vpop.f32.mrb[24].mxu0  ;;  %v3253_v62 = vpop.f32.mrb[24].mxu1  ;;  %v697_v63 = vadd.f32 %v696_v51, %v695_v41  ;;  %v936_v0 = vsel %vm302_vm1, %v920_v47, 0.0  ;;  %v883_v7 = vadd.f32 %v882_v28, %v881_v61  ;;  %v1138_v10 = vmul.f32 %v3161_v54, %v3161_v54 }
 0x117   : > { %2295 = vst.msk [vmem:[#allocation2 + $0x150] sm:$0xff] %vm302_vm1, %v3251_v48  ;;  %2320 = vst.msk [vmem:[#allocation2 + $0x1d0] sm:$0xff] %vm302_vm1, %v3253_v62  ;;  %v3264_v59 = vpop.f32.mrb[25].mxu0  ;;  %v3266_v3 = vpop.f32.mrb[25].mxu1  ;;  %v481_v4 = vrot.slane %v480_v56, 1  ;;  %v537_v5 = vadd.f32 %v536_v57, %v535_v46  ;;  %v752_v6 = vrot.slane %v751_v58, 2  ;;  %v937_v11 = vadd.f32 %v936_v0, %v935_v43 }
 0x118   : > { %2293 = vst.msk [vmem:[#allocation2 + $0x140] sm:$0xff] %vm302_vm1, %v3264_v59  ;;  %2318 = vst.msk [vmem:[#allocation2 + $0x1c0] sm:$0xff] %vm302_vm1, %v3266_v3  ;;  %v3272_v60 = vpop.f32.mrb[26].mxu0  ;;  %v3274_v8 = vpop.f32.mrb[26].mxu1  ;;  %v1097_v12 = vadd.f32 %v1096_v1, %v1095_v44  ;;  %v1152_v15 = vsel %vm302_vm1, %v1136_v2, 0.0  ;;  %v698_v25 = vrot.slane %v697_v63, 1  ;;  %v1139_v47 = vmul.f32 %v3206_v24, %v3206_v24 }
 0x119   : > { %2296 = vst.msk [vmem:[#allocation2 + $0x158] sm:$0xff] %vm302_vm1, %v3272_v60  ;;  %2321 = vst.msk [vmem:[#allocation2 + $0x1d8] sm:$0xff] %vm302_vm1, %v3274_v8  ;;  %v3283_v16 = vpop.f32.mrb[27].mxu0  ;;  %v3285_v17 = vpop.f32.mrb[27].mxu1  ;;  %v482_v18 = vadd.f32 %v481_v4, %v480_v56  ;;  %v538_v14 = vrot.slane %v537_v5, 1  ;;  %v753_v21 = vadd.f32 %v752_v6, %v751_v58  ;;  %v1153_v22 = vadd.f32 %v1152_v15, %v1151_v52 }
 0x11a   : > { %2294 = vst.msk [vmem:[#allocation2 + $0x148] sm:$0xff] %vm302_vm1, %v3283_v16  ;;  %2319 = vst.msk [vmem:[#allocation2 + $0x1c8] sm:$0xff] %vm302_vm1, %v3285_v17  ;;  %v884_v26 = vsel %vm302_vm1, %v3159_v53, 0.0  ;;  %v939_v27 = vadd.f32 %v3218_v32, %v937_v11  ;;  %v1099_v28 = vadd.f32 %v3222_v33, %v1097_v12  ;;  %v1100_v38 = vsel %vm302_vm1, %v3161_v54, 0.0 }
 0x11b   : > { %v483_v31 = vadd.f32 %v482_v18, %v445_v9  ;;  %v539_v34 = vadd.f32 %v538_v14, %v537_v5  ;;  %v1155_v39 = vadd.f32 %v1154_v37, %v1153_v22  ;;  %v754_v40 = vrot.slane %v753_v21, 1 }
 0x11c   : > { %v940_v41 = vsel %vm302_vm1, %v922_v50, 0.0  ;;  %v1156_v42 = vsel %vm302_vm1, %v1138_v10, 0.0  ;;  %v885_v43 = vadd.f32 %v884_v26, %v883_v7  ;;  %v925_v53 = vmul.f32 %v3192_v19, %v3192_v19 }
 0x11d   : > { %485 = vst.msk [vmem:[#allocation3] sm:$0x1] %vm241_vm2, %v483_v31  ;;  %v540_v44 = vadd.f32 %v539_v34, %v486_v13  ;;  %v886_v32 = vsel %vm302_vm1, %v3204_v23, 0.0  ;;  %v923_v33 = vmul.f32 %v3204_v23, %v3204_v23  ;;  %v699_v45 = vadd.f32 %v698_v25, %v697_v63 }
 0x11e   : > { %v3306_v54 = vpop.f32.mrb[28].mxu0  ;;  %v3308_v37 = vpop.f32.mrb[28].mxu1  ;;  %v890_v46 = vsel %vm302_vm1, %v3192_v19, 0.0  ;;  %v887_v49 = vadd.f32 %v886_v32, %v885_v43  ;;  %v941_v50 = vadd.f32 %v940_v41, %v939_v27  ;;  %v1101_v55 = vadd.f32 %v1100_v38, %v1099_v28 }
 0x11f   : > { %2299 = vst.msk [vmem:[#allocation2 + $0x170] sm:$0xff] %vm302_vm1, %v3306_v54  ;;  %2324 = vst.msk [vmem:[#allocation2 + $0x1f0] sm:$0xff] %vm302_vm1, %v3308_v37  ;;  %v3316_v51 = vpop.f32.mrb[29].mxu0  ;;  %v3318_v52 = vpop.f32.mrb[29].mxu1  ;;  %v942_v23 = vsel %vm302_vm1, %v923_v33, 0.0  ;;  %v1102_v19 = vsel %vm302_vm1, %v3206_v24, 0.0  ;;  %v1141_v61 = vmul.f32 %v3194_v20, %v3194_v20  ;;  %v1157_v0 = vadd.f32 %v1156_v42, %v1155_v39 }
 0x120   : > { %541 = vst.msk [vmem:[#allocation4] sm:$0x1] %vm241_vm2, %v540_v44  ;;  %v3330_v56 = vpop.f32.mrb[30].mxu0  ;;  %v3332_v57 = vpop.f32.mrb[30].mxu1  ;;  %v1106_v58 = vsel %vm302_vm1, %v3194_v20, 0.0  ;;  %v943_v63 = vadd.f32 %v942_v23, %v941_v50  ;;  %v755_v2 = vadd.f32 %v754_v40, %v753_v21  ;;  %v946_v4 = vsel %vm302_vm1, %v925_v53, 0.0 }
 0x121   : > { %2297 = vst.msk [vmem:[#allocation2 + $0x160] sm:$0xff] %vm302_vm1, %v3316_v51  ;;  %2322 = vst.msk [vmem:[#allocation2 + $0x1e0] sm:$0xff] %vm302_vm1, %v3318_v52  ;;  %v3342_v24 = vpop.f32.mrb[31].mxu0  ;;  %v3344_v1 = vpop.f32.mrb[31].mxu1  ;;  %v1103_v5 = vadd.f32 %v1102_v19, %v1101_v55  ;;  %v1158_v6 = vsel %vm302_vm1, %v1139_v47, 0.0  ;;  %v926_v7 = vmul.f32 %v3213_v29, %v3213_v29  ;;  %v888_v9 = vsel %vm302_vm1, %v3230_v35, 0.0 }
 0x122   : > { %2300 = vst.msk [vmem:[#allocation2 + $0x178] sm:$0xff] %vm302_vm1, %v3330_v56  ;;  %2325 = vst.msk [vmem:[#allocation2 + $0x1f8] sm:$0xff] %vm302_vm1, %v3332_v57  ;;  %v1159_v20 = vadd.f32 %v1158_v6, %v1157_v0  ;;  %v924_v10 = vmul.f32 %v3230_v35, %v3230_v35  ;;  %v1142_v11 = vmul.f32 %v3215_v30, %v3215_v30  ;;  %v1104_v15 = vsel %vm302_vm1, %v3232_v36, 0.0 }
 0x123   : > { %2298 = vst.msk [vmem:[#allocation2 + $0x168] sm:$0xff] %vm302_vm1, %v3342_v24  ;;  %2323 = vst.msk [vmem:[#allocation2 + $0x1e8] sm:$0xff] %vm302_vm1, %v3344_v1  ;;  %v889_v12 = vadd.f32 %v888_v9, %v887_v49  ;;  %v1140_v18 = vmul.f32 %v3232_v36, %v3232_v36  ;;  %v1162_v21 = vsel %vm302_vm1, %v1141_v61, 0.0  ;;  %v1108_v22 = vsel %vm302_vm1, %v3215_v30, 0.0 }
 0x124   : > { %v662_v14 = vld [vmem:[#allocation3] sm:$0x1]  ;;  %v944_v13 = vsel %vm302_vm1, %v924_v10, 0.0  ;;  %v1105_v25 = vadd.f32 %v1104_v15, %v1103_v5  ;;  %v892_v34 = vsel %vm302_vm1, %v3213_v29, 0.0  ;;  %v948_v36 = vsel %vm302_vm1, %v926_v7, 0.0 }
 0x125   : > { %v700_v35 = vadd.f32 %v699_v45, %v662_v14  ;;  %v891_v26 = vadd.f32 %v890_v46, %v889_v12  ;;  %v945_v27 = vadd.f32 %v944_v13, %v943_v63  ;;  %v1160_v28 = vsel %vm302_vm1, %v1140_v18, 0.0 }
 0x126   : > { %v1107_v38 = vadd.f32 %v1106_v58, %v1105_v25  ;;  %v1161_v39 = vadd.f32 %v1160_v28, %v1159_v20  ;;  %v1164_v30 = vsel %vm302_vm1, %v1142_v11, 0.0  ;;  %v894_v44 = vsel %vm302_vm1, %v3264_v59, 0.0 }
 0x127   : > { %v702_v31 = vld [vmem:[#allocation4] sm:$0x1]  ;;  %701 = vst.msk [vmem:[#allocation3] sm:$0x1] %vm241_vm2, %v700_v35  ;;  %v947_v41 = vadd.f32 %v946_v4, %v945_v27  ;;  %v893_v42 = vadd.f32 %v892_v34, %v891_v26  ;;  %v927_v53 = vmul.f32 %v3264_v59, %v3264_v59  ;;  %v1110_v45 = vsel %vm302_vm1, %v3266_v3, 0.0 }
 0x128   : > { %v756_v40 = vadd.f32 %v755_v2, %v702_v31  ;;  %v1163_v43 = vadd.f32 %v1162_v21, %v1161_v39  ;;  %v1109_v32 = vadd.f32 %v1108_v22, %v1107_v38  ;;  %v1143_v50 = vmul.f32 %v3266_v3, %v3266_v3 }
 0x129   : > { %v895_v29 = vadd.f32 %v894_v44, %v893_v42  ;;  %v949_v33 = vadd.f32 %v948_v36, %v947_v41  ;;  %v950_v46 = vsel %vm302_vm1, %v927_v53, 0.0  ;;  %v898_v55 = vsel %vm302_vm1, %v3251_v48, 0.0 }
 0x12a   : > { %757 = vst.msk [vmem:[#allocation4] sm:$0x1] %vm241_vm2, %v756_v40  ;;  %v1111_v49 = vadd.f32 %v1110_v45, %v1109_v32  ;;  %v1165_v23 = vadd.f32 %v1164_v30, %v1163_v43  ;;  %v929_v59 = vmul.f32 %v3251_v48, %v3251_v48  ;;  %v1114_v19 = vsel %vm302_vm1, %v3253_v62, 0.0 }
 0x12b   : > { %v951_v47 = vadd.f32 %v950_v46, %v949_v33  ;;  %v1145_v58 = vmul.f32 %v3253_v62, %v3253_v62  ;;  %v1166_v61 = vsel %vm302_vm1, %v1143_v50, 0.0  ;;  %v896_v63 = vsel %vm302_vm1, %v3283_v16, 0.0 }
 0x12c   : > { %v928_v3 = vmul.f32 %v3283_v16, %v3283_v16  ;;  %v1167_v0 = vadd.f32 %v1166_v61, %v1165_v23  ;;  %v930_v2 = vmul.f32 %v3272_v60, %v3272_v60  ;;  %v897_v48 = vadd.f32 %v896_v63, %v895_v29 }
 0x12d   : > { %v1112_v4 = vsel %vm302_vm1, %v3285_v17, 0.0  ;;  %v1146_v5 = vmul.f32 %v3274_v8, %v3274_v8  ;;  %v1144_v20 = vmul.f32 %v3285_v17, %v3285_v17  ;;  %v954_v7 = vsel %vm302_vm1, %v929_v59, 0.0 }
 0x12e   : > { %v952_v62 = vsel %vm302_vm1, %v928_v3, 0.0  ;;  %v1113_v6 = vadd.f32 %v1112_v4, %v1111_v49  ;;  %v1116_v16 = vsel %vm302_vm1, %v3274_v8, 0.0  ;;  %v899_v9 = vadd.f32 %v898_v55, %v897_v48 }
 0x12f   : > { %v953_v10 = vadd.f32 %v952_v62, %v951_v47  ;;  %v1170_v11 = vsel %vm302_vm1, %v1145_v58, 0.0  ;;  %v900_v12 = vsel %vm302_vm1, %v3272_v60, 0.0  ;;  %v1168_v18 = vsel %vm302_vm1, %v1144_v20, 0.0 }
 0x130   : > { %v1115_v15 = vadd.f32 %v1114_v19, %v1113_v6  ;;  %v956_v14 = vsel %vm302_vm1, %v930_v2, 0.0  ;;  %v1169_v22 = vadd.f32 %v1168_v18, %v1167_v0  ;;  %v901_v17 = vadd.f32 %v900_v12, %v899_v9 }
 0x131   : > { %v955_v21 = vadd.f32 %v954_v7, %v953_v10  ;;  %v1172_v13 = vsel %vm302_vm1, %v1146_v5, 0.0  ;;  %v902_v8 = vsel %vm302_vm1, %v3316_v51, 0.0  ;;  %v931_v25 = vmul.f32 %v3316_v51, %v3316_v51 }
 0x132   : > { %v1117_v35 = vadd.f32 %v1116_v16, %v1115_v15  ;;  %v1171_v26 = vadd.f32 %v1170_v11, %v1169_v22  ;;  %v903_v27 = vadd.f32 %v902_v8, %v901_v17  ;;  %v1118_v28 = vsel %vm302_vm1, %v3318_v52, 0.0  ;;  %v878_v22 = vld [vmem:[#allocation3] sm:$0x1] }
 0x133   : > { %v957_v60 = vadd.f32 %v956_v14, %v955_v21  ;;  %v906_v31 = vsel %vm302_vm1, %v3306_v54, 0.0  ;;  %v958_v34 = vsel %vm302_vm1, %v931_v25, 0.0  ;;  %v1147_v38 = vmul.f32 %v3318_v52, %v3318_v52  ;;  %v918_v25 = vld [vmem:[#allocation4] sm:$0x1] }
 0x134   : > { %v1119_v36 = vadd.f32 %v1118_v28, %v1117_v35  ;;  %v933_v39 = vmul.f32 %v3306_v54, %v3306_v54  ;;  %v1122_v51 = vsel %vm302_vm1, %v3308_v37, 0.0  ;;  %v1173_v30 = vadd.f32 %v1172_v13, %v1171_v26 }
 0x135   : > { %v959_v40 = vadd.f32 %v958_v34, %v957_v60  ;;  %v1149_v41 = vmul.f32 %v3308_v37, %v3308_v37  ;;  %v1174_v42 = vsel %vm302_vm1, %v1147_v38, 0.0  ;;  %v904_v43 = vsel %vm302_vm1, %v3342_v24, 0.0 }
 0x136   : > { %v932_v44 = vmul.f32 %v3342_v24, %v3342_v24  ;;  %v1175_v52 = vadd.f32 %v1174_v42, %v1173_v30  ;;  %v934_v54 = vmul.f32 %v3330_v56, %v3330_v56  ;;  %v905_v53 = vadd.f32 %v904_v43, %v903_v27 }
 0x137   : > { %v1120_v32 = vsel %vm302_vm1, %v3344_v1, 0.0  ;;  %v1150_v29 = vmul.f32 %v3332_v57, %v3332_v57  ;;  %v1148_v45 = vmul.f32 %v3344_v1, %v3344_v1  ;;  %v962_v46 = vsel %vm302_vm1, %v933_v39, 0.0 }
 0x138   : > { %v960_v37 = vsel %vm302_vm1, %v932_v44, 0.0  ;;  %v1121_v33 = vadd.f32 %v1120_v32, %v1119_v36  ;;  %v1124_v24 = vsel %vm302_vm1, %v3332_v57, 0.0  ;;  %v907_v49 = vadd.f32 %v906_v31, %v905_v53 }
 0x139   : > { %v961_v50 = vadd.f32 %v960_v37, %v959_v40  ;;  %v1178_v23 = vsel %vm302_vm1, %v1149_v41, 0.0  ;;  %v908_v55 = vsel %vm302_vm1, %v3330_v56, 0.0  ;;  %v1176_v19 = vsel %vm302_vm1, %v1148_v45, 0.0 }
 0x13a   : > { %v1123_v59 = vadd.f32 %v1122_v51, %v1121_v33  ;;  %v909_v47 = vadd.f32 %v908_v55, %v907_v49  ;;  %v1177_v61 = vadd.f32 %v1176_v19, %v1175_v52  ;;  %v964_v1 = vsel %vm302_vm1, %v934_v54, 0.0 }
 0x13b   : > { %v963_v58 = vadd.f32 %v962_v46, %v961_v50  ;;  %v1180_v63 = vsel %vm302_vm1, %v1150_v29, 0.0 }
 0x13c   : > { %v1125_v3 = vadd.f32 %v1124_v24, %v1123_v59  ;;  %v910_v0 = vrot.slane %v909_v47, 4  ;;  %v1179_v2 = vadd.f32 %v1178_v23, %v1177_v61 }
 0x13d   : > { %v965_v57 = vadd.f32 %v964_v1, %v963_v58 }
 0x13e   : > { %v1126_v48 = vrot.slane %v1125_v3, 4  ;;  %v911_v4 = vadd.f32 %v910_v0, %v909_v47  ;;  %v1181_v62 = vadd.f32 %v1180_v63, %v1179_v2 }
 0x13f   : > { %v966_v5 = vrot.slane %v965_v57, 4 }
 0x140   : > { %v912_v6 = vrot.slane %v911_v4, 2  ;;  %v1127_v20 = vadd.f32 %v1126_v48, %v1125_v3  ;;  %v1182_v7 = vrot.slane %v1181_v62, 4 }
 0x141   : > { %v967_v56 = vadd.f32 %v966_v5, %v965_v57 }
 0x142   : > { %v913_v16 = vadd.f32 %v912_v6, %v911_v4  ;;  %v1183_v10 = vadd.f32 %v1182_v7, %v1181_v62  ;;  %v1128_v15 = vrot.slane %v1127_v20, 2 }
 0x143   : > { %v968_v9 = vrot.slane %v967_v56, 2 }
 0x144   : > { %v914_v11 = vrot.slane %v913_v16, 1  ;;  %v1184_v21 = vrot.slane %v1183_v10, 2  ;;  %v1129_v8 = vadd.f32 %v1128_v15, %v1127_v20 }
 0x145   : > { %v969_v12 = vadd.f32 %v968_v9, %v967_v56 }
 0x146   : > { %v915_v18 = vadd.f32 %v914_v11, %v913_v16  ;;  %v1185_v26 = vadd.f32 %v1184_v21, %v1183_v10  ;;  %v1130_v27 = vrot.slane %v1129_v8, 1 }
 0x147   : > { %v970_v14 = vrot.slane %v969_v12, 1 }
 0x148   : > { %v916_v17 = vadd.f32 %v915_v18, %v878_v22  ;;  %v1186_v60 = vrot.slane %v1185_v26, 1  ;;  %v1131_v28 = vadd.f32 %v1130_v27, %v1129_v8 }
 0x149   : > { %v971_v13 = vadd.f32 %v970_v14, %v969_v12 }
 0x14a   : > { %917 = vst.msk [vmem:[#allocation3] sm:$0x1] %vm241_vm2, %v916_v17  ;;  %v1187_v36 = vadd.f32 %v1186_v60, %v1185_v26 }
 0x14b   : > { %v972_v35 = vadd.f32 %v971_v13, %v918_v25 }
 0x14d   : > { %973 = vst.msk [vmem:[#allocation4] sm:$0x1] %vm241_vm2, %v972_v35 }
 0x151   : > { %v1094_v31 = vld [vmem:[#allocation3] sm:$0x1] }
 0x152   : > { %v1132_v34 = vadd.f32 %v1131_v28, %v1094_v31 }
 0x154   : > { %v1134_v38 = vld [vmem:[#allocation4] sm:$0x1]  ;;  %1133 = vst.msk [vmem:[#allocation3] sm:$0x1] %vm241_vm2, %v1132_v34 }
 0x155   : > { %v1188_v39 = vadd.f32 %v1187_v36, %v1134_v38 }
 0x157   : > { %1189 = vst.msk [vmem:[#allocation4] sm:$0x1] %vm241_vm2, %v1188_v39 }
 0x158 PF: > { %p1190_p5 = scmp.eq.s32.totalorder %s2914_s15, 1 }
 0x159   : > { %v1203_v54 = vld [vmem:[%s4297_s2] sm:$0x1] (%p1190_p5)  ;;  %vm1207_vm3 = vcmask (%p1190_p5), 57344  }
 0x15a   : > { %1195 = sbr.rel (!%p1190_p5) target bundleno = 377 (0x179), region = 48  ;;  %v1209_v29 = vld [vmem:[%s4298_s3] sm:$0x1] (%p1190_p5) }
 0x15c   : > { %v1196_v51 = vld [vmem:[#allocation3] sm:$0x1] (%p1190_p5) }
 0x15d   : > { %v1197_v30 = vmul.f32 (%p1190_p5), 0.001953125, %v1196_v51 }
 0x15e   : > { %v1198_v40 = vld [vmem:[#allocation4] sm:$0x1] (%p1190_p5) }
 0x15f   : > { %v1199_v41 = vmul.f32 (%p1190_p5), 0.001953125, %v1198_v40  ;;  %v1200_v42 = vmul.f32 (%p1190_p5), %v1197_v30, %v1197_v30 }
 0x161   : > { %v1201_v43 = vsub.f32 %v1199_v41, %v1200_v42 }
 0x163   : > { %v1202_v44 = vmax.f32 %v1201_v43, 0.0 }
 0x165   : > { %v1204_v52 = vadd.f32 1e-05, %v1202_v44 }
 0x167   : > { %2768 = vrsqrt.f32 %v1204_v52 }
 0x171   : > { %v2769_v53 = vpop.eup %2768 }
 0x172   : > { %v1206_v32 = vmul.f32 %v2769_v53, %v1203_v54 }
 0x174   : > { %1208 = vst.msk [vmem:[#allocation5] sm:$0x1] %vm1207_vm3, %v1206_v32  ;;  %v1210_v37 = vmul.f32 %v1206_v32, %v1197_v30 }
 0x176   : > { %v1211_v33 = vsub.f32 %v1209_v29, %v1210_v37 }
 0x178   : > { %1212 = vst.msk [vmem:[#allocation6] sm:$0x1] %vm1207_vm3, %v1211_v33 }
 0x179 PF: > { %p2327_p6 = scmp.ne.s32.totalorder %s2914_s15, 1 }
 0x17a   : > { %v1220_v24 = vld [vmem:[#allocation2] sm:$0xff] (!%p2327_p6)  ;;  %v1221_v50 = vld [vmem:[#allocation2 + $0x8] sm:$0xff] (!%p2327_p6)  ;;  %v1222_v23 = vld [vmem:[#allocation2 + $0x10] sm:$0xff] (!%p2327_p6)  ;;  %vm1440_vm6 = vcmask (!%p2327_p6), 60416  }
 0x17b   : > { %1215 = sbr.rel (%p2327_p6) target bundleno = 535 (0x217), region = 52  ;;  %v3467_v45 = vld [vmem:[#allocation5] ss:$0 sm:$0xff] (!%p2327_p6)  ;;  %v1223_v55 = vld [vmem:[#allocation2 + $0x18] sm:$0xff] (!%p2327_p6)  ;;  %v1225_v61 = vld [vmem:[#allocation2 + $0x28] sm:$0xff] (!%p2327_p6) }
 0x17c   : > { %v1242_v49 = vmul.f32 (!%p2327_p6), %v3467_v45, %v1220_v24  ;;  %v1243_v59 = vmul.f32 (!%p2327_p6), %v3467_v45, %v1221_v50  ;;  %v1244_v19 = vmul.f32 (!%p2327_p6), %v3467_v45, %v1222_v23  ;;  %v1245_v47 = vmul.f32 (!%p2327_p6), %v3467_v45, %v1223_v55  ;;  %v1224_v58 = vld [vmem:[#allocation2 + $0x20] sm:$0xff] (!%p2327_p6)  ;;  %v1226_v1 = vld [vmem:[#allocation2 + $0x30] sm:$0xff] (!%p2327_p6)  ;;  %v1227_v57 = vld [vmem:[#allocation2 + $0x38] sm:$0xff] (!%p2327_p6) }
 0x17d   : > { %v1246_v3 = vmul.f32 (!%p2327_p6), %v3467_v45, %v1224_v58  ;;  %v1247_v0 = vmul.f32 (!%p2327_p6), %v3467_v45, %v1225_v61  ;;  %v1248_v56 = vmul.f32 (!%p2327_p6), %v3467_v45, %v1226_v1  ;;  %v1249_v16 = vmul.f32 (!%p2327_p6), %v3467_v45, %v1227_v57  ;;  %v1228_v11 = vld [vmem:[#allocation2 + $0x40] sm:$0xff] (!%p2327_p6)  ;;  %v1229_v25 = vld [vmem:[#allocation2 + $0x48] sm:$0xff] (!%p2327_p6)  ;;  %v1230_v35 = vld [vmem:[#allocation2 + $0x50] sm:$0xff] (!%p2327_p6) }
 0x17e   : > { %v1250_v8 = vmul.f32 (!%p2327_p6), %v3467_v45, %v1228_v11  ;;  %v1231_v31 = vld [vmem:[#allocation2 + $0x58] sm:$0xff] (!%p2327_p6)  ;;  %v1251_v36 = vmul.f32 (!%p2327_p6), %v3467_v45, %v1229_v25  ;;  %v1252_v38 = vmul.f32 (!%p2327_p6), %v3467_v45, %v1230_v35  ;;  %v1232_v39 = vld [vmem:[#allocation2 + $0x60] sm:$0xff] (!%p2327_p6)  ;;  %v1233_v51 = vld [vmem:[#allocation2 + $0x68] sm:$0xff] (!%p2327_p6) }
 0x17f   : > { %v3469_v46 = vld [vmem:[#allocation6] ss:$0 sm:$0xff] (!%p2327_p6)  ;;  %v1253_v43 = vmul.f32 (!%p2327_p6), %v3467_v45, %v1231_v31  ;;  %v1254_v52 = vmul.f32 (!%p2327_p6), %v3467_v45, %v1232_v39  ;;  %v1255_v54 = vmul.f32 (!%p2327_p6), %v3467_v45, %v1233_v51  ;;  %v1234_v29 = vld [vmem:[#allocation2 + $0x70] sm:$0xff] (!%p2327_p6)  ;;  %v1235_v24 = vld [vmem:[#allocation2 + $0x78] sm:$0xff] (!%p2327_p6) }
 0x180   : > { %v3476_v63 = vadd.f32 (!%p2327_p6), %v3469_v46, %v1242_v49  ;;  %v3481_v2 = vadd.f32 (!%p2327_p6), %v3469_v46, %v1243_v59  ;;  %v3484_v48 = vadd.f32 (!%p2327_p6), %v3469_v46, %v1244_v19  ;;  %v3487_v4 = vadd.f32 (!%p2327_p6), %v3469_v46, %v1245_v47  ;;  %v2363_v51 = vld [vmem:[#allocation2 + $0x88] sm:$0xff] (!%p2327_p6) }
 0x181   : > { %v3491_v62 = vadd.f32 (!%p2327_p6), %v3469_v46, %v1246_v3  ;;  %v3494_v6 = vadd.f32 (!%p2327_p6), %v3469_v46, %v1247_v0  ;;  %v3504_v22 = vadd.f32 (!%p2327_p6), %v3469_v46, %v1248_v56  ;;  %v3507_v13 = vadd.f32 (!%p2327_p6), %v3469_v46, %v1249_v16 }
 0x182   : > { %v1296_v5 = vmin.f32 %v3476_v63, 0.0  ;;  %v1297_v20 = vmin.f32 %v3481_v2, 0.0  ;;  %v1298_v7 = vmin.f32 %v3484_v48, 0.0  ;;  %v1299_v10 = vmin.f32 %v3487_v4, 0.0 }
 0x183   : > { %v1300_v18 = vmin.f32 %v3491_v62, 0.0  ;;  %v1301_v21 = vmin.f32 %v3494_v6, 0.0  ;;  %vm1280_vm4 = vcmp.gt.f32.partialorder %v3476_v63, 0.0  ;;  %v1302_v27 = vmin.f32 %v3504_v22, 0.0 }
 0x184   : > { %v1312_v9 = vmul.f32 1.442695, %v1296_v5  ;;  %v1314_v12 = vmul.f32 1.442695, %v1297_v20  ;;  %v1316_v15 = vmul.f32 1.442695, %v1298_v7  ;;  %v3515_v28 = vadd.f32 %v3469_v46, %v1250_v8 }
 0x185   : > { %v1318_v14 = vmul.f32 1.442695, %v1299_v10  ;;  %v1320_v17 = vmul.f32 1.442695, %v1300_v18  ;;  %v1322_v26 = vmul.f32 1.442695, %v1301_v21  ;;  %v3522_v41 = vadd.f32 %v3469_v46, %v1251_v36 }
 0x186   : > { %2770 = vpow2.f32 %v1312_v9  ;;  %vm1281_vm5 = vcmp.gt.f32.partialorder %v3481_v2, 0.0  ;;  %v1303_v60 = vmin.f32 %v3507_v13, 0.0  ;;  %v1324_v34 = vmul.f32 1.442695, %v1302_v27 }
 0x187   : > { %2772 = vpow2.f32 %v1314_v12  ;;  %vm1282_vm7 = vcmp.gt.f32.partialorder %v3484_v48, 0.0  ;;  %v1304_v30 = vmin.f32 %v3515_v28, 0.0  ;;  %v3525_v42 = vadd.f32 %v3469_v46, %v1252_v38 }
 0x188   : > { %2774 = vpow2.f32 %v1316_v15  ;;  %v1326_v40 = vmul.f32 1.442695, %v1303_v60  ;;  %vm1283_vm8 = vcmp.gt.f32.partialorder %v3487_v4, 0.0  ;;  %vm1284_vm9 = vcmp.gt.f32.partialorder %v3491_v62, 0.0 }
 0x189   : > { %2776 = vpow2.f32 %v1318_v14  ;;  %v1328_v44 = vmul.f32 1.442695, %v1304_v30  ;;  %v1305_v53 = vmin.f32 %v3522_v41, 0.0  ;;  %v1306_v32 = vmin.f32 %v3525_v42, 0.0 }
 0x18a   : > { %2778 = vpow2.f32 %v1320_v17  ;;  %vm1285_vm10 = vcmp.gt.f32.partialorder %v3494_v6, 0.0  ;;  %v3536_v37 = vadd.f32 %v3469_v46, %v1253_v43  ;;  %v3539_v33 = vadd.f32 %v3469_v46, %v1254_v52 }
 0x18b   : > { %2780 = vpow2.f32 %v1322_v26  ;;  %vm1286_vm11 = vcmp.gt.f32.partialorder %v3504_v22, 0.0  ;;  %vm1287_vm12 = vcmp.gt.f32.partialorder %v3507_v13, 0.0  ;;  %v1330_v50 = vmul.f32 1.442695, %v1305_v53 }
 0x18c   : > { %2782 = vpow2.f32 %v1324_v34  ;;  %v1332_v23 = vmul.f32 1.442695, %v1306_v32  ;;  %vm1288_vm13 = vcmp.gt.f32.partialorder %v3515_v28, 0.0  ;;  %v1307_v19 = vmin.f32 %v3536_v37, 0.0 }
 0x18d   : > { %2784 = vpow2.f32 %v1326_v40  ;;  %v3546_v47 = vadd.f32 %v3469_v46, %v1255_v54  ;;  %v1256_v58 = vmul.f32 %v3467_v45, %v1234_v29  ;;  %v1308_v3 = vmin.f32 %v3539_v33, 0.0 }
 0x18e   : > { %2786 = vpow2.f32 %v1328_v44  ;;  %v1257_v0 = vmul.f32 %v3467_v45, %v1235_v24  ;;  %v1334_v20 = vmul.f32 1.442695, %v1307_v19  ;;  %vm1289_vm14 = vcmp.gt.f32.partialorder %v3522_v41, 0.0  ;;  %v2365_v24 = vld [vmem:[#allocation2 + $0x98] sm:$0xff] }
 0x18f   : > { %2788 = vpow2.f32 %v1330_v50  ;;  %v1336_v11 = vmul.f32 1.442695, %v1308_v3  ;;  %vm1290_vm15 = vcmp.gt.f32.partialorder %v3525_v42, 0.0  ;;  %v1309_v26 = vmin.f32 %v3546_v47, 0.0 }
 0x190   : > { %v2771_v49 = vpop.eup %2770  ;;  %2790 = vpow2.f32 %v1332_v23  ;;  %v3585_v31 = vadd.f32 %v3469_v46, %v1256_v58  ;;  %v3595_v39 = vadd.f32 %v3469_v46, %v1257_v0  ;;  %vm1291_vm0 = vcmp.gt.f32.partialorder %v3536_v37, 0.0 }
 0x191   : > { %v2773_v55 = vpop.eup %2772  ;;  %v2330_v59 = vadd.f32 -1.0, %v2771_v49  ;;  %2792 = vpow2.f32 %v1334_v20  ;;  %v1338_v38 = vmul.f32 1.442695, %v1309_v26  ;;  %vm1292_vm1 = vcmp.gt.f32.partialorder %v3539_v33, 0.0  ;;  %v2369_v26 = vld [vmem:[#allocation2 + $0xb8] sm:$0xff] }
 0x192   : > { %v2775_v61 = vpop.eup %2774  ;;  %v2331_v1 = vadd.f32 -1.0, %v2773_v55  ;;  %2794 = vpow2.f32 %v1336_v11  ;;  %v1310_v52 = vmin.f32 %v3585_v31, 0.0  ;;  %v1311_v53 = vmin.f32 %v3595_v39, 0.0  ;;  %v2366_v11 = vld [vmem:[#allocation2 + $0xa0] sm:$0xff] }
 0x193   : > { %v2777_v57 = vpop.eup %2776  ;;  %v1360_v5 = vsel %vm1280_vm4, %v3476_v63, %v2330_v59  ;;  %v2332_v56 = vadd.f32 -1.0, %v2775_v61  ;;  %2796 = vpow2.f32 %v1338_v38  ;;  %v1476_v29 = vmul.f32 %v2363_v51, %v3467_v45 }
 0x194   : > { %v2779_v7 = vpop.eup %2778  ;;  %v2559_v16 = vpack.c.bf16 %v1360_v5, %v1360_v5  ;;  %v1361_v9 = vsel %vm1281_vm5, %v3481_v2, %v2331_v1  ;;  %v2333_v10 = vadd.f32 -1.0, %v2777_v57  ;;  %v1340_v55 = vmul.f32 1.442695, %v1310_v52 }
 0x195   : > { %v2781_v12 = vpop.eup %2780  ;;  %v2560_v15 = vpack.c.bf16 %v1361_v9, %v1361_v9  ;;  %v1362_v18 = vsel %vm1282_vm7, %v3484_v48, %v2332_v56  ;;  %v2334_v63 = vadd.f32 -1.0, %v2779_v7  ;;  %v3630_v61 = vadd.f32 %v3469_v46, %v1476_v29 }
 0x196   : > { %v2783_v14 = vpop.eup %2782  ;;  %1441 = vst.msk [vmem:[%s4299_s4] sm:$0xf] %vm1440_vm6, %v2559_v16  ;;  %v2561_v2 = vpack.c.bf16 %v1362_v18, %v1362_v18  ;;  %v1363_v21 = vsel %vm1283_vm8, %v3487_v4, %v2333_v10  ;;  %v2335_v17 = vadd.f32 -1.0, %v2781_v12  ;;  %2798 = vpow2.f32 %v1340_v55  ;;  %v2367_v12 = vld [vmem:[#allocation2 + $0xa8] sm:$0xff] }
 0x197   : > { %v2785_v8 = vpop.eup %2784  ;;  %1442 = vst.msk [vmem:[%s4299_s4 + $0x4] sm:$0xf] %vm1440_vm6, %v2560_v15  ;;  %v2562_v48 = vpack.c.bf16 %v1363_v21, %v1363_v21  ;;  %v1364_v25 = vsel %vm1284_vm9, %v3491_v62, %v2334_v63  ;;  %v2336_v35 = vadd.f32 -1.0, %v2783_v14  ;;  %v1478_v57 = vmul.f32 %v2365_v24, %v3467_v45  ;;  %v2368_v15 = vld [vmem:[#allocation2 + $0xb0] sm:$0xff] }
 0x198   : > { %1443 = vst.msk [vmem:[%s4299_s4 + $0x8] sm:$0xf] %vm1440_vm6, %v2561_v2  ;;  %v2563_v4 = vpack.c.bf16 %v1364_v25, %v1364_v25  ;;  %v1365_v27 = vsel %vm1285_vm10, %v3494_v6, %v2335_v17  ;;  %v2337_v60 = vadd.f32 -1.0, %v2785_v8  ;;  %v2787_v34 = vpop.eup %2786  ;;  %v2362_v6 = vld [vmem:[#allocation2 + $0x80] sm:$0xff]  ;;  %vm1293_vm2 = vcmp.gt.f32.partialorder %v3546_v47, 0.0 }
 0x199   : > { %1444 = vst.msk [vmem:[%s4299_s4 + $0xc] sm:$0xf] %vm1440_vm6, %v2562_v48  ;;  %v2564_v62 = vpack.c.bf16 %v1365_v27, %v1365_v27  ;;  %v1366_v36 = vsel %vm1286_vm11, %v3504_v22, %v2336_v35  ;;  %v2338_v43 = vadd.f32 -1.0, %v2787_v34  ;;  %v2364_v22 = vld [vmem:[#allocation2 + $0x90] sm:$0xff]  ;;  %v2789_v54 = vpop.eup %2788  ;;  %v1475_v32 = vmul.f32 %v2362_v6, %v3467_v45 }
 0x19a   : > { %1445 = vst.msk [vmem:[%s4299_s4 + $0x10] sm:$0xf] %vm1440_vm6, %v2563_v4  ;;  %v2565_v40 = vpack.c.bf16 %v1366_v36, %v1366_v36  ;;  %v1367_v30 = vsel %vm1287_vm12, %v3507_v13, %v2337_v60  ;;  %v2791_v49 = vpop.eup %2790  ;;  %v2339_v23 = vadd.f32 -1.0, %v2789_v54  ;;  %v1477_v59 = vmul.f32 %v2364_v22, %v3467_v45  ;;  %v2370_v4 = vld [vmem:[#allocation2 + $0xc0] sm:$0xff] }
 0x19b   : > { %1446 = vst.msk [vmem:[%s4299_s4 + $0x14] sm:$0xf] %vm1440_vm6, %v2564_v62  ;;  %v2566_v44 = vpack.c.bf16 %v1367_v30, %v1367_v30  ;;  %v1368_v13 = vsel %vm1288_vm13, %v3515_v28, %v2338_v43  ;;  %v2340_v19 = vadd.f32 -1.0, %v2791_v49  ;;  %v1342_v28 = vmul.f32 1.442695, %v1311_v53  ;;  %v2793_v1 = vpop.eup %2792 }
 0x19c   : > { %1447 = vst.msk [vmem:[%s4299_s4 + $0x18] sm:$0xf] %vm1440_vm6, %v2565_v40  ;;  %v2567_v50 = vpack.c.bf16 %v1368_v13, %v1368_v13  ;;  %v3627_v58 = vadd.f32 %v3469_v46, %v1475_v32  ;;  %v1369_v3 = vsel %vm1289_vm14, %v3522_v41, %v2339_v23  ;;  %v3640_v0 = vadd.f32 %v3469_v46, %v1477_v59  ;;  %v2795_v5 = vpop.eup %2794 }
 0x19d   : > { %1448 = vst.msk [vmem:[%s4299_s4 + $0x1c] sm:$0xf] %vm1440_vm6, %v2566_v44  ;;  %v2568_v56 = vpack.c.bf16 %v1369_v3, %v1369_v3  ;;  %v1370_v20 = vsel %vm1290_vm15, %v3525_v42, %v2340_v19  ;;  %v2341_v7 = vadd.f32 -1.0, %v2793_v1  ;;  %2800 = vpow2.f32 %v1342_v28  ;;  %v2797_v48 = vpop.eup %2796  ;;  %v2371_v44 = vld [vmem:[#allocation2 + $0xc8] sm:$0xff]  ;;  %v2372_v28 = vld [vmem:[#allocation2 + $0xd0] sm:$0xff]  ;;  %v2373_v3 = vld [vmem:[#allocation2 + $0xd8] sm:$0xff] }
 0x19e   : > { %1449 = vst.msk [vmem:[%s4299_s4 + $0x20] sm:$0xf] %vm1440_vm6, %v2567_v50  ;;  %v2569_v16 = vpack.c.bf16 %v1370_v20, %v1370_v20  ;;  %v2342_v9 = vadd.f32 -1.0, %v2795_v5  ;;  %v1523_v10 = vmin.f32 %v3627_v58, 0.0  ;;  %v1524_v42 = vmin.f32 %v3630_v61, 0.0 }
 0x19f   : > { %1450 = vst.msk [vmem:[%s4299_s4 + $0x24] sm:$0xf] %vm1440_vm6, %v2568_v56  ;;  %v1371_v41 = vsel %vm1291_vm0, %v3536_v37, %v2341_v7  ;;  %v1525_v2 = vmin.f32 %v3640_v0, 0.0  ;;  %v3665_v17 = vadd.f32 %v3469_v46, %v1478_v57  ;;  %v1479_v8 = vmul.f32 %v2366_v11, %v3467_v45 }
 0x1a0   : > { %1451 = vst.msk [vmem:[%s4299_s4 + $0x28] sm:$0xf] %vm1440_vm6, %v2569_v16  ;;  %v2570_v18 = vpack.c.bf16 %v1371_v41, %v1371_v41  ;;  %v1372_v63 = vsel %vm1292_vm1, %v3539_v33, %v2342_v9  ;;  %v1539_v14 = vmul.f32 1.442695, %v1523_v10  ;;  %v1541_v21 = vmul.f32 1.442695, %v1524_v42  ;;  %v2799_v30 = vpop.eup %2798 }
 0x1a1   : > { %v2571_v37 = vpack.c.bf16 %v1372_v63, %v1372_v63  ;;  %v1543_v25 = vmul.f32 1.442695, %v1525_v2  ;;  %v1480_v33 = vmul.f32 %v2367_v12, %v3467_v45  ;;  %v1481_v35 = vmul.f32 %v2368_v15, %v3467_v45 }
 0x1a2   : > { %1452 = vst.msk [vmem:[%s4299_s4 + $0x2c] sm:$0xf] %vm1440_vm6, %v2570_v18  ;;  %2802 = vpow2.f32 %v1539_v14  ;;  %v2343_v27 = vadd.f32 -1.0, %v2797_v48  ;;  %vm1294_vm3 = vcmp.gt.f32.partialorder %v3585_v31, 0.0  ;;  %v1526_v60 = vmin.f32 %v3665_v17, 0.0 }
 0x1a3   : > { %1453 = vst.msk [vmem:[%s4299_s4 + $0x30] sm:$0xf] %vm1440_vm6, %v2571_v37  ;;  %2804 = vpow2.f32 %v1541_v21  ;;  %v3681_v34 = vadd.f32 %v3469_v46, %v1479_v8  ;;  %v3684_v62 = vadd.f32 %v3469_v46, %v1480_v33  ;;  %v3687_v36 = vadd.f32 %v3469_v46, %v1481_v35  ;;  %v2374_v37 = vld [vmem:[#allocation2 + $0xe0] sm:$0xff]  ;;  %v2375_v21 = vld [vmem:[#allocation2 + $0xe8] sm:$0xff]  ;;  %v2376_v8 = vld [vmem:[#allocation2 + $0xf0] sm:$0xff] }
 0x1a4   : > { %2806 = vpow2.f32 %v1543_v25  ;;  %v1373_v38 = vsel %vm1293_vm2, %v3546_v47, %v2343_v27  ;;  %v1545_v6 = vmul.f32 1.442695, %v1526_v60  ;;  %v1482_v51 = vmul.f32 %v2369_v26, %v3467_v45 }
 0x1a5   : > { %v1483_v40 = vmul.f32 %v2370_v4, %v3467_v45  ;;  %v2572_v43 = vpack.c.bf16 %v1373_v38, %v1373_v38  ;;  %vm1295_vm4 = vcmp.gt.f32.partialorder %v3595_v39, 0.0  ;;  %vm1507_vm5 = vcmp.gt.f32.partialorder %v3627_v58, 0.0 }
 0x1a6   : > { %v1527_v22 = vmin.f32 %v3681_v34, 0.0  ;;  %v2344_v54 = vadd.f32 -1.0, %v2799_v30  ;;  %vm1508_vm7 = vcmp.gt.f32.partialorder %v3630_v61, 0.0  ;;  %2808 = vpow2.f32 %v1545_v6 }
 0x1a7   : > { %v2801_v52 = vpop.eup %2800  ;;  %v1528_v47 = vmin.f32 %v3684_v62, 0.0  ;;  %1454 = vst.msk [vmem:[%s4299_s4 + $0x34] sm:$0xf] %vm1440_vm6, %v2572_v43  ;;  %v1529_v32 = vmin.f32 %v3687_v36, 0.0  ;;  %v3705_v29 = vadd.f32 %v3469_v46, %v1482_v51  ;;  %v3711_v50 = vadd.f32 %v3469_v46, %v1483_v40  ;;  %v2377_v40 = vld [vmem:[#allocation2 + $0xf8] sm:$0xff] }
 0x1a8   : > { %v2345_v13 = vadd.f32 -1.0, %v2801_v52  ;;  %v1547_v53 = vmul.f32 1.442695, %v1527_v22  ;;  %v1374_v24 = vsel %vm1294_vm3, %v3585_v31, %v2344_v54  ;;  %v1484_v23 = vmul.f32 %v2371_v44, %v3467_v45 }
 0x1a9   : > { %v1549_v49 = vmul.f32 1.442695, %v1528_v47  ;;  %v2573_v55 = vpack.c.bf16 %v1374_v24, %v1374_v24  ;;  %v1551_v19 = vmul.f32 1.442695, %v1529_v32  ;;  %vm1509_vm8 = vcmp.gt.f32.partialorder %v3640_v0, 0.0 }
 0x1aa   : > { %v1375_v59 = vsel %vm1295_vm4, %v3595_v39, %v2345_v13  ;;  %2810 = vpow2.f32 %v1547_v53  ;;  %v1530_v31 = vmin.f32 %v3705_v29, 0.0  ;;  %vm1510_vm9 = vcmp.gt.f32.partialorder %v3665_v17, 0.0 }
 0x1ab   : > { %v2574_v1 = vpack.c.bf16 %v1375_v59, %v1375_v59  ;;  %2812 = vpow2.f32 %v1549_v49  ;;  %1455 = vst.msk [vmem:[%s4299_s4 + $0x38] sm:$0xf] %vm1440_vm6, %v2573_v55  ;;  %v1531_v39 = vmin.f32 %v3711_v50, 0.0  ;;  %v3726_v5 = vadd.f32 %v3469_v46, %v1484_v23 }
 0x1ac   : > { %v2803_v57 = vpop.eup %2802  ;;  %2814 = vpow2.f32 %v1551_v19  ;;  %vm1511_vm10 = vcmp.gt.f32.partialorder %v3681_v34, 0.0  ;;  %v1553_v7 = vmul.f32 1.442695, %v1530_v31  ;;  %v1485_v16 = vmul.f32 %v2372_v28, %v3467_v45  ;;  %v2426_v31 = vld [vmem:[#allocation2 + $0x100] sm:$0xff] }
 0x1ad   : > { %v2805_v56 = vpop.eup %2804  ;;  %1456 = vst.msk [vmem:[%s4299_s4 + $0x3c] sm:$0xf] %vm1440_vm6, %v2574_v1  ;;  %v2378_v20 = vadd.f32 -1.0, %v2803_v57  ;;  %v1555_v11 = vmul.f32 1.442695, %v1531_v39  ;;  %v1532_v41 = vmin.f32 %v3726_v5, 0.0  ;;  %v1486_v42 = vmul.f32 %v2373_v3, %v3467_v45 }
 0x1ae   : > { %v2807_v9 = vpop.eup %2806  ;;  %v2379_v10 = vadd.f32 -1.0, %v2805_v56  ;;  %2816 = vpow2.f32 %v1553_v7  ;;  %v3740_v18 = vadd.f32 %v3469_v46, %v1485_v16  ;;  %vm1512_vm11 = vcmp.gt.f32.partialorder %v3684_v62, 0.0  ;;  %v2427_v3 = vld [vmem:[#allocation2 + $0x108] sm:$0xff] }
 0x1af   : > { %v1587_v12 = vsel %vm1507_vm5, %v3627_v58, %v2378_v20  ;;  %v2380_v15 = vadd.f32 -1.0, %v2807_v9  ;;  %2818 = vpow2.f32 %v1555_v11  ;;  %v1557_v2 = vmul.f32 1.442695, %v1532_v41 }
 0x1b0   : > { %v2575_v63 = vpack.c.bf16 %v1587_v12, %v1587_v12  ;;  %v1588_v14 = vsel %vm1508_vm7, %v3630_v61, %v2379_v10  ;;  %v2809_v48 = vpop.eup %2808  ;;  %v1533_v33 = vmin.f32 %v3740_v18, 0.0  ;;  %v3755_v26 = vadd.f32 %v3469_v46, %v1486_v42  ;;  %v2428_v42 = vld [vmem:[#allocation2 + $0x110] sm:$0xff] }
 0x1b1   : > { %v2576_v25 = vpack.c.bf16 %v1588_v14, %v1588_v14  ;;  %v1589_v58 = vsel %vm1509_vm8, %v3640_v0, %v2380_v15  ;;  %v2381_v35 = vadd.f32 -1.0, %v2809_v48  ;;  %2820 = vpow2.f32 %v1557_v2  ;;  %v2429_v14 = vld [vmem:[#allocation2 + $0x118] sm:$0xff] }
 0x1b2   : > { %2410 = vst.msk [vmem:[%s4299_s4 + $0x40] sm:$0xf] %vm1440_vm6, %v2575_v63  ;;  %v2577_v61 = vpack.c.bf16 %v1589_v58, %v1589_v58  ;;  %v1559_v0 = vmul.f32 1.442695, %v1533_v33  ;;  %v1487_v4 = vmul.f32 %v2374_v37, %v3467_v45  ;;  %v1488_v27 = vmul.f32 %v2375_v21, %v3467_v45 }
 0x1b3   : > { %2411 = vst.msk [vmem:[%s4299_s4 + $0x44] sm:$0xf] %vm1440_vm6, %v2576_v25  ;;  %v1489_v60 = vmul.f32 %v2376_v8, %v3467_v45  ;;  %v1590_v6 = vsel %vm1510_vm9, %v3665_v17, %v2381_v35  ;;  %vm1513_vm12 = vcmp.gt.f32.partialorder %v3687_v36, 0.0  ;;  %vm1514_vm13 = vcmp.gt.f32.partialorder %v3705_v29, 0.0 }
 0x1b4   : > { %v2811_v38 = vpop.eup %2810  ;;  %2412 = vst.msk [vmem:[%s4299_s4 + $0x48] sm:$0xf] %vm1440_vm6, %v2577_v61  ;;  %v1534_v51 = vmin.f32 %v3755_v26, 0.0  ;;  %v2578_v43 = vpack.c.bf16 %v1590_v6, %v1590_v6  ;;  %2822 = vpow2.f32 %v1559_v0  ;;  %v3775_v44 = vadd.f32 %v3469_v46, %v1487_v4  ;;  %v2431_v6 = vld [vmem:[#allocation2 + $0x128] sm:$0xff] }
 0x1b5   : > { %v2813_v30 = vpop.eup %2812  ;;  %v2382_v22 = vadd.f32 -1.0, %v2811_v38  ;;  %v3778_v13 = vadd.f32 %v3469_v46, %v1488_v27  ;;  %v3781_v17 = vadd.f32 %v3469_v46, %v1489_v60  ;;  %v1490_v49 = vmul.f32 %v2377_v40, %v3467_v45  ;;  %v2430_v38 = vld [vmem:[#allocation2 + $0x120] sm:$0xff] }
 0x1b6   : > { %v2815_v52 = vpop.eup %2814  ;;  %v2383_v54 = vadd.f32 -1.0, %v2813_v30  ;;  %v1561_v47 = vmul.f32 1.442695, %v1534_v51  ;;  %2413 = vst.msk [vmem:[%s4299_s4 + $0x4c] sm:$0xf] %vm1440_vm6, %v2578_v43  ;;  %v1535_v24 = vmin.f32 %v3775_v44, 0.0  ;;  %v1702_v11 = vmul.f32 %v2426_v31, %v3467_v45 }
 0x1b7   : > { %v1591_v53 = vsel %vm1511_vm10, %v3681_v34, %v2382_v22  ;;  %v2384_v32 = vadd.f32 -1.0, %v2815_v52  ;;  %vm1515_vm14 = vcmp.gt.f32.partialorder %v3711_v50, 0.0  ;;  %v1536_v1 = vmin.f32 %v3778_v13, 0.0  ;;  %v2432_v52 = vld [vmem:[#allocation2 + $0x130] sm:$0xff] }
 0x1b8   : > { %v2579_v23 = vpack.c.bf16 %v1591_v53, %v1591_v53  ;;  %v1592_v55 = vsel %vm1512_vm11, %v3684_v62, %v2383_v54  ;;  %2824 = vpow2.f32 %v1561_v47  ;;  %v2817_v59 = vpop.eup %2816  ;;  %v1563_v34 = vmul.f32 1.442695, %v1535_v24  ;;  %v2433_v24 = vld [vmem:[#allocation2 + $0x138] sm:$0xff] }
 0x1b9   : > { %v2580_v19 = vpack.c.bf16 %v1592_v55, %v1592_v55  ;;  %v1593_v28 = vsel %vm1513_vm12, %v3687_v36, %v2384_v32  ;;  %v2819_v57 = vpop.eup %2818  ;;  %v2385_v39 = vadd.f32 -1.0, %v2817_v59  ;;  %vm1516_vm15 = vcmp.gt.f32.partialorder %v3726_v5, 0.0 }
 0x1ba   : > { %2414 = vst.msk [vmem:[%s4299_s4 + $0x50] sm:$0xf] %vm1440_vm6, %v2579_v23  ;;  %v2581_v62 = vpack.c.bf16 %v1593_v28, %v1593_v28  ;;  %v1537_v56 = vmin.f32 %v3781_v17, 0.0  ;;  %v2386_v36 = vadd.f32 -1.0, %v2819_v57  ;;  %2826 = vpow2.f32 %v1563_v34 }
 0x1bb   : > { %2415 = vst.msk [vmem:[%s4299_s4 + $0x54] sm:$0xf] %vm1440_vm6, %v2580_v19  ;;  %v1565_v20 = vmul.f32 1.442695, %v1536_v1  ;;  %v3811_v7 = vadd.f32 %v3469_v46, %v1490_v49  ;;  %v2821_v16 = vpop.eup %2820  ;;  %v1594_v9 = vsel %vm1514_vm13, %v3705_v29, %v2385_v39  ;;  %v1703_v41 = vmul.f32 %v2427_v3, %v3467_v45 }
 0x1bc   : > { %2416 = vst.msk [vmem:[%s4299_s4 + $0x58] sm:$0xf] %vm1440_vm6, %v2581_v62  ;;  %v1567_v10 = vmul.f32 1.442695, %v1537_v56  ;;  %v2582_v12 = vpack.c.bf16 %v1594_v9, %v1594_v9  ;;  %v1595_v15 = vsel %vm1515_vm14, %v3711_v50, %v2386_v36  ;;  %v2387_v63 = vadd.f32 -1.0, %v2821_v16  ;;  %v2434_v56 = vld [vmem:[#allocation2 + $0x140] sm:$0xff] }
 0x1bd   : > { %2828 = vpow2.f32 %v1565_v20  ;;  %v2583_v2 = vpack.c.bf16 %v1595_v15, %v1595_v15  ;;  %vm1517_vm0 = vcmp.gt.f32.partialorder %v3740_v18, 0.0  ;;  %v1538_v29 = vmin.f32 %v3811_v7, 0.0 }
 0x1be   : > { %2830 = vpow2.f32 %v1567_v10  ;;  %v2823_v37 = vpop.eup %2822  ;;  %2417 = vst.msk [vmem:[%s4299_s4 + $0x5c] sm:$0xf] %vm1440_vm6, %v2582_v12  ;;  %v1596_v21 = vsel %vm1516_vm15, %v3726_v5, %v2387_v63  ;;  %v3835_v50 = vadd.f32 %v3469_v46, %v1702_v11  ;;  %v3838_v8 = vadd.f32 %v3469_v46, %v1703_v41  ;;  %v2435_v11 = vld [vmem:[#allocation2 + $0x148] sm:$0xff] }
 0x1bf   : > { %v1704_v48 = vmul.f32 %v2428_v42, %v3467_v45  ;;  %2418 = vst.msk [vmem:[%s4299_s4 + $0x60] sm:$0xf] %vm1440_vm6, %v2583_v2  ;;  %v2584_v25 = vpack.c.bf16 %v1596_v21, %v1596_v21  ;;  %v2388_v58 = vadd.f32 -1.0, %v2823_v37  ;;  %v1569_v33 = vmul.f32 1.442695, %v1538_v29 }
 0x1c0   : > { %v1705_v61 = vmul.f32 %v2429_v14, %v3467_v45  ;;  %vm1518_vm1 = vcmp.gt.f32.partialorder %v3755_v26, 0.0  ;;  %vm1519_vm2 = vcmp.gt.f32.partialorder %v3775_v44, 0.0  ;;  %v1750_v5 = vmin.f32 %v3835_v50, 0.0  ;;  %v2436_v14 = vld [vmem:[#allocation2 + $0x150] sm:$0xff] }
 0x1c1   : > { %v1751_v35 = vmin.f32 %v3838_v8, 0.0  ;;  %2419 = vst.msk [vmem:[%s4299_s4 + $0x64] sm:$0xf] %vm1440_vm6, %v2584_v25  ;;  %v1597_v4 = vsel %vm1517_vm0, %v3740_v18, %v2388_v58  ;;  %2832 = vpow2.f32 %v1569_v33  ;;  %v3858_v27 = vadd.f32 %v3469_v46, %v1704_v48 }
 0x1c2   : > { %v2825_v0 = vpop.eup %2824  ;;  %v3861_v60 = vadd.f32 %v3469_v46, %v1705_v61  ;;  %v2585_v51 = vpack.c.bf16 %v1597_v4, %v1597_v4  ;;  %v1766_v30 = vmul.f32 1.442695, %v1750_v5  ;;  %vm1520_vm3 = vcmp.gt.f32.partialorder %v3778_v13, 0.0  ;;  %v2437_v61 = vld [vmem:[#allocation2 + $0x158] sm:$0xff] }
 0x1c3   : > { %v2389_v40 = vadd.f32 -1.0, %v2825_v0  ;;  %v1768_v43 = vmul.f32 1.442695, %v1751_v35  ;;  %vm1521_vm4 = vcmp.gt.f32.partialorder %v3781_v17, 0.0  ;;  %v1752_v22 = vmin.f32 %v3858_v27, 0.0 }
 0x1c4   : > { %v1753_v18 = vmin.f32 %v3861_v60, 0.0  ;;  %v2827_v54 = vpop.eup %2826  ;;  %2420 = vst.msk [vmem:[%s4299_s4 + $0x68] sm:$0xf] %vm1440_vm6, %v2585_v51  ;;  %2834 = vpow2.f32 %v1766_v30  ;;  %v1706_v53 = vmul.f32 %v2430_v38, %v3467_v45  ;;  %v1707_v32 = vmul.f32 %v2431_v6, %v3467_v45 }
 0x1c5   : > { %v1598_v47 = vsel %vm1518_vm1, %v3755_v26, %v2389_v40  ;;  %v2390_v23 = vadd.f32 -1.0, %v2827_v54  ;;  %2836 = vpow2.f32 %v1768_v43  ;;  %v1770_v55 = vmul.f32 1.442695, %v1752_v22 }
 0x1c6   : > { %v2586_v49 = vpack.c.bf16 %v1598_v47, %v1598_v47  ;;  %v1772_v19 = vmul.f32 1.442695, %v1753_v18  ;;  %v3877_v28 = vadd.f32 %v3469_v46, %v1706_v53  ;;  %v3880_v34 = vadd.f32 %v3469_v46, %v1707_v32 }
 0x1c7   : > { %v2829_v59 = vpop.eup %2828  ;;  %v1708_v26 = vmul.f32 %v2432_v52, %v3467_v45  ;;  %v1599_v31 = vsel %vm1519_vm2, %v3775_v44, %v2390_v23  ;;  %2838 = vpow2.f32 %v1770_v55  ;;  %v1709_v57 = vmul.f32 %v2433_v24, %v3467_v45  ;;  %v2438_v24 = vld [vmem:[#allocation2 + $0x160] sm:$0xff]  ;;  %v2440_v55 = vld [vmem:[#allocation2 + $0x170] sm:$0xff] }
 0x1c8   : > { %v2831_v1 = vpop.eup %2830  ;;  %2421 = vst.msk [vmem:[%s4299_s4 + $0x6c] sm:$0xf] %vm1440_vm6, %v2586_v49  ;;  %v2391_v3 = vadd.f32 -1.0, %v2829_v59  ;;  %v2587_v62 = vpack.c.bf16 %v1599_v31, %v1599_v31  ;;  %vm1522_vm5 = vcmp.gt.f32.partialorder %v3811_v7, 0.0  ;;  %2840 = vpow2.f32 %v1772_v19  ;;  %v2439_v49 = vld [vmem:[#allocation2 + $0x168] sm:$0xff] }
 0x1c9   : > { %v2392_v39 = vadd.f32 -1.0, %v2831_v1  ;;  %vm1734_vm7 = vcmp.gt.f32.partialorder %v3835_v50, 0.0  ;;  %v1754_v20 = vmin.f32 %v3877_v28, 0.0  ;;  %v1755_v44 = vmin.f32 %v3880_v34, 0.0 }
 0x1ca   : > { %v1600_v36 = vsel %vm1520_vm3, %v3778_v13, %v2391_v3  ;;  %2422 = vst.msk [vmem:[%s4299_s4 + $0x70] sm:$0xf] %vm1440_vm6, %v2587_v62  ;;  %v3906_v10 = vadd.f32 %v3469_v46, %v1708_v26  ;;  %v3909_v13 = vadd.f32 %v3469_v46, %v1709_v57  ;;  %v1710_v63 = vmul.f32 %v2434_v56, %v3467_v45  ;;  %v2441_v62 = vld [vmem:[#allocation2 + $0x178] sm:$0xff] }
 0x1cb   : > { %v2588_v16 = vpack.c.bf16 %v1600_v36, %v1600_v36  ;;  %v1601_v9 = vsel %vm1521_vm4, %v3781_v17, %v2392_v39  ;;  %v2833_v41 = vpop.eup %2832  ;;  %v1774_v12 = vmul.f32 1.442695, %v1754_v20  ;;  %v1776_v15 = vmul.f32 1.442695, %v1755_v44 }
 0x1cc   : > { %v2589_v42 = vpack.c.bf16 %v1601_v9, %v1601_v9  ;;  %v2393_v17 = vadd.f32 -1.0, %v2833_v41  ;;  %vm1735_vm8 = vcmp.gt.f32.partialorder %v3838_v8, 0.0  ;;  %vm1736_vm9 = vcmp.gt.f32.partialorder %v3858_v27, 0.0 }
 0x1cd   : > { %2423 = vst.msk [vmem:[%s4299_s4 + $0x74] sm:$0xf] %vm1440_vm6, %v2588_v16  ;;  %v1756_v2 = vmin.f32 %v3906_v10, 0.0  ;;  %2842 = vpow2.f32 %v1774_v12  ;;  %v1757_v29 = vmin.f32 %v3909_v13, 0.0  ;;  %v3925_v37 = vadd.f32 %v3469_v46, %v1710_v63 }
 0x1ce   : > { %2424 = vst.msk [vmem:[%s4299_s4 + $0x78] sm:$0xf] %vm1440_vm6, %v2589_v42  ;;  %v1711_v21 = vmul.f32 %v2435_v11, %v3467_v45  ;;  %v2835_v48 = vpop.eup %2834  ;;  %v1602_v25 = vsel %vm1522_vm5, %v3811_v7, %v2393_v17  ;;  %2844 = vpow2.f32 %v1776_v15  ;;  %v1712_v33 = vmul.f32 %v2436_v14, %v3467_v45 }
 0x1cf   : > { %v1778_v58 = vmul.f32 1.442695, %v1756_v2  ;;  %v2837_v5 = vpop.eup %2836  ;;  %v2590_v35 = vpack.c.bf16 %v1602_v25, %v1602_v25  ;;  %v2442_v0 = vadd.f32 -1.0, %v2835_v48  ;;  %vm1737_vm10 = vcmp.gt.f32.partialorder %v3861_v60, 0.0  ;;  %v4014_v25 = vld [vmem:[#allocation6] ss:$0 sm:$0xff] }
 0x1d0   : > { %v1780_v4 = vmul.f32 1.442695, %v1757_v29  ;;  %v2443_v38 = vadd.f32 -1.0, %v2837_v5  ;;  %v1758_v6 = vmin.f32 %v3925_v37, 0.0  ;;  %v3935_v51 = vadd.f32 %v3469_v46, %v1711_v21 }
 0x1d1   : > { %2846 = vpow2.f32 %v1778_v58  ;;  %v2839_v40 = vpop.eup %2838  ;;  %2425 = vst.msk [vmem:[%s4299_s4 + $0x7c] sm:$0xf] %vm1440_vm6, %v2590_v35  ;;  %v1814_v7 = vsel %vm1734_vm7, %v3835_v50, %v2442_v0  ;;  %v3945_v30 = vadd.f32 %v3469_v46, %v1712_v33  ;;  %v1713_v43 = vmul.f32 %v2437_v61, %v3467_v45  ;;  %v2490_v33 = vld [vmem:[#allocation2 + $0x180] sm:$0xff]  ;;  %v2491_v61 = vld [vmem:[#allocation2 + $0x188] sm:$0xff] }
 0x1d2   : > { %2848 = vpow2.f32 %v1780_v4  ;;  %v2841_v22 = vpop.eup %2840  ;;  %v2591_v18 = vpack.c.bf16 %v1814_v7, %v1814_v7  ;;  %v1815_v52 = vsel %vm1735_vm8, %v3838_v8, %v2443_v38  ;;  %v2444_v54 = vadd.f32 -1.0, %v2839_v40  ;;  %v2492_v4 = vld [vmem:[#allocation2 + $0x190] sm:$0xff]  ;;  %v2493_v38 = vld [vmem:[#allocation2 + $0x198] sm:$0xff] }
 0x1d3   : > { %v1782_v47 = vmul.f32 1.442695, %v1758_v6  ;;  %v2592_v53 = vpack.c.bf16 %v1815_v52, %v1815_v52  ;;  %v2445_v32 = vadd.f32 -1.0, %v2841_v22  ;;  %vm1738_vm11 = vcmp.gt.f32.partialorder %v3877_v28, 0.0  ;;  %v4032_v22 = vld [vmem:[#allocation5] ss:$0 sm:$0xff] }
 0x1d4   : > { %v1759_v50 = vmin.f32 %v3935_v51, 0.0  ;;  %2474 = vst.msk [vmem:[%s4299_s4 + $0x80] sm:$0xf] %vm1440_vm6, %v2591_v18  ;;  %v1816_v23 = vsel %vm1736_vm9, %v3858_v27, %v2444_v54  ;;  %vm1739_vm12 = vcmp.gt.f32.partialorder %v3880_v34, 0.0  ;;  %v1760_v8 = vmin.f32 %v3945_v30, 0.0 }
 0x1d5   : > { %2850 = vpow2.f32 %v1782_v47  ;;  %2475 = vst.msk [vmem:[%s4299_s4 + $0x84] sm:$0xf] %vm1440_vm6, %v2592_v53  ;;  %v2593_v59 = vpack.c.bf16 %v1816_v23, %v1816_v23  ;;  %v1817_v19 = vsel %vm1737_vm10, %v3861_v60, %v2445_v32  ;;  %v3970_v1 = vadd.f32 %v3469_v46, %v1713_v43 }
 0x1d6   : > { %v1784_v26 = vmul.f32 1.442695, %v1759_v50  ;;  %v2594_v27 = vpack.c.bf16 %v1817_v19, %v1817_v19  ;;  %v1786_v31 = vmul.f32 1.442695, %v1760_v8  ;;  %v1714_v3 = vmul.f32 %v2438_v24, %v3467_v45 }
 0x1d7   : > { %v1715_v57 = vmul.f32 %v2439_v49, %v3467_v45  ;;  %v2843_v39 = vpop.eup %2842  ;;  %2476 = vst.msk [vmem:[%s4299_s4 + $0x88] sm:$0xf] %vm1440_vm6, %v2593_v59  ;;  %vm1740_vm13 = vcmp.gt.f32.partialorder %v3906_v10, 0.0  ;;  %v1761_v60 = vmin.f32 %v3970_v1, 0.0  ;;  %v1716_v56 = vmul.f32 %v2440_v55, %v3467_v45 }
 0x1d8   : > { %2852 = vpow2.f32 %v1784_v26  ;;  %v2845_v36 = vpop.eup %2844  ;;  %2477 = vst.msk [vmem:[%s4299_s4 + $0x8c] sm:$0xf] %vm1440_vm6, %v2594_v27  ;;  %v2446_v20 = vadd.f32 -1.0, %v2843_v39  ;;  %v3986_v44 = vadd.f32 %v3469_v46, %v1714_v3  ;;  %v1717_v42 = vmul.f32 %v2441_v62, %v3467_v45  ;;  %v2494_v62 = vld [vmem:[#allocation2 + $0x1a0] sm:$0xff]  ;;  %v2495_v39 = vld [vmem:[#allocation2 + $0x1a8] sm:$0xff] }
 0x1d9   : > { %2854 = vpow2.f32 %v1786_v31  ;;  %v3989_v16 = vadd.f32 %v3469_v46, %v1715_v57  ;;  %v2447_v9 = vadd.f32 -1.0, %v2845_v36  ;;  %v1788_v11 = vmul.f32 1.442695, %v1761_v60 }
 0x1da   : > { %v3992_v41 = vadd.f32 %v3469_v46, %v1716_v56  ;;  %v1818_v15 = vsel %vm1738_vm11, %v3877_v28, %v2446_v20  ;;  %vm1741_vm14 = vcmp.gt.f32.partialorder %v3909_v13, 0.0  ;;  %vm1742_vm15 = vcmp.gt.f32.partialorder %v3925_v37, 0.0 }
 0x1db   : > { %v2847_v12 = vpop.eup %2846  ;;  %v1762_v63 = vmin.f32 %v3986_v44, 0.0  ;;  %v2595_v17 = vpack.c.bf16 %v1818_v15, %v1818_v15  ;;  %v1819_v46 = vsel %vm1739_vm12, %v3880_v34, %v2447_v9  ;;  %2856 = vpow2.f32 %v1788_v11  ;;  %v2496_v9 = vld [vmem:[#allocation2 + $0x1b0] sm:$0xff] }
 0x1dc   : > { %v2849_v14 = vpop.eup %2848  ;;  %v2448_v2 = vadd.f32 -1.0, %v2847_v12  ;;  %v2596_v45 = vpack.c.bf16 %v1819_v46, %v1819_v46  ;;  %v1763_v48 = vmin.f32 %v3989_v16, 0.0  ;;  %vm1743_vm0 = vcmp.gt.f32.partialorder %v3935_v51, 0.0 }
 0x1dd   : > { %v2449_v29 = vadd.f32 -1.0, %v2849_v14  ;;  %v1790_v21 = vmul.f32 1.442695, %v1762_v63  ;;  %2478 = vst.msk [vmem:[%s4299_s4 + $0x90] sm:$0xf] %vm1440_vm6, %v2595_v17  ;;  %v1764_v34 = vmin.f32 %v3992_v41, 0.0  ;;  %v4017_v58 = vadd.f32 %v4014_v25, %v1717_v42 }
 0x1de   : > { %v1820_v28 = vsel %vm1740_vm13, %v3906_v10, %v2448_v2  ;;  %2479 = vst.msk [vmem:[%s4299_s4 + $0x94] sm:$0xf] %vm1440_vm6, %v2596_v45  ;;  %v1792_v0 = vmul.f32 1.442695, %v1763_v48  ;;  %vm1744_vm1 = vcmp.gt.f32.partialorder %v3945_v30, 0.0  ;;  %v1930_v18 = vmul.f32 %v4032_v22, %v2491_v61  ;;  %v2497_v63 = vld [vmem:[#allocation2 + $0x1b8] sm:$0xff] }
 0x1df   : > { %v2851_v5 = vpop.eup %2850  ;;  %v2597_v35 = vpack.c.bf16 %v1820_v28, %v1820_v28  ;;  %v1821_v10 = vsel %vm1741_vm14, %v3909_v13, %v2449_v29  ;;  %2858 = vpow2.f32 %v1790_v21  ;;  %v1794_v7 = vmul.f32 1.442695, %v1764_v34 }
 0x1e0   : > { %v2598_v6 = vpack.c.bf16 %v1821_v10, %v1821_v10  ;;  %v2450_v40 = vadd.f32 -1.0, %v2851_v5  ;;  %2860 = vpow2.f32 %v1792_v0  ;;  %v1765_v43 = vmin.f32 %v4017_v58, 0.0 }
 0x1e1   : > { %2480 = vst.msk [vmem:[%s4299_s4 + $0x98] sm:$0xf] %vm1440_vm6, %v2597_v35  ;;  %v1929_v13 = vmul.f32 %v4032_v22, %v2490_v33  ;;  %2862 = vpow2.f32 %v1794_v7  ;;  %v1931_v47 = vmul.f32 %v4032_v22, %v2492_v4  ;;  %v1932_v53 = vmul.f32 %v4032_v22, %v2493_v38  ;;  %v2499_v7 = vld [vmem:[#allocation2 + $0x1c8] sm:$0xff] }
 0x1e2   : > { %v2853_v52 = vpop.eup %2852  ;;  %2481 = vst.msk [vmem:[%s4299_s4 + $0x9c] sm:$0xf] %vm1440_vm6, %v2598_v6  ;;  %v1822_v54 = vsel %vm1742_vm15, %v3925_v37, %v2450_v40  ;;  %v1796_v49 = vmul.f32 1.442695, %v1765_v43  ;;  %v4049_v55 = vadd.f32 %v4014_v25, %v1930_v18  ;;  %vm1745_vm2 = vcmp.gt.f32.partialorder %v3970_v1, 0.0  ;;  %v2498_v40 = vld [vmem:[#allocation2 + $0x1c0] sm:$0xff] }
 0x1e3   : > { %v2855_v32 = vpop.eup %2854  ;;  %v2599_v50 = vpack.c.bf16 %v1822_v54, %v1822_v54  ;;  %v2451_v24 = vadd.f32 -1.0, %v2853_v52  ;;  %v4046_v23 = vadd.f32 %v4014_v25, %v1929_v13  ;;  %v4052_v59 = vadd.f32 %v4014_v25, %v1931_v47  ;;  %v2500_v47 = vld [vmem:[#allocation2 + $0x1d0] sm:$0xff] }
 0x1e4   : > { %v2452_v8 = vadd.f32 -1.0, %v2855_v32  ;;  %v4055_v37 = vadd.f32 %v4014_v25, %v1932_v53  ;;  %2864 = vpow2.f32 %v1796_v49  ;;  %vm1746_vm3 = vcmp.gt.f32.partialorder %v3986_v44, 0.0  ;;  %v2502_v49 = vld [vmem:[#allocation2 + $0x1e0] sm:$0xff] }
 0x1e5   : > { %2482 = vst.msk [vmem:[%s4299_s4 + $0xa0] sm:$0xf] %vm1440_vm6, %v2599_v50  ;;  %v1823_v19 = vsel %vm1743_vm0, %v3935_v51, %v2451_v24  ;;  %v1977_v26 = vmin.f32 %v4046_v23, 0.0  ;;  %v2857_v27 = vpop.eup %2856  ;;  %v1978_v57 = vmin.f32 %v4049_v55, 0.0  ;;  %vm1747_vm4 = vcmp.gt.f32.partialorder %v3989_v16, 0.0  ;;  %v2501_v24 = vld [vmem:[#allocation2 + $0x1d8] sm:$0xff] }
 0x1e6   : > { %v2600_v31 = vpack.c.bf16 %v1823_v19, %v1823_v19  ;;  %v1824_v3 = vsel %vm1744_vm1, %v3945_v30, %v2452_v8  ;;  %v2453_v56 = vadd.f32 -1.0, %v2857_v27  ;;  %vm1748_vm5 = vcmp.gt.f32.partialorder %v3992_v41, 0.0 }
 0x1e7   : > { %v2601_v60 = vpack.c.bf16 %v1824_v3, %v1824_v3  ;;  %v1993_v51 = vmul.f32 1.442695, %v1977_v26  ;;  %v1995_v36 = vmul.f32 1.442695, %v1978_v57  ;;  %v1979_v30 = vmin.f32 %v4052_v59, 0.0 }
 0x1e8   : > { %2483 = vst.msk [vmem:[%s4299_s4 + $0xa4] sm:$0xf] %vm1440_vm6, %v2600_v31  ;;  %v1980_v20 = vmin.f32 %v4055_v37, 0.0  ;;  %v1825_v42 = vsel %vm1745_vm2, %v3970_v1, %v2453_v56  ;;  %v1933_v12 = vmul.f32 %v4032_v22, %v2494_v62  ;;  %v1934_v15 = vmul.f32 %v4032_v22, %v2495_v39 }
 0x1e9   : > { %v2859_v11 = vpop.eup %2858  ;;  %2484 = vst.msk [vmem:[%s4299_s4 + $0xa8] sm:$0xf] %vm1440_vm6, %v2601_v60  ;;  %2866 = vpow2.f32 %v1993_v51  ;;  %v2602_v14 = vpack.c.bf16 %v1825_v42, %v1825_v42  ;;  %v1997_v46 = vmul.f32 1.442695, %v1979_v30  ;;  %v1935_v1 = vmul.f32 %v4032_v22, %v2496_v9 }
 0x1ea   : > { %v2454_v17 = vadd.f32 -1.0, %v2859_v11  ;;  %2868 = vpow2.f32 %v1995_v36  ;;  %v2861_v2 = vpop.eup %2860  ;;  %v1999_v45 = vmul.f32 1.442695, %v1980_v20  ;;  %v4089_v29 = vadd.f32 %v4014_v25, %v1933_v12 }
 0x1eb   : > { %v4092_v21 = vadd.f32 %v4014_v25, %v1934_v15  ;;  %v2863_v48 = vpop.eup %2862  ;;  %2485 = vst.msk [vmem:[%s4299_s4 + $0xac] sm:$0xf] %vm1440_vm6, %v2602_v14  ;;  %v2455_v34 = vadd.f32 -1.0, %v2861_v2  ;;  %2870 = vpow2.f32 %v1997_v46  ;;  %v1936_v33 = vmul.f32 %v4032_v22, %v2497_v63 }
 0x1ec   : > { %v1826_v28 = vsel %vm1746_vm3, %v3986_v44, %v2454_v17  ;;  %v2456_v5 = vadd.f32 -1.0, %v2863_v48  ;;  %vm1749_vm7 = vcmp.gt.f32.partialorder %v4017_v58, 0.0  ;;  %2872 = vpow2.f32 %v1999_v45  ;;  %v2504_v48 = vld [vmem:[#allocation2 + $0x1f0] sm:$0xff] }
 0x1ed   : > { %v2603_v61 = vpack.c.bf16 %v1826_v28, %v1826_v28  ;;  %v1827_v35 = vsel %vm1747_vm4, %v3989_v16, %v2455_v34  ;;  %vm1961_vm8 = vcmp.gt.f32.partialorder %v4046_v23, 0.0  ;;  %v1981_v10 = vmin.f32 %v4089_v29, 0.0 }
 0x1ee   : > { %v1982_v0 = vmin.f32 %v4092_v21, 0.0  ;;  %v2865_v44 = vpop.eup %2864  ;;  %v2604_v4 = vpack.c.bf16 %v1827_v35, %v1827_v35  ;;  %v1828_v38 = vsel %vm1748_vm5, %v3992_v41, %v2456_v5  ;;  %v4118_v6 = vadd.f32 %v4014_v25, %v1935_v1  ;;  %v2503_v1 = vld [vmem:[#allocation2 + $0x1e8] sm:$0xff] }
 0x1ef   : > { %2486 = vst.msk [vmem:[%s4299_s4 + $0xb0] sm:$0xf] %vm1440_vm6, %v2603_v61  ;;  %v4121_v16 = vadd.f32 %v4014_v25, %v1936_v33  ;;  %v2605_v43 = vpack.c.bf16 %v1828_v38, %v1828_v38  ;;  %v2457_v13 = vadd.f32 -1.0, %v2865_v44  ;;  %v2001_v18 = vmul.f32 1.442695, %v1981_v10  ;;  %v2505_v33 = vld [vmem:[#allocation2 + $0x1f8] sm:$0xff] }
 0x1f0   : > { %v2003_v52 = vmul.f32 1.442695, %v1982_v0  ;;  %2487 = vst.msk [vmem:[%s4299_s4 + $0xb4] sm:$0xf] %vm1440_vm6, %v2604_v4  ;;  %vm1962_vm9 = vcmp.gt.f32.partialorder %v4049_v55, 0.0  ;;  %vm1963_vm10 = vcmp.gt.f32.partialorder %v4052_v59, 0.0  ;;  %v1937_v32 = vmul.f32 %v4032_v22, %v2498_v40 }
 0x1f1   : > { %v1983_v41 = vmin.f32 %v4118_v6, 0.0  ;;  %v1984_v54 = vmin.f32 %v4121_v16, 0.0  ;;  %2488 = vst.msk [vmem:[%s4299_s4 + $0xb8] sm:$0xf] %vm1440_vm6, %v2605_v43  ;;  %v1829_v53 = vsel %vm1749_vm7, %v4017_v58, %v2457_v13  ;;  %2874 = vpow2.f32 %v2001_v18 }
 0x1f2   : > { %v1938_v50 = vmul.f32 %v4032_v22, %v2499_v7  ;;  %v2606_v19 = vpack.c.bf16 %v1829_v53, %v1829_v53  ;;  %2876 = vpow2.f32 %v2003_v52  ;;  %v4141_v57 = vadd.f32 %v4014_v25, %v1937_v32 }
 0x1f3   : > { %v2867_v8 = vpop.eup %2866  ;;  %v2005_v26 = vmul.f32 1.442695, %v1983_v41  ;;  %v2007_v27 = vmul.f32 1.442695, %v1984_v54  ;;  %v1939_v58 = vmul.f32 %v4032_v22, %v2500_v47  ;;  %v1940_v60 = vmul.f32 %v4032_v22, %v2501_v24 }
 0x1f4   : > { %v2869_v31 = vpop.eup %2868  ;;  %v2506_v3 = vadd.f32 -1.0, %v2867_v8  ;;  %v4144_v62 = vadd.f32 %v4014_v25, %v1938_v50  ;;  %2489 = vst.msk [vmem:[%s4299_s4 + $0xbc] sm:$0xf] %vm1440_vm6, %v2606_v19  ;;  %v1941_v56 = vmul.f32 %v4032_v22, %v2502_v49  ;;  %vm1964_vm11 = vcmp.gt.f32.partialorder %v4055_v37, 0.0 }
 0x1f5   : > { %v2507_v39 = vadd.f32 -1.0, %v2869_v31  ;;  %2878 = vpow2.f32 %v2005_v26  ;;  %v2871_v51 = vpop.eup %2870  ;;  %v1985_v30 = vmin.f32 %v4141_v57, 0.0  ;;  %vm1965_vm12 = vcmp.gt.f32.partialorder %v4089_v29, 0.0 }
 0x1f6   : > { %v2041_v36 = vsel %vm1961_vm8, %v4046_v23, %v2506_v3  ;;  %2880 = vpow2.f32 %v2007_v27  ;;  %v2873_v20 = vpop.eup %2872  ;;  %v2508_v42 = vadd.f32 -1.0, %v2871_v51  ;;  %v1986_v14 = vmin.f32 %v4144_v62, 0.0 }
 0x1f7   : > { %v2607_v9 = vpack.c.bf16 %v2041_v36, %v2041_v36  ;;  %v2042_v11 = vsel %vm1962_vm9, %v4049_v55, %v2507_v39  ;;  %v2509_v15 = vadd.f32 -1.0, %v2873_v20  ;;  %v2009_v63 = vmul.f32 1.442695, %v1985_v30 }
 0x1f8   : > { %v2608_v12 = vpack.c.bf16 %v2042_v11, %v2042_v11  ;;  %v2043_v23 = vsel %vm1963_vm10, %v4052_v59, %v2508_v42  ;;  %v4171_v17 = vadd.f32 %v4014_v25, %v1939_v58  ;;  %v4174_v55 = vadd.f32 %v4014_v25, %v1940_v60 }
 0x1f9   : > { %2538 = vst.msk [vmem:[%s4299_s4 + $0xc0] sm:$0xf] %vm1440_vm6, %v2607_v9  ;;  %v4177_v46 = vadd.f32 %v4014_v25, %v1941_v56  ;;  %v2609_v2 = vpack.c.bf16 %v2043_v23, %v2043_v23  ;;  %v2044_v45 = vsel %vm1964_vm11, %v4055_v37, %v2509_v15  ;;  %2882 = vpow2.f32 %v2009_v63 }
 0x1fa   : > { %2539 = vst.msk [vmem:[%s4299_s4 + $0xc4] sm:$0xf] %vm1440_vm6, %v2608_v12  ;;  %v2011_v59 = vmul.f32 1.442695, %v1986_v14  ;;  %v2610_v28 = vpack.c.bf16 %v2044_v45, %v2044_v45  ;;  %vm1966_vm13 = vcmp.gt.f32.partialorder %v4092_v21, 0.0  ;;  %vm1967_vm14 = vcmp.gt.f32.partialorder %v4118_v6, 0.0 }
 0x1fb   : > { %v1987_v34 = vmin.f32 %v4171_v17, 0.0  ;;  %v2875_v61 = vpop.eup %2874  ;;  %2540 = vst.msk [vmem:[%s4299_s4 + $0xc8] sm:$0xf] %vm1440_vm6, %v2609_v2  ;;  %vm1968_vm15 = vcmp.gt.f32.partialorder %v4121_v16, 0.0  ;;  %v1988_v37 = vmin.f32 %v4174_v55, 0.0  ;;  %v1989_v5 = vmin.f32 %v4177_v46, 0.0 }
 0x1fc   : > { %2884 = vpow2.f32 %v2011_v59  ;;  %v2877_v35 = vpop.eup %2876  ;;  %2541 = vst.msk [vmem:[%s4299_s4 + $0xcc] sm:$0xf] %vm1440_vm6, %v2610_v28  ;;  %v2510_v10 = vadd.f32 -1.0, %v2875_v61  ;;  %v1942_v44 = vmul.f32 %v4032_v22, %v2503_v1  ;;  %v1943_v4 = vmul.f32 %v4032_v22, %v2504_v48 }
 0x1fd   : > { %v2013_v0 = vmul.f32 1.442695, %v1987_v34  ;;  %v2511_v38 = vadd.f32 -1.0, %v2877_v35  ;;  %v2015_v40 = vmul.f32 1.442695, %v1988_v37  ;;  %v1944_v43 = vmul.f32 %v4032_v22, %v2505_v33 }
 0x1fe   : > { %v2017_v7 = vmul.f32 1.442695, %v1989_v5  ;;  %v2045_v18 = vsel %vm1965_vm12, %v4089_v29, %v2510_v10  ;;  %v4207_v52 = vadd.f32 %v4014_v25, %v1942_v44  ;;  %v4210_v41 = vadd.f32 %v4014_v25, %v1943_v4 }
 0x1ff   : > { %v2879_v13 = vpop.eup %2878  ;;  %2886 = vpow2.f32 %v2013_v0  ;;  %v2611_v47 = vpack.c.bf16 %v2045_v18, %v2045_v18  ;;  %v2046_v53 = vsel %vm1966_vm13, %v4092_v21, %v2511_v38  ;;  %v1960_v19 = vadd.f32 %v4014_v25, %v1944_v43 }
 0x200   : > { %v2881_v54 = vpop.eup %2880  ;;  %v2512_v32 = vadd.f32 -1.0, %v2879_v13  ;;  %2888 = vpow2.f32 %v2015_v40  ;;  %v2612_v22 = vpack.c.bf16 %v2046_v53, %v2046_v53  ;;  %v1990_v24 = vmin.f32 %v4207_v52, 0.0 }
 0x201   : > { %v2513_v50 = vadd.f32 -1.0, %v2881_v54  ;;  %2890 = vpow2.f32 %v2017_v7  ;;  %2542 = vst.msk [vmem:[%s4299_s4 + $0xd0] sm:$0xf] %vm1440_vm6, %v2611_v47  ;;  %v1991_v49 = vmin.f32 %v4210_v41, 0.0  ;;  %vm1969_vm0 = vcmp.gt.f32.partialorder %v4141_v57, 0.0 }
 0x202   : > { %v2047_v29 = vsel %vm1967_vm14, %v4118_v6, %v2512_v32  ;;  %2543 = vst.msk [vmem:[%s4299_s4 + $0xd4] sm:$0xf] %vm1440_vm6, %v2612_v22  ;;  %v2019_v6 = vmul.f32 1.442695, %v1990_v24  ;;  %v1992_v58 = vmin.f32 %v1960_v19, 0.0  ;;  %vm1970_vm1 = vcmp.gt.f32.partialorder %v4144_v62, 0.0 }
 0x203   : > { %v2613_v21 = vpack.c.bf16 %v2047_v29, %v2047_v29  ;;  %v2048_v8 = vsel %vm1968_vm15, %v4121_v16, %v2513_v50  ;;  %v2883_v26 = vpop.eup %2882  ;;  %v2021_v31 = vmul.f32 1.442695, %v1991_v49  ;;  %vm1971_vm2 = vcmp.gt.f32.partialorder %v4171_v17, 0.0 }
 0x204   : > { %v2614_v27 = vpack.c.bf16 %v2048_v8, %v2048_v8  ;;  %v2514_v3 = vadd.f32 -1.0, %v2883_v26  ;;  %2892 = vpow2.f32 %v2019_v6  ;;  %v2023_v60 = vmul.f32 1.442695, %v1992_v58 }
 0x205   : > { %2544 = vst.msk [vmem:[%s4299_s4 + $0xd8] sm:$0xf] %vm1440_vm6, %v2613_v21  ;;  %2894 = vpow2.f32 %v2021_v31  ;;  %vm1972_vm3 = vcmp.gt.f32.partialorder %v4174_v55, 0.0  ;;  %vm1973_vm4 = vcmp.gt.f32.partialorder %v4177_v46, 0.0  ;;  %vm1974_vm5 = vcmp.gt.f32.partialorder %v4207_v52, 0.0 }
 0x206   : > { %v2885_v39 = vpop.eup %2884  ;;  %2545 = vst.msk [vmem:[%s4299_s4 + $0xdc] sm:$0xf] %vm1440_vm6, %v2614_v27  ;;  %v2049_v25 = vsel %vm1969_vm0, %v4141_v57, %v2514_v3  ;;  %2896 = vpow2.f32 %v2023_v60  ;;  %vm1975_vm7 = vcmp.gt.f32.partialorder %v4210_v41, 0.0  ;;  %vm1976_vm8 = vcmp.gt.f32.partialorder %v1960_v19, 0.0 }
 0x207   : > { %v2515_v16 = vadd.f32 -1.0, %v2885_v39  ;;  %v2615_v56 = vpack.c.bf16 %v2049_v25, %v2049_v25 }
 0x209   : > { %v2887_v51 = vpop.eup %2886  ;;  %v2050_v36 = vsel %vm1970_vm1, %v4144_v62, %v2515_v16  ;;  %2546 = vst.msk [vmem:[%s4299_s4 + $0xe0] sm:$0xf] %vm1440_vm6, %v2615_v56 }
 0x20a   : > { %v2889_v30 = vpop.eup %2888  ;;  %v2616_v20 = vpack.c.bf16 %v2050_v36, %v2050_v36  ;;  %v2516_v9 = vadd.f32 -1.0, %v2887_v51 }
 0x20b   : > { %v2891_v57 = vpop.eup %2890  ;;  %v2517_v11 = vadd.f32 -1.0, %v2889_v30 }
 0x20c   : > { %2547 = vst.msk [vmem:[%s4299_s4 + $0xe4] sm:$0xf] %vm1440_vm6, %v2616_v20  ;;  %v2051_v62 = vsel %vm1971_vm2, %v4171_v17, %v2516_v9  ;;  %v2518_v42 = vadd.f32 -1.0, %v2891_v57 }
 0x20d   : > { %v2617_v12 = vpack.c.bf16 %v2051_v62, %v2051_v62  ;;  %v2052_v15 = vsel %vm1972_vm3, %v4174_v55, %v2517_v11 }
 0x20e   : > { %v2618_v63 = vpack.c.bf16 %v2052_v15, %v2052_v15  ;;  %v2053_v14 = vsel %vm1973_vm4, %v4177_v46, %v2518_v42  ;;  %v2893_v2 = vpop.eup %2892 }
 0x20f   : > { %2548 = vst.msk [vmem:[%s4299_s4 + $0xe8] sm:$0xf] %vm1440_vm6, %v2617_v12  ;;  %v2619_v23 = vpack.c.bf16 %v2053_v14, %v2053_v14  ;;  %v2895_v17 = vpop.eup %2894  ;;  %v2519_v55 = vadd.f32 -1.0, %v2893_v2 }
 0x210   : > { %2549 = vst.msk [vmem:[%s4299_s4 + $0xec] sm:$0xf] %vm1440_vm6, %v2618_v63  ;;  %v2520_v46 = vadd.f32 -1.0, %v2895_v17  ;;  %v2897_v45 = vpop.eup %2896 }
 0x211   : > { %2550 = vst.msk [vmem:[%s4299_s4 + $0xf0] sm:$0xf] %vm1440_vm6, %v2619_v23  ;;  %v2054_v59 = vsel %vm1974_vm5, %v4207_v52, %v2519_v55  ;;  %v2521_v28 = vadd.f32 -1.0, %v2897_v45 }
 0x212   : > { %v2620_v1 = vpack.c.bf16 %v2054_v59, %v2054_v59  ;;  %v2055_v48 = vsel %vm1975_vm7, %v4210_v41, %v2520_v46 }
 0x213   : > { %v2621_v34 = vpack.c.bf16 %v2055_v48, %v2055_v48  ;;  %v2056_v33 = vsel %vm1976_vm8, %v1960_v19, %v2521_v28 }
 0x214   : > { %2551 = vst.msk [vmem:[%s4299_s4 + $0xf4] sm:$0xf] %vm1440_vm6, %v2620_v1  ;;  %v2622_v61 = vpack.c.bf16 %v2056_v33, %v2056_v33 }
 0x215   : > { %2552 = vst.msk [vmem:[%s4299_s4 + $0xf8] sm:$0xf] %vm1440_vm6, %v2621_v34 }
 0x216   : > { %2553 = vst.msk [vmem:[%s4299_s4 + $0xfc] sm:$0xf] %vm1440_vm6, %v2622_v61 }
 0x217 PF: > { %s14_s17 = sadd.s32 1, %s2922_s17   ;;  %s4300_s15 = smov %s2918_s16 }
 0x218   : > { %p11_p7 = scmp.ge.s32.totalorder %s14_s17, 4   ;;  %s4301_s16 = smov %s4303_s18 }
 0x21a   :  { %13 = sbr.rel (!%p11_p7) target bundleno = 2 (0x2), region = 96 }

// kernel: autoencoder_forward.21
= control target key start
LH: loop header
LB: loop body
LE: loop exit
PB: predicated region body
PF: predicated region fallthrough
CT: control target
= control target key end

     0   :  { %vm282_vm0 = vcmask 588800   ;;  %vm379_vm1 = vcmask 1043456   ;;  %vm672_vm2 = vcmask 31744   ;;  %s1459_s1 = inlined_call_operand.vmem [shape: bf16[72,4], index: 1, kind: input, shape index: {}]   ;;  %s1460_s0 = inlined_call_operand.vmem [shape: bf16[512,72], index: 0, kind: input, shape index: {}]   ;;  %s1461_s2 = inlined_call_operand.vmem [shape: f32[1,4], index: 2, kind: input, shape index: {}]   ;;  %s1462_s3 = inlined_call_operand.vmem [shape: f32[512,4], index: 3, kind: output, shape index: {}]  }
   0x1   :  { %v934_v0 = vld [vmem:[%s1459_s1] sm:$0xff]   ;;  %v935_v1 = vld [vmem:[%s1459_s1 + $0x8] sm:$0xff]   ;;  %v936_v2 = vld [vmem:[%s1459_s1 + $0x10] sm:$0xff]  }
   0x2   :  { %848 = vmatprep.subr.bf16.mxu0 %v934_v0  ;;  %922 = vmatprep.subr.bf16.mxu1 %v934_v0  ;;  %v939_v3 = vld [vmem:[%s1460_s0] sm:$0xff]   ;;  %v937_v5 = vld [vmem:[%s1459_s1 + $0x18] sm:$0xff]   ;;  %v941_v8 = vld [vmem:[%s1460_s0 + $0x8] sm:$0xff]  }
   0x3   :  { %849 = vmatpush3.bf16.msra.mxu0 %v934_v0  ;;  %927 = vmatpush3.bf16.msra.mxu1 %v934_v0  ;;  %v940_v4 = vld [vmem:[%s1460_s0 + $0x80] sm:$0xff]   ;;  %v942_v9 = vld [vmem:[%s1460_s0 + $0x88] sm:$0xff]   ;;  %v943_v10 = vld [vmem:[%s1460_s0 + $0x10] sm:$0xff]  }
   0x4   :  { %850 = vmatprep.subr.bf16.mxu0 %v935_v1  ;;  %923 = vmatprep.subr.bf16.mxu1 %v935_v1  ;;  %v938_v6 = vld [vmem:[%s1459_s1 + $0x20] ss:$0 sps:$4 sm:$0xff]   ;;  %v944_v11 = vld [vmem:[%s1460_s0 + $0x90] sm:$0xff]   ;;  %v945_v12 = vld [vmem:[%s1460_s0 + $0x18] sm:$0xff]  }
   0x5   :  { %858 = vmatprep.mubr.msk.bf16.mxu0 %vm282_vm0, %v939_v3  ;;  %890 = vmatprep.mubr.msk.bf16.mxu1 %vm282_vm0, %v940_v4  ;;  %v381_v7 = vsel %vm379_vm1, %v938_v6, 0  ;;  %v946_v13 = vld [vmem:[%s1460_s0 + $0x98] sm:$0xff]   ;;  %v947_v14 = vld [vmem:[%s1460_s0 + $0x20] sm:$0xff]   ;;  %v949_v16 = vld [vmem:[%s1460_s0 + $0x28] sm:$0xff]  }
   0x6   :  { %v948_v15 = vld [vmem:[%s1460_s0 + $0xa0] sm:$0xff]   ;;  %v950_v17 = vld [vmem:[%s1460_s0 + $0xa8] sm:$0xff]   ;;  %v951_v18 = vld [vmem:[%s1460_s0 + $0x30] sm:$0xff]  }
   0x7   :  { %851 = vmatpush3.bf16.msra.mxu0 %v935_v1  ;;  %928 = vmatpush3.bf16.msra.mxu1 %v935_v1  ;;  %v952_v19 = vld [vmem:[%s1460_s0 + $0xb0] sm:$0xff]   ;;  %v953_v20 = vld [vmem:[%s1460_s0 + $0x38] sm:$0xff]   ;;  %v955_v22 = vld [vmem:[%s1460_s0 + $0x40] sm:$0xff]  }
   0x8   :  { %852 = vmatprep.subr.bf16.mxu0 %v936_v2  ;;  %924 = vmatprep.subr.bf16.mxu1 %v936_v2  ;;  %v954_v21 = vld [vmem:[%s1460_s0 + $0xb8] sm:$0xff]   ;;  %v956_v23 = vld [vmem:[%s1460_s0 + $0xc0] sm:$0xff]   ;;  %v957_v24 = vld [vmem:[%s1460_s0 + $0x48] sm:$0xff]  }
   0x9   :  { %v958_v25 = vld [vmem:[%s1460_s0 + $0xc8] sm:$0xff]   ;;  %v959_v26 = vld [vmem:[%s1460_s0 + $0x50] sm:$0xff]   ;;  %v961_v28 = vld [vmem:[%s1460_s0 + $0x58] sm:$0xff]  }
   0xa   :  { %v960_v27 = vld [vmem:[%s1460_s0 + $0xd0] sm:$0xff]   ;;  %v962_v29 = vld [vmem:[%s1460_s0 + $0xd8] sm:$0xff]   ;;  %v963_v30 = vld [vmem:[%s1460_s0 + $0x60] sm:$0xff]  }
   0xb   :  { %853 = vmatpush3.bf16.msra.mxu0 %v936_v2  ;;  %929 = vmatpush3.bf16.msra.mxu1 %v936_v2  ;;  %v964_v31 = vld [vmem:[%s1460_s0 + $0xe0] sm:$0xff]   ;;  %v965_v32 = vld [vmem:[%s1460_s0 + $0x68] sm:$0xff]   ;;  %v967_v34 = vld [vmem:[%s1460_s0 + $0x70] sm:$0xff]  }
   0xc   :  { %854 = vmatprep.subr.bf16.mxu0 %v937_v5  ;;  %925 = vmatprep.subr.bf16.mxu1 %v937_v5  ;;  %v966_v33 = vld [vmem:[%s1460_s0 + $0xe8] sm:$0xff]   ;;  %v968_v35 = vld [vmem:[%s1460_s0 + $0xf0] sm:$0xff]   ;;  %v969_v36 = vld [vmem:[%s1460_s0 + $0x78] sm:$0xff]  }
   0xd   :  { %v970_v37 = vld [vmem:[%s1460_s0 + $0xf8] sm:$0xff]   ;;  %v1137_v38 = vld [vmem:[%s1461_s2] ss:$0 sm:$0xff] }
   0xf   :  { %855 = vmatpush3.bf16.msra.mxu0 %v937_v5  ;;  %930 = vmatpush3.bf16.msra.mxu1 %v937_v5 }
  0x10   :  { %932 = vmatprep.subr.msk.bf16.mxu0 %vm379_vm1, %v938_v6  ;;  %933 = vmatprep.subr.msk.bf16.mxu1 %vm379_vm1, %v938_v6 }
  0x13   :  { %857 = vmatpush3.bf16.msra.mxu0 %v381_v7  ;;  %931 = vmatpush3.bf16.msra.mxu1 %v381_v7 }
  0x16   :  { %859 = vmatmul.mubr.msk.bf16.vlgmr.msra.gmra.mrb[0].mxu0 %vm282_vm0, %v941_v8  ;;  %891 = vmatmul.mubr.msk.bf16.vlgmr.msra.gmra.mrb[0].mxu1 %vm282_vm0, %v942_v9 }
  0x17   :  { %862 = vmatprep.mubr.msk.bf16.mxu0 %vm282_vm0, %v943_v10  ;;  %894 = vmatprep.mubr.msk.bf16.mxu1 %vm282_vm0, %v944_v11 }
  0x1e   :  { %863 = vmatmul.mubr.msk.bf16.gmra.mrb[4].mxu0 %vm282_vm0, %v945_v12  ;;  %895 = vmatmul.mubr.msk.bf16.gmra.mrb[4].mxu1 %vm282_vm0, %v946_v13 }
  0x1f   :  { %866 = vmatprep.mubr.msk.bf16.mxu0 %vm282_vm0, %v947_v14  ;;  %898 = vmatprep.mubr.msk.bf16.mxu1 %vm282_vm0, %v948_v15 }
  0x26   :  { %867 = vmatmul.mubr.msk.bf16.gmra.mrb[8].mxu0 %vm282_vm0, %v949_v16  ;;  %899 = vmatmul.mubr.msk.bf16.gmra.mrb[8].mxu1 %vm282_vm0, %v950_v17 }
  0x27   :  { %870 = vmatprep.mubr.msk.bf16.mxu0 %vm282_vm0, %v951_v18  ;;  %902 = vmatprep.mubr.msk.bf16.mxu1 %vm282_vm0, %v952_v19 }
  0x2e   :  { %871 = vmatmul.mubr.msk.bf16.gmra.mrb[12].mxu0 %vm282_vm0, %v953_v20  ;;  %903 = vmatmul.mubr.msk.bf16.gmra.mrb[12].mxu1 %vm282_vm0, %v954_v21 }
  0x2f   :  { %874 = vmatprep.mubr.msk.bf16.mxu0 %vm282_vm0, %v955_v22  ;;  %906 = vmatprep.mubr.msk.bf16.mxu1 %vm282_vm0, %v956_v23 }
  0x36   :  { %875 = vmatmul.mubr.msk.bf16.gmra.mrb[16].mxu0 %vm282_vm0, %v957_v24  ;;  %907 = vmatmul.mubr.msk.bf16.gmra.mrb[16].mxu1 %vm282_vm0, %v958_v25 }
  0x37   :  { %878 = vmatprep.mubr.msk.bf16.mxu0 %vm282_vm0, %v959_v26  ;;  %910 = vmatprep.mubr.msk.bf16.mxu1 %vm282_vm0, %v960_v27 }
  0x3e   :  { %879 = vmatmul.mubr.msk.bf16.gmra.mrb[20].mxu0 %vm282_vm0, %v961_v28  ;;  %911 = vmatmul.mubr.msk.bf16.gmra.mrb[20].mxu1 %vm282_vm0, %v962_v29 }
  0x3f   :  { %882 = vmatprep.mubr.msk.bf16.mxu0 %vm282_vm0, %v963_v30  ;;  %914 = vmatprep.mubr.msk.bf16.mxu1 %vm282_vm0, %v964_v31 }
  0x46   :  { %883 = vmatmul.mubr.msk.bf16.gmra.mrb[24].mxu0 %vm282_vm0, %v965_v32  ;;  %915 = vmatmul.mubr.msk.bf16.gmra.mrb[24].mxu1 %vm282_vm0, %v966_v33 }
  0x47   :  { %886 = vmatprep.mubr.msk.bf16.mxu0 %vm282_vm0, %v967_v34  ;;  %918 = vmatprep.mubr.msk.bf16.mxu1 %vm282_vm0, %v968_v35 }
  0x4e   :  { %887 = vmatmul.mubr.msk.bf16.gmra.mrb[28].mxu0 %vm282_vm0, %v969_v36  ;;  %919 = vmatmul.mubr.msk.bf16.gmra.mrb[28].mxu1 %vm282_vm0, %v970_v37 }
  0xe9   :  { %v860_v39 = vpop.f32.mrb[0].mxu0  ;;  %v892_v40 = vpop.f32.mrb[0].mxu1 }
  0xea   :  { %v426_v41 = vadd.f32 %v860_v39, %v1137_v38  ;;  %v554_v42 = vadd.f32 %v892_v40, %v1137_v38  ;;  %v417_v43 = vpop.f32.mrb[1].mxu0  ;;  %v545_v44 = vpop.f32.mrb[1].mxu1 }
  0xeb   :  { %v418_v45 = vadd.f32 %v1137_v38, %v417_v43  ;;  %v546_v46 = vadd.f32 %v1137_v38, %v545_v44  ;;  %v861_v47 = vpop.f32.mrb[2].mxu0  ;;  %v893_v48 = vpop.f32.mrb[2].mxu1 }
  0xec   :  { %675 = vst.msk [vmem:[%s1462_s3 + $0x10] sm:$0xff] %vm672_vm2, %v426_v41  ;;  %707 = vst.msk [vmem:[%s1462_s3 + $0x110] sm:$0xff] %vm672_vm2, %v554_v42  ;;  %v429_v49 = vadd.f32 %v861_v47, %v1137_v38  ;;  %v557_v50 = vadd.f32 %v893_v48, %v1137_v38  ;;  %v420_v51 = vpop.f32.mrb[3].mxu0  ;;  %v548_v52 = vpop.f32.mrb[3].mxu1 }
  0xed   :  { %673 = vst.msk [vmem:[%s1462_s3] sm:$0xff] %vm672_vm2, %v418_v45  ;;  %705 = vst.msk [vmem:[%s1462_s3 + $0x100] sm:$0xff] %vm672_vm2, %v546_v46  ;;  %v421_v53 = vadd.f32 %v1137_v38, %v420_v51  ;;  %v549_v54 = vadd.f32 %v1137_v38, %v548_v52 }
  0xee   :  { %676 = vst.msk [vmem:[%s1462_s3 + $0x18] sm:$0xff] %vm672_vm2, %v429_v49  ;;  %708 = vst.msk [vmem:[%s1462_s3 + $0x118] sm:$0xff] %vm672_vm2, %v557_v50 }
  0xef   :  { %674 = vst.msk [vmem:[%s1462_s3 + $0x8] sm:$0xff] %vm672_vm2, %v421_v53  ;;  %706 = vst.msk [vmem:[%s1462_s3 + $0x108] sm:$0xff] %vm672_vm2, %v549_v54 }
  0xf1   :  { %v864_v55 = vpop.f32.mrb[4].mxu0  ;;  %v896_v56 = vpop.f32.mrb[4].mxu1 }
  0xf2   :  { %v442_v57 = vadd.f32 %v864_v55, %v1137_v38  ;;  %v570_v58 = vadd.f32 %v896_v56, %v1137_v38  ;;  %v433_v59 = vpop.f32.mrb[5].mxu0  ;;  %v561_v60 = vpop.f32.mrb[5].mxu1 }
  0xf3   :  { %v434_v61 = vadd.f32 %v1137_v38, %v433_v59  ;;  %v562_v62 = vadd.f32 %v1137_v38, %v561_v60  ;;  %v865_v63 = vpop.f32.mrb[6].mxu0  ;;  %v897_v0 = vpop.f32.mrb[6].mxu1 }
  0xf4   :  { %679 = vst.msk [vmem:[%s1462_s3 + $0x30] sm:$0xff] %vm672_vm2, %v442_v57  ;;  %711 = vst.msk [vmem:[%s1462_s3 + $0x130] sm:$0xff] %vm672_vm2, %v570_v58  ;;  %v445_v1 = vadd.f32 %v865_v63, %v1137_v38  ;;  %v573_v2 = vadd.f32 %v897_v0, %v1137_v38  ;;  %v436_v3 = vpop.f32.mrb[7].mxu0  ;;  %v564_v4 = vpop.f32.mrb[7].mxu1 }
  0xf5   :  { %677 = vst.msk [vmem:[%s1462_s3 + $0x20] sm:$0xff] %vm672_vm2, %v434_v61  ;;  %709 = vst.msk [vmem:[%s1462_s3 + $0x120] sm:$0xff] %vm672_vm2, %v562_v62  ;;  %v437_v5 = vadd.f32 %v1137_v38, %v436_v3  ;;  %v565_v6 = vadd.f32 %v1137_v38, %v564_v4 }
  0xf6   :  { %680 = vst.msk [vmem:[%s1462_s3 + $0x38] sm:$0xff] %vm672_vm2, %v445_v1  ;;  %712 = vst.msk [vmem:[%s1462_s3 + $0x138] sm:$0xff] %vm672_vm2, %v573_v2 }
  0xf7   :  { %678 = vst.msk [vmem:[%s1462_s3 + $0x28] sm:$0xff] %vm672_vm2, %v437_v5  ;;  %710 = vst.msk [vmem:[%s1462_s3 + $0x128] sm:$0xff] %vm672_vm2, %v565_v6 }
  0xf9   :  { %v868_v7 = vpop.f32.mrb[8].mxu0  ;;  %v900_v8 = vpop.f32.mrb[8].mxu1 }
  0xfa   :  { %v458_v9 = vadd.f32 %v868_v7, %v1137_v38  ;;  %v586_v10 = vadd.f32 %v900_v8, %v1137_v38  ;;  %v449_v11 = vpop.f32.mrb[9].mxu0  ;;  %v577_v12 = vpop.f32.mrb[9].mxu1 }
  0xfb   :  { %v450_v13 = vadd.f32 %v1137_v38, %v449_v11  ;;  %v578_v14 = vadd.f32 %v1137_v38, %v577_v12  ;;  %v869_v15 = vpop.f32.mrb[10].mxu0  ;;  %v901_v16 = vpop.f32.mrb[10].mxu1 }
  0xfc   :  { %683 = vst.msk [vmem:[%s1462_s3 + $0x50] sm:$0xff] %vm672_vm2, %v458_v9  ;;  %715 = vst.msk [vmem:[%s1462_s3 + $0x150] sm:$0xff] %vm672_vm2, %v586_v10  ;;  %v461_v17 = vadd.f32 %v869_v15, %v1137_v38  ;;  %v589_v18 = vadd.f32 %v901_v16, %v1137_v38  ;;  %v452_v19 = vpop.f32.mrb[11].mxu0  ;;  %v580_v20 = vpop.f32.mrb[11].mxu1 }
  0xfd   :  { %681 = vst.msk [vmem:[%s1462_s3 + $0x40] sm:$0xff] %vm672_vm2, %v450_v13  ;;  %713 = vst.msk [vmem:[%s1462_s3 + $0x140] sm:$0xff] %vm672_vm2, %v578_v14  ;;  %v453_v21 = vadd.f32 %v1137_v38, %v452_v19  ;;  %v581_v22 = vadd.f32 %v1137_v38, %v580_v20 }
  0xfe   :  { %684 = vst.msk [vmem:[%s1462_s3 + $0x58] sm:$0xff] %vm672_vm2, %v461_v17  ;;  %716 = vst.msk [vmem:[%s1462_s3 + $0x158] sm:$0xff] %vm672_vm2, %v589_v18 }
  0xff   :  { %682 = vst.msk [vmem:[%s1462_s3 + $0x48] sm:$0xff] %vm672_vm2, %v453_v21  ;;  %714 = vst.msk [vmem:[%s1462_s3 + $0x148] sm:$0xff] %vm672_vm2, %v581_v22 }
 0x101   :  { %v872_v23 = vpop.f32.mrb[12].mxu0  ;;  %v904_v24 = vpop.f32.mrb[12].mxu1 }
 0x102   :  { %v474_v25 = vadd.f32 %v872_v23, %v1137_v38  ;;  %v602_v26 = vadd.f32 %v904_v24, %v1137_v38  ;;  %v465_v27 = vpop.f32.mrb[13].mxu0  ;;  %v593_v28 = vpop.f32.mrb[13].mxu1 }
 0x103   :  { %v466_v29 = vadd.f32 %v1137_v38, %v465_v27  ;;  %v594_v30 = vadd.f32 %v1137_v38, %v593_v28  ;;  %v873_v31 = vpop.f32.mrb[14].mxu0  ;;  %v905_v32 = vpop.f32.mrb[14].mxu1 }
 0x104   :  { %687 = vst.msk [vmem:[%s1462_s3 + $0x70] sm:$0xff] %vm672_vm2, %v474_v25  ;;  %719 = vst.msk [vmem:[%s1462_s3 + $0x170] sm:$0xff] %vm672_vm2, %v602_v26  ;;  %v477_v33 = vadd.f32 %v873_v31, %v1137_v38  ;;  %v605_v34 = vadd.f32 %v905_v32, %v1137_v38  ;;  %v468_v35 = vpop.f32.mrb[15].mxu0  ;;  %v596_v36 = vpop.f32.mrb[15].mxu1 }
 0x105   :  { %685 = vst.msk [vmem:[%s1462_s3 + $0x60] sm:$0xff] %vm672_vm2, %v466_v29  ;;  %717 = vst.msk [vmem:[%s1462_s3 + $0x160] sm:$0xff] %vm672_vm2, %v594_v30  ;;  %v469_v37 = vadd.f32 %v1137_v38, %v468_v35  ;;  %v597_v39 = vadd.f32 %v1137_v38, %v596_v36 }
 0x106   :  { %688 = vst.msk [vmem:[%s1462_s3 + $0x78] sm:$0xff] %vm672_vm2, %v477_v33  ;;  %720 = vst.msk [vmem:[%s1462_s3 + $0x178] sm:$0xff] %vm672_vm2, %v605_v34 }
 0x107   :  { %686 = vst.msk [vmem:[%s1462_s3 + $0x68] sm:$0xff] %vm672_vm2, %v469_v37  ;;  %718 = vst.msk [vmem:[%s1462_s3 + $0x168] sm:$0xff] %vm672_vm2, %v597_v39 }
 0x109   :  { %v876_v40 = vpop.f32.mrb[16].mxu0  ;;  %v908_v41 = vpop.f32.mrb[16].mxu1 }
 0x10a   :  { %v490_v42 = vadd.f32 %v876_v40, %v1137_v38  ;;  %v618_v43 = vadd.f32 %v908_v41, %v1137_v38  ;;  %v481_v44 = vpop.f32.mrb[17].mxu0  ;;  %v609_v45 = vpop.f32.mrb[17].mxu1 }
 0x10b   :  { %v482_v46 = vadd.f32 %v1137_v38, %v481_v44  ;;  %v610_v47 = vadd.f32 %v1137_v38, %v609_v45  ;;  %v877_v48 = vpop.f32.mrb[18].mxu0  ;;  %v909_v49 = vpop.f32.mrb[18].mxu1 }
 0x10c   :  { %691 = vst.msk [vmem:[%s1462_s3 + $0x90] sm:$0xff] %vm672_vm2, %v490_v42  ;;  %723 = vst.msk [vmem:[%s1462_s3 + $0x190] sm:$0xff] %vm672_vm2, %v618_v43  ;;  %v493_v50 = vadd.f32 %v877_v48, %v1137_v38  ;;  %v621_v51 = vadd.f32 %v909_v49, %v1137_v38  ;;  %v484_v52 = vpop.f32.mrb[19].mxu0  ;;  %v612_v53 = vpop.f32.mrb[19].mxu1 }
 0x10d   :  { %689 = vst.msk [vmem:[%s1462_s3 + $0x80] sm:$0xff] %vm672_vm2, %v482_v46  ;;  %721 = vst.msk [vmem:[%s1462_s3 + $0x180] sm:$0xff] %vm672_vm2, %v610_v47  ;;  %v485_v54 = vadd.f32 %v1137_v38, %v484_v52  ;;  %v613_v55 = vadd.f32 %v1137_v38, %v612_v53 }
 0x10e   :  { %692 = vst.msk [vmem:[%s1462_s3 + $0x98] sm:$0xff] %vm672_vm2, %v493_v50  ;;  %724 = vst.msk [vmem:[%s1462_s3 + $0x198] sm:$0xff] %vm672_vm2, %v621_v51 }
 0x10f   :  { %690 = vst.msk [vmem:[%s1462_s3 + $0x88] sm:$0xff] %vm672_vm2, %v485_v54  ;;  %722 = vst.msk [vmem:[%s1462_s3 + $0x188] sm:$0xff] %vm672_vm2, %v613_v55 }
 0x111   :  { %v880_v56 = vpop.f32.mrb[20].mxu0  ;;  %v912_v57 = vpop.f32.mrb[20].mxu1 }
 0x112   :  { %v506_v58 = vadd.f32 %v880_v56, %v1137_v38  ;;  %v634_v59 = vadd.f32 %v912_v57, %v1137_v38  ;;  %v497_v60 = vpop.f32.mrb[21].mxu0  ;;  %v625_v61 = vpop.f32.mrb[21].mxu1 }
 0x113   :  { %v498_v62 = vadd.f32 %v1137_v38, %v497_v60  ;;  %v626_v63 = vadd.f32 %v1137_v38, %v625_v61  ;;  %v881_v0 = vpop.f32.mrb[22].mxu0  ;;  %v913_v1 = vpop.f32.mrb[22].mxu1 }
 0x114   :  { %695 = vst.msk [vmem:[%s1462_s3 + $0xb0] sm:$0xff] %vm672_vm2, %v506_v58  ;;  %727 = vst.msk [vmem:[%s1462_s3 + $0x1b0] sm:$0xff] %vm672_vm2, %v634_v59  ;;  %v509_v2 = vadd.f32 %v881_v0, %v1137_v38  ;;  %v637_v3 = vadd.f32 %v913_v1, %v1137_v38  ;;  %v500_v4 = vpop.f32.mrb[23].mxu0  ;;  %v628_v5 = vpop.f32.mrb[23].mxu1 }
 0x115   :  { %693 = vst.msk [vmem:[%s1462_s3 + $0xa0] sm:$0xff] %vm672_vm2, %v498_v62  ;;  %725 = vst.msk [vmem:[%s1462_s3 + $0x1a0] sm:$0xff] %vm672_vm2, %v626_v63  ;;  %v501_v6 = vadd.f32 %v1137_v38, %v500_v4  ;;  %v629_v7 = vadd.f32 %v1137_v38, %v628_v5 }
 0x116   :  { %696 = vst.msk [vmem:[%s1462_s3 + $0xb8] sm:$0xff] %vm672_vm2, %v509_v2  ;;  %728 = vst.msk [vmem:[%s1462_s3 + $0x1b8] sm:$0xff] %vm672_vm2, %v637_v3 }
 0x117   :  { %694 = vst.msk [vmem:[%s1462_s3 + $0xa8] sm:$0xff] %vm672_vm2, %v501_v6  ;;  %726 = vst.msk [vmem:[%s1462_s3 + $0x1a8] sm:$0xff] %vm672_vm2, %v629_v7 }
 0x119   :  { %v884_v8 = vpop.f32.mrb[24].mxu0  ;;  %v916_v9 = vpop.f32.mrb[24].mxu1 }
 0x11a   :  { %v522_v10 = vadd.f32 %v884_v8, %v1137_v38  ;;  %v650_v11 = vadd.f32 %v916_v9, %v1137_v38  ;;  %v513_v12 = vpop.f32.mrb[25].mxu0  ;;  %v641_v13 = vpop.f32.mrb[25].mxu1 }
 0x11b   :  { %v514_v14 = vadd.f32 %v1137_v38, %v513_v12  ;;  %v642_v15 = vadd.f32 %v1137_v38, %v641_v13  ;;  %v885_v16 = vpop.f32.mrb[26].mxu0  ;;  %v917_v17 = vpop.f32.mrb[26].mxu1 }
 0x11c   :  { %699 = vst.msk [vmem:[%s1462_s3 + $0xd0] sm:$0xff] %vm672_vm2, %v522_v10  ;;  %731 = vst.msk [vmem:[%s1462_s3 + $0x1d0] sm:$0xff] %vm672_vm2, %v650_v11  ;;  %v525_v18 = vadd.f32 %v885_v16, %v1137_v38  ;;  %v653_v19 = vadd.f32 %v917_v17, %v1137_v38  ;;  %v516_v20 = vpop.f32.mrb[27].mxu0  ;;  %v644_v21 = vpop.f32.mrb[27].mxu1 }
 0x11d   :  { %697 = vst.msk [vmem:[%s1462_s3 + $0xc0] sm:$0xff] %vm672_vm2, %v514_v14  ;;  %729 = vst.msk [vmem:[%s1462_s3 + $0x1c0] sm:$0xff] %vm672_vm2, %v642_v15  ;;  %v517_v22 = vadd.f32 %v1137_v38, %v516_v20  ;;  %v645_v23 = vadd.f32 %v1137_v38, %v644_v21 }
 0x11e   :  { %700 = vst.msk [vmem:[%s1462_s3 + $0xd8] sm:$0xff] %vm672_vm2, %v525_v18  ;;  %732 = vst.msk [vmem:[%s1462_s3 + $0x1d8] sm:$0xff] %vm672_vm2, %v653_v19 }
 0x11f   :  { %698 = vst.msk [vmem:[%s1462_s3 + $0xc8] sm:$0xff] %vm672_vm2, %v517_v22  ;;  %730 = vst.msk [vmem:[%s1462_s3 + $0x1c8] sm:$0xff] %vm672_vm2, %v645_v23 }
 0x121   :  { %v888_v24 = vpop.f32.mrb[28].mxu0  ;;  %v920_v25 = vpop.f32.mrb[28].mxu1 }
 0x122   :  { %v538_v26 = vadd.f32 %v888_v24, %v1137_v38  ;;  %v666_v27 = vadd.f32 %v920_v25, %v1137_v38  ;;  %v529_v28 = vpop.f32.mrb[29].mxu0  ;;  %v657_v29 = vpop.f32.mrb[29].mxu1 }
 0x123   :  { %v530_v30 = vadd.f32 %v1137_v38, %v529_v28  ;;  %v658_v31 = vadd.f32 %v1137_v38, %v657_v29  ;;  %v889_v32 = vpop.f32.mrb[30].mxu0  ;;  %v921_v33 = vpop.f32.mrb[30].mxu1 }
 0x124   :  { %703 = vst.msk [vmem:[%s1462_s3 + $0xf0] sm:$0xff] %vm672_vm2, %v538_v26  ;;  %735 = vst.msk [vmem:[%s1462_s3 + $0x1f0] sm:$0xff] %vm672_vm2, %v666_v27  ;;  %v541_v34 = vadd.f32 %v889_v32, %v1137_v38  ;;  %v669_v35 = vadd.f32 %v921_v33, %v1137_v38  ;;  %v532_v36 = vpop.f32.mrb[31].mxu0  ;;  %v660_v37 = vpop.f32.mrb[31].mxu1 }
 0x125   :  { %701 = vst.msk [vmem:[%s1462_s3 + $0xe0] sm:$0xff] %vm672_vm2, %v530_v30  ;;  %733 = vst.msk [vmem:[%s1462_s3 + $0x1e0] sm:$0xff] %vm672_vm2, %v658_v31  ;;  %v533_v39 = vadd.f32 %v1137_v38, %v532_v36  ;;  %v661_v40 = vadd.f32 %v1137_v38, %v660_v37 }
 0x126   :  { %704 = vst.msk [vmem:[%s1462_s3 + $0xf8] sm:$0xff] %vm672_vm2, %v541_v34  ;;  %736 = vst.msk [vmem:[%s1462_s3 + $0x1f8] sm:$0xff] %vm672_vm2, %v669_v35 }
 0x127   :  { %702 = vst.msk [vmem:[%s1462_s3 + $0xe8] sm:$0xff] %vm672_vm2, %v533_v39  ;;  %734 = vst.msk [vmem:[%s1462_s3 + $0x1e8] sm:$0xff] %vm672_vm2, %v661_v40 }

</bundles_post_ra>
